<compile_context>
chip_gen: v6e
topology: v6e:2x2x1
jax: 0.10.0
libtpu: 0.0.40
codegen_flags: <defaults>
</compile_context>

<pallas_src>
import jax
import jax.numpy as jnp
from jax import lax
from jax.experimental import pallas as pl
from jax.experimental.pallas import tpu as pltpu

LANES = 512            # lane (last-dim) width of each batch tile
STRIP = 32             # sublane rows per inner strip  (32*512*4 B = 64 KiB of x)
MAX_BLOCK_ROWS = 256   # rows per grid block: 256*512*4 B = 512 KiB (VMEM-safe on all gens)

LAYER_SIZES = ((8, 1), (4, 8), (2, 4), (1, 2))   # (out_features, in_features)
LAYER_NAMES = ("fc0", "fc1", "fc2", "fc3")

# Offsets into the flat weight / bias tables.
W0, W1, W2, W3 = 0, 8, 40, 48        # fc0:8, fc1:32, fc2:8, fc3:2  (total 50)
B0, B1, B2, B3 = 0, 8, 12, 14        # fc0:8, fc1:4,  fc2:2, fc3:1  (total 15)


def _cdiv(a, b):
    return -(-a // b)


def _sigmoid(z):
    # sigmoid(z) == 0.5 * tanh(0.5 * z) + 0.5  -- single EUP op, no divide.
    return 0.5 * jnp.tanh(0.5 * z) + 0.5


def _tree_sum(terms):
    """Balanced pairwise adds (shorter dependency chain than a left fold)."""
    terms = list(terms)
    while len(terms) > 1:
        nxt = [terms[i] + terms[i + 1] for i in range(0, len(terms) - 1, 2)]
        if len(terms) % 2:
            nxt.append(terms[-1])
        terms = nxt
    return terms[0]


def _mlp_kernel(w_ref, b_ref, x_ref, o_ref):
    """w_ref: (64,) SMEM flat weights, b_ref: (16,) SMEM flat biases.
       x_ref / o_ref: (block_rows, LANES) VMEM tiles, one batch elem per lane."""
    # Hoist all SMEM scalar loads out of the strip loop (loop-invariant).
    w = [w_ref[i] for i in range(50)]
    b = [b_ref[i] for i in range(15)]

    block_rows = x_ref.shape[0]
    n_strips = block_rows // STRIP

    def strip_body(s, carry):
        r0 = pl.multiple_of(s * STRIP, STRIP)
        x = x_ref[pl.ds(r0, STRIP), :]                       # (STRIP, LANES)

        # fc0: 1 -> 8, sigmoid  (scalar-broadcast FMA on VPU, tanh on EUP)
        h0 = [_sigmoid(w[W0 + o] * x + b[B0 + o]) for o in range(8)]

        # fc1: 8 -> 4, sigmoid
        h1 = [_sigmoid(_tree_sum(w[W1 + o * 8 + i] * h0[i] for i in range(8))
                       + b[B1 + o])
              for o in range(4)]

        # fc2: 4 -> 2, sigmoid
        h2 = [_sigmoid(_tree_sum(w[W2 + o * 4 + i] * h1[i] for i in range(4))
                       + b[B2 + o])
              for o in range(2)]

        # fc3: 2 -> 1 (no activation)
        o_ref[pl.ds(r0, STRIP), :] = w[W3] * h2[0] + w[W3 + 1] * h2[1] + b[B3]
        return carry

    lax.fori_loop(0, n_strips, strip_body, 0, unroll=True)


def _stack_params(params):
    """Pack the 4 layers into flat (64,) weight and (16,) bias f32 tables."""
    w_parts, b_parts = [], []
    for name in LAYER_NAMES:
        wt, bi = params[name]                    # wt: (out, in), bi: (out,)
        w_parts.append(wt.astype(jnp.float32).reshape(-1))
        b_parts.append(bi.astype(jnp.float32).reshape(-1))
    w_flat = jnp.concatenate(w_parts)            # (50,)
    b_flat = jnp.concatenate(b_parts)            # (15,)
    w_flat = jnp.pad(w_flat, (0, 64 - w_flat.shape[0]))
    b_flat = jnp.pad(b_flat, (0, 16 - b_flat.shape[0]))
    return w_flat, b_flat


@jax.jit
def mlp_forward(x, params):
    """x: (B, 1) float32.  params: dict name -> (w (out,in), b (out,)) PyTorch layout."""
    B = x.shape[0]

    # --- choose block / grid sizes (all static: derived from x.shape) -------
    rows_needed = max(1, _cdiv(B, LANES))
    total_strips = _cdiv(rows_needed, STRIP)
    # Keep >=2 grid steps when the batch allows (v7x megacore), cap block at 512 KiB.
    block_strips = min(MAX_BLOCK_ROWS // STRIP, max(1, total_strips // 2))
    grid_steps = _cdiv(total_strips, block_strips)
    total_strips = grid_steps * block_strips
    rows = total_strips * STRIP
    block_rows = block_strips * STRIP
    n_pad = rows * LANES

    # Tail-only pad (no full zeros-buffer + dynamic-update-slice copy).
    x_flat = jnp.pad(x.reshape(-1).astype(jnp.float32), (0, n_pad - B))
    x2d = x_flat.reshape(rows, LANES)

    w_flat, b_flat = _stack_params(params)

    tile = pl.BlockSpec((block_rows, LANES), lambda i: (i, 0))
    out = pl.pallas_call(
        _mlp_kernel,
        out_shape=jax.ShapeDtypeStruct((rows, LANES), jnp.float32),
        grid=(grid_steps,),
        in_specs=[
            pl.BlockSpec(memory_space=pltpu.MemorySpace.SMEM),   # flat weights (resident)
            pl.BlockSpec(memory_space=pltpu.MemorySpace.SMEM),   # flat biases  (resident)
            tile,                                                # x tile
        ],
        out_specs=tile,
        compiler_params=pltpu.CompilerParams(
            dimension_semantics=("parallel",)),                  # megacore on v7x
    )(w_flat, b_flat, x2d)

    return out.reshape(-1)[:B].reshape(B, 1)


def init_params(key):
    """Deterministic parameter init (shapes from the PyTorch module __init__)."""
    params = {}
    for name, (out_f, in_f) in zip(LAYER_NAMES, LAYER_SIZES):
        key, kw, kb = jax.random.split(key, 3)
        bound = 1.0 / jnp.sqrt(in_f)
        w = jax.random.uniform(kw, (out_f, in_f), jnp.float32, -bound, bound)
        b = jax.random.uniform(kb, (out_f,), jnp.float32, -bound, bound)
        params[name] = (w, b)
    return params


def reference_forward(x, params):
    h = x.astype(jnp.float32)
    for i, name in enumerate(LAYER_NAMES):
        w, b = params[name]
        h = h @ w.T + b
        if i < 3:
            h = jax.nn.sigmoid(h)
    return h


if __name__ == "__main__":
    key_p, key_x = jax.random.split(jax.random.PRNGKey(0))
    params = init_params(key_p)

    # Module forward operates on a last-dim-1 tensor; use a small batch of them.
    x = jax.random.uniform(key_x, (2, 1), jnp.float32)
    y = mlp_forward(x, params)
    jax.block_until_ready(y)

    y_ref = reference_forward(x, params)
    assert y.shape == (2, 1)
    assert jnp.allclose(y, y_ref, atol=1e-5, rtol=1e-5), (y, y_ref)

    # Also exercise a multi-step grid + multi-strip block with a ragged tail.
    xb = jax.random.uniform(jax.random.PRNGKey(2), (3 * STRIP * LANES + 17, 1),
                            jnp.float32)
    yb = mlp_forward(xb, params)
    jax.block_until_ready(yb)
    yb_ref = reference_forward(xb, params)
    assert jnp.allclose(yb, yb_ref, atol=1e-5, rtol=1e-5)

    print("KERNEL_OK")
</pallas_src>

<mosaic_0001>
module attributes {stable_mosaic.version = 11 : i64} {
  func.func @_mlp_kernel(%arg0: i32, %arg1: memref<64xf32, #tpu.memory_space<smem>>, %arg2: memref<16xf32, #tpu.memory_space<smem>>, %arg3: memref<32x512xf32, #tpu.memory_space<vmem>>, %arg4: memref<32x512xf32, #tpu.memory_space<vmem>>) attributes {dimension_semantics = [#tpu.dimension_semantics<parallel>], iteration_bounds = array<i64: 1>, scalar_prefetch = 0 : i64, scratch_operands = 0 : i64, tpu.core_type = #tpu.core_type<tc>, window_params = [{transform_indices = @transform_0, window_bounds = array<i64: 64>}, {transform_indices = @transform_1, window_bounds = array<i64: 16>}, {transform_indices = @transform_2, window_bounds = array<i64: 32, 512>}, {transform_indices = @transform_3, window_bounds = array<i64: 32, 512>}]} {
    %c0 = arith.constant 0 : index
    %0 = memref.load %arg1[%c0] : memref<64xf32, #tpu.memory_space<smem>>
    %c1 = arith.constant 1 : index
    %1 = memref.load %arg1[%c1] : memref<64xf32, #tpu.memory_space<smem>>
    %c2 = arith.constant 2 : index
    %2 = memref.load %arg1[%c2] : memref<64xf32, #tpu.memory_space<smem>>
    %c3 = arith.constant 3 : index
    %3 = memref.load %arg1[%c3] : memref<64xf32, #tpu.memory_space<smem>>
    %c4 = arith.constant 4 : index
    %4 = memref.load %arg1[%c4] : memref<64xf32, #tpu.memory_space<smem>>
    %c5 = arith.constant 5 : index
    %5 = memref.load %arg1[%c5] : memref<64xf32, #tpu.memory_space<smem>>
    %c6 = arith.constant 6 : index
    %6 = memref.load %arg1[%c6] : memref<64xf32, #tpu.memory_space<smem>>
    %c7 = arith.constant 7 : index
    %7 = memref.load %arg1[%c7] : memref<64xf32, #tpu.memory_space<smem>>
    %c8 = arith.constant 8 : index
    %8 = memref.load %arg1[%c8] : memref<64xf32, #tpu.memory_space<smem>>
    %c9 = arith.constant 9 : index
    %9 = memref.load %arg1[%c9] : memref<64xf32, #tpu.memory_space<smem>>
    %c10 = arith.constant 10 : index
    %10 = memref.load %arg1[%c10] : memref<64xf32, #tpu.memory_space<smem>>
    %c11 = arith.constant 11 : index
    %11 = memref.load %arg1[%c11] : memref<64xf32, #tpu.memory_space<smem>>
    %c12 = arith.constant 12 : index
    %12 = memref.load %arg1[%c12] : memref<64xf32, #tpu.memory_space<smem>>
    %c13 = arith.constant 13 : index
    %13 = memref.load %arg1[%c13] : memref<64xf32, #tpu.memory_space<smem>>
    %c14 = arith.constant 14 : index
    %14 = memref.load %arg1[%c14] : memref<64xf32, #tpu.memory_space<smem>>
    %c15 = arith.constant 15 : index
    %15 = memref.load %arg1[%c15] : memref<64xf32, #tpu.memory_space<smem>>
    %c16 = arith.constant 16 : index
    %16 = memref.load %arg1[%c16] : memref<64xf32, #tpu.memory_space<smem>>
    %c17 = arith.constant 17 : index
    %17 = memref.load %arg1[%c17] : memref<64xf32, #tpu.memory_space<smem>>
    %c18 = arith.constant 18 : index
    %18 = memref.load %arg1[%c18] : memref<64xf32, #tpu.memory_space<smem>>
    %c19 = arith.constant 19 : index
    %19 = memref.load %arg1[%c19] : memref<64xf32, #tpu.memory_space<smem>>
    %c20 = arith.constant 20 : index
    %20 = memref.load %arg1[%c20] : memref<64xf32, #tpu.memory_space<smem>>
    %c21 = arith.constant 21 : index
    %21 = memref.load %arg1[%c21] : memref<64xf32, #tpu.memory_space<smem>>
    %c22 = arith.constant 22 : index
    %22 = memref.load %arg1[%c22] : memref<64xf32, #tpu.memory_space<smem>>
    %c23 = arith.constant 23 : index
    %23 = memref.load %arg1[%c23] : memref<64xf32, #tpu.memory_space<smem>>
    %c24 = arith.constant 24 : index
    %24 = memref.load %arg1[%c24] : memref<64xf32, #tpu.memory_space<smem>>
    %c25 = arith.constant 25 : index
    %25 = memref.load %arg1[%c25] : memref<64xf32, #tpu.memory_space<smem>>
    %c26 = arith.constant 26 : index
    %26 = memref.load %arg1[%c26] : memref<64xf32, #tpu.memory_space<smem>>
    %c27 = arith.constant 27 : index
    %27 = memref.load %arg1[%c27] : memref<64xf32, #tpu.memory_space<smem>>
    %c28 = arith.constant 28 : index
    %28 = memref.load %arg1[%c28] : memref<64xf32, #tpu.memory_space<smem>>
    %c29 = arith.constant 29 : index
    %29 = memref.load %arg1[%c29] : memref<64xf32, #tpu.memory_space<smem>>
    %c30 = arith.constant 30 : index
    %30 = memref.load %arg1[%c30] : memref<64xf32, #tpu.memory_space<smem>>
    %c31 = arith.constant 31 : index
    %31 = memref.load %arg1[%c31] : memref<64xf32, #tpu.memory_space<smem>>
    %c32 = arith.constant 32 : index
    %32 = memref.load %arg1[%c32] : memref<64xf32, #tpu.memory_space<smem>>
    %c33 = arith.constant 33 : index
    %33 = memref.load %arg1[%c33] : memref<64xf32, #tpu.memory_space<smem>>
    %c34 = arith.constant 34 : index
    %34 = memref.load %arg1[%c34] : memref<64xf32, #tpu.memory_space<smem>>
    %c35 = arith.constant 35 : index
    %35 = memref.load %arg1[%c35] : memref<64xf32, #tpu.memory_space<smem>>
    %c36 = arith.constant 36 : index
    %36 = memref.load %arg1[%c36] : memref<64xf32, #tpu.memory_space<smem>>
    %c37 = arith.constant 37 : index
    %37 = memref.load %arg1[%c37] : memref<64xf32, #tpu.memory_space<smem>>
    %c38 = arith.constant 38 : index
    %38 = memref.load %arg1[%c38] : memref<64xf32, #tpu.memory_space<smem>>
    %c39 = arith.constant 39 : index
    %39 = memref.load %arg1[%c39] : memref<64xf32, #tpu.memory_space<smem>>
    %c40 = arith.constant 40 : index
    %40 = memref.load %arg1[%c40] : memref<64xf32, #tpu.memory_space<smem>>
    %c41 = arith.constant 41 : index
    %41 = memref.load %arg1[%c41] : memref<64xf32, #tpu.memory_space<smem>>
    %c42 = arith.constant 42 : index
    %42 = memref.load %arg1[%c42] : memref<64xf32, #tpu.memory_space<smem>>
    %c43 = arith.constant 43 : index
    %43 = memref.load %arg1[%c43] : memref<64xf32, #tpu.memory_space<smem>>
    %c44 = arith.constant 44 : index
    %44 = memref.load %arg1[%c44] : memref<64xf32, #tpu.memory_space<smem>>
    %c45 = arith.constant 45 : index
    %45 = memref.load %arg1[%c45] : memref<64xf32, #tpu.memory_space<smem>>
    %c46 = arith.constant 46 : index
    %46 = memref.load %arg1[%c46] : memref<64xf32, #tpu.memory_space<smem>>
    %c47 = arith.constant 47 : index
    %47 = memref.load %arg1[%c47] : memref<64xf32, #tpu.memory_space<smem>>
    %c48 = arith.constant 48 : index
    %48 = memref.load %arg1[%c48] : memref<64xf32, #tpu.memory_space<smem>>
    %c49 = arith.constant 49 : index
    %49 = memref.load %arg1[%c49] : memref<64xf32, #tpu.memory_space<smem>>
    %c0_0 = arith.constant 0 : index
    %50 = memref.load %arg2[%c0_0] : memref<16xf32, #tpu.memory_space<smem>>
    %c1_1 = arith.constant 1 : index
    %51 = memref.load %arg2[%c1_1] : memref<16xf32, #tpu.memory_space<smem>>
    %c2_2 = arith.constant 2 : index
    %52 = memref.load %arg2[%c2_2] : memref<16xf32, #tpu.memory_space<smem>>
    %c3_3 = arith.constant 3 : index
    %53 = memref.load %arg2[%c3_3] : memref<16xf32, #tpu.memory_space<smem>>
    %c4_4 = arith.constant 4 : index
    %54 = memref.load %arg2[%c4_4] : memref<16xf32, #tpu.memory_space<smem>>
    %c5_5 = arith.constant 5 : index
    %55 = memref.load %arg2[%c5_5] : memref<16xf32, #tpu.memory_space<smem>>
    %c6_6 = arith.constant 6 : index
    %56 = memref.load %arg2[%c6_6] : memref<16xf32, #tpu.memory_space<smem>>
    %c7_7 = arith.constant 7 : index
    %57 = memref.load %arg2[%c7_7] : memref<16xf32, #tpu.memory_space<smem>>
    %c8_8 = arith.constant 8 : index
    %58 = memref.load %arg2[%c8_8] : memref<16xf32, #tpu.memory_space<smem>>
    %c9_9 = arith.constant 9 : index
    %59 = memref.load %arg2[%c9_9] : memref<16xf32, #tpu.memory_space<smem>>
    %c10_10 = arith.constant 10 : index
    %60 = memref.load %arg2[%c10_10] : memref<16xf32, #tpu.memory_space<smem>>
    %c11_11 = arith.constant 11 : index
    %61 = memref.load %arg2[%c11_11] : memref<16xf32, #tpu.memory_space<smem>>
    %c12_12 = arith.constant 12 : index
    %62 = memref.load %arg2[%c12_12] : memref<16xf32, #tpu.memory_space<smem>>
    %c13_13 = arith.constant 13 : index
    %63 = memref.load %arg2[%c13_13] : memref<16xf32, #tpu.memory_space<smem>>
    %c14_14 = arith.constant 14 : index
    %64 = memref.load %arg2[%c14_14] : memref<16xf32, #tpu.memory_space<smem>>
    %c0_i32 = arith.constant 0 : i32
    %c32_i32 = arith.constant 32 : i32
    %65 = arith.muli %c0_i32, %c32_i32 : i32
    %66 = tpu.assume_multiple %65, 32 : i32
    %67 = arith.index_cast %66 : i32 to index
    %c0_15 = arith.constant 0 : index
    %68 = vector.load %arg3[%67, %c0_15] : memref<32x512xf32, #tpu.memory_space<vmem>>, vector<32x512xf32>
    %69 = vector.broadcast %0 : f32 to vector<32x512xf32>
    %70 = arith.mulf %69, %68 : vector<32x512xf32>
    %71 = vector.broadcast %50 : f32 to vector<32x512xf32>
    %72 = arith.addf %70, %71 : vector<32x512xf32>
    %cst = arith.constant 5.000000e-01 : f32
    %73 = vector.broadcast %cst : f32 to vector<32x512xf32>
    %74 = arith.mulf %73, %72 : vector<32x512xf32>
    %75 = math.tanh %74 : vector<32x512xf32>
    %cst_16 = arith.constant 5.000000e-01 : f32
    %76 = vector.broadcast %cst_16 : f32 to vector<32x512xf32>
    %77 = arith.mulf %76, %75 : vector<32x512xf32>
    %cst_17 = arith.constant 5.000000e-01 : f32
    %78 = vector.broadcast %cst_17 : f32 to vector<32x512xf32>
    %79 = arith.addf %77, %78 : vector<32x512xf32>
    %80 = vector.broadcast %1 : f32 to vector<32x512xf32>
    %81 = arith.mulf %80, %68 : vector<32x512xf32>
    %82 = vector.broadcast %51 : f32 to vector<32x512xf32>
    %83 = arith.addf %81, %82 : vector<32x512xf32>
    %cst_18 = arith.constant 5.000000e-01 : f32
    %84 = vector.broadcast %cst_18 : f32 to vector<32x512xf32>
    %85 = arith.mulf %84, %83 : vector<32x512xf32>
    %86 = math.tanh %85 : vector<32x512xf32>
    %cst_19 = arith.constant 5.000000e-01 : f32
    %87 = vector.broadcast %cst_19 : f32 to vector<32x512xf32>
    %88 = arith.mulf %87, %86 : vector<32x512xf32>
    %cst_20 = arith.constant 5.000000e-01 : f32
    %89 = vector.broadcast %cst_20 : f32 to vector<32x512xf32>
    %90 = arith.addf %88, %89 : vector<32x512xf32>
    %91 = vector.broadcast %2 : f32 to vector<32x512xf32>
    %92 = arith.mulf %91, %68 : vector<32x512xf32>
    %93 = vector.broadcast %52 : f32 to vector<32x512xf32>
    %94 = arith.addf %92, %93 : vector<32x512xf32>
    %cst_21 = arith.constant 5.000000e-01 : f32
    %95 = vector.broadcast %cst_21 : f32 to vector<32x512xf32>
    %96 = arith.mulf %95, %94 : vector<32x512xf32>
    %97 = math.tanh %96 : vector<32x512xf32>
    %cst_22 = arith.constant 5.000000e-01 : f32
    %98 = vector.broadcast %cst_22 : f32 to vector<32x512xf32>
    %99 = arith.mulf %98, %97 : vector<32x512xf32>
    %cst_23 = arith.constant 5.000000e-01 : f32
    %100 = vector.broadcast %cst_23 : f32 to vector<32x512xf32>
    %101 = arith.addf %99, %100 : vector<32x512xf32>
    %102 = vector.broadcast %3 : f32 to vector<32x512xf32>
    %103 = arith.mulf %102, %68 : vector<32x512xf32>
    %104 = vector.broadcast %53 : f32 to vector<32x512xf32>
    %105 = arith.addf %103, %104 : vector<32x512xf32>
    %cst_24 = arith.constant 5.000000e-01 : f32
    %106 = vector.broadcast %cst_24 : f32 to vector<32x512xf32>
    %107 = arith.mulf %106, %105 : vector<32x512xf32>
    %108 = math.tanh %107 : vector<32x512xf32>
    %cst_25 = arith.constant 5.000000e-01 : f32
    %109 = vector.broadcast %cst_25 : f32 to vector<32x512xf32>
    %110 = arith.mulf %109, %108 : vector<32x512xf32>
    %cst_26 = arith.constant 5.000000e-01 : f32
    %111 = vector.broadcast %cst_26 : f32 to vector<32x512xf32>
    %112 = arith.addf %110, %111 : vector<32x512xf32>
    %113 = vector.broadcast %4 : f32 to vector<32x512xf32>
    %114 = arith.mulf %113, %68 : vector<32x512xf32>
    %115 = vector.broadcast %54 : f32 to vector<32x512xf32>
    %116 = arith.addf %114, %115 : vector<32x512xf32>
    %cst_27 = arith.constant 5.000000e-01 : f32
    %117 = vector.broadcast %cst_27 : f32 to vector<32x512xf32>
    %118 = arith.mulf %117, %116 : vector<32x512xf32>
    %119 = math.tanh %118 : vector<32x512xf32>
    %cst_28 = arith.constant 5.000000e-01 : f32
    %120 = vector.broadcast %cst_28 : f32 to vector<32x512xf32>
    %121 = arith.mulf %120, %119 : vector<32x512xf32>
    %cst_29 = arith.constant 5.000000e-01 : f32
    %122 = vector.broadcast %cst_29 : f32 to vector<32x512xf32>
    %123 = arith.addf %121, %122 : vector<32x512xf32>
    %124 = vector.broadcast %5 : f32 to vector<32x512xf32>
    %125 = arith.mulf %124, %68 : vector<32x512xf32>
    %126 = vector.broadcast %55 : f32 to vector<32x512xf32>
    %127 = arith.addf %125, %126 : vector<32x512xf32>
    %cst_30 = arith.constant 5.000000e-01 : f32
    %128 = vector.broadcast %cst_30 : f32 to vector<32x512xf32>
    %129 = arith.mulf %128, %127 : vector<32x512xf32>
    %130 = math.tanh %129 : vector<32x512xf32>
    %cst_31 = arith.constant 5.000000e-01 : f32
    %131 = vector.broadcast %cst_31 : f32 to vector<32x512xf32>
    %132 = arith.mulf %131, %130 : vector<32x512xf32>
    %cst_32 = arith.constant 5.000000e-01 : f32
    %133 = vector.broadcast %cst_32 : f32 to vector<32x512xf32>
    %134 = arith.addf %132, %133 : vector<32x512xf32>
    %135 = vector.broadcast %6 : f32 to vector<32x512xf32>
    %136 = arith.mulf %135, %68 : vector<32x512xf32>
    %137 = vector.broadcast %56 : f32 to vector<32x512xf32>
    %138 = arith.addf %136, %137 : vector<32x512xf32>
    %cst_33 = arith.constant 5.000000e-01 : f32
    %139 = vector.broadcast %cst_33 : f32 to vector<32x512xf32>
    %140 = arith.mulf %139, %138 : vector<32x512xf32>
    %141 = math.tanh %140 : vector<32x512xf32>
    %cst_34 = arith.constant 5.000000e-01 : f32
    %142 = vector.broadcast %cst_34 : f32 to vector<32x512xf32>
    %143 = arith.mulf %142, %141 : vector<32x512xf32>
    %cst_35 = arith.constant 5.000000e-01 : f32
    %144 = vector.broadcast %cst_35 : f32 to vector<32x512xf32>
    %145 = arith.addf %143, %144 : vector<32x512xf32>
    %146 = vector.broadcast %7 : f32 to vector<32x512xf32>
    %147 = arith.mulf %146, %68 : vector<32x512xf32>
    %148 = vector.broadcast %57 : f32 to vector<32x512xf32>
    %149 = arith.addf %147, %148 : vector<32x512xf32>
    %cst_36 = arith.constant 5.000000e-01 : f32
    %150 = vector.broadcast %cst_36 : f32 to vector<32x512xf32>
    %151 = arith.mulf %150, %149 : vector<32x512xf32>
    %152 = math.tanh %151 : vector<32x512xf32>
    %cst_37 = arith.constant 5.000000e-01 : f32
    %153 = vector.broadcast %cst_37 : f32 to vector<32x512xf32>
    %154 = arith.mulf %153, %152 : vector<32x512xf32>
    %cst_38 = arith.constant 5.000000e-01 : f32
    %155 = vector.broadcast %cst_38 : f32 to vector<32x512xf32>
    %156 = arith.addf %154, %155 : vector<32x512xf32>
    %157 = vector.broadcast %8 : f32 to vector<32x512xf32>
    %158 = arith.mulf %157, %79 : vector<32x512xf32>
    %159 = vector.broadcast %9 : f32 to vector<32x512xf32>
    %160 = arith.mulf %159, %90 : vector<32x512xf32>
    %161 = vector.broadcast %10 : f32 to vector<32x512xf32>
    %162 = arith.mulf %161, %101 : vector<32x512xf32>
    %163 = vector.broadcast %11 : f32 to vector<32x512xf32>
    %164 = arith.mulf %163, %112 : vector<32x512xf32>
    %165 = vector.broadcast %12 : f32 to vector<32x512xf32>
    %166 = arith.mulf %165, %123 : vector<32x512xf32>
    %167 = vector.broadcast %13 : f32 to vector<32x512xf32>
    %168 = arith.mulf %167, %134 : vector<32x512xf32>
    %169 = vector.broadcast %14 : f32 to vector<32x512xf32>
    %170 = arith.mulf %169, %145 : vector<32x512xf32>
    %171 = vector.broadcast %15 : f32 to vector<32x512xf32>
    %172 = arith.mulf %171, %156 : vector<32x512xf32>
    %173 = arith.addf %158, %160 : vector<32x512xf32>
    %174 = arith.addf %162, %164 : vector<32x512xf32>
    %175 = arith.addf %166, %168 : vector<32x512xf32>
    %176 = arith.addf %170, %172 : vector<32x512xf32>
    %177 = arith.addf %173, %174 : vector<32x512xf32>
    %178 = arith.addf %175, %176 : vector<32x512xf32>
    %179 = arith.addf %177, %178 : vector<32x512xf32>
    %180 = vector.broadcast %58 : f32 to vector<32x512xf32>
    %181 = arith.addf %179, %180 : vector<32x512xf32>
    %cst_39 = arith.constant 5.000000e-01 : f32
    %182 = vector.broadcast %cst_39 : f32 to vector<32x512xf32>
    %183 = arith.mulf %182, %181 : vector<32x512xf32>
    %184 = math.tanh %183 : vector<32x512xf32>
    %cst_40 = arith.constant 5.000000e-01 : f32
    %185 = vector.broadcast %cst_40 : f32 to vector<32x512xf32>
    %186 = arith.mulf %185, %184 : vector<32x512xf32>
    %cst_41 = arith.constant 5.000000e-01 : f32
    %187 = vector.broadcast %cst_41 : f32 to vector<32x512xf32>
    %188 = arith.addf %186, %187 : vector<32x512xf32>
    %189 = vector.broadcast %16 : f32 to vector<32x512xf32>
    %190 = arith.mulf %189, %79 : vector<32x512xf32>
    %191 = vector.broadcast %17 : f32 to vector<32x512xf32>
    %192 = arith.mulf %191, %90 : vector<32x512xf32>
    %193 = vector.broadcast %18 : f32 to vector<32x512xf32>
    %194 = arith.mulf %193, %101 : vector<32x512xf32>
    %195 = vector.broadcast %19 : f32 to vector<32x512xf32>
    %196 = arith.mulf %195, %112 : vector<32x512xf32>
    %197 = vector.broadcast %20 : f32 to vector<32x512xf32>
    %198 = arith.mulf %197, %123 : vector<32x512xf32>
    %199 = vector.broadcast %21 : f32 to vector<32x512xf32>
    %200 = arith.mulf %199, %134 : vector<32x512xf32>
    %201 = vector.broadcast %22 : f32 to vector<32x512xf32>
    %202 = arith.mulf %201, %145 : vector<32x512xf32>
    %203 = vector.broadcast %23 : f32 to vector<32x512xf32>
    %204 = arith.mulf %203, %156 : vector<32x512xf32>
    %205 = arith.addf %190, %192 : vector<32x512xf32>
    %206 = arith.addf %194, %196 : vector<32x512xf32>
    %207 = arith.addf %198, %200 : vector<32x512xf32>
    %208 = arith.addf %202, %204 : vector<32x512xf32>
    %209 = arith.addf %205, %206 : vector<32x512xf32>
    %210 = arith.addf %207, %208 : vector<32x512xf32>
    %211 = arith.addf %209, %210 : vector<32x512xf32>
    %212 = vector.broadcast %59 : f32 to vector<32x512xf32>
    %213 = arith.addf %211, %212 : vector<32x512xf32>
    %cst_42 = arith.constant 5.000000e-01 : f32
    %214 = vector.broadcast %cst_42 : f32 to vector<32x512xf32>
    %215 = arith.mulf %214, %213 : vector<32x512xf32>
    %216 = math.tanh %215 : vector<32x512xf32>
    %cst_43 = arith.constant 5.000000e-01 : f32
    %217 = vector.broadcast %cst_43 : f32 to vector<32x512xf32>
    %218 = arith.mulf %217, %216 : vector<32x512xf32>
    %cst_44 = arith.constant 5.000000e-01 : f32
    %219 = vector.broadcast %cst_44 : f32 to vector<32x512xf32>
    %220 = arith.addf %218, %219 : vector<32x512xf32>
    %221 = vector.broadcast %24 : f32 to vector<32x512xf32>
    %222 = arith.mulf %221, %79 : vector<32x512xf32>
    %223 = vector.broadcast %25 : f32 to vector<32x512xf32>
    %224 = arith.mulf %223, %90 : vector<32x512xf32>
    %225 = vector.broadcast %26 : f32 to vector<32x512xf32>
    %226 = arith.mulf %225, %101 : vector<32x512xf32>
    %227 = vector.broadcast %27 : f32 to vector<32x512xf32>
    %228 = arith.mulf %227, %112 : vector<32x512xf32>
    %229 = vector.broadcast %28 : f32 to vector<32x512xf32>
    %230 = arith.mulf %229, %123 : vector<32x512xf32>
    %231 = vector.broadcast %29 : f32 to vector<32x512xf32>
    %232 = arith.mulf %231, %134 : vector<32x512xf32>
    %233 = vector.broadcast %30 : f32 to vector<32x512xf32>
    %234 = arith.mulf %233, %145 : vector<32x512xf32>
    %235 = vector.broadcast %31 : f32 to vector<32x512xf32>
    %236 = arith.mulf %235, %156 : vector<32x512xf32>
    %237 = arith.addf %222, %224 : vector<32x512xf32>
    %238 = arith.addf %226, %228 : vector<32x512xf32>
    %239 = arith.addf %230, %232 : vector<32x512xf32>
    %240 = arith.addf %234, %236 : vector<32x512xf32>
    %241 = arith.addf %237, %238 : vector<32x512xf32>
    %242 = arith.addf %239, %240 : vector<32x512xf32>
    %243 = arith.addf %241, %242 : vector<32x512xf32>
    %244 = vector.broadcast %60 : f32 to vector<32x512xf32>
    %245 = arith.addf %243, %244 : vector<32x512xf32>
    %cst_45 = arith.constant 5.000000e-01 : f32
    %246 = vector.broadcast %cst_45 : f32 to vector<32x512xf32>
    %247 = arith.mulf %246, %245 : vector<32x512xf32>
    %248 = math.tanh %247 : vector<32x512xf32>
    %cst_46 = arith.constant 5.000000e-01 : f32
    %249 = vector.broadcast %cst_46 : f32 to vector<32x512xf32>
    %250 = arith.mulf %249, %248 : vector<32x512xf32>
    %cst_47 = arith.constant 5.000000e-01 : f32
    %251 = vector.broadcast %cst_47 : f32 to vector<32x512xf32>
    %252 = arith.addf %250, %251 : vector<32x512xf32>
    %253 = vector.broadcast %32 : f32 to vector<32x512xf32>
    %254 = arith.mulf %253, %79 : vector<32x512xf32>
    %255 = vector.broadcast %33 : f32 to vector<32x512xf32>
    %256 = arith.mulf %255, %90 : vector<32x512xf32>
    %257 = vector.broadcast %34 : f32 to vector<32x512xf32>
    %258 = arith.mulf %257, %101 : vector<32x512xf32>
    %259 = vector.broadcast %35 : f32 to vector<32x512xf32>
    %260 = arith.mulf %259, %112 : vector<32x512xf32>
    %261 = vector.broadcast %36 : f32 to vector<32x512xf32>
    %262 = arith.mulf %261, %123 : vector<32x512xf32>
    %263 = vector.broadcast %37 : f32 to vector<32x512xf32>
    %264 = arith.mulf %263, %134 : vector<32x512xf32>
    %265 = vector.broadcast %38 : f32 to vector<32x512xf32>
    %266 = arith.mulf %265, %145 : vector<32x512xf32>
    %267 = vector.broadcast %39 : f32 to vector<32x512xf32>
    %268 = arith.mulf %267, %156 : vector<32x512xf32>
    %269 = arith.addf %254, %256 : vector<32x512xf32>
    %270 = arith.addf %258, %260 : vector<32x512xf32>
    %271 = arith.addf %262, %264 : vector<32x512xf32>
    %272 = arith.addf %266, %268 : vector<32x512xf32>
    %273 = arith.addf %269, %270 : vector<32x512xf32>
    %274 = arith.addf %271, %272 : vector<32x512xf32>
    %275 = arith.addf %273, %274 : vector<32x512xf32>
    %276 = vector.broadcast %61 : f32 to vector<32x512xf32>
    %277 = arith.addf %275, %276 : vector<32x512xf32>
    %cst_48 = arith.constant 5.000000e-01 : f32
    %278 = vector.broadcast %cst_48 : f32 to vector<32x512xf32>
    %279 = arith.mulf %278, %277 : vector<32x512xf32>
    %280 = math.tanh %279 : vector<32x512xf32>
    %cst_49 = arith.constant 5.000000e-01 : f32
    %281 = vector.broadcast %cst_49 : f32 to vector<32x512xf32>
    %282 = arith.mulf %281, %280 : vector<32x512xf32>
    %cst_50 = arith.constant 5.000000e-01 : f32
    %283 = vector.broadcast %cst_50 : f32 to vector<32x512xf32>
    %284 = arith.addf %282, %283 : vector<32x512xf32>
    %285 = vector.broadcast %40 : f32 to vector<32x512xf32>
    %286 = arith.mulf %285, %188 : vector<32x512xf32>
    %287 = vector.broadcast %41 : f32 to vector<32x512xf32>
    %288 = arith.mulf %287, %220 : vector<32x512xf32>
    %289 = vector.broadcast %42 : f32 to vector<32x512xf32>
    %290 = arith.mulf %289, %252 : vector<32x512xf32>
    %291 = vector.broadcast %43 : f32 to vector<32x512xf32>
    %292 = arith.mulf %291, %284 : vector<32x512xf32>
    %293 = arith.addf %286, %288 : vector<32x512xf32>
    %294 = arith.addf %290, %292 : vector<32x512xf32>
    %295 = arith.addf %293, %294 : vector<32x512xf32>
    %296 = vector.broadcast %62 : f32 to vector<32x512xf32>
    %297 = arith.addf %295, %296 : vector<32x512xf32>
    %cst_51 = arith.constant 5.000000e-01 : f32
    %298 = vector.broadcast %cst_51 : f32 to vector<32x512xf32>
    %299 = arith.mulf %298, %297 : vector<32x512xf32>
    %300 = math.tanh %299 : vector<32x512xf32>
    %cst_52 = arith.constant 5.000000e-01 : f32
    %301 = vector.broadcast %cst_52 : f32 to vector<32x512xf32>
    %302 = arith.mulf %301, %300 : vector<32x512xf32>
    %cst_53 = arith.constant 5.000000e-01 : f32
    %303 = vector.broadcast %cst_53 : f32 to vector<32x512xf32>
    %304 = arith.addf %302, %303 : vector<32x512xf32>
    %305 = vector.broadcast %44 : f32 to vector<32x512xf32>
    %306 = arith.mulf %305, %188 : vector<32x512xf32>
    %307 = vector.broadcast %45 : f32 to vector<32x512xf32>
    %308 = arith.mulf %307, %220 : vector<32x512xf32>
    %309 = vector.broadcast %46 : f32 to vector<32x512xf32>
    %310 = arith.mulf %309, %252 : vector<32x512xf32>
    %311 = vector.broadcast %47 : f32 to vector<32x512xf32>
    %312 = arith.mulf %311, %284 : vector<32x512xf32>
    %313 = arith.addf %306, %308 : vector<32x512xf32>
    %314 = arith.addf %310, %312 : vector<32x512xf32>
    %315 = arith.addf %313, %314 : vector<32x512xf32>
    %316 = vector.broadcast %63 : f32 to vector<32x512xf32>
    %317 = arith.addf %315, %316 : vector<32x512xf32>
    %cst_54 = arith.constant 5.000000e-01 : f32
    %318 = vector.broadcast %cst_54 : f32 to vector<32x512xf32>
    %319 = arith.mulf %318, %317 : vector<32x512xf32>
    %320 = math.tanh %319 : vector<32x512xf32>
    %cst_55 = arith.constant 5.000000e-01 : f32
    %321 = vector.broadcast %cst_55 : f32 to vector<32x512xf32>
    %322 = arith.mulf %321, %320 : vector<32x512xf32>
    %cst_56 = arith.constant 5.000000e-01 : f32
    %323 = vector.broadcast %cst_56 : f32 to vector<32x512xf32>
    %324 = arith.addf %322, %323 : vector<32x512xf32>
    %325 = vector.broadcast %48 : f32 to vector<32x512xf32>
    %326 = arith.mulf %325, %304 : vector<32x512xf32>
    %327 = vector.broadcast %49 : f32 to vector<32x512xf32>
    %328 = arith.mulf %327, %324 : vector<32x512xf32>
    %329 = arith.addf %326, %328 : vector<32x512xf32>
    %330 = vector.broadcast %64 : f32 to vector<32x512xf32>
    %331 = arith.addf %329, %330 : vector<32x512xf32>
    %332 = arith.index_cast %66 : i32 to index
    %c0_57 = arith.constant 0 : index
    %333 = vector.load %arg4[%332, %c0_57] : memref<32x512xf32, #tpu.memory_space<vmem>>, vector<32x512xf32>
    tpu.vector_store %arg4[%332, %c0_57], %331 {strides = array<i32>} : memref<32x512xf32, #tpu.memory_space<vmem>>, vector<32x512xf32>,
    %c1_i32 = arith.constant 1 : i32
    return
  }
  func.func @transform_0(%arg0: i32) -> i32 {
    %c0_i32 = arith.constant 0 : i32
    %c0_i32_0 = arith.constant 0 : i32
    return %c0_i32 : i32
  }
  func.func @transform_1(%arg0: i32) -> i32 {
    %c0_i32 = arith.constant 0 : i32
    %c0_i32_0 = arith.constant 0 : i32
    return %c0_i32 : i32
  }
  func.func @transform_2(%arg0: i32) -> (i32, i32) {
    %c0_i32 = arith.constant 0 : i32
    %c0_i32_0 = arith.constant 0 : i32
    return %arg0, %c0_i32 : i32, i32
  }
  func.func @transform_3(%arg0: i32) -> (i32, i32) {
    %c0_i32 = arith.constant 0 : i32
    %c0_i32_0 = arith.constant 0 : i32
    return %arg0, %c0_i32 : i32, i32
  }
}

</mosaic_0001>

<bundles_post_ra>
// kernel: mlp_forward.1
= control target key start
LH: loop header
LB: loop body
LE: loop exit
PB: predicated region body
PF: predicated region fallthrough
CT: control target
= control target key end

     0   :  { %8 = vsyncpa [#allocation3], 0  ;;  %s7557_s0 = inlined_call_operand.vmem [shape: f32[64], index: 0, kind: input, shape index: {}]   ;;  %s7558_s1 = inlined_call_operand.vmem [shape: f32[16], index: 1, kind: input, shape index: {}]   ;;  %s7559_s2 = inlined_call_operand.vmem [shape: f32[32,512], index: 2, kind: input, shape index: {}]   ;;  %s7560_s3 = inlined_call_operand.vmem [shape: f32[32,512], index: 3, kind: output, shape index: {}]  }
   0x1   :  { %s16_s14 = sshll.u32 %s7557_s0, 4  ;;  %s17_s14 = int_to_ptr.vmem [resolvable:$true] %s16_s14 }
   0x2   :  { %9 = vsyncpa [#allocation5], 0  ;;  %s26_s17 = sshll.u32 %s7558_s1, 4  ;;  %s3237_s18 = scalar_lea.vmem %s17_s14, 16  ;;  %s27_s17 = int_to_ptr.vmem [resolvable:$true] %s26_s17 }
   0x3   :  { %p3238_p0 = scmp.ne.s32.totalorder %s17_s14, %s3237_s18  ;;  %p3242_p1 = scmp.lt.s32.totalorder %s17_s14, %s17_s14 }
   0x4   :  { %p3243_p2 = scmp.lt.s32.totalorder %s3237_s18, %s3237_s18 }
   0x6   :  { %p3244_p3 = por %p3243_p2, %p3242_p1 }
   0x8   :  { %p3245_p4 = pnand %p3244_p3, %p3238_p0 }
   0xa   :  { %3248 = shalt.err (!%p3245_p4)
}
   0xb   :  { %s3265_s19 = smov [#allocation2]   ;;  %s3249_s20 = scalar_lea.vmem %s27_s17, 16 }
   0xc   :  { %19 = dma.vmem_to_smem %s17_s14, 16, %s3265_s19, [#allocation3]  }
   0xd   :  { %p3250_p5 = scmp.ne.s32.totalorder %s27_s17, %s3249_s20  ;;  %p3254_p6 = scmp.lt.s32.totalorder %s27_s17, %s27_s17 }
   0xe   :  { %p3255_p7 = scmp.lt.s32.totalorder %s3249_s20, %s3249_s20 }
  0x10   :  { %p3256_p8 = por %p3255_p7, %p3254_p6 }
  0x12   :  { %p3257_p9 = pnand %p3256_p8, %p3250_p5 }
  0x14   :  { %3260 = shalt.err (!%p3257_p9)
}
  0x15   :  { %s3266_s0 = smov [#allocation4]  }
  0x16   :  { %29 = dma.vmem_to_smem %s27_s17, 16, %s3266_s0, [#allocation5]  }
  0x17   :  { %3261 = dma.done.wait [#allocation3], 16  }
  0x18   :  { %3262 = vsyncadd [#allocation3], 4294967280 }
  0x19   :  { %3263 = dma.done.wait [#allocation5], 16  }
  0x1a   :  { %3264 = vsyncadd [#allocation5], 4294967280 }
  0x1b   :  { %38 = sfence }
  0x1c   :  { %s39_s1 = sld [smem:[#allocation2]]  ;;  %v3304_v0 = vld [vmem:[%s7559_s2] sm:$0xff]  ;;  %v3309_v1 = vld [vmem:[%s7559_s2 + $0x8] sm:$0xff]  ;;  %v3314_v2 = vld [vmem:[%s7559_s2 + $0x10] sm:$0xff] }
  0x1d   :  { %s3293_s21 = sld [smem:[#allocation2 + $0x1]]  ;;  %v3319_v3 = vld [vmem:[%s7559_s2 + $0x18] sm:$0xff]  ;;  %v3324_v4 = vld [vmem:[%s7559_s2 + $0x20] sm:$0xff]  ;;  %v3329_v5 = vld [vmem:[%s7559_s2 + $0x28] sm:$0xff] }
  0x1e   :  { %s3295_s22 = sld [smem:[#allocation2 + $0x2]]  ;;  %v3334_v7 = vld [vmem:[%s7559_s2 + $0x30] sm:$0xff]  ;;  %v3339_v8 = vld [vmem:[%s7559_s2 + $0x38] sm:$0xff]  ;;  %v3344_v9 = vld [vmem:[%s7559_s2 + $0x40] sm:$0xff] }
  0x1f   :  { %s3297_s23 = sld [smem:[#allocation2 + $0x3]]  ;;  %v3349_v10 = vld [vmem:[%s7559_s2 + $0x48] sm:$0xff]  ;;  %v3354_v11 = vld [vmem:[%s7559_s2 + $0x50] sm:$0xff]  ;;  %v3359_v12 = vld [vmem:[%s7559_s2 + $0x58] sm:$0xff] }
  0x20   :  { %s3299_s24 = sld [smem:[#allocation2 + $0x4]]  ;;  %v3364_v13 = vld [vmem:[%s7559_s2 + $0x60] sm:$0xff]  ;;  %v3369_v14 = vld [vmem:[%s7559_s2 + $0x68] sm:$0xff]  ;;  %v3374_v15 = vld [vmem:[%s7559_s2 + $0x70] sm:$0xff] }
  0x21   :  { %v3391_v20 = vld [vmem:[%s7559_s2 + $0x78] sm:$0xff]  ;;  %s3747_s5 = sld [smem:[#allocation4 + $0x2]] }
  0x22   :  { %v123_v6 = vstv %s39_s1  ;;  %s3757_s6 = sld [smem:[#allocation4 + $0x3]] }
  0x23   :  { %v3377_v16 = vmul.f32 %v123_v6, %v3304_v0  ;;  %v3380_v17 = vmul.f32 %v123_v6, %v3309_v1  ;;  %v3383_v18 = vmul.f32 %v123_v6, %v3314_v2  ;;  %v3386_v19 = vmul.f32 %v123_v6, %v3319_v3  ;;  %s3974_s7 = sld [smem:[#allocation4 + $0x4]] }
  0x24   :  { %v3394_v21 = vmul.f32 %v123_v6, %v3324_v4  ;;  %v3397_v22 = vmul.f32 %v123_v6, %v3329_v5  ;;  %v3400_v23 = vmul.f32 %v123_v6, %v3334_v7  ;;  %v3403_v24 = vmul.f32 %v123_v6, %v3339_v8  ;;  %s4023_s8 = sld [smem:[#allocation4 + $0x5]] }
  0x25   :  { %v3406_v25 = vmul.f32 %v123_v6, %v3344_v9  ;;  %v3409_v26 = vmul.f32 %v123_v6, %v3349_v10  ;;  %v3412_v27 = vmul.f32 %v123_v6, %v3354_v11  ;;  %v221_v28 = vstv %s3293_s21  ;;  %s3495_s21 = sld [smem:[#allocation2 + $0x5]] }
  0x26   :  { %v3416_v29 = vmul.f32 %v123_v6, %v3359_v12  ;;  %v3419_v30 = vmul.f32 %v123_v6, %v3364_v13  ;;  %v3422_v31 = vmul.f32 %v123_v6, %v3369_v14  ;;  %v3425_v32 = vmul.f32 %v123_v6, %v3374_v15  ;;  %s4092_s9 = sld [smem:[#allocation4 + $0x6]] }
  0x27   :  { %v3428_v33 = vmul.f32 %v123_v6, %v3391_v20  ;;  %v319_v34 = vstv %s3295_s22  ;;  %v417_v35 = vstv %s3297_s23  ;;  %v3433_v36 = vstv %s3299_s24  ;;  %s3545_s22 = sld [smem:[#allocation2 + $0x6]] }
  0x28   :  { %v3436_v37 = vmul.f32 %v221_v28, %v3304_v0  ;;  %v3439_v38 = vmul.f32 %v221_v28, %v3309_v1  ;;  %v3442_v39 = vmul.f32 %v221_v28, %v3314_v2  ;;  %v3445_v40 = vmul.f32 %v221_v28, %v3319_v3  ;;  %s3571_s23 = sld [smem:[#allocation4]] }
  0x29   :  { %v3448_v41 = vmul.f32 %v221_v28, %v3324_v4  ;;  %v3451_v42 = vmul.f32 %v221_v28, %v3329_v5  ;;  %v3454_v43 = vmul.f32 %v221_v28, %v3334_v7  ;;  %v3457_v44 = vmul.f32 %v221_v28, %v3339_v8  ;;  %s3725_s24 = sld [smem:[#allocation4 + $0x1]] }
  0x2a   :  { %v3460_v45 = vmul.f32 %v221_v28, %v3344_v9  ;;  %v3463_v46 = vmul.f32 %v221_v28, %v3349_v10  ;;  %v3466_v47 = vmul.f32 %v221_v28, %v3354_v11  ;;  %v3469_v48 = vmul.f32 %v221_v28, %v3359_v12  ;;  %s4144_s10 = sld [smem:[#allocation2 + $0x7]] }
  0x2b   :  { %v3472_v49 = vmul.f32 %v221_v28, %v3364_v13  ;;  %v3475_v50 = vmul.f32 %v221_v28, %v3369_v14  ;;  %v3478_v51 = vmul.f32 %v221_v28, %v3374_v15  ;;  %v3481_v52 = vmul.f32 %v221_v28, %v3391_v20  ;;  %s4174_s13 = sld [smem:[#allocation4 + $0x7]] }
  0x2c   :  { %v3484_v53 = vmul.f32 %v319_v34, %v3304_v0  ;;  %v3487_v54 = vmul.f32 %v319_v34, %v3309_v1  ;;  %v3490_v55 = vmul.f32 %v319_v34, %v3314_v2  ;;  %v3493_v56 = vmul.f32 %v319_v34, %v3319_v3  ;;  %s4182_s16 = sld [smem:[#allocation2 + $0x8]] }
  0x2d   :  { %v3498_v57 = vmul.f32 %v319_v34, %v3324_v4  ;;  %v3501_v58 = vmul.f32 %v319_v34, %v3329_v5  ;;  %v3504_v59 = vmul.f32 %v319_v34, %v3334_v7  ;;  %v3507_v60 = vmul.f32 %v319_v34, %v3339_v8  ;;  %s4190_s19 = sld [smem:[#allocation2 + $0x9]] }
  0x2e   :  { %v3510_v61 = vmul.f32 %v319_v34, %v3344_v9  ;;  %v3513_v62 = vmul.f32 %v319_v34, %v3349_v10  ;;  %v3516_v63 = vmul.f32 %v319_v34, %v3354_v11  ;;  %v3519_v6 = vmul.f32 %v319_v34, %v3359_v12  ;;  %s4472_s18 = sld [smem:[#allocation2 + $0xc]] }
  0x2f   :  { %7789 = vst [vmem:[#allocation8_spill] sm:$0xff] %v3504_v59  ;;  %7790 = vst [vmem:[#allocation9_spill] sm:$0xff] %v3507_v60  ;;  %v3522_v28 = vmul.f32 %v319_v34, %v3364_v13  ;;  %v3525_v59 = vmul.f32 %v319_v34, %v3369_v14  ;;  %v3528_v60 = vmul.f32 %v319_v34, %v3374_v15  ;;  %s4556_s20 = sld [smem:[#allocation2 + $0xe]] }
  0x30   :  { %7791 = vst [vmem:[#allocation10_spill] sm:$0xff] %v3510_v61  ;;  %7792 = vst [vmem:[#allocation11_spill] sm:$0xff] %v3513_v62  ;;  %v3531_v61 = vmul.f32 %v319_v34, %v3391_v20  ;;  %v3534_v62 = vmul.f32 %v417_v35, %v3304_v0  ;;  %v3551_v34 = vmul.f32 %v417_v35, %v3329_v5  ;;  %s4589_s0 = sld [smem:[#allocation2 + $0xf]] }
  0x31   :  { %7793 = vst [vmem:[#allocation12_spill] sm:$0xff] %v3516_v63  ;;  %7794 = vst [vmem:[#allocation13_spill] sm:$0xff] %v3519_v6  ;;  %v3537_v63 = vmul.f32 %v417_v35, %v3309_v1  ;;  %v3540_v6 = vmul.f32 %v417_v35, %v3314_v2  ;;  %s4931_s1 = sld [smem:[#allocation4 + $0x8]] }
  0x32   :  { %7795 = vst [vmem:[#allocation14_spill] sm:$0xff] %v3522_v28  ;;  %7796 = vst [vmem:[#allocation15_spill] sm:$0xff] %v3525_v59  ;;  %v3543_v28 = vmul.f32 %v417_v35, %v3319_v3  ;;  %v3548_v59 = vmul.f32 %v417_v35, %v3324_v4  ;;  %s4961_s25 = sld [smem:[#allocation2 + $0x10]] }
  0x33   :  { %7797 = vst [vmem:[#allocation16_spill] sm:$0xff] %v3528_v60  ;;  %7798 = vst [vmem:[#allocation17_spill] sm:$0xff] %v3531_v61  ;;  %v3554_v61 = vmul.f32 %v417_v35, %v3334_v7  ;;  %s4965_s26 = sld [smem:[#allocation2 + $0x11]] }
  0x34   :  { %7799 = vst [vmem:[#allocation18_spill] sm:$0xff] %v3534_v62  ;;  %7800 = vst [vmem:[#allocation19_spill] sm:$0xff] %v3537_v63  ;;  %v3557_v62 = vmul.f32 %v417_v35, %v3339_v8  ;;  %v3560_v63 = vmul.f32 %v417_v35, %v3344_v9  ;;  %s4968_s27 = sld [smem:[#allocation2 + $0x12]] }
  0x35   :  { %7801 = vst [vmem:[#allocation20_spill] sm:$0xff] %v3540_v6  ;;  %7802 = vst [vmem:[#allocation21_spill] sm:$0xff] %v3543_v28  ;;  %v3563_v28 = vmul.f32 %v417_v35, %v3349_v10  ;;  %v3566_v6 = vmul.f32 %v417_v35, %v3354_v11  ;;  %s5033_s28 = sld [smem:[#allocation2 + $0x13]] }
  0x36   :  { %7803 = vst [vmem:[#allocation22_spill] sm:$0xff] %v3548_v59  ;;  %7804 = vst [vmem:[#allocation23_spill] sm:$0xff] %v3551_v34  ;;  %v3569_v59 = vmul.f32 %v417_v35, %v3359_v12  ;;  %v3583_v34 = vmul.f32 %v417_v35, %v3391_v20  ;;  %s5071_s29 = sld [smem:[#allocation2 + $0x14]] }
  0x37   :  { %7805 = vst [vmem:[#allocation24_spill] sm:$0xff] %v3554_v61  ;;  %7806 = vst [vmem:[#allocation25_spill] sm:$0xff] %v3557_v62  ;;  %v3574_v61 = vmul.f32 %v417_v35, %v3364_v13  ;;  %v3577_v62 = vmul.f32 %v417_v35, %v3369_v14  ;;  %s5186_s30 = sld [smem:[#allocation2 + $0x15]] }
  0x38   :  { %7807 = vst [vmem:[#allocation26_spill] sm:$0xff] %v3560_v63  ;;  %7808 = vst [vmem:[#allocation27_spill] sm:$0xff] %v3563_v28  ;;  %v3580_v63 = vmul.f32 %v417_v35, %v3374_v15  ;;  %v3603_v35 = vmul.f32 %v3433_v36, %v3324_v4  ;;  %s5212_s4 = sld [smem:[#allocation2 + $0x16]] }
  0x39   :  { %7809 = vst [vmem:[#allocation28_spill] sm:$0xff] %v3566_v6  ;;  %7810 = vst [vmem:[#allocation29_spill] sm:$0xff] %v3569_v59  ;;  %v3587_v6 = vmul.f32 %v3433_v36, %v3304_v0  ;;  %v3591_v59 = vmul.f32 %v3433_v36, %v3309_v1  ;;  %s6153_s11 = sld [smem:[#allocation4 + $0xa]] }
  0x3a   :  { %7811 = vst [vmem:[#allocation30_spill] sm:$0xff] %v3574_v61  ;;  %7812 = vst [vmem:[#allocation31_spill] sm:$0xff] %v3577_v62  ;;  %v3595_v61 = vmul.f32 %v3433_v36, %v3314_v2  ;;  %v3599_v62 = vmul.f32 %v3433_v36, %v3319_v3  ;;  %s6190_s12 = sld [smem:[#allocation2 + $0x20]] }
  0x3b   :  { %7813 = vst [vmem:[#allocation32_spill] sm:$0xff] %v3580_v63  ;;  %7814 = vst [vmem:[#allocation33_spill] sm:$0xff] %v3583_v34  ;;  %v3607_v34 = vmul.f32 %v3433_v36, %v3329_v5  ;;  %s6192_s14 = sld [smem:[#allocation2 + $0x21]] }
  0x3c   :  { %7815 = vst [vmem:[#allocation34_spill] sm:$0xff] %v3587_v6  ;;  %7816 = vst [vmem:[#allocation35_spill] sm:$0xff] %v3591_v59  ;;  %v3611_v6 = vmul.f32 %v3433_v36, %v3334_v7  ;;  %v613_v59 = vstv %s3495_s21  ;;  %s5274_s21 = sld [smem:[#allocation2 + $0x17]] }
  0x3d   :  { %7817 = vst [vmem:[#allocation36_spill] sm:$0xff] %v3595_v61  ;;  %7818 = vst [vmem:[#allocation37_spill] sm:$0xff] %v3599_v62  ;;  %v3616_v61 = vmul.f32 %v3433_v36, %v3339_v8  ;;  %v3620_v62 = vmul.f32 %v3433_v36, %v3344_v9  ;;  %v3651_v63 = vmul.f32 %v613_v59, %v3304_v0  ;;  %s6195_s15 = sld [smem:[#allocation2 + $0x22]] }
  0x3e   :  { %7819 = vst [vmem:[#allocation38_spill] sm:$0xff] %v3603_v35  ;;  %7820 = vst [vmem:[#allocation39_spill] sm:$0xff] %v3607_v34  ;;  %v3624_v35 = vmul.f32 %v3433_v36, %v3349_v10  ;;  %v3628_v34 = vmul.f32 %v3433_v36, %v3354_v11  ;;  %v3660_v28 = vmul.f32 %v613_v59, %v3319_v3  ;;  %s6288_s17 = sld [smem:[#allocation2 + $0x24]] }
  0x3f   :  { %7821 = vst [vmem:[#allocation40_spill] sm:$0xff] %v3611_v6  ;;  %7822 = vst [vmem:[#allocation41_spill] sm:$0xff] %v3616_v61  ;;  %v3632_v6 = vmul.f32 %v3433_v36, %v3359_v12  ;;  %v3636_v61 = vmul.f32 %v3433_v36, %v3364_v13  ;;  %v3683_v60 = vmul.f32 %v613_v59, %v3354_v11 }
  0x40   :  { %7823 = vst [vmem:[#allocation42_spill] sm:$0xff] %v3620_v62  ;;  %7824 = vst [vmem:[#allocation43_spill] sm:$0xff] %v3624_v35  ;;  %v3640_v62 = vmul.f32 %v3433_v36, %v3369_v14  ;;  %v3644_v35 = vmul.f32 %v3433_v36, %v3374_v15 }
  0x41   :  { %7825 = vst [vmem:[#allocation44_spill] sm:$0xff] %v3628_v34  ;;  %7826 = vst [vmem:[#allocation45_spill] sm:$0xff] %v3632_v6  ;;  %v3648_v34 = vmul.f32 %v3433_v36, %v3391_v20  ;;  %v3654_v6 = vmul.f32 %v613_v59, %v3309_v1  ;;  %v711_v36 = vstv %s3545_s22  ;;  %s5561_s22 = sld [smem:[#allocation4 + $0x9]] }
  0x42   :  { %7827 = vst [vmem:[#allocation46_spill] sm:$0xff] %v3636_v61  ;;  %7828 = vst [vmem:[#allocation47_spill] sm:$0xff] %v3640_v62  ;;  %v3657_v61 = vmul.f32 %v613_v59, %v3314_v2  ;;  %v3663_v62 = vmul.f32 %v613_v59, %v3324_v4 }
  0x43   :  { %7829 = vst [vmem:[#allocation48_spill] sm:$0xff] %v3644_v35  ;;  %7830 = vst [vmem:[#allocation49_spill] sm:$0xff] %v3648_v34  ;;  %v3666_v35 = vmul.f32 %v613_v59, %v3329_v5  ;;  %v3670_v34 = vmul.f32 %v613_v59, %v3334_v7 }
  0x44   :  { %7831 = vst [vmem:[#allocation50_spill] sm:$0xff] %v3651_v63  ;;  %7832 = vst [vmem:[#allocation51_spill] sm:$0xff] %v3654_v6  ;;  %v3673_v63 = vmul.f32 %v613_v59, %v3339_v8  ;;  %v3676_v6 = vmul.f32 %v613_v59, %v3344_v9 }
  0x45   :  { %7833 = vst [vmem:[#allocation52_spill] sm:$0xff] %v3657_v61  ;;  %7834 = vst [vmem:[#allocation53_spill] sm:$0xff] %v3660_v28  ;;  %v3679_v61 = vmul.f32 %v613_v59, %v3349_v10  ;;  %v140_v28 = vstv %s3571_s23  ;;  %s5592_s23 = sld [smem:[#allocation2 + $0x18]] }
  0x46   :  { %7835 = vst [vmem:[#allocation54_spill] sm:$0xff] %v3663_v62  ;;  %7836 = vst [vmem:[#allocation55_spill] sm:$0xff] %v3666_v35  ;;  %v3686_v62 = vmul.f32 %v613_v59, %v3359_v12  ;;  %v3689_v35 = vmul.f32 %v613_v59, %v3364_v13 }
  0x47   :  { %7837 = vst [vmem:[#allocation56_spill] sm:$0xff] %v3670_v34  ;;  %7838 = vst [vmem:[#allocation57_spill] sm:$0xff] %v3673_v63  ;;  %v3692_v34 = vmul.f32 %v613_v59, %v3369_v14  ;;  %v3695_v63 = vmul.f32 %v613_v59, %v3374_v15 }
  0x48   :  { %7839 = vst [vmem:[#allocation58_spill] sm:$0xff] %v3676_v6  ;;  %7840 = vst [vmem:[#allocation59_spill] sm:$0xff] %v3679_v61  ;;  %v3698_v6 = vmul.f32 %v613_v59, %v3391_v20  ;;  %v3701_v61 = vmul.f32 %v711_v36, %v3304_v0  ;;  %v3717_v59 = vmul.f32 %v711_v36, %v3329_v5 }
  0x49   :  { %7841 = vst [vmem:[#allocation60_spill] sm:$0xff] %v3683_v60  ;;  %7842 = vst [vmem:[#allocation61_spill] sm:$0xff] %v3686_v62  ;;  %v3704_v60 = vmul.f32 %v711_v36, %v3309_v1  ;;  %v3707_v62 = vmul.f32 %v711_v36, %v3314_v2  ;;  %v3720_v0 = vmul.f32 %v711_v36, %v3334_v7 }
  0x4a   :  { %7843 = vst [vmem:[#allocation62_spill] sm:$0xff] %v3689_v35  ;;  %7844 = vst [vmem:[#allocation63_spill] sm:$0xff] %v3692_v34  ;;  %v3710_v35 = vmul.f32 %v711_v36, %v3319_v3  ;;  %v3713_v34 = vmul.f32 %v711_v36, %v3324_v4  ;;  %v3723_v1 = vmul.f32 %v711_v36, %v3339_v8 }
  0x4b   :  { %7845 = vst [vmem:[#allocation64_spill] sm:$0xff] %v3695_v63  ;;  %v141_v63 = vadd.f32 %v140_v28, %v3377_v16  ;;  %v142_v2 = vadd.f32 %v140_v28, %v3380_v17  ;;  %v3729_v3 = vmul.f32 %v711_v36, %v3344_v9  ;;  %v3732_v4 = vmul.f32 %v711_v36, %v3349_v10 }
  0x4c   :  { %7846 = vst [vmem:[#allocation65_spill] sm:$0xff] %v3723_v1  ;;  %v3735_v16 = vmul.f32 %v711_v36, %v3354_v11  ;;  %v143_v5 = vadd.f32 %v140_v28, %v3383_v18  ;;  %v3739_v7 = vmul.f32 %v711_v36, %v3359_v12  ;;  %v3742_v8 = vmul.f32 %v711_v36, %v3364_v13 }
  0x4d   :  { %v3745_v1 = vmul.f32 %v711_v36, %v3369_v14  ;;  %v144_v9 = vadd.f32 %v140_v28, %v3386_v19  ;;  %v145_v10 = vadd.f32 %v140_v28, %v3394_v21  ;;  %v3752_v11 = vmul.f32 %v711_v36, %v3374_v15 }
  0x4e   :  { %7847 = vst [vmem:[#allocation66_spill] sm:$0xff] %v3735_v16  ;;  %7848 = vst [vmem:[#allocation67_spill] sm:$0xff] %v3739_v7  ;;  %v3755_v17 = vmul.f32 %v711_v36, %v3391_v20  ;;  %v146_v12 = vadd.f32 %v140_v28, %v3397_v22  ;;  %v147_v13 = vadd.f32 %v140_v28, %v3400_v23  ;;  %v157_v18 = vmul.f32 0.5, %v141_v63 }
  0x4f   :  { %7849 = vst [vmem:[#allocation68_spill] sm:$0xff] %v3742_v8  ;;  %7850 = vst [vmem:[#allocation69_spill] sm:$0xff] %v3745_v1  ;;  %v148_v14 = vadd.f32 %v140_v28, %v3403_v24  ;;  %v149_v1 = vadd.f32 %v140_v28, %v3406_v25  ;;  %v150_v19 = vadd.f32 %v140_v28, %v3409_v26  ;;  %v158_v15 = vmul.f32 0.5, %v142_v2 }
  0x50   :  { %7851 = vst [vmem:[#allocation70_spill] sm:$0xff] %v3752_v11  ;;  %7852 = vst [vmem:[#allocation71_spill] sm:$0xff] %v3755_v17  ;;  %v151_v21 = vadd.f32 %v140_v28, %v3412_v27  ;;  %v152_v20 = vadd.f32 %v140_v28, %v3416_v29  ;;  %v153_v36 = vadd.f32 %v140_v28, %v3419_v30  ;;  %v159_v22 = vmul.f32 0.5, %v143_v5 }
  0x51   :  { %v154_v17 = vadd.f32 %v140_v28, %v3422_v31  ;;  %v155_v23 = vadd.f32 %v140_v28, %v3425_v32  ;;  %v156_v24 = vadd.f32 %v140_v28, %v3428_v33  ;;  %v160_v63 = vmul.f32 0.5, %v144_v9 }
  0x52   :  { %v161_v11 = vmul.f32 0.5, %v145_v10  ;;  %v162_v25 = vmul.f32 0.5, %v146_v12  ;;  %v163_v8 = vmul.f32 0.5, %v147_v13  ;;  %v164_v26 = vmul.f32 0.5, %v148_v14 }
  0x53   :  { %2773 = vtanh.f32 %v157_v18  ;;  %v165_v27 = vmul.f32 0.5, %v149_v1  ;;  %v166_v2 = vmul.f32 0.5, %v150_v19  ;;  %v238_v29 = vstv %s3725_s24  ;;  %s5594_s24 = sld [smem:[#allocation2 + $0x19]] }
  0x54   :  { %2775 = vtanh.f32 %v158_v15  ;;  %v167_v30 = vmul.f32 0.5, %v151_v21  ;;  %v168_v7 = vmul.f32 0.5, %v152_v20  ;;  %v169_v31 = vmul.f32 0.5, %v153_v36 }
  0x55   :  { %2777 = vtanh.f32 %v159_v22  ;;  %v170_v5 = vmul.f32 0.5, %v154_v17  ;;  %v171_v32 = vmul.f32 0.5, %v155_v23  ;;  %v172_v16 = vmul.f32 0.5, %v156_v24 }
  0x56   :  { %2779 = vtanh.f32 %v160_v63  ;;  %v239_v33 = vadd.f32 %v238_v29, %v3436_v37  ;;  %v3773_v28 = vstv %s3747_s5  ;;  %v3776_v9 = vstv %s3757_s6  ;;  %s5598_s5 = sld [smem:[#allocation2 + $0x1a]] }
  0x57   :  { %2781 = vtanh.f32 %v161_v11  ;;  %v240_v1 = vadd.f32 %v238_v29, %v3439_v38  ;;  %v241_v10 = vadd.f32 %v238_v29, %v3442_v39  ;;  %v242_v12 = vadd.f32 %v238_v29, %v3445_v40  ;;  %s5651_s6 = sld [smem:[#allocation2 + $0x1b]] }
  0x58   :  { %2783 = vtanh.f32 %v162_v25  ;;  %v243_v17 = vadd.f32 %v238_v29, %v3448_v41  ;;  %v244_v13 = vadd.f32 %v238_v29, %v3451_v42  ;;  %v245_v11 = vadd.f32 %v238_v29, %v3454_v43 }
  0x59   :  { %2785 = vtanh.f32 %v163_v8  ;;  %v246_v37 = vadd.f32 %v238_v29, %v3457_v44  ;;  %v247_v14 = vadd.f32 %v238_v29, %v3460_v45  ;;  %v248_v18 = vadd.f32 %v238_v29, %v3463_v46 }
  0x5a   :  { %2787 = vtanh.f32 %v164_v26  ;;  %v249_v38 = vadd.f32 %v238_v29, %v3466_v47  ;;  %v250_v39 = vadd.f32 %v238_v29, %v3469_v48  ;;  %v251_v40 = vadd.f32 %v238_v29, %v3472_v49 }
  0x5b   :  { %2789 = vtanh.f32 %v165_v27  ;;  %v252_v41 = vadd.f32 %v238_v29, %v3475_v50  ;;  %v253_v42 = vadd.f32 %v238_v29, %v3478_v51  ;;  %v254_v43 = vadd.f32 %v238_v29, %v3481_v52 }
  0x5c   :  { %2791 = vtanh.f32 %v166_v2  ;;  %v255_v44 = vmul.f32 0.5, %v239_v33  ;;  %v256_v8 = vmul.f32 0.5, %v240_v1  ;;  %v257_v45 = vmul.f32 0.5, %v241_v10 }
  0x5d   :  { %2793 = vtanh.f32 %v167_v30  ;;  %v258_v46 = vmul.f32 0.5, %v242_v12  ;;  %v259_v19 = vmul.f32 0.5, %v243_v17  ;;  %v260_v21 = vmul.f32 0.5, %v244_v13 }
  0x5e   :  { %2795 = vtanh.f32 %v168_v7  ;;  %v261_v47 = vmul.f32 0.5, %v245_v11  ;;  %v262_v48 = vmul.f32 0.5, %v246_v37  ;;  %v263_v15 = vmul.f32 0.5, %v247_v14  ;;  %v7858_v14 = vld [vmem:[#allocation12_spill] sm:$0xff] }
  0x5f   :  { %2797 = vtanh.f32 %v169_v31  ;;  %v264_v20 = vmul.f32 0.5, %v248_v18  ;;  %v3793_v50 = vmul.f32 0.5, %v249_v38  ;;  %v3795_v51 = vmul.f32 0.5, %v250_v39 }
  0x60   :  { %v2774_v49 = vpop.eup %2773  ;;  %2799 = vtanh.f32 %v170_v5  ;;  %v3797_v36 = vmul.f32 0.5, %v251_v40  ;;  %v3799_v22 = vmul.f32 0.5, %v252_v41  ;;  %v3801_v7 = vmul.f32 0.5, %v253_v42  ;;  %v7860_v41 = vld [vmem:[#allocation13_spill] sm:$0xff] }
  0x61   :  { %v2776_v52 = vpop.eup %2775  ;;  %2801 = vtanh.f32 %v171_v32  ;;  %v3803_v24 = vmul.f32 0.5, %v254_v43  ;;  %v337_v63 = vadd.f32 %v3773_v28, %v3484_v53  ;;  %v338_v25 = vadd.f32 %v3773_v28, %v3487_v54  ;;  %v7853_v32 = vld [vmem:[#allocation8_spill] sm:$0xff] }
  0x62   :  { %v2778_v23 = vpop.eup %2777  ;;  %2803 = vtanh.f32 %v172_v16  ;;  %v189_v27 = vmul.f32 0.5, %v2774_v49  ;;  %v339_v2 = vadd.f32 %v3773_v28, %v3490_v55  ;;  %v3813_v29 = vadd.f32 %v3773_v28, %v3493_v56  ;;  %v7854_v56 = vld [vmem:[#allocation9_spill] sm:$0xff] }
  0x63   :  { %v2780_v26 = vpop.eup %2779  ;;  %2805 = vtanh.f32 %v255_v44  ;;  %v190_v16 = vmul.f32 0.5, %v2776_v52  ;;  %v3817_v31 = vadd.f32 %v3773_v28, %v3498_v57  ;;  %v3821_v53 = vadd.f32 %v3773_v28, %v3501_v58  ;;  %v7855_v57 = vld [vmem:[#allocation10_spill] sm:$0xff]  ;;  %v7856_v58 = vld [vmem:[#allocation11_spill] sm:$0xff] }
  0x64   :  { %v2782_v30 = vpop.eup %2781  ;;  %2807 = vtanh.f32 %v256_v8  ;;  %v191_v5 = vmul.f32 0.5, %v2778_v23  ;;  %v3825_v55 = vadd.f32 %v3773_v28, %v7853_v32  ;;  %v3829_v33 = vadd.f32 %v3773_v28, %v7854_v56  ;;  %v7864_v23 = vld [vmem:[#allocation15_spill] sm:$0xff]  ;;  %v7868_v56 = vld [vmem:[#allocation17_spill] sm:$0xff] }
  0x65   :  { %v2784_v54 = vpop.eup %2783  ;;  %2809 = vtanh.f32 %v257_v45  ;;  %v192_v10 = vmul.f32 0.5, %v2780_v26  ;;  %v3833_v12 = vadd.f32 %v3773_v28, %v7855_v57  ;;  %v3837_v17 = vadd.f32 %v3773_v28, %v7856_v58  ;;  %v7862_v45 = vld [vmem:[#allocation14_spill] sm:$0xff] }
  0x66   :  { %v2786_v1 = vpop.eup %2785  ;;  %2811 = vtanh.f32 %v258_v46  ;;  %v193_v11 = vmul.f32 0.5, %v2782_v30  ;;  %v3839_v37 = vadd.f32 0.5, %v189_v27  ;;  %v3843_v18 = vadd.f32 %v3773_v28, %v7858_v14 }
  0x67   :  { %v2788_v13 = vpop.eup %2787  ;;  %2813 = vtanh.f32 %v259_v19  ;;  %v194_v39 = vmul.f32 0.5, %v2784_v54  ;;  %v3845_v40 = vadd.f32 0.5, %v190_v16  ;;  %v3849_v42 = vadd.f32 %v3773_v28, %v7860_v41  ;;  %v7866_v16 = vld [vmem:[#allocation16_spill] sm:$0xff] }
  0x68   :  { %7857 = vst [vmem:[#allocation8_spill] sm:$0xff] %v3839_v37  ;;  %v2790_v38 = vpop.eup %2789  ;;  %2815 = vtanh.f32 %v260_v21  ;;  %v195_v44 = vmul.f32 0.5, %v2786_v1  ;;  %v3851_v8 = vadd.f32 0.5, %v191_v5  ;;  %v3855_v46 = vadd.f32 %v3773_v28, %v7862_v45 }
  0x69   :  { %7859 = vst [vmem:[#allocation9_spill] sm:$0xff] %v3845_v40  ;;  %v2792_v43 = vpop.eup %2791  ;;  %2817 = vtanh.f32 %v261_v47  ;;  %v196_v49 = vmul.f32 0.5, %v2788_v13  ;;  %v3857_v52 = vadd.f32 0.5, %v192_v10  ;;  %v3861_v21 = vadd.f32 %v3773_v28, %v7864_v23 }
  0x6a   :  { %7861 = vst [vmem:[#allocation10_spill] sm:$0xff] %v3851_v8  ;;  %v2794_v19 = vpop.eup %2793  ;;  %2819 = vtanh.f32 %v262_v48  ;;  %v197_v27 = vmul.f32 0.5, %v2790_v38  ;;  %v3863_v30 = vadd.f32 0.5, %v193_v11  ;;  %v3867_v47 = vadd.f32 %v3773_v28, %v7866_v16 }
  0x6b   :  { %7863 = vst [vmem:[#allocation11_spill] sm:$0xff] %v3857_v52  ;;  %v2796_v26 = vpop.eup %2795  ;;  %2821 = vtanh.f32 %v263_v15  ;;  %v198_v5 = vmul.f32 0.5, %v2792_v43  ;;  %v3869_v32 = vadd.f32 0.5, %v194_v39  ;;  %v3873_v48 = vadd.f32 %v3773_v28, %v7868_v56 }
  0x6c   :  { %7865 = vst [vmem:[#allocation12_spill] sm:$0xff] %v3863_v30  ;;  %v2798_v54 = vpop.eup %2797  ;;  %2823 = vtanh.f32 %v264_v20  ;;  %v199_v10 = vmul.f32 0.5, %v2794_v19  ;;  %v3875_v57 = vadd.f32 0.5, %v195_v44  ;;  %v353_v15 = vmul.f32 0.5, %v337_v63 }
  0x6d   :  { %7867 = vst [vmem:[#allocation13_spill] sm:$0xff] %v3869_v32  ;;  %v2800_v1 = vpop.eup %2799  ;;  %2825 = vtanh.f32 %v3793_v50  ;;  %v200_v13 = vmul.f32 0.5, %v2796_v26  ;;  %v3878_v11 = vadd.f32 0.5, %v196_v49  ;;  %v354_v14 = vmul.f32 0.5, %v338_v25 }
  0x6e   :  { %7869 = vst [vmem:[#allocation14_spill] sm:$0xff] %v3875_v57  ;;  %v2802_v58 = vpop.eup %2801  ;;  %2827 = vtanh.f32 %v3795_v51  ;;  %v201_v20 = vmul.f32 0.5, %v2798_v54  ;;  %v3881_v39 = vadd.f32 0.5, %v197_v27  ;;  %v355_v28 = vmul.f32 0.5, %v339_v2 }
  0x6f   :  { %7870 = vst [vmem:[#allocation15_spill] sm:$0xff] %v3878_v11  ;;  %v2804_v38 = vpop.eup %2803  ;;  %2829 = vtanh.f32 %v3797_v36  ;;  %v202_v43 = vmul.f32 0.5, %v2800_v1  ;;  %v3884_v44 = vadd.f32 0.5, %v198_v5  ;;  %v356_v50 = vmul.f32 0.5, %v3813_v29 }
  0x70   :  { %7871 = vst [vmem:[#allocation16_spill] sm:$0xff] %v3881_v39  ;;  %v2806_v41 = vpop.eup %2805  ;;  %2831 = vtanh.f32 %v3799_v22  ;;  %v203_v45 = vmul.f32 0.5, %v2802_v58  ;;  %v3888_v19 = vadd.f32 0.5, %v199_v10  ;;  %v357_v51 = vmul.f32 0.5, %v3817_v31 }
  0x71   :  { %7872 = vst [vmem:[#allocation17_spill] sm:$0xff] %v3884_v44  ;;  %v2808_v63 = vpop.eup %2807  ;;  %2833 = vtanh.f32 %v3801_v7  ;;  %v204_v49 = vmul.f32 0.5, %v2804_v38  ;;  %v3892_v36 = vadd.f32 0.5, %v200_v13  ;;  %v358_v2 = vmul.f32 0.5, %v3821_v53 }
  0x72   :  { %7873 = vst [vmem:[#allocation72_spill] sm:$0xff] %v3888_v19  ;;  %v2810_v25 = vpop.eup %2809  ;;  %2835 = vtanh.f32 %v3803_v24  ;;  %v3896_v22 = vadd.f32 0.5, %v201_v20  ;;  %v287_v29 = vmul.f32 0.5, %v2806_v41  ;;  %v359_v26 = vmul.f32 0.5, %v3825_v55 }
  0x73   :  { %7874 = vst [vmem:[#allocation73_spill] sm:$0xff] %v3892_v36  ;;  %v2812_v23 = vpop.eup %2811  ;;  %v360_v27 = vmul.f32 0.5, %v3829_v33  ;;  %v3900_v7 = vadd.f32 0.5, %v202_v43  ;;  %v288_v31 = vmul.f32 0.5, %v2808_v63  ;;  %v361_v54 = vmul.f32 0.5, %v3833_v12 }
  0x74   :  { %7875 = vst [vmem:[#allocation74_spill] sm:$0xff] %v3896_v22  ;;  %v2814_v16 = vpop.eup %2813  ;;  %2837 = vtanh.f32 %v353_v15  ;;  %v3903_v56 = vadd.f32 0.5, %v203_v45  ;;  %v289_v24 = vmul.f32 0.5, %v2810_v25  ;;  %v362_v53 = vmul.f32 0.5, %v3837_v17 }
  0x75   :  { %7876 = vst [vmem:[#allocation75_spill] sm:$0xff] %v3900_v7  ;;  %v2816_v5 = vpop.eup %2815  ;;  %2839 = vtanh.f32 %v354_v14  ;;  %v3906_v10 = vadd.f32 0.5, %v204_v49  ;;  %v290_v55 = vmul.f32 0.5, %v2812_v23  ;;  %v363_v33 = vmul.f32 0.5, %v3843_v18 }
  0x76   :  { %7877 = vst [vmem:[#allocation76_spill] sm:$0xff] %v3903_v56  ;;  %v2818_v1 = vpop.eup %2817  ;;  %2841 = vtanh.f32 %v355_v28  ;;  %v291_v13 = vmul.f32 0.5, %v2814_v16  ;;  %v3909_v38 = vadd.f32 0.5, %v287_v29  ;;  %v364_v12 = vmul.f32 0.5, %v3849_v42 }
  0x77   :  { %7878 = vst [vmem:[#allocation77_spill] sm:$0xff] %v3906_v10  ;;  %v2820_v58 = vpop.eup %2819  ;;  %2843 = vtanh.f32 %v356_v50  ;;  %v292_v20 = vmul.f32 0.5, %v2816_v5  ;;  %v3912_v41 = vadd.f32 0.5, %v288_v31  ;;  %v365_v17 = vmul.f32 0.5, %v3855_v46  ;;  %v7884_v46 = vld [vmem:[#allocation18_spill] sm:$0xff] }
  0x78   :  { %7879 = vst [vmem:[#allocation78_spill] sm:$0xff] %v3909_v38  ;;  %v2822_v15 = vpop.eup %2821  ;;  %2845 = vtanh.f32 %v357_v51  ;;  %v293_v43 = vmul.f32 0.5, %v2818_v1  ;;  %v3915_v63 = vadd.f32 0.5, %v289_v24  ;;  %v366_v18 = vmul.f32 0.5, %v3861_v21 }
  0x79   :  { %7880 = vst [vmem:[#allocation79_spill] sm:$0xff] %v3912_v41  ;;  %v2824_v14 = vpop.eup %2823  ;;  %v367_v28 = vmul.f32 0.5, %v3867_v47  ;;  %v294_v25 = vmul.f32 0.5, %v2820_v58  ;;  %v3919_v49 = vadd.f32 0.5, %v290_v55  ;;  %v368_v42 = vmul.f32 0.5, %v3873_v48  ;;  %v7886_v47 = vld [vmem:[#allocation19_spill] sm:$0xff] }
  0x7a   :  { %7881 = vst [vmem:[#allocation80_spill] sm:$0xff] %v3915_v63  ;;  %v2826_v45 = vpop.eup %2825  ;;  %2847 = vtanh.f32 %v358_v2  ;;  %v295_v23 = vmul.f32 0.5, %v2822_v15  ;;  %v3922_v29 = vadd.f32 0.5, %v291_v13  ;;  %v435_v51 = vadd.f32 %v3776_v9, %v7884_v46  ;;  %v7888_v2 = vld [vmem:[#allocation20_spill] sm:$0xff]  ;;  %v7890_v15 = vld [vmem:[#allocation21_spill] sm:$0xff] }
  0x7b   :  { %7882 = vst [vmem:[#allocation81_spill] sm:$0xff] %v3919_v49  ;;  %v2828_v50 = vpop.eup %2827  ;;  %2849 = vtanh.f32 %v359_v26  ;;  %v296_v31 = vmul.f32 0.5, %v2824_v14  ;;  %v3926_v21 = vadd.f32 0.5, %v292_v20  ;;  %v436_v5 = vadd.f32 %v3776_v9, %v7886_v47 }
  0x7c   :  { %7883 = vst [vmem:[#allocation82_spill] sm:$0xff] %v3922_v29  ;;  %v2830_v16 = vpop.eup %2829  ;;  %2851 = vtanh.f32 %v360_v27  ;;  %v297_v1 = vmul.f32 0.5, %v2826_v45  ;;  %v3930_v48 = vadd.f32 0.5, %v293_v43  ;;  %v437_v55 = vadd.f32 %v3776_v9, %v7888_v2  ;;  %v7892_v45 = vld [vmem:[#allocation22_spill] sm:$0xff]  ;;  %v7894_v2 = vld [vmem:[#allocation23_spill] sm:$0xff] }
  0x7d   :  { %7885 = vst [vmem:[#allocation18_spill] sm:$0xff] %v3926_v21  ;;  %v2832_v24 = vpop.eup %2831  ;;  %2853 = vtanh.f32 %v361_v54  ;;  %v298_v58 = vmul.f32 0.5, %v2828_v50  ;;  %v3934_v13 = vadd.f32 0.5, %v294_v25  ;;  %v438_v20 = vadd.f32 %v3776_v9, %v7890_v15  ;;  %v7896_v15 = vld [vmem:[#allocation24_spill] sm:$0xff] }
  0x7e   :  { %7887 = vst [vmem:[#allocation19_spill] sm:$0xff] %v3930_v48  ;;  %v2834_v26 = vpop.eup %2833  ;;  %2855 = vtanh.f32 %v362_v53  ;;  %v299_v14 = vmul.f32 0.5, %v2830_v16  ;;  %v3938_v46 = vadd.f32 0.5, %v295_v23  ;;  %v439_v43 = vadd.f32 %v3776_v9, %v7892_v45 }
  0x7f   :  { %7889 = vst [vmem:[#allocation20_spill] sm:$0xff] %v3934_v13  ;;  %v2836_v27 = vpop.eup %2835  ;;  %2857 = vtanh.f32 %v363_v33  ;;  %v300_v54 = vmul.f32 0.5, %v2832_v24  ;;  %v3942_v47 = vadd.f32 0.5, %v296_v31  ;;  %v440_v25 = vadd.f32 %v3776_v9, %v7894_v2  ;;  %v7898_v24 = vld [vmem:[#allocation25_spill] sm:$0xff]  ;;  %v7900_v2 = vld [vmem:[#allocation26_spill] sm:$0xff] }
  0x80   :  { %7891 = vst [vmem:[#allocation21_spill] sm:$0xff] %v3938_v46  ;;  %2859 = vtanh.f32 %v364_v12  ;;  %v301_v53 = vmul.f32 0.5, %v2834_v26  ;;  %v3946_v13 = vadd.f32 0.5, %v297_v1  ;;  %v441_v23 = vadd.f32 %v3776_v9, %v7896_v15  ;;  %v7901_v26 = vld [vmem:[#allocation27_spill] sm:$0xff] }
  0x81   :  { %7893 = vst [vmem:[#allocation22_spill] sm:$0xff] %v3942_v47  ;;  %v2838_v50 = vpop.eup %2837  ;;  %2861 = vtanh.f32 %v365_v17  ;;  %v302_v33 = vmul.f32 0.5, %v2836_v27  ;;  %v3950_v46 = vadd.f32 0.5, %v298_v58  ;;  %v442_v31 = vadd.f32 %v3776_v9, %v7898_v24  ;;  %v7903_v27 = vld [vmem:[#allocation28_spill] sm:$0xff]  ;;  %v7906_v47 = vld [vmem:[#allocation30_spill] sm:$0xff] }
  0x82   :  { %7895 = vst [vmem:[#allocation23_spill] sm:$0xff] %v3946_v13  ;;  %v2840_v16 = vpop.eup %2839  ;;  %2863 = vtanh.f32 %v366_v18  ;;  %v3954_v45 = vadd.f32 0.5, %v299_v14  ;;  %v443_v1 = vadd.f32 %v3776_v9, %v7900_v2  ;;  %v444_v17 = vadd.f32 %v3776_v9, %v7901_v26 }
  0x83   :  { %7897 = vst [vmem:[#allocation24_spill] sm:$0xff] %v3950_v46  ;;  %v2842_v12 = vpop.eup %2841  ;;  %2865 = vtanh.f32 %v367_v28  ;;  %v3960_v15 = vadd.f32 0.5, %v300_v54  ;;  %v385_v58 = vmul.f32 0.5, %v2838_v50  ;;  %v445_v18 = vadd.f32 %v3776_v9, %v7903_v27  ;;  %v7908_v54 = vld [vmem:[#allocation31_spill] sm:$0xff] }
  0x84   :  { %7899 = vst [vmem:[#allocation25_spill] sm:$0xff] %v3954_v45  ;;  %v2844_v13 = vpop.eup %2843  ;;  %2867 = vtanh.f32 %v368_v42  ;;  %v3964_v24 = vadd.f32 0.5, %v301_v53  ;;  %v386_v14 = vmul.f32 0.5, %v2840_v16  ;;  %v7905_v45 = vld [vmem:[#allocation29_spill] sm:$0xff]  ;;  %v447_v2 = vadd.f32 %v3776_v9, %v7906_v47  ;;  %v7909_v53 = vld [vmem:[#allocation32_spill] sm:$0xff] }
  0x85   :  { %7902 = vst [vmem:[#allocation26_spill] sm:$0xff] %v3960_v15  ;;  %v2846_v46 = vpop.eup %2845  ;;  %v446_v28 = vadd.f32 %v3776_v9, %v7905_v45  ;;  %v3970_v48 = vadd.f32 0.5, %v302_v33  ;;  %v387_v26 = vmul.f32 0.5, %v2842_v12  ;;  %v448_v42 = vadd.f32 %v3776_v9, %v7908_v54 }
  0x86   :  { %7904 = vst [vmem:[#allocation27_spill] sm:$0xff] %v3964_v24  ;;  %v451_v50 = vmul.f32 0.5, %v435_v51  ;;  %v388_v27 = vmul.f32 0.5, %v2844_v13  ;;  %v449_v16 = vadd.f32 %v3776_v9, %v7909_v53  ;;  %v7910_v24 = vld [vmem:[#allocation33_spill] sm:$0xff]  ;;  %v452_v21 = vmul.f32 0.5, %v436_v5 }
  0x87   :  { %7907 = vst [vmem:[#allocation28_spill] sm:$0xff] %v3970_v48  ;;  %v2848_v15 = vpop.eup %2847  ;;  %v450_v45 = vadd.f32 %v3776_v9, %v7910_v24  ;;  %v389_v47 = vmul.f32 0.5, %v2846_v46  ;;  %v3980_v33 = vadd.f32 0.5, %v385_v58  ;;  %v453_v12 = vmul.f32 0.5, %v437_v55 }
  0x88   :  { %v2850_v29 = vpop.eup %2849  ;;  %v454_v48 = vmul.f32 0.5, %v438_v20  ;;  %v3982_v54 = vadd.f32 0.5, %v386_v14  ;;  %v455_v51 = vmul.f32 0.5, %v439_v43  ;;  %v456_v63 = vmul.f32 0.5, %v440_v25 }
  0x89   :  { %7911 = vst [vmem:[#allocation29_spill] sm:$0xff] %v3980_v33  ;;  %v2852_v49 = vpop.eup %2851  ;;  %v457_v41 = vmul.f32 0.5, %v441_v23  ;;  %v390_v38 = vmul.f32 0.5, %v2848_v15  ;;  %v3984_v10 = vadd.f32 0.5, %v387_v26  ;;  %v458_v53 = vmul.f32 0.5, %v442_v31 }
  0x8a   :  { %7912 = vst [vmem:[#allocation30_spill] sm:$0xff] %v3982_v54  ;;  %v2854_v13 = vpop.eup %2853  ;;  %2869 = vtanh.f32 %v451_v50  ;;  %v3986_v5 = vadd.f32 0.5, %v388_v27  ;;  %v459_v46 = vmul.f32 0.5, %v443_v1  ;;  %v460_v58 = vmul.f32 0.5, %v444_v17 }
  0x8b   :  { %7913 = vst [vmem:[#allocation31_spill] sm:$0xff] %v3984_v10  ;;  %v2856_v9 = vpop.eup %2855  ;;  %2871 = vtanh.f32 %v452_v21  ;;  %v391_v20 = vmul.f32 0.5, %v2850_v29  ;;  %v3988_v24 = vadd.f32 0.5, %v389_v47  ;;  %v461_v14 = vmul.f32 0.5, %v445_v18 }
  0x8c   :  { %7914 = vst [vmem:[#allocation32_spill] sm:$0xff] %v3986_v5  ;;  %v2858_v55 = vpop.eup %2857  ;;  %2873 = vtanh.f32 %v453_v12  ;;  %v392_v25 = vmul.f32 0.5, %v2852_v49  ;;  %v462_v23 = vmul.f32 0.5, %v446_v28  ;;  %v463_v15 = vmul.f32 0.5, %v447_v2 }
  0x8d   :  { %7915 = vst [vmem:[#allocation33_spill] sm:$0xff] %v3988_v24  ;;  %v2860_v43 = vpop.eup %2859  ;;  %2875 = vtanh.f32 %v454_v48  ;;  %v393_v26 = vmul.f32 0.5, %v2854_v13  ;;  %v3990_v50 = vadd.f32 0.5, %v390_v38  ;;  %v464_v27 = vmul.f32 0.5, %v448_v42 }
  0x8e   :  { %v2862_v31 = vpop.eup %2861  ;;  %2877 = vtanh.f32 %v455_v51  ;;  %v394_v21 = vmul.f32 0.5, %v2856_v9  ;;  %v465_v17 = vmul.f32 0.5, %v449_v16  ;;  %v532_v29 = vstv %s3974_s7  ;;  %v7920_v51 = vld [vmem:[#allocation34_spill] sm:$0xff]  ;;  %v7922_v9 = vld [vmem:[#allocation35_spill] sm:$0xff]  ;;  %s5733_s7 = sld [smem:[#allocation2 + $0x1c]] }
  0x8f   :  { %7916 = vst [vmem:[#allocation83_spill] sm:$0xff] %v3990_v50  ;;  %v2864_v1 = vpop.eup %2863  ;;  %2879 = vtanh.f32 %v456_v63  ;;  %v395_v18 = vmul.f32 0.5, %v2858_v55  ;;  %v3993_v24 = vadd.f32 0.5, %v391_v20  ;;  %v466_v12 = vmul.f32 0.5, %v450_v45  ;;  %v7924_v20 = vld [vmem:[#allocation36_spill] sm:$0xff] }
  0x90   :  { %v2866_v47 = vpop.eup %2865  ;;  %2881 = vtanh.f32 %v457_v41  ;;  %v396_v28 = vmul.f32 0.5, %v2860_v43  ;;  %v397_v48 = vmul.f32 0.5, %v2862_v31  ;;  %v3995_v2 = vadd.f32 0.5, %v392_v25 }
  0x91   :  { %7917 = vst [vmem:[#allocation84_spill] sm:$0xff] %v3993_v24  ;;  %v2868_v49 = vpop.eup %2867  ;;  %2883 = vtanh.f32 %v458_v53  ;;  %v398_v38 = vmul.f32 0.5, %v2864_v1  ;;  %v3997_v42 = vadd.f32 0.5, %v393_v26  ;;  %v533_v16 = vadd.f32 %v532_v29, %v7920_v51  ;;  %v7929_v1 = vld [vmem:[#allocation38_spill] sm:$0xff] }
  0x92   :  { %7918 = vst [vmem:[#allocation85_spill] sm:$0xff] %v3995_v2  ;;  %2885 = vtanh.f32 %v459_v46  ;;  %v399_v63 = vmul.f32 0.5, %v2866_v47  ;;  %v4000_v13 = vadd.f32 0.5, %v394_v21  ;;  %v534_v55 = vadd.f32 %v532_v29, %v7922_v9  ;;  %v7927_v46 = vld [vmem:[#allocation37_spill] sm:$0xff]  ;;  %v7930_v21 = vld [vmem:[#allocation39_spill] sm:$0xff] }
  0x93   :  { %7919 = vst [vmem:[#allocation86_spill] sm:$0xff] %v3997_v42  ;;  %2887 = vtanh.f32 %v460_v58  ;;  %v400_v45 = vmul.f32 0.5, %v2868_v49  ;;  %v4003_v41 = vadd.f32 0.5, %v395_v18  ;;  %v535_v43 = vadd.f32 %v532_v29, %v7924_v20 }
  0x94   :  { %7921 = vst [vmem:[#allocation34_spill] sm:$0xff] %v4000_v13  ;;  %2889 = vtanh.f32 %v461_v14  ;;  %v4006_v25 = vadd.f32 0.5, %v396_v28  ;;  %v4008_v53 = vadd.f32 0.5, %v397_v48  ;;  %v536_v31 = vadd.f32 %v532_v29, %v7927_v46  ;;  %v7932_v14 = vld [vmem:[#allocation40_spill] sm:$0xff]  ;;  %v7933_v28 = vld [vmem:[#allocation41_spill] sm:$0xff]  ;;  %v7936_v46 = vld [vmem:[#allocation43_spill] sm:$0xff] }
  0x95   :  { %7923 = vst [vmem:[#allocation35_spill] sm:$0xff] %v4003_v41  ;;  %2891 = vtanh.f32 %v462_v23  ;;  %v4011_v26 = vadd.f32 0.5, %v398_v38  ;;  %v537_v58 = vadd.f32 %v532_v29, %v7929_v1  ;;  %v538_v47 = vadd.f32 %v532_v29, %v7930_v21  ;;  %v7935_v23 = vld [vmem:[#allocation42_spill] sm:$0xff]  ;;  %v7937_v1 = vld [vmem:[#allocation44_spill] sm:$0xff] }
  0x96   :  { %7925 = vst [vmem:[#allocation36_spill] sm:$0xff] %v4006_v25  ;;  %7926 = vst [vmem:[#allocation87_spill] sm:$0xff] %v4008_v53  ;;  %2893 = vtanh.f32 %v463_v15  ;;  %v4015_v18 = vadd.f32 0.5, %v399_v63  ;;  %v539_v51 = vadd.f32 %v532_v29, %v7932_v14  ;;  %v540_v9 = vadd.f32 %v532_v29, %v7933_v28  ;;  %v7938_v63 = vld [vmem:[#allocation45_spill] sm:$0xff] }
  0x97   :  { %7928 = vst [vmem:[#allocation37_spill] sm:$0xff] %v4011_v26  ;;  %v2870_v49 = vpop.eup %2869  ;;  %2895 = vtanh.f32 %v464_v27  ;;  %v4019_v20 = vadd.f32 0.5, %v400_v45  ;;  %v541_v38 = vadd.f32 %v532_v29, %v7935_v23  ;;  %v542_v15 = vadd.f32 %v532_v29, %v7936_v46  ;;  %v7939_v27 = vld [vmem:[#allocation46_spill] sm:$0xff]  ;;  %v7940_v45 = vld [vmem:[#allocation47_spill] sm:$0xff]  ;;  %v7941_v23 = vld [vmem:[#allocation48_spill] sm:$0xff] }
  0x98   :  { %7931 = vst [vmem:[#allocation38_spill] sm:$0xff] %v4015_v18  ;;  %v2872_v48 = vpop.eup %2871  ;;  %2897 = vtanh.f32 %v465_v17  ;;  %v543_v21 = vadd.f32 %v532_v29, %v7937_v1  ;;  %v544_v18 = vadd.f32 %v532_v29, %v7938_v63  ;;  %v545_v53 = vadd.f32 %v532_v29, %v7939_v27  ;;  %v7942_v46 = vld [vmem:[#allocation49_spill] sm:$0xff] }
  0x99   :  { %7934 = vst [vmem:[#allocation39_spill] sm:$0xff] %v4019_v20  ;;  %v2874_v26 = vpop.eup %2873  ;;  %v549_v14 = vmul.f32 0.5, %v533_v16  ;;  %2899 = vtanh.f32 %v466_v12  ;;  %v483_v28 = vmul.f32 0.5, %v2870_v49  ;;  %v546_v20 = vadd.f32 %v532_v29, %v7940_v45 }
  0x9a   :  { %v2876_v25 = vpop.eup %2875  ;;  %v550_v17 = vmul.f32 0.5, %v534_v55  ;;  %v547_v13 = vadd.f32 %v532_v29, %v7941_v23  ;;  %v548_v42 = vadd.f32 %v532_v29, %v7942_v46  ;;  %v551_v2 = vmul.f32 0.5, %v535_v43  ;;  %v7949_v46 = vld [vmem:[#allocation50_spill] sm:$0xff] }
  0x9b   :  { %v2878_v41 = vpop.eup %2877  ;;  %v552_v24 = vmul.f32 0.5, %v536_v31  ;;  %v484_v1 = vmul.f32 0.5, %v2872_v48  ;;  %v553_v5 = vmul.f32 0.5, %v537_v58  ;;  %v554_v63 = vmul.f32 0.5, %v538_v47 }
  0x9c   :  { %v2880_v50 = vpop.eup %2879  ;;  %v555_v10 = vmul.f32 0.5, %v539_v51  ;;  %v485_v16 = vmul.f32 0.5, %v2874_v26  ;;  %v556_v54 = vmul.f32 0.5, %v540_v9  ;;  %v557_v12 = vmul.f32 0.5, %v541_v38 }
  0x9d   :  { %v2882_v27 = vpop.eup %2881  ;;  %2901 = vtanh.f32 %v549_v14  ;;  %v4031_v45 = vadd.f32 0.5, %v483_v28  ;;  %v558_v55 = vmul.f32 0.5, %v542_v15  ;;  %v559_v33 = vmul.f32 0.5, %v543_v21 }
  0x9e   :  { %v2884_v49 = vpop.eup %2883  ;;  %2903 = vtanh.f32 %v550_v17  ;;  %v486_v43 = vmul.f32 0.5, %v2876_v25  ;;  %v487_v31 = vmul.f32 0.5, %v2878_v41  ;;  %v560_v23 = vmul.f32 0.5, %v544_v18 }
  0x9f   :  { %7943 = vst [vmem:[#allocation40_spill] sm:$0xff] %v4031_v45  ;;  %v2886_v29 = vpop.eup %2885  ;;  %2905 = vtanh.f32 %v551_v2  ;;  %v488_v47 = vmul.f32 0.5, %v2880_v50  ;;  %v4033_v51 = vadd.f32 0.5, %v484_v1  ;;  %v561_v26 = vmul.f32 0.5, %v545_v53  ;;  %v7950_v1 = vld [vmem:[#allocation51_spill] sm:$0xff] }
  0xa0   :  { %v2888_v58 = vpop.eup %2887  ;;  %2907 = vtanh.f32 %v552_v24  ;;  %v489_v48 = vmul.f32 0.5, %v2882_v27  ;;  %v4035_v38 = vadd.f32 0.5, %v485_v16  ;;  %v562_v14 = vmul.f32 0.5, %v546_v20 }
  0xa1   :  { %7944 = vst [vmem:[#allocation41_spill] sm:$0xff] %v4033_v51  ;;  %v2890_v9 = vpop.eup %2889  ;;  %v4038_v15 = vstv %s4023_s8  ;;  %v490_v28 = vmul.f32 0.5, %v2884_v49  ;;  %v563_v17 = vmul.f32 0.5, %v547_v13  ;;  %v564_v25 = vmul.f32 0.5, %v548_v42  ;;  %s5759_s8 = sld [smem:[#allocation2 + $0x1d]] }
  0xa2   :  { %7945 = vst [vmem:[#allocation42_spill] sm:$0xff] %v4035_v38  ;;  %v2892_v21 = vpop.eup %2891  ;;  %2909 = vtanh.f32 %v553_v5  ;;  %v491_v2 = vmul.f32 0.5, %v2886_v29  ;;  %v4040_v18 = vadd.f32 0.5, %v486_v43  ;;  %v4042_v50 = vadd.f32 0.5, %v487_v31 }
  0xa3   :  { %v2894_v41 = vpop.eup %2893  ;;  %2911 = vtanh.f32 %v554_v63  ;;  %v4044_v53 = vadd.f32 0.5, %v488_v47  ;;  %v631_v20 = vadd.f32 %v4038_v15, %v7949_v46  ;;  %v632_v27 = vadd.f32 %v4038_v15, %v7950_v1  ;;  %v7953_v63 = vld [vmem:[#allocation52_spill] sm:$0xff]  ;;  %v7955_v46 = vld [vmem:[#allocation53_spill] sm:$0xff] }
  0xa4   :  { %7946 = vst [vmem:[#allocation43_spill] sm:$0xff] %v4040_v18  ;;  %7947 = vst [vmem:[#allocation44_spill] sm:$0xff] %v4042_v50  ;;  %v2896_v24 = vpop.eup %2895  ;;  %2913 = vtanh.f32 %v555_v10  ;;  %v492_v42 = vmul.f32 0.5, %v2888_v58  ;;  %v493_v5 = vmul.f32 0.5, %v2890_v9  ;;  %v4050_v16 = vadd.f32 0.5, %v489_v48  ;;  %v7956_v48 = vld [vmem:[#allocation54_spill] sm:$0xff] }
  0xa5   :  { %7948 = vst [vmem:[#allocation45_spill] sm:$0xff] %v4044_v53  ;;  %v2898_v13 = vpop.eup %2897  ;;  %2915 = vtanh.f32 %v556_v54  ;;  %v494_v49 = vmul.f32 0.5, %v2892_v21  ;;  %v4052_v29 = vadd.f32 0.5, %v490_v28  ;;  %v633_v43 = vadd.f32 %v4038_v15, %v7953_v63  ;;  %v7959_v28 = vld [vmem:[#allocation55_spill] sm:$0xff] }
  0xa6   :  { %7951 = vst [vmem:[#allocation46_spill] sm:$0xff] %v4050_v16  ;;  %2917 = vtanh.f32 %v557_v12  ;;  %v2900_v10 = vpop.eup %2899  ;;  %v495_v31 = vmul.f32 0.5, %v2894_v41  ;;  %v4056_v47 = vadd.f32 0.5, %v491_v2  ;;  %v634_v1 = vadd.f32 %v4038_v15, %v7955_v46  ;;  %v7961_v46 = vld [vmem:[#allocation56_spill] sm:$0xff] }
  0xa7   :  { %7952 = vst [vmem:[#allocation47_spill] sm:$0xff] %v4052_v29  ;;  %2919 = vtanh.f32 %v558_v55  ;;  %v496_v58 = vmul.f32 0.5, %v2896_v24  ;;  %v497_v9 = vmul.f32 0.5, %v2898_v13  ;;  %v635_v54 = vadd.f32 %v4038_v15, %v7956_v48  ;;  %v7964_v48 = vld [vmem:[#allocation58_spill] sm:$0xff] }
  0xa8   :  { %7954 = vst [vmem:[#allocation48_spill] sm:$0xff] %v4056_v47  ;;  %2921 = vtanh.f32 %v559_v33  ;;  %v4062_v21 = vadd.f32 0.5, %v492_v42  ;;  %v4064_v12 = vadd.f32 0.5, %v493_v5  ;;  %v636_v41 = vadd.f32 %v4038_v15, %v7959_v28  ;;  %v7963_v42 = vld [vmem:[#allocation57_spill] sm:$0xff] }
  0xa9   :  { %2923 = vtanh.f32 %v560_v23  ;;  %v498_v63 = vmul.f32 0.5, %v2900_v10  ;;  %v4068_v55 = vadd.f32 0.5, %v494_v49  ;;  %v637_v24 = vadd.f32 %v4038_v15, %v7961_v46 }
  0xaa   :  { %7957 = vst [vmem:[#allocation49_spill] sm:$0xff] %v4062_v21  ;;  %7958 = vst [vmem:[#allocation50_spill] sm:$0xff] %v4064_v12  ;;  %v2902_v2 = vpop.eup %2901  ;;  %2925 = vtanh.f32 %v561_v26  ;;  %v4072_v13 = vadd.f32 0.5, %v495_v31  ;;  %v638_v5 = vadd.f32 %v4038_v15, %v7963_v42  ;;  %v639_v23 = vadd.f32 %v4038_v15, %v7964_v48  ;;  %v7967_v26 = vld [vmem:[#allocation59_spill] sm:$0xff] }
  0xab   :  { %7960 = vst [vmem:[#allocation51_spill] sm:$0xff] %v4068_v55  ;;  %v2904_v33 = vpop.eup %2903  ;;  %2927 = vtanh.f32 %v562_v14  ;;  %v4078_v28 = vadd.f32 0.5, %v496_v58  ;;  %v4080_v10 = vadd.f32 0.5, %v497_v9  ;;  %v640_v49 = vadd.f32 %v4038_v15, %v7967_v26  ;;  %v7969_v55 = vld [vmem:[#allocation61_spill] sm:$0xff]  ;;  %v7971_v58 = vld [vmem:[#allocation62_spill] sm:$0xff] }
  0xac   :  { %7962 = vst [vmem:[#allocation52_spill] sm:$0xff] %v4072_v13  ;;  %v2906_v12 = vpop.eup %2905  ;;  %2929 = vtanh.f32 %v563_v17  ;;  %v581_v31 = vmul.f32 0.5, %v2902_v2  ;;  %v7968_v13 = vld [vmem:[#allocation60_spill] sm:$0xff]  ;;  %v642_v42 = vadd.f32 %v4038_v15, %v7969_v55  ;;  %v4088_v21 = vadd.f32 0.5, %v498_v63 }
  0xad   :  { %7965 = vst [vmem:[#allocation53_spill] sm:$0xff] %v4078_v28  ;;  %7966 = vst [vmem:[#allocation54_spill] sm:$0xff] %v4080_v10  ;;  %v2908_v46 = vpop.eup %2907  ;;  %2931 = vtanh.f32 %v564_v25  ;;  %v641_v14 = vadd.f32 %v4038_v15, %v7968_v13  ;;  %v582_v48 = vmul.f32 0.5, %v2904_v33  ;;  %v643_v9 = vadd.f32 %v4038_v15, %v7971_v58  ;;  %v7972_v28 = vld [vmem:[#allocation63_spill] sm:$0xff]  ;;  %v7973_v2 = vld [vmem:[#allocation64_spill] sm:$0xff] }
  0xae   :  { %7970 = vst [vmem:[#allocation55_spill] sm:$0xff] %v4088_v21  ;;  %v647_v10 = vmul.f32 0.5, %v631_v20  ;;  %v583_v26 = vmul.f32 0.5, %v2906_v12  ;;  %v644_v25 = vadd.f32 %v4038_v15, %v7972_v28  ;;  %v645_v13 = vadd.f32 %v4038_v15, %v7973_v2 }
  0xaf   :  { %v2910_v17 = vpop.eup %2909  ;;  %v648_v47 = vmul.f32 0.5, %v632_v27  ;;  %v584_v55 = vmul.f32 0.5, %v2908_v46  ;;  %v646_v63 = vadd.f32 %v4038_v15, %v3698_v6  ;;  %v649_v33 = vmul.f32 0.5, %v633_v43 }
  0xb0   :  { %v2912_v29 = vpop.eup %2911  ;;  %v650_v21 = vmul.f32 0.5, %v634_v1  ;;  %v4100_v20 = vadd.f32 0.5, %v581_v31  ;;  %v651_v16 = vmul.f32 0.5, %v635_v54  ;;  %v652_v53 = vmul.f32 0.5, %v636_v41 }
  0xb1   :  { %v2914_v58 = vpop.eup %2913  ;;  %v653_v12 = vmul.f32 0.5, %v637_v24  ;;  %v585_v18 = vmul.f32 0.5, %v2910_v17  ;;  %v4102_v28 = vadd.f32 0.5, %v582_v48  ;;  %v654_v38 = vmul.f32 0.5, %v638_v5 }
  0xb2   :  { %7974 = vst [vmem:[#allocation56_spill] sm:$0xff] %v4100_v20  ;;  %v2916_v50 = vpop.eup %2915  ;;  %2933 = vtanh.f32 %v647_v10  ;;  %v4104_v2 = vadd.f32 0.5, %v583_v26  ;;  %v655_v46 = vmul.f32 0.5, %v639_v23  ;;  %v656_v51 = vmul.f32 0.5, %v640_v49 }
  0xb3   :  { %7975 = vst [vmem:[#allocation57_spill] sm:$0xff] %v4102_v28  ;;  %v2918_v27 = vpop.eup %2917  ;;  %2935 = vtanh.f32 %v648_v47  ;;  %v586_v15 = vmul.f32 0.5, %v2912_v29  ;;  %v4106_v43 = vadd.f32 0.5, %v584_v55  ;;  %v657_v1 = vmul.f32 0.5, %v641_v14 }
  0xb4   :  { %7976 = vst [vmem:[#allocation58_spill] sm:$0xff] %v4104_v2  ;;  %v2920_v6 = vpop.eup %2919  ;;  %2937 = vtanh.f32 %v649_v33  ;;  %v587_v41 = vmul.f32 0.5, %v2914_v58  ;;  %v588_v24 = vmul.f32 0.5, %v2916_v50  ;;  %v658_v31 = vmul.f32 0.5, %v642_v42 }
  0xb5   :  { %7977 = vst [vmem:[#allocation59_spill] sm:$0xff] %v4106_v43  ;;  %v2922_v54 = vpop.eup %2921  ;;  %2939 = vtanh.f32 %v650_v21  ;;  %v4108_v10 = vadd.f32 0.5, %v585_v18  ;;  %v659_v48 = vmul.f32 0.5, %v643_v9  ;;  %v660_v17 = vmul.f32 0.5, %v644_v25 }
  0xb6   :  { %v2924_v5 = vpop.eup %2923  ;;  %2941 = vtanh.f32 %v651_v16  ;;  %v589_v47 = vmul.f32 0.5, %v2918_v27  ;;  %v661_v49 = vmul.f32 0.5, %v645_v13  ;;  %v728_v29 = vstv %s4092_s9  ;;  %s5813_s9 = sld [smem:[#allocation2 + $0x1e]] }
  0xb7   :  { %7978 = vst [vmem:[#allocation60_spill] sm:$0xff] %v4108_v10  ;;  %v2926_v23 = vpop.eup %2925  ;;  %2943 = vtanh.f32 %v652_v53  ;;  %v590_v14 = vmul.f32 0.5, %v2920_v6  ;;  %v4111_v55 = vadd.f32 0.5, %v586_v15  ;;  %v662_v33 = vmul.f32 0.5, %v646_v63 }
  0xb8   :  { %v2928_v26 = vpop.eup %2927  ;;  %2945 = vtanh.f32 %v653_v12  ;;  %v591_v42 = vmul.f32 0.5, %v2922_v54  ;;  %v4113_v21 = vadd.f32 0.5, %v587_v41  ;;  %v4115_v18 = vadd.f32 0.5, %v588_v24 }
  0xb9   :  { %7979 = vst [vmem:[#allocation61_spill] sm:$0xff] %v4111_v55  ;;  %v2930_v50 = vpop.eup %2929  ;;  %2947 = vtanh.f32 %v654_v38  ;;  %v592_v16 = vmul.f32 0.5, %v2924_v5  ;;  %v593_v25 = vmul.f32 0.5, %v2926_v23  ;;  %v729_v53 = vadd.f32 %v728_v29, %v3701_v61 }
  0xba   :  { %7980 = vst [vmem:[#allocation62_spill] sm:$0xff] %v4113_v21  ;;  %7981 = vst [vmem:[#allocation63_spill] sm:$0xff] %v4115_v18  ;;  %v2932_v9 = vpop.eup %2931  ;;  %2949 = vtanh.f32 %v655_v46  ;;  %v594_v13 = vmul.f32 0.5, %v2928_v26  ;;  %v4118_v58 = vadd.f32 0.5, %v589_v47  ;;  %v730_v63 = vadd.f32 %v728_v29, %v3704_v60  ;;  %v7991_v26 = vld [vmem:[#allocation66_spill] sm:$0xff] }
  0xbb   :  { %2951 = vtanh.f32 %v656_v51  ;;  %v595_v12 = vmul.f32 0.5, %v2930_v50  ;;  %v4121_v27 = vadd.f32 0.5, %v590_v14  ;;  %v731_v6 = vadd.f32 %v728_v29, %v3707_v62 }
  0xbc   :  { %7982 = vst [vmem:[#allocation64_spill] sm:$0xff] %v4118_v58  ;;  %2953 = vtanh.f32 %v657_v1  ;;  %v596_v15 = vmul.f32 0.5, %v2932_v9  ;;  %v4124_v38 = vadd.f32 0.5, %v591_v42  ;;  %v732_v46 = vadd.f32 %v728_v29, %v3710_v35  ;;  %v7989_v35 = vld [vmem:[#allocation65_spill] sm:$0xff]  ;;  %v7993_v42 = vld [vmem:[#allocation68_spill] sm:$0xff] }
  0xbd   :  { %7983 = vst [vmem:[#allocation88_spill] sm:$0xff] %v4121_v27  ;;  %2955 = vtanh.f32 %v658_v31  ;;  %v4127_v54 = vadd.f32 0.5, %v592_v16  ;;  %v4129_v61 = vadd.f32 0.5, %v593_v25  ;;  %v733_v51 = vadd.f32 %v728_v29, %v3713_v34 }
  0xbe   :  { %7984 = vst [vmem:[#allocation89_spill] sm:$0xff] %v4124_v38  ;;  %2957 = vtanh.f32 %v659_v48  ;;  %v4132_v41 = vadd.f32 0.5, %v594_v13  ;;  %v734_v1 = vadd.f32 %v728_v29, %v3717_v59  ;;  %v735_v62 = vadd.f32 %v728_v29, %v3720_v0  ;;  %v7992_v0 = vld [vmem:[#allocation67_spill] sm:$0xff] }
  0xbf   :  { %7985 = vst [vmem:[#allocation90_spill] sm:$0xff] %v4127_v54  ;;  %7986 = vst [vmem:[#allocation91_spill] sm:$0xff] %v4129_v61  ;;  %v2934_v60 = vpop.eup %2933  ;;  %2959 = vtanh.f32 %v660_v17  ;;  %v4136_v5 = vadd.f32 0.5, %v595_v12  ;;  %v736_v31 = vadd.f32 %v728_v29, %v7989_v35  ;;  %v737_v23 = vadd.f32 %v728_v29, %v3729_v3  ;;  %v7994_v3 = vld [vmem:[#allocation69_spill] sm:$0xff]  ;;  %v7995_v12 = vld [vmem:[#allocation70_spill] sm:$0xff] }
  0xc0   :  { %7987 = vst [vmem:[#allocation92_spill] sm:$0xff] %v4132_v41  ;;  %v2936_v24 = vpop.eup %2935  ;;  %2961 = vtanh.f32 %v661_v49  ;;  %v4140_v48 = vadd.f32 0.5, %v596_v15  ;;  %v738_v34 = vadd.f32 %v728_v29, %v3732_v4  ;;  %v739_v17 = vadd.f32 %v728_v29, %v7991_v26  ;;  %v7996_v4 = vld [vmem:[#allocation71_spill] sm:$0xff] }
  0xc1   :  { %7988 = vst [vmem:[#allocation93_spill] sm:$0xff] %v4136_v5  ;;  %v2938_v47 = vpop.eup %2937  ;;  %2963 = vtanh.f32 %v662_v33  ;;  %v679_v59 = vmul.f32 0.5, %v2934_v60  ;;  %v740_v50 = vadd.f32 %v728_v29, %v7992_v0  ;;  %v741_v49 = vadd.f32 %v728_v29, %v7993_v42 }
  0xc2   :  { %7990 = vst [vmem:[#allocation65_spill] sm:$0xff] %v4140_v48  ;;  %v2940_v14 = vpop.eup %2939  ;;  %v745_v9 = vmul.f32 0.5, %v729_v53  ;;  %v680_v25 = vmul.f32 0.5, %v2936_v24  ;;  %v742_v13 = vadd.f32 %v728_v29, %v7994_v3  ;;  %v743_v15 = vadd.f32 %v728_v29, %v7995_v12 }
  0xc3   :  { %v2942_v16 = vpop.eup %2941  ;;  %v746_v33 = vmul.f32 0.5, %v730_v63  ;;  %v744_v48 = vadd.f32 %v728_v29, %v7996_v4  ;;  %v747_v26 = vmul.f32 0.5, %v731_v6  ;;  %v748_v5 = vmul.f32 0.5, %v732_v46 }
  0xc4   :  { %v2944_v35 = vpop.eup %2943  ;;  %v749_v41 = vmul.f32 0.5, %v733_v51  ;;  %v681_v60 = vmul.f32 0.5, %v2938_v47  ;;  %v750_v54 = vmul.f32 0.5, %v734_v1  ;;  %v751_v0 = vmul.f32 0.5, %v735_v62 }
  0xc5   :  { %v2946_v61 = vpop.eup %2945  ;;  %v752_v38 = vmul.f32 0.5, %v736_v31  ;;  %v682_v53 = vmul.f32 0.5, %v2940_v14  ;;  %v4151_v27 = vadd.f32 0.5, %v679_v59  ;;  %v753_v24 = vmul.f32 0.5, %v737_v23 }
  0xc6   :  { %v2948_v42 = vpop.eup %2947  ;;  %2965 = vtanh.f32 %v745_v9  ;;  %v4153_v12 = vadd.f32 0.5, %v680_v25  ;;  %v754_v63 = vmul.f32 0.5, %v738_v34  ;;  %v755_v58 = vmul.f32 0.5, %v739_v17 }
  0xc7   :  { %7997 = vst [vmem:[#allocation66_spill] sm:$0xff] %v4151_v27  ;;  %v2950_v3 = vpop.eup %2949  ;;  %2967 = vtanh.f32 %v746_v33  ;;  %v683_v6 = vmul.f32 0.5, %v2942_v16  ;;  %v684_v46 = vmul.f32 0.5, %v2944_v35  ;;  %v756_v51 = vmul.f32 0.5, %v740_v50 }
  0xc8   :  { %7998 = vst [vmem:[#allocation67_spill] sm:$0xff] %v4153_v12  ;;  %v2952_v29 = vpop.eup %2951  ;;  %2969 = vtanh.f32 %v747_v26  ;;  %v685_v62 = vmul.f32 0.5, %v2946_v61  ;;  %v4155_v31 = vadd.f32 0.5, %v681_v60  ;;  %v757_v47 = vmul.f32 0.5, %v741_v49  ;;  %v3222_v26 = vld [vmem:[%s7559_s2 + $0x8] sm:$0xff] }
  0xc9   :  { %v2954_v1 = vpop.eup %2953  ;;  %2971 = vtanh.f32 %v748_v5  ;;  %v4157_v14 = vadd.f32 0.5, %v682_v53  ;;  %v758_v59 = vmul.f32 0.5, %v742_v13  ;;  %v4160_v34 = vstv %s4144_s10  ;;  %s5842_s10 = sld [smem:[#allocation2 + $0x1f]] }
  0xca   :  { %7999 = vst [vmem:[#allocation68_spill] sm:$0xff] %v4155_v31  ;;  %v2956_v23 = vpop.eup %2955  ;;  %2973 = vtanh.f32 %v749_v41  ;;  %v686_v9 = vmul.f32 0.5, %v2948_v42  ;;  %v759_v25 = vmul.f32 0.5, %v743_v15  ;;  %v760_v16 = vmul.f32 0.5, %v744_v48  ;;  %v3221_v41 = vld [vmem:[%s7559_s2] sm:$0xff]  ;;  %v3223_v42 = vld [vmem:[%s7559_s2 + $0x10] sm:$0xff] }
  0xcb   :  { %8000 = vst [vmem:[#allocation69_spill] sm:$0xff] %v4157_v14  ;;  %v2958_v17 = vpop.eup %2957  ;;  %2975 = vtanh.f32 %v750_v54  ;;  %v687_v33 = vmul.f32 0.5, %v2950_v3  ;;  %v4162_v35 = vadd.f32 0.5, %v683_v6  ;;  %v4164_v61 = vadd.f32 0.5, %v684_v46 }
  0xcc   :  { %v2960_v50 = vpop.eup %2959  ;;  %2977 = vtanh.f32 %v751_v0  ;;  %v688_v49 = vmul.f32 0.5, %v2952_v29  ;;  %v4166_v4 = vadd.f32 0.5, %v685_v62  ;;  %v4172_v13 = vmul.f32 %v3221_v41, %v4160_v34  ;;  %v3225_v62 = vld [vmem:[%s7559_s2 + $0x20] sm:$0xff] }
  0xcd   :  { %8001 = vst [vmem:[#allocation70_spill] sm:$0xff] %v4162_v35  ;;  %8002 = vst [vmem:[#allocation71_spill] sm:$0xff] %v4164_v61  ;;  %v2962_v5 = vpop.eup %2961  ;;  %2979 = vtanh.f32 %v752_v38  ;;  %v689_v48 = vmul.f32 0.5, %v2954_v1  ;;  %v690_v15 = vmul.f32 0.5, %v2956_v23  ;;  %v4180_v60 = vmul.f32 %v3222_v26, %v4160_v34 }
  0xce   :  { %8003 = vst [vmem:[#allocation94_spill] sm:$0xff] %v4166_v4  ;;  %v2964_v54 = vpop.eup %2963  ;;  %2981 = vtanh.f32 %v753_v24  ;;  %v691_v38 = vmul.f32 0.5, %v2958_v17  ;;  %v4184_v0 = vadd.f32 0.5, %v686_v9  ;;  %v812_v53 = vmul.f32 %v3223_v42, %v4160_v34 }
  0xcf   :  { %2983 = vtanh.f32 %v754_v63  ;;  %v692_v24 = vmul.f32 0.5, %v2960_v50  ;;  %v693_v3 = vmul.f32 0.5, %v2962_v5  ;;  %v4192_v29 = vadd.f32 0.5, %v687_v33  ;;  %v3224_v63 = vld [vmem:[%s7559_s2 + $0x18] sm:$0xff] }
  0xd0   :  { %8004 = vst [vmem:[#allocation95_spill] sm:$0xff] %v4184_v0  ;;  %2985 = vtanh.f32 %v755_v58  ;;  %v694_v6 = vmul.f32 0.5, %v2964_v54  ;;  %v4194_v46 = vadd.f32 0.5, %v688_v49  ;;  %v813_v1 = vmul.f32 %v3224_v63, %v4160_v34  ;;  %v3226_v58 = vld [vmem:[%s7559_s2 + $0x28] sm:$0xff]  ;;  %v3227_v49 = vld [vmem:[%s7559_s2 + $0x30] sm:$0xff] }
  0xd1   :  { %8005 = vst [vmem:[#allocation96_spill] sm:$0xff] %v4192_v29  ;;  %v814_v23 = vmul.f32 %v3225_v62, %v4160_v34  ;;  %v4204_v17 = vadd.f32 0.5, %v689_v48  ;;  %v4206_v9 = vadd.f32 0.5, %v690_v15  ;;  %2987 = vtanh.f32 %v756_v51  ;;  %v3228_v51 = vld [vmem:[%s7559_s2 + $0x38] sm:$0xff]  ;;  %v3230_v62 = vld [vmem:[%s7559_s2 + $0x48] sm:$0xff] }
  0xd2   :  { %8006 = vst [vmem:[#allocation97_spill] sm:$0xff] %v4194_v46  ;;  %v815_v50 = vmul.f32 %v3226_v58, %v4160_v34  ;;  %v4212_v5 = vadd.f32 0.5, %v691_v38  ;;  %2989 = vtanh.f32 %v757_v47  ;;  %v816_v41 = vmul.f32 %v3227_v49, %v4160_v34  ;;  %v3229_v47 = vld [vmem:[%s7559_s2 + $0x40] sm:$0xff] }
  0xd3   :  { %8007 = vst [vmem:[#allocation98_spill] sm:$0xff] %v4204_v17  ;;  %8008 = vst [vmem:[#allocation99_spill] sm:$0xff] %v4206_v9  ;;  %v2966_v33 = vpop.eup %2965  ;;  %v817_v54 = vmul.f32 %v3228_v51, %v4160_v34  ;;  %v4222_v15 = vadd.f32 0.5, %v692_v24  ;;  %v4224_v26 = vadd.f32 0.5, %v693_v3  ;;  %2991 = vtanh.f32 %v758_v59  ;;  %v3231_v59 = vld [vmem:[%s7559_s2 + $0x50] sm:$0xff] }
  0xd4   :  { %8009 = vst [vmem:[#allocation100_spill] sm:$0xff] %v4212_v5  ;;  %v2968_v48 = vpop.eup %2967  ;;  %v818_v38 = vmul.f32 %v3229_v47, %v4160_v34  ;;  %v4230_v63 = vadd.f32 0.5, %v694_v6  ;;  %2993 = vtanh.f32 %v759_v25  ;;  %v819_v24 = vmul.f32 %v3230_v62, %v4160_v34  ;;  %v3232_v25 = vld [vmem:[%s7559_s2 + $0x58] sm:$0xff] }
  0xd5   :  { %8010 = vst [vmem:[#allocation101_spill] sm:$0xff] %v4222_v15  ;;  %8011 = vst [vmem:[#allocation102_spill] sm:$0xff] %v4224_v26  ;;  %v2970_v42 = vpop.eup %2969  ;;  %v820_v3 = vmul.f32 %v3231_v59, %v4160_v34  ;;  %2995 = vtanh.f32 %v760_v16  ;;  %v777_v49 = vmul.f32 0.5, %v2966_v33  ;;  %v821_v6 = vmul.f32 %v3232_v25, %v4160_v34  ;;  %v3234_v16 = vld [vmem:[%s7559_s2 + $0x68] sm:$0xff]  ;;  %v3235_v26 = vld [vmem:[%s7559_s2 + $0x70] sm:$0xff] }
  0xd6   :  { %8012 = vst [vmem:[#allocation103_spill] sm:$0xff] %v4230_v63  ;;  %v2972_v58 = vpop.eup %2971  ;;  %v826_v51 = vstv %s4174_s13  ;;  %v778_v62 = vmul.f32 0.5, %v2968_v48  ;;  %v3233_v63 = vld [vmem:[%s7559_s2 + $0x60] sm:$0xff]  ;;  %v823_v33 = vmul.f32 %v3234_v16, %v4160_v34  ;;  %v824_v25 = vmul.f32 %v3235_v26, %v4160_v34  ;;  %v3236_v5 = vld [vmem:[%s7559_s2 + $0x78] sm:$0xff]  ;;  %s4303_s2 = sld [smem:[#allocation2 + $0xa]] }
  0xd7   :  { %v2974_v47 = vpop.eup %2973  ;;  %v822_v59 = vmul.f32 %v3233_v63, %v4160_v34  ;;  %v779_v48 = vmul.f32 0.5, %v2970_v42  ;;  %v825_v63 = vmul.f32 %v3236_v5, %v4160_v34  ;;  %v4262_v9 = vstv %s4182_s16  ;;  %s4327_s16 = sld [smem:[#allocation2 + $0xb]] }
  0xd8   :  { %v2976_v15 = vpop.eup %2975  ;;  %v4265_v17 = vstv %s4190_s19  ;;  %v780_v16 = vmul.f32 0.5, %v2972_v58  ;;  %v827_v29 = vadd.f32 %v826_v51, %v4172_v13  ;;  %v828_v0 = vadd.f32 %v826_v51, %v4180_v60  ;;  %s4499_s19 = sld [smem:[#allocation2 + $0xd]] }
  0xd9   :  { %v2978_v46 = vpop.eup %2977  ;;  %v829_v4 = vadd.f32 %v826_v51, %v812_v53  ;;  %v781_v61 = vmul.f32 0.5, %v2974_v47  ;;  %v4269_v42 = vadd.f32 0.5, %v777_v49  ;;  %v830_v35 = vadd.f32 %v826_v51, %v813_v1  ;;  %s6256_s13 = sld [smem:[#allocation2 + $0x23]] }
  0xda   :  { %v2980_v26 = vpop.eup %2979  ;;  %v831_v14 = vadd.f32 %v826_v51, %v814_v23  ;;  %v782_v12 = vmul.f32 0.5, %v2976_v15  ;;  %v4271_v34 = vadd.f32 0.5, %v778_v62  ;;  %v832_v5 = vadd.f32 %v826_v51, %v815_v50 }
  0xdb   :  { %8013 = vst [vmem:[#allocation104_spill] sm:$0xff] %v4269_v42  ;;  %v2982_v31 = vpop.eup %2981  ;;  %v833_v27 = vadd.f32 %v826_v51, %v816_v41  ;;  %v4273_v21 = vadd.f32 0.5, %v779_v48  ;;  %v834_v58 = vadd.f32 %v826_v51, %v817_v54  ;;  %v835_v13 = vadd.f32 %v826_v51, %v818_v38 }
  0xdc   :  { %8014 = vst [vmem:[#allocation105_spill] sm:$0xff] %v4271_v34  ;;  %v2984_v18 = vpop.eup %2983  ;;  %v836_v55 = vadd.f32 %v826_v51, %v819_v24  ;;  %v783_v53 = vmul.f32 0.5, %v2978_v46  ;;  %v784_v10 = vmul.f32 0.5, %v2980_v26  ;;  %v4275_v47 = vadd.f32 0.5, %v780_v16 }
  0xdd   :  { %8015 = vst [vmem:[#allocation106_spill] sm:$0xff] %v4273_v21  ;;  %v2986_v60 = vpop.eup %2985  ;;  %v837_v49 = vadd.f32 %v826_v51, %v820_v3  ;;  %v785_v1 = vmul.f32 0.5, %v2982_v31  ;;  %v4277_v23 = vadd.f32 0.5, %v781_v61  ;;  %v838_v15 = vadd.f32 %v826_v51, %v821_v6 }
  0xde   :  { %8016 = vst [vmem:[#allocation107_spill] sm:$0xff] %v4275_v47  ;;  %v839_v62 = vadd.f32 %v826_v51, %v822_v59  ;;  %v2988_v34 = vpop.eup %2987  ;;  %v786_v50 = vmul.f32 0.5, %v2984_v18  ;;  %v4279_v41 = vadd.f32 0.5, %v782_v12  ;;  %v840_v48 = vadd.f32 %v826_v51, %v823_v33 }
  0xdf   :  { %8017 = vst [vmem:[#allocation108_spill] sm:$0xff] %v4277_v23  ;;  %v843_v21 = vmul.f32 0.5, %v827_v29  ;;  %v2990_v54 = vpop.eup %2989  ;;  %v787_v38 = vmul.f32 0.5, %v2986_v60  ;;  %v841_v24 = vadd.f32 %v826_v51, %v824_v25  ;;  %v842_v42 = vadd.f32 %v826_v51, %v825_v63 }
  0xe0   :  { %8018 = vst [vmem:[#allocation109_spill] sm:$0xff] %v4279_v41  ;;  %v844_v46 = vmul.f32 0.5, %v828_v0  ;;  %v2992_v26 = vpop.eup %2991  ;;  %v4281_v16 = vadd.f32 0.5, %v783_v53  ;;  %v4283_v3 = vadd.f32 0.5, %v784_v10  ;;  %v845_v31 = vmul.f32 0.5, %v829_v4 }
  0xe1   :  { %v846_v61 = vmul.f32 0.5, %v830_v35  ;;  %v2994_v6 = vpop.eup %2993  ;;  %v788_v59 = vmul.f32 0.5, %v2988_v34  ;;  %v4285_v23 = vadd.f32 0.5, %v785_v1  ;;  %v847_v18 = vmul.f32 0.5, %v831_v14 }
  0xe2   :  { %8019 = vst [vmem:[#allocation110_spill] sm:$0xff] %v4281_v16  ;;  %8020 = vst [vmem:[#allocation111_spill] sm:$0xff] %v4283_v3  ;;  %v848_v12 = vmul.f32 0.5, %v832_v5  ;;  %v2996_v33 = vpop.eup %2995  ;;  %v789_v29 = vmul.f32 0.5, %v2990_v54  ;;  %v4287_v41 = vadd.f32 0.5, %v786_v50  ;;  %v849_v25 = vmul.f32 0.5, %v833_v27 }
  0xe3   :  { %8021 = vst [vmem:[#allocation112_spill] sm:$0xff] %v4285_v23  ;;  %2997 = vtanh.f32 %v843_v21  ;;  %v790_v0 = vmul.f32 0.5, %v2992_v26  ;;  %v4289_v51 = vadd.f32 0.5, %v787_v38  ;;  %v850_v63 = vmul.f32 0.5, %v834_v58 }
  0xe4   :  { %8022 = vst [vmem:[#allocation113_spill] sm:$0xff] %v4287_v41  ;;  %2999 = vtanh.f32 %v844_v46  ;;  %v791_v10 = vmul.f32 0.5, %v2994_v6  ;;  %v851_v4 = vmul.f32 0.5, %v835_v13  ;;  %v852_v35 = vmul.f32 0.5, %v836_v55 }
  0xe5   :  { %8023 = vst [vmem:[#allocation114_spill] sm:$0xff] %v4289_v51  ;;  %3001 = vtanh.f32 %v845_v31  ;;  %v792_v34 = vmul.f32 0.5, %v2996_v33  ;;  %v4291_v60 = vadd.f32 0.5, %v788_v59  ;;  %v853_v14 = vmul.f32 0.5, %v837_v49 }
  0xe6   :  { %3003 = vtanh.f32 %v846_v61  ;;  %v4293_v5 = vadd.f32 0.5, %v789_v29  ;;  %v854_v53 = vmul.f32 0.5, %v838_v15  ;;  %v855_v1 = vmul.f32 0.5, %v839_v62  ;;  %v8036_v29 = vld [vmem:[#allocation78_spill] sm:$0xff] }
  0xe7   :  { %8024 = vst [vmem:[#allocation115_spill] sm:$0xff] %v4291_v60  ;;  %3005 = vtanh.f32 %v847_v18  ;;  %v4295_v21 = vadd.f32 0.5, %v790_v0  ;;  %v856_v27 = vmul.f32 0.5, %v840_v48  ;;  %v857_v50 = vmul.f32 0.5, %v841_v24  ;;  %v8037_v0 = vld [vmem:[#allocation79_spill] sm:$0xff] }
  0xe8   :  { %8025 = vst [vmem:[#allocation116_spill] sm:$0xff] %v4293_v5  ;;  %3007 = vtanh.f32 %v848_v12  ;;  %v4297_v58 = vadd.f32 0.5, %v791_v10  ;;  %v858_v13 = vmul.f32 0.5, %v842_v42  ;;  %v4301_v55 = vmul.f32 %v4262_v9, %v3839_v37  ;;  %v8034_v12 = vld [vmem:[#allocation77_spill] sm:$0xff] }
  0xe9   :  { %8026 = vst [vmem:[#allocation117_spill] sm:$0xff] %v4295_v21  ;;  %3009 = vtanh.f32 %v849_v25  ;;  %v4305_v49 = vadd.f32 0.5, %v792_v34  ;;  %v4309_v15 = vmul.f32 %v4262_v9, %v3845_v40  ;;  %v4313_v62 = vmul.f32 %v4262_v9, %v3851_v8  ;;  %v8039_v34 = vld [vmem:[#allocation81_spill] sm:$0xff] }
  0xea   :  { %8027 = vst [vmem:[#allocation118_spill] sm:$0xff] %v4297_v58  ;;  %3011 = vtanh.f32 %v850_v63  ;;  %v4317_v42 = vmul.f32 %v4262_v9, %v3857_v52  ;;  %v4321_v48 = vmul.f32 %v4262_v9, %v3863_v30  ;;  %v4325_v54 = vmul.f32 %v4262_v9, %v3869_v32  ;;  %v8054_v32 = vld [vmem:[#allocation27_spill] sm:$0xff] }
  0xeb   :  { %8028 = vst [vmem:[#allocation119_spill] sm:$0xff] %v4305_v49  ;;  %3013 = vtanh.f32 %v851_v4  ;;  %v4331_v38 = vmul.f32 %v4262_v9, %v3875_v57  ;;  %v4335_v24 = vmul.f32 %v4262_v9, %v3878_v11  ;;  %v4339_v46 = vmul.f32 %v4262_v9, %v3881_v39  ;;  %v8038_v4 = vld [vmem:[#allocation80_spill] sm:$0xff]  ;;  %v8050_v39 = vld [vmem:[#allocation25_spill] sm:$0xff] }
  0xec   :  { %3015 = vtanh.f32 %v852_v35  ;;  %v4343_v26 = vmul.f32 %v4262_v9, %v3884_v44  ;;  %v4347_v31 = vmul.f32 %v4262_v9, %v3888_v19  ;;  %v4351_v61 = vmul.f32 %v4262_v9, %v3892_v36  ;;  %v8046_v19 = vld [vmem:[#allocation23_spill] sm:$0xff]  ;;  %v8048_v44 = vld [vmem:[#allocation24_spill] sm:$0xff] }
  0xed   :  { %3017 = vtanh.f32 %v853_v14  ;;  %v4355_v6 = vmul.f32 %v4262_v9, %v3896_v22  ;;  %v4359_v59 = vmul.f32 %v4262_v9, %v3900_v7  ;;  %v4363_v18 = vmul.f32 %v4262_v9, %v3903_v56  ;;  %v8044_v7 = vld [vmem:[#allocation21_spill] sm:$0xff] }
  0xee   :  { %8029 = vst [vmem:[#allocation120_spill] sm:$0xff] %v4347_v31  ;;  %8030 = vst [vmem:[#allocation121_spill] sm:$0xff] %v4351_v61  ;;  %3019 = vtanh.f32 %v854_v53  ;;  %v4367_v33 = vmul.f32 %v4262_v9, %v8034_v12  ;;  %v4371_v25 = vmul.f32 %v4265_v17, %v8036_v29  ;;  %v4375_v63 = vmul.f32 %v4265_v17, %v8037_v0  ;;  %v8040_v9 = vld [vmem:[#allocation82_spill] sm:$0xff]  ;;  %v8042_v12 = vld [vmem:[#allocation19_spill] sm:$0xff] }
  0xef   :  { %8031 = vst [vmem:[#allocation122_spill] sm:$0xff] %v4355_v6  ;;  %8032 = vst [vmem:[#allocation123_spill] sm:$0xff] %v4359_v59  ;;  %3021 = vtanh.f32 %v855_v1  ;;  %v4379_v35 = vmul.f32 %v4265_v17, %v8038_v4  ;;  %v4383_v14 = vmul.f32 %v4265_v17, %v8039_v34  ;;  %v4387_v53 = vmul.f32 %v4265_v17, %v8040_v9  ;;  %v8041_v29 = vld [vmem:[#allocation18_spill] sm:$0xff]  ;;  %v8043_v4 = vld [vmem:[#allocation20_spill] sm:$0xff] }
  0xf0   :  { %8033 = vst [vmem:[#allocation124_spill] sm:$0xff] %v4363_v18  ;;  %8035 = vst [vmem:[#allocation125_spill] sm:$0xff] %v4367_v33  ;;  %v2998_v10 = vpop.eup %2997  ;;  %3023 = vtanh.f32 %v856_v27  ;;  %v4391_v0 = vmul.f32 %v4265_v17, %v8041_v29  ;;  %v4395_v27 = vmul.f32 %v4265_v17, %v8042_v12  ;;  %v4399_v56 = vmul.f32 %v4265_v17, %v8043_v4  ;;  %v8060_v33 = vld [vmem:[#allocation30_spill] sm:$0xff]  ;;  %v8062_v18 = vld [vmem:[#allocation31_spill] sm:$0xff] }
  0xf1   :  { %v3000_v1 = vpop.eup %2999  ;;  %3025 = vtanh.f32 %v857_v50  ;;  %v4403_v9 = vmul.f32 %v4265_v17, %v8044_v7  ;;  %v8045_v50 = vld [vmem:[#allocation22_spill] sm:$0xff]  ;;  %v941_v29 = vstv %s4303_s2  ;;  %v4412_v12 = vmul.f32 %v4265_v17, %v8046_v19  ;;  %v8056_v19 = vld [vmem:[#allocation28_spill] sm:$0xff]  ;;  %v8116_v31 = vld [vmem:[#allocation49_spill] sm:$0xff]  ;;  %s6376_s2 = sld [smem:[#allocation2 + $0x25]] }
  0xf2   :  { %v3002_v34 = vpop.eup %3001  ;;  %3027 = vtanh.f32 %v858_v13  ;;  %v4407_v22 = vmul.f32 %v4265_v17, %v8045_v50  ;;  %v4416_v4 = vmul.f32 %v4265_v17, %v8048_v44  ;;  %v4420_v13 = vmul.f32 %v4265_v17, %v8050_v39  ;;  %v8052_v7 = vld [vmem:[#allocation26_spill] sm:$0xff]  ;;  %v8058_v39 = vld [vmem:[#allocation29_spill] sm:$0xff] }
  0xf3   :  { %v3004_v36 = vpop.eup %3003  ;;  %8047 = vst [vmem:[#allocation126_spill] sm:$0xff] %v4412_v12  ;;  %v4424_v11 = vmul.f32 %v4265_v17, %v8052_v7  ;;  %v875_v57 = vmul.f32 0.5, %v2998_v10  ;;  %v4428_v30 = vmul.f32 %v4265_v17, %v8054_v32  ;;  %v4432_v52 = vmul.f32 %v4265_v17, %v8056_v19  ;;  %v8066_v17 = vld [vmem:[#allocation33_spill] sm:$0xff]  ;;  %v8092_v12 = vld [vmem:[#allocation39_spill] sm:$0xff] }
  0xf4   :  { %8049 = vst [vmem:[#allocation127_spill] sm:$0xff] %v4416_v4  ;;  %8051 = vst [vmem:[#allocation128_spill] sm:$0xff] %v4420_v13  ;;  %v3006_v50 = vpop.eup %3005  ;;  %v4435_v44 = vstv %s4327_s16  ;;  %v876_v40 = vmul.f32 0.5, %v3000_v1  ;;  %v4438_v37 = vmul.f32 %v941_v29, %v8058_v39  ;;  %v4441_v7 = vmul.f32 %v941_v29, %v8060_v33  ;;  %v8072_v33 = vld [vmem:[#allocation85_spill] sm:$0xff]  ;;  %s6386_s16 = sld [smem:[#allocation2 + $0x26]] }
  0xf5   :  { %8053 = vst [vmem:[#allocation129_spill] sm:$0xff] %v4424_v11  ;;  %8055 = vst [vmem:[#allocation130_spill] sm:$0xff] %v4428_v30  ;;  %v3008_v8 = vpop.eup %3007  ;;  %v4444_v10 = vmul.f32 %v941_v29, %v8062_v18  ;;  %v877_v32 = vmul.f32 0.5, %v3002_v34  ;;  %v8064_v30 = vld [vmem:[#allocation32_spill] sm:$0xff]  ;;  %v4450_v19 = vmul.f32 %v941_v29, %v8066_v17  ;;  %v878_v39 = vmul.f32 0.5, %v3004_v36  ;;  %v8074_v18 = vld [vmem:[#allocation86_spill] sm:$0xff] }
  0xf6   :  { %8057 = vst [vmem:[#allocation131_spill] sm:$0xff] %v4432_v52  ;;  %8059 = vst [vmem:[#allocation132_spill] sm:$0xff] %v4438_v37  ;;  %v3010_v11 = vpop.eup %3009  ;;  %v4447_v59 = vmul.f32 %v941_v29, %v8064_v30  ;;  %v8068_v52 = vld [vmem:[#allocation83_spill] sm:$0xff]  ;;  %v8070_v37 = vld [vmem:[#allocation84_spill] sm:$0xff]  ;;  %v879_v30 = vmul.f32 0.5, %v3006_v50 }
  0xf7   :  { %8061 = vst [vmem:[#allocation133_spill] sm:$0xff] %v4441_v7  ;;  %8063 = vst [vmem:[#allocation134_spill] sm:$0xff] %v4444_v10  ;;  %v4453_v13 = vmul.f32 %v941_v29, %v8068_v52  ;;  %v3012_v1 = vpop.eup %3011  ;;  %v4456_v6 = vmul.f32 %v941_v29, %v8070_v37  ;;  %v4459_v7 = vmul.f32 %v941_v29, %v8072_v33  ;;  %v8077_v17 = vld [vmem:[#allocation34_spill] sm:$0xff]  ;;  %v8079_v52 = vld [vmem:[#allocation35_spill] sm:$0xff]  ;;  %v880_v37 = vmul.f32 0.5, %v3008_v8 }
  0xf8   :  { %8065 = vst [vmem:[#allocation135_spill] sm:$0xff] %v4447_v59  ;;  %8067 = vst [vmem:[#allocation136_spill] sm:$0xff] %v4450_v19  ;;  %v4462_v10 = vmul.f32 %v941_v29, %v8074_v18  ;;  %v3014_v34 = vpop.eup %3013  ;;  %v4464_v59 = vadd.f32 0.5, %v875_v57  ;;  %v4467_v19 = vmul.f32 %v941_v29, %v8077_v17  ;;  %v8082_v33 = vld [vmem:[#allocation36_spill] sm:$0xff]  ;;  %v8084_v18 = vld [vmem:[#allocation87_spill] sm:$0xff]  ;;  %v881_v50 = vmul.f32 0.5, %v3010_v11 }
  0xf9   :  { %8069 = vst [vmem:[#allocation137_spill] sm:$0xff] %v4453_v13  ;;  %8071 = vst [vmem:[#allocation138_spill] sm:$0xff] %v4456_v6  ;;  %v4470_v13 = vmul.f32 %v941_v29, %v8079_v52  ;;  %v3016_v36 = vpop.eup %3015  ;;  %v4474_v6 = vadd.f32 0.5, %v876_v40  ;;  %v4482_v4 = vadd.f32 0.5, %v877_v32  ;;  %v8087_v17 = vld [vmem:[#allocation37_spill] sm:$0xff]  ;;  %v8089_v52 = vld [vmem:[#allocation38_spill] sm:$0xff] }
  0xfa   :  { %8073 = vst [vmem:[#allocation139_spill] sm:$0xff] %v4459_v7  ;;  %8075 = vst [vmem:[#allocation140_spill] sm:$0xff] %v4462_v10  ;;  %v4477_v7 = vmul.f32 %v941_v29, %v8082_v33  ;;  %v4480_v10 = vmul.f32 %v941_v29, %v8084_v18  ;;  %v3018_v57 = vpop.eup %3017  ;;  %v882_v8 = vmul.f32 0.5, %v3012_v1  ;;  %v4490_v40 = vadd.f32 0.5, %v878_v39  ;;  %v8098_v1 = vld [vmem:[#allocation42_spill] sm:$0xff] }
  0xfb   :  { %8076 = vst [vmem:[#allocation141_spill] sm:$0xff] %v4464_v59  ;;  %8078 = vst [vmem:[#allocation142_spill] sm:$0xff] %v4467_v19  ;;  %v4485_v19 = vmul.f32 %v941_v29, %v8087_v17  ;;  %v3020_v61 = vpop.eup %3019  ;;  %v4493_v33 = vmul.f32 %v941_v29, %v8092_v12  ;;  %v4497_v18 = vmul.f32 %v4435_v44, %v4031_v45  ;;  %v883_v32 = vmul.f32 0.5, %v3014_v34 }
  0xfc   :  { %8080 = vst [vmem:[#allocation143_spill] sm:$0xff] %v4470_v13  ;;  %8081 = vst [vmem:[#allocation144_spill] sm:$0xff] %v4474_v6  ;;  %v4488_v13 = vmul.f32 %v941_v29, %v8089_v52  ;;  %v3022_v11 = vpop.eup %3021  ;;  %v4501_v17 = vadd.f32 0.5, %v879_v30  ;;  %v4509_v39 = vmul.f32 %v4435_v44, %v8098_v1  ;;  %v4511_v12 = vadd.f32 0.5, %v880_v37  ;;  %v8105_v30 = vld [vmem:[#allocation45_spill] sm:$0xff] }
  0xfd   :  { %8083 = vst [vmem:[#allocation145_spill] sm:$0xff] %v4477_v7  ;;  %8085 = vst [vmem:[#allocation146_spill] sm:$0xff] %v4480_v10  ;;  %v3024_v29 = vpop.eup %3023  ;;  %v4523_v10 = vmul.f32 %v4435_v44, %v8105_v30  ;;  %v884_v7 = vmul.f32 0.5, %v3016_v36  ;;  %v4525_v1 = vadd.f32 0.5, %v881_v50  ;;  %v8113_v30 = vld [vmem:[#allocation48_spill] sm:$0xff]  ;;  %v887_v36 = vmul.f32 0.5, %v3022_v11 }
  0xfe   :  { %8086 = vst [vmem:[#allocation147_spill] sm:$0xff] %v4482_v4  ;;  %8088 = vst [vmem:[#allocation148_spill] sm:$0xff] %v4485_v19  ;;  %v8096_v19 = vld [vmem:[#allocation41_spill] sm:$0xff]  ;;  %v4541_v50 = vadd.f32 0.5, %v883_v32 }
  0xff   :  { %8090 = vst [vmem:[#allocation149_spill] sm:$0xff] %v4488_v13  ;;  %8091 = vst [vmem:[#allocation150_spill] sm:$0xff] %v4490_v40  ;;  %v4505_v52 = vmul.f32 %v4435_v44, %v8096_v19  ;;  %v8103_v13 = vld [vmem:[#allocation44_spill] sm:$0xff]  ;;  %v3026_v19 = vpop.eup %3025  ;;  %v4558_v32 = vadd.f32 0.5, %v884_v7 }
 0x100   :  { %8093 = vst [vmem:[#allocation151_spill] sm:$0xff] %v4493_v33  ;;  %8094 = vst [vmem:[#allocation152_spill] sm:$0xff] %v4497_v18  ;;  %v8101_v33 = vld [vmem:[#allocation43_spill] sm:$0xff]  ;;  %v4519_v34 = vmul.f32 %v4435_v44, %v8103_v13  ;;  %v885_v13 = vmul.f32 0.5, %v3018_v57  ;;  %v4535_v18 = vadd.f32 0.5, %v882_v8 }
 0x101   :  { %8095 = vst [vmem:[#allocation153_spill] sm:$0xff] %v4501_v17  ;;  %8097 = vst [vmem:[#allocation154_spill] sm:$0xff] %v4505_v52  ;;  %v4515_v45 = vmul.f32 %v4435_v44, %v8101_v33  ;;  %v8110_v52 = vld [vmem:[#allocation47_spill] sm:$0xff] }
 0x102   :  { %8099 = vst [vmem:[#allocation155_spill] sm:$0xff] %v4509_v39  ;;  %8100 = vst [vmem:[#allocation156_spill] sm:$0xff] %v4511_v12  ;;  %v8108_v39 = vld [vmem:[#allocation46_spill] sm:$0xff]  ;;  %v4533_v33 = vmul.f32 %v4435_v44, %v8110_v52  ;;  %v8120_v57 = vld [vmem:[#allocation51_spill] sm:$0xff] }
 0x103   :  { %8102 = vst [vmem:[#allocation157_spill] sm:$0xff] %v4515_v45  ;;  %8104 = vst [vmem:[#allocation158_spill] sm:$0xff] %v4519_v34  ;;  %v4529_v37 = vmul.f32 %v4435_v44, %v8108_v39  ;;  %v3028_v45 = vpop.eup %3027  ;;  %v886_v34 = vmul.f32 0.5, %v3020_v61  ;;  %v4545_v39 = vmul.f32 %v4435_v44, %v8116_v31  ;;  %v889_v61 = vmul.f32 0.5, %v3026_v19 }
 0x104   :  { %8106 = vst [vmem:[#allocation159_spill] sm:$0xff] %v4523_v10  ;;  %8107 = vst [vmem:[#allocation160_spill] sm:$0xff] %v4525_v1  ;;  %v4539_v10 = vmul.f32 %v4435_v44, %v8113_v30  ;;  %v4553_v8 = vmul.f32 %v4435_v44, %v8120_v57  ;;  %v975_v30 = vstv %s4472_s18  ;;  %v890_v11 = vmul.f32 0.5, %v3028_v45  ;;  %v8129_v57 = vld [vmem:[#allocation54_spill] sm:$0xff]  ;;  %s6396_s18 = sld [smem:[#allocation2 + $0x27]] }
 0x105   :  { %8109 = vst [vmem:[#allocation161_spill] sm:$0xff] %v4529_v37  ;;  %8111 = vst [vmem:[#allocation162_spill] sm:$0xff] %v4533_v33  ;;  %v8118_v37 = vld [vmem:[#allocation50_spill] sm:$0xff]  ;;  %v888_v33 = vmul.f32 0.5, %v3024_v29  ;;  %v4568_v29 = vadd.f32 0.5, %v885_v13  ;;  %v4570_v19 = vadd.f32 0.5, %v886_v34  ;;  %v992_v13 = vstv %s4499_s19 }
 0x106   :  { %8112 = vst [vmem:[#allocation163_spill] sm:$0xff] %v4535_v18  ;;  %8114 = vst [vmem:[#allocation164_spill] sm:$0xff] %v4539_v10  ;;  %v4549_v52 = vmul.f32 %v4435_v44, %v8118_v37  ;;  %v8123_v10 = vld [vmem:[#allocation52_spill] sm:$0xff]  ;;  %v4580_v45 = vadd.f32 0.5, %v887_v36  ;;  %v4601_v36 = vadd.f32 0.5, %v890_v11  ;;  %v8153_v11 = vld [vmem:[#allocation89_spill] sm:$0xff] }
 0x107   :  { %8115 = vst [vmem:[#allocation165_spill] sm:$0xff] %v4541_v50  ;;  %8117 = vst [vmem:[#allocation166_spill] sm:$0xff] %v4545_v39  ;;  %v4562_v31 = vmul.f32 %v4435_v44, %v8123_v10  ;;  %v8125_v39 = vld [vmem:[#allocation53_spill] sm:$0xff]  ;;  %v4583_v10 = vmul.f32 %v975_v30, %v4100_v20  ;;  %v4591_v34 = vadd.f32 0.5, %v888_v33  ;;  %v8141_v20 = vld [vmem:[#allocation60_spill] sm:$0xff]  ;;  %s6760_s19 = sld [smem:[#allocation4 + $0xb]] }
 0x108   :  { %8119 = vst [vmem:[#allocation167_spill] sm:$0xff] %v4549_v52  ;;  %8121 = vst [vmem:[#allocation168_spill] sm:$0xff] %v4553_v8  ;;  %v4566_v37 = vmul.f32 %v4435_v44, %v8125_v39  ;;  %v4574_v8 = vmul.f32 %v4435_v44, %v8129_v57  ;;  %v8131_v52 = vld [vmem:[#allocation55_spill] sm:$0xff]  ;;  %v4586_v39 = vmul.f32 %v975_v30, %v4102_v28  ;;  %v8143_v28 = vld [vmem:[#allocation61_spill] sm:$0xff] }
 0x109   :  { %8122 = vst [vmem:[#allocation169_spill] sm:$0xff] %v4558_v32  ;;  %8124 = vst [vmem:[#allocation170_spill] sm:$0xff] %v4562_v31  ;;  %v4578_v7 = vmul.f32 %v4435_v44, %v8131_v52  ;;  %v4596_v57 = vmul.f32 %v975_v30, %v4104_v2  ;;  %v4599_v44 = vmul.f32 %v975_v30, %v4106_v43  ;;  %v8147_v33 = vld [vmem:[#allocation63_spill] sm:$0xff]  ;;  %v8149_v2 = vld [vmem:[#allocation64_spill] sm:$0xff] }
 0x10a   :  { %8126 = vst [vmem:[#allocation171_spill] sm:$0xff] %v4566_v37  ;;  %8127 = vst [vmem:[#allocation172_spill] sm:$0xff] %v4568_v29  ;;  %v4593_v37 = vadd.f32 0.5, %v889_v61  ;;  %v4604_v52 = vmul.f32 %v975_v30, %v8141_v20  ;;  %v4613_v61 = vmul.f32 %v975_v30, %v8147_v33  ;;  %v8151_v43 = vld [vmem:[#allocation88_spill] sm:$0xff]  ;;  %v8155_v20 = vld [vmem:[#allocation90_spill] sm:$0xff] }
 0x10b   :  { %8128 = vst [vmem:[#allocation173_spill] sm:$0xff] %v4570_v19  ;;  %8130 = vst [vmem:[#allocation174_spill] sm:$0xff] %v4574_v8  ;;  %v4622_v8 = vmul.f32 %v975_v30, %v8153_v11  ;;  %v8161_v33 = vld [vmem:[#allocation93_spill] sm:$0xff]  ;;  %v8167_v11 = vld [vmem:[#allocation67_spill] sm:$0xff] }
 0x10c   :  { %8132 = vst [vmem:[#allocation175_spill] sm:$0xff] %v4578_v7  ;;  %8133 = vst [vmem:[#allocation176_spill] sm:$0xff] %v4580_v45 }
 0x10d   :  { %8134 = vst [vmem:[#allocation177_spill] sm:$0xff] %v4583_v10  ;;  %8135 = vst [vmem:[#allocation178_spill] sm:$0xff] %v4586_v39  ;;  %v4607_v39 = vmul.f32 %v975_v30, %v8143_v28  ;;  %v8145_v10 = vld [vmem:[#allocation62_spill] sm:$0xff]  ;;  %v8157_v28 = vld [vmem:[#allocation91_spill] sm:$0xff] }
 0x10e   :  { %8136 = vst [vmem:[#allocation179_spill] sm:$0xff] %v4591_v34  ;;  %8137 = vst [vmem:[#allocation180_spill] sm:$0xff] %v4593_v37  ;;  %v4610_v7 = vmul.f32 %v975_v30, %v8145_v10  ;;  %v8159_v10 = vld [vmem:[#allocation92_spill] sm:$0xff] }
 0x10f   :  { %8138 = vst [vmem:[#allocation181_spill] sm:$0xff] %v4596_v57  ;;  %8139 = vst [vmem:[#allocation182_spill] sm:$0xff] %v4599_v44  ;;  %v4616_v57 = vmul.f32 %v975_v30, %v8149_v2  ;;  %v4619_v44 = vmul.f32 %v975_v30, %v8151_v43  ;;  %v8163_v2 = vld [vmem:[#allocation65_spill] sm:$0xff]  ;;  %v8165_v43 = vld [vmem:[#allocation66_spill] sm:$0xff] }
 0x110   :  { %8140 = vst [vmem:[#allocation183_spill] sm:$0xff] %v4601_v36  ;;  %8142 = vst [vmem:[#allocation184_spill] sm:$0xff] %v4604_v52  ;;  %v4625_v52 = vmul.f32 %v975_v30, %v8155_v20  ;;  %v8169_v20 = vld [vmem:[#allocation68_spill] sm:$0xff] }
 0x111   :  { %8144 = vst [vmem:[#allocation185_spill] sm:$0xff] %v4607_v39  ;;  %8146 = vst [vmem:[#allocation186_spill] sm:$0xff] %v4610_v7  ;;  %v4628_v39 = vmul.f32 %v975_v30, %v8157_v28  ;;  %v4631_v7 = vmul.f32 %v975_v30, %v8159_v10  ;;  %v8171_v28 = vld [vmem:[#allocation69_spill] sm:$0xff]  ;;  %v8173_v10 = vld [vmem:[#allocation70_spill] sm:$0xff] }
 0x112   :  { %8148 = vst [vmem:[#allocation187_spill] sm:$0xff] %v4613_v61  ;;  %8150 = vst [vmem:[#allocation188_spill] sm:$0xff] %v4616_v57  ;;  %v4634_v61 = vmul.f32 %v975_v30, %v8161_v33  ;;  %v4637_v57 = vmul.f32 %v975_v30, %v8163_v2  ;;  %v8175_v33 = vld [vmem:[#allocation71_spill] sm:$0xff]  ;;  %v1009_v30 = vstv %s4556_s20  ;;  %v8177_v2 = vld [vmem:[#allocation94_spill] sm:$0xff]  ;;  %s6809_s20 = sld [smem:[#allocation2 + $0x28]] }
 0x113   :  { %8152 = vst [vmem:[#allocation189_spill] sm:$0xff] %v4619_v44  ;;  %8154 = vst [vmem:[#allocation190_spill] sm:$0xff] %v4622_v8  ;;  %v4640_v44 = vmul.f32 %v992_v13, %v8165_v43  ;;  %v4643_v8 = vmul.f32 %v992_v13, %v8167_v11  ;;  %v4659_v43 = vmul.f32 %v992_v13, %v8177_v2  ;;  %v8190_v2 = vld [vmem:[#allocation101_spill] sm:$0xff] }
 0x114   :  { %8156 = vst [vmem:[#allocation191_spill] sm:$0xff] %v4625_v52  ;;  %8158 = vst [vmem:[#allocation192_spill] sm:$0xff] %v4628_v39  ;;  %v4646_v52 = vmul.f32 %v992_v13, %v8169_v20  ;;  %v4649_v39 = vmul.f32 %v992_v13, %v8171_v28  ;;  %v8185_v28 = vld [vmem:[#allocation98_spill] sm:$0xff] }
 0x115   :  { %8160 = vst [vmem:[#allocation193_spill] sm:$0xff] %v4631_v7  ;;  %8162 = vst [vmem:[#allocation194_spill] sm:$0xff] %v4634_v61  ;;  %v4652_v7 = vmul.f32 %v992_v13, %v8173_v10  ;;  %v4655_v61 = vmul.f32 %v992_v13, %v8175_v33  ;;  %v8187_v10 = vld [vmem:[#allocation99_spill] sm:$0xff]  ;;  %v8189_v33 = vld [vmem:[#allocation100_spill] sm:$0xff] }
 0x116   :  { %8164 = vst [vmem:[#allocation195_spill] sm:$0xff] %v4637_v57  ;;  %8166 = vst [vmem:[#allocation196_spill] sm:$0xff] %v4640_v44  ;;  %v8179_v57 = vld [vmem:[#allocation95_spill] sm:$0xff] }
 0x117   :  { %8168 = vst [vmem:[#allocation197_spill] sm:$0xff] %v4643_v8  ;;  %8170 = vst [vmem:[#allocation198_spill] sm:$0xff] %v4646_v52  ;;  %v4662_v11 = vmul.f32 %v992_v13, %v8179_v57  ;;  %v8181_v8 = vld [vmem:[#allocation96_spill] sm:$0xff]  ;;  %v8183_v52 = vld [vmem:[#allocation97_spill] sm:$0xff] }
 0x118   :  { %8172 = vst [vmem:[#allocation199_spill] sm:$0xff] %v4649_v39  ;;  %8174 = vst [vmem:[#allocation200_spill] sm:$0xff] %v4652_v7  ;;  %v4665_v20 = vmul.f32 %v992_v13, %v8181_v8  ;;  %v4668_v44 = vmul.f32 %v992_v13, %v8183_v52  ;;  %v4671_v39 = vmul.f32 %v992_v13, %v8185_v28  ;;  %v8192_v57 = vld [vmem:[#allocation102_spill] sm:$0xff]  ;;  %v8194_v8 = vld [vmem:[#allocation103_spill] sm:$0xff]  ;;  %v1026_v28 = vstv %s4589_s0  ;;  %s6811_s0 = sld [smem:[#allocation2 + $0x29]] }
 0x119   :  { %8176 = vst [vmem:[#allocation201_spill] sm:$0xff] %v4655_v61  ;;  %8178 = vst [vmem:[#allocation202_spill] sm:$0xff] %v4659_v43  ;;  %v4674_v7 = vmul.f32 %v992_v13, %v8187_v10  ;;  %v4677_v61 = vmul.f32 %v992_v13, %v8189_v33  ;;  %v4680_v43 = vmul.f32 %v992_v13, %v8190_v2  ;;  %v8195_v52 = vld [vmem:[#allocation104_spill] sm:$0xff]  ;;  %v8197_v10 = vld [vmem:[#allocation106_spill] sm:$0xff] }
 0x11a   :  { %8180 = vst [vmem:[#allocation203_spill] sm:$0xff] %v4662_v11  ;;  %8182 = vst [vmem:[#allocation204_spill] sm:$0xff] %v4665_v20  ;;  %v4683_v11 = vmul.f32 %v992_v13, %v8192_v57  ;;  %v4686_v20 = vmul.f32 %v992_v13, %v8194_v8  ;;  %v4699_v33 = vmul.f32 %v1009_v30, %v4275_v47  ;;  %v8198_v2 = vld [vmem:[#allocation108_spill] sm:$0xff]  ;;  %v8199_v57 = vld [vmem:[#allocation109_spill] sm:$0xff] }
 0x11b   :  { %8184 = vst [vmem:[#allocation205_spill] sm:$0xff] %v4668_v44  ;;  %8186 = vst [vmem:[#allocation206_spill] sm:$0xff] %v4671_v39  ;;  %v4689_v44 = vmul.f32 %v1009_v30, %v8195_v52  ;;  %v8196_v39 = vld [vmem:[#allocation105_spill] sm:$0xff]  ;;  %v4708_v13 = vmul.f32 %v1009_v30, %v4281_v16  ;;  %v4711_v52 = vmul.f32 %v1009_v30, %v4283_v3 }
 0x11c   :  { %8188 = vst [vmem:[#allocation207_spill] sm:$0xff] %v4674_v7  ;;  %8191 = vst [vmem:[#allocation208_spill] sm:$0xff] %v4680_v43  ;;  %v4693_v31 = vmul.f32 %v1009_v30, %v8196_v39  ;;  %v4696_v7 = vmul.f32 %v1009_v30, %v8197_v10  ;;  %v4702_v43 = vmul.f32 %v1009_v30, %v8198_v2 }
 0x11d   :  { %8193 = vst [vmem:[#allocation209_spill] sm:$0xff] %v4683_v11  ;;  %v4705_v11 = vmul.f32 %v1009_v30, %v8199_v57  ;;  %v4714_v39 = vmul.f32 %v1009_v30, %v4285_v23  ;;  %v4717_v10 = vmul.f32 %v1009_v30, %v4287_v41  ;;  %v4720_v47 = vmul.f32 %v1009_v30, %v4289_v51 }
 0x11e   :  { %v4723_v2 = vmul.f32 %v1009_v30, %v4291_v60  ;;  %v4726_v57 = vmul.f32 %v1009_v30, %v4293_v5  ;;  %v4729_v16 = vmul.f32 %v1009_v30, %v4295_v21  ;;  %v4732_v3 = vmul.f32 %v1009_v30, %v4297_v58 }
 0x11f   :  { %8200 = vst [vmem:[#allocation210_spill] sm:$0xff] %v4717_v10  ;;  %8201 = vst [vmem:[#allocation211_spill] sm:$0xff] %v4720_v47  ;;  %v4735_v23 = vmul.f32 %v1009_v30, %v4305_v49  ;;  %v4738_v41 = vmul.f32 %v1026_v28, %v4464_v59  ;;  %v4741_v51 = vmul.f32 %v1026_v28, %v4474_v6  ;;  %v8246_v49 = vld [vmem:[#allocation154_spill] sm:$0xff]  ;;  %v8297_v47 = vld [vmem:[#allocation191_spill] sm:$0xff] }
 0x120   :  { %8202 = vst [vmem:[#allocation212_spill] sm:$0xff] %v4723_v2  ;;  %8203 = vst [vmem:[#allocation213_spill] sm:$0xff] %v4726_v57  ;;  %v4744_v60 = vmul.f32 %v1026_v28, %v4482_v4  ;;  %v4747_v5 = vmul.f32 %v1026_v28, %v4490_v40  ;;  %v4750_v21 = vmul.f32 %v1026_v28, %v4501_v17  ;;  %v8289_v57 = vld [vmem:[#allocation187_spill] sm:$0xff]  ;;  %v8293_v2 = vld [vmem:[#allocation189_spill] sm:$0xff] }
 0x121   :  { %8204 = vst [vmem:[#allocation214_spill] sm:$0xff] %v4729_v16  ;;  %8205 = vst [vmem:[#allocation215_spill] sm:$0xff] %v4732_v3  ;;  %v4753_v58 = vmul.f32 %v1026_v28, %v4511_v12  ;;  %v4756_v30 = vmul.f32 %v1026_v28, %v4525_v1  ;;  %v4759_v59 = vmul.f32 %v1026_v28, %v4535_v18  ;;  %v8281_v3 = vld [vmem:[#allocation182_spill] sm:$0xff]  ;;  %v8285_v16 = vld [vmem:[#allocation185_spill] sm:$0xff] }
 0x122   :  { %8206 = vst [vmem:[#allocation216_spill] sm:$0xff] %v4735_v23  ;;  %v4762_v6 = vmul.f32 %v1026_v28, %v4541_v50  ;;  %v4765_v4 = vmul.f32 %v1026_v28, %v4558_v32  ;;  %v4768_v40 = vmul.f32 %v1026_v28, %v4568_v29  ;;  %v4771_v17 = vmul.f32 %v1026_v28, %v4570_v19  ;;  %v8244_v29 = vld [vmem:[#allocation152_spill] sm:$0xff]  ;;  %v8277_v23 = vld [vmem:[#allocation178_spill] sm:$0xff] }
 0x123   :  { %v4774_v12 = vmul.f32 %v1026_v28, %v4580_v45  ;;  %v4777_v1 = vmul.f32 %v1026_v28, %v4591_v34  ;;  %v4780_v18 = vmul.f32 %v1026_v28, %v4593_v37  ;;  %v4783_v50 = vmul.f32 %v1026_v28, %v4601_v36  ;;  %v8238_v36 = vld [vmem:[#allocation130_spill] sm:$0xff]  ;;  %v8241_v37 = vld [vmem:[#allocation131_spill] sm:$0xff] }
 0x124   :  { %8207 = vst [vmem:[#allocation217_spill] sm:$0xff] %v4762_v6  ;;  %8208 = vst [vmem:[#allocation218_spill] sm:$0xff] %v4765_v4  ;;  %v4787_v32 = vadd.f32 %v4371_v25, %v4301_v55  ;;  %v4791_v19 = vadd.f32 %v4375_v63, %v4309_v15  ;;  %v4795_v45 = vadd.f32 %v4379_v35, %v4313_v62  ;;  %v8225_v25 = vld [vmem:[#allocation120_spill] sm:$0xff]  ;;  %v8226_v63 = vld [vmem:[#allocation126_spill] sm:$0xff] }
 0x125   :  { %8209 = vst [vmem:[#allocation219_spill] sm:$0xff] %v4768_v40  ;;  %8210 = vst [vmem:[#allocation220_spill] sm:$0xff] %v4771_v17  ;;  %v4799_v34 = vadd.f32 %v4383_v14, %v4317_v42  ;;  %v4803_v28 = vadd.f32 %v4387_v53, %v4321_v48  ;;  %v4807_v55 = vadd.f32 %v4391_v0, %v4325_v54  ;;  %v8228_v0 = vld [vmem:[#allocation121_spill] sm:$0xff]  ;;  %v8229_v35 = vld [vmem:[#allocation127_spill] sm:$0xff] }
 0x126   :  { %8211 = vst [vmem:[#allocation221_spill] sm:$0xff] %v4774_v12  ;;  %8212 = vst [vmem:[#allocation222_spill] sm:$0xff] %v4777_v1  ;;  %v4811_v15 = vadd.f32 %v4395_v27, %v4331_v38  ;;  %v4815_v62 = vadd.f32 %v4399_v56, %v4335_v24  ;;  %v4819_v42 = vadd.f32 %v4403_v9, %v4339_v46  ;;  %v8231_v14 = vld [vmem:[#allocation122_spill] sm:$0xff]  ;;  %v8232_v53 = vld [vmem:[#allocation128_spill] sm:$0xff] }
 0x127   :  { %8213 = vst [vmem:[#allocation223_spill] sm:$0xff] %v4780_v18  ;;  %8214 = vst [vmem:[#allocation224_spill] sm:$0xff] %v4783_v50  ;;  %v4823_v48 = vadd.f32 %v4407_v22, %v4343_v26  ;;  %v4827_v54 = vadd.f32 %v8226_v63, %v8225_v25  ;;  %v4831_v38 = vadd.f32 %v8229_v35, %v8228_v0  ;;  %v8234_v24 = vld [vmem:[#allocation123_spill] sm:$0xff]  ;;  %v8235_v27 = vld [vmem:[#allocation129_spill] sm:$0xff] }
 0x128   :  { %8215 = vst [vmem:[#allocation225_spill] sm:$0xff] %v4787_v32  ;;  %8216 = vst [vmem:[#allocation226_spill] sm:$0xff] %v4791_v19  ;;  %v4835_v56 = vadd.f32 %v8232_v53, %v8231_v14  ;;  %v4839_v46 = vadd.f32 %v8235_v27, %v8234_v24  ;;  %v8237_v9 = vld [vmem:[#allocation124_spill] sm:$0xff]  ;;  %v8240_v26 = vld [vmem:[#allocation125_spill] sm:$0xff] }
 0x129   :  { %8217 = vst [vmem:[#allocation227_spill] sm:$0xff] %v4795_v45  ;;  %8218 = vst [vmem:[#allocation228_spill] sm:$0xff] %v4799_v34  ;;  %v4843_v22 = vadd.f32 %v8238_v36, %v8237_v9  ;;  %v4847_v25 = vadd.f32 %v8241_v37, %v8240_v26  ;;  %v8243_v63 = vld [vmem:[#allocation132_spill] sm:$0xff]  ;;  %v8245_v35 = vld [vmem:[#allocation133_spill] sm:$0xff] }
 0x12a   :  { %8219 = vst [vmem:[#allocation229_spill] sm:$0xff] %v4803_v28  ;;  %8220 = vst [vmem:[#allocation230_spill] sm:$0xff] %v4807_v55  ;;  %v1059_v0 = vadd.f32 %v8244_v29, %v8243_v63  ;;  %v1060_v8 = vadd.f32 %v8246_v49, %v8245_v35  ;;  %v8247_v14 = vld [vmem:[#allocation134_spill] sm:$0xff]  ;;  %v8248_v53 = vld [vmem:[#allocation155_spill] sm:$0xff] }
 0x12b   :  { %8221 = vst [vmem:[#allocation231_spill] sm:$0xff] %v4811_v15  ;;  %8222 = vst [vmem:[#allocation232_spill] sm:$0xff] %v4815_v62  ;;  %v8250_v24 = vld [vmem:[#allocation157_spill] sm:$0xff]  ;;  %v8255_v37 = vld [vmem:[#allocation138_spill] sm:$0xff] }
 0x12c   :  { %8223 = vst [vmem:[#allocation233_spill] sm:$0xff] %v4819_v42  ;;  %8224 = vst [vmem:[#allocation234_spill] sm:$0xff] %v4823_v48  ;;  %v8253_v9 = vld [vmem:[#allocation137_spill] sm:$0xff]  ;;  %v8257_v42 = vld [vmem:[#allocation139_spill] sm:$0xff] }
 0x12d   :  { %8227 = vst [vmem:[#allocation120_spill] sm:$0xff] %v4827_v54  ;;  %8230 = vst [vmem:[#allocation126_spill] sm:$0xff] %v4831_v38  ;;  %v8249_v38 = vld [vmem:[#allocation135_spill] sm:$0xff]  ;;  %v8252_v54 = vld [vmem:[#allocation158_spill] sm:$0xff] }
 0x12e   :  { %8233 = vst [vmem:[#allocation121_spill] sm:$0xff] %v4835_v56  ;;  %8236 = vst [vmem:[#allocation127_spill] sm:$0xff] %v4839_v46  ;;  %v1061_v56 = vadd.f32 %v8248_v53, %v8247_v14  ;;  %v1062_v27 = vadd.f32 %v8250_v24, %v8249_v38  ;;  %v8251_v46 = vld [vmem:[#allocation136_spill] sm:$0xff]  ;;  %v8256_v26 = vld [vmem:[#allocation161_spill] sm:$0xff] }
 0x12f   :  { %8239 = vst [vmem:[#allocation122_spill] sm:$0xff] %v4843_v22  ;;  %8242 = vst [vmem:[#allocation128_spill] sm:$0xff] %v4847_v25  ;;  %v1063_v36 = vadd.f32 %v8252_v54, %v8251_v46  ;;  %v8254_v22 = vld [vmem:[#allocation159_spill] sm:$0xff]  ;;  %v1065_v25 = vadd.f32 %v8256_v26, %v8255_v37  ;;  %v8258_v29 = vld [vmem:[#allocation162_spill] sm:$0xff] }
 0x130   :  { %v1064_v48 = vadd.f32 %v8254_v22, %v8253_v9  ;;  %v1066_v63 = vadd.f32 %v8258_v29, %v8257_v42  ;;  %v8259_v62 = vld [vmem:[#allocation140_spill] sm:$0xff]  ;;  %v8261_v15 = vld [vmem:[#allocation142_spill] sm:$0xff]  ;;  %v8263_v55 = vld [vmem:[#allocation143_spill] sm:$0xff] }
 0x131   :  { %v8260_v49 = vld [vmem:[#allocation164_spill] sm:$0xff]  ;;  %v8262_v14 = vld [vmem:[#allocation166_spill] sm:$0xff]  ;;  %v8264_v38 = vld [vmem:[#allocation167_spill] sm:$0xff] }
 0x132   :  { %v1067_v35 = vadd.f32 %v8260_v49, %v8259_v62  ;;  %v1068_v53 = vadd.f32 %v8262_v14, %v8261_v15  ;;  %v1069_v24 = vadd.f32 %v8264_v38, %v8263_v55  ;;  %v8265_v28 = vld [vmem:[#allocation145_spill] sm:$0xff]  ;;  %v8266_v54 = vld [vmem:[#allocation168_spill] sm:$0xff]  ;;  %v8267_v34 = vld [vmem:[#allocation146_spill] sm:$0xff] }
 0x133   :  { %v1070_v46 = vadd.f32 %v8266_v54, %v8265_v28  ;;  %v8268_v22 = vld [vmem:[#allocation170_spill] sm:$0xff]  ;;  %v8269_v45 = vld [vmem:[#allocation148_spill] sm:$0xff]  ;;  %v8270_v37 = vld [vmem:[#allocation171_spill] sm:$0xff] }
 0x134   :  { %v1071_v9 = vadd.f32 %v8268_v22, %v8267_v34  ;;  %v1072_v26 = vadd.f32 %v8270_v37, %v8269_v45  ;;  %v8271_v19 = vld [vmem:[#allocation149_spill] sm:$0xff]  ;;  %v8272_v42 = vld [vmem:[#allocation174_spill] sm:$0xff]  ;;  %v8273_v32 = vld [vmem:[#allocation151_spill] sm:$0xff] }
 0x135   :  { %v1073_v29 = vadd.f32 %v8272_v42, %v8271_v19  ;;  %v8274_v62 = vld [vmem:[#allocation175_spill] sm:$0xff]  ;;  %v8275_v50 = vld [vmem:[#allocation177_spill] sm:$0xff]  ;;  %v8276_v15 = vld [vmem:[#allocation196_spill] sm:$0xff] }
 0x136   :  { %v1074_v49 = vadd.f32 %v8274_v62, %v8273_v32  ;;  %v1075_v14 = vadd.f32 %v8276_v15, %v8275_v50  ;;  %v8278_v55 = vld [vmem:[#allocation197_spill] sm:$0xff]  ;;  %v8280_v28 = vld [vmem:[#allocation198_spill] sm:$0xff]  ;;  %v8282_v34 = vld [vmem:[#allocation199_spill] sm:$0xff] }
 0x137   :  { %v1076_v38 = vadd.f32 %v8278_v55, %v8277_v23  ;;  %v8279_v18 = vld [vmem:[#allocation181_spill] sm:$0xff]  ;;  %v1078_v22 = vadd.f32 %v8282_v34, %v8281_v3  ;;  %v8283_v1 = vld [vmem:[#allocation184_spill] sm:$0xff]  ;;  %v8287_v12 = vld [vmem:[#allocation186_spill] sm:$0xff] }
 0x138   :  { %v1077_v54 = vadd.f32 %v8280_v28, %v8279_v18  ;;  %v8284_v45 = vld [vmem:[#allocation200_spill] sm:$0xff]  ;;  %v8286_v19 = vld [vmem:[#allocation201_spill] sm:$0xff]  ;;  %v8288_v32 = vld [vmem:[#allocation202_spill] sm:$0xff] }
 0x139   :  { %v1079_v37 = vadd.f32 %v8284_v45, %v8283_v1  ;;  %v1080_v42 = vadd.f32 %v8286_v19, %v8285_v16  ;;  %v1081_v62 = vadd.f32 %v8288_v32, %v8287_v12  ;;  %v8290_v50 = vld [vmem:[#allocation203_spill] sm:$0xff]  ;;  %v8291_v17 = vld [vmem:[#allocation188_spill] sm:$0xff]  ;;  %v8294_v18 = vld [vmem:[#allocation205_spill] sm:$0xff] }
 0x13a   :  { %v1082_v15 = vadd.f32 %v8290_v50, %v8289_v57  ;;  %v8292_v23 = vld [vmem:[#allocation204_spill] sm:$0xff]  ;;  %v1084_v28 = vadd.f32 %v8294_v18, %v8293_v2  ;;  %v8295_v40 = vld [vmem:[#allocation190_spill] sm:$0xff]  ;;  %v8298_v1 = vld [vmem:[#allocation207_spill] sm:$0xff]  ;;  %v1091_v2 = vadd.f32 %v4738_v41, %v4689_v44  ;;  %v1098_v41 = vadd.f32 %v4759_v59, %v4711_v52 }
 0x13b   :  { %v1083_v55 = vadd.f32 %v8292_v23, %v8291_v17  ;;  %v8296_v3 = vld [vmem:[#allocation206_spill] sm:$0xff]  ;;  %v1086_v45 = vadd.f32 %v8298_v1, %v8297_v47  ;;  %v8299_v4 = vld [vmem:[#allocation192_spill] sm:$0xff]  ;;  %v8300_v19 = vld [vmem:[#allocation193_spill] sm:$0xff]  ;;  %v1093_v47 = vadd.f32 %v4744_v60, %v4696_v7 }
 0x13c   :  { %v1085_v34 = vadd.f32 %v8296_v3, %v8295_v40  ;;  %v1087_v16 = vadd.f32 %v4677_v61, %v8299_v4  ;;  %v8301_v12 = vld [vmem:[#allocation208_spill] sm:$0xff]  ;;  %v8302_v10 = vld [vmem:[#allocation194_spill] sm:$0xff]  ;;  %v8303_v57 = vld [vmem:[#allocation209_spill] sm:$0xff]  ;;  %v1092_v40 = vadd.f32 %v4741_v51, %v4693_v31  ;;  %v1094_v4 = vadd.f32 %v4747_v5, %v4699_v33 }
 0x13d   :  { %v1088_v32 = vadd.f32 %v8301_v12, %v8300_v19  ;;  %v1089_v50 = vadd.f32 %v8303_v57, %v8302_v10  ;;  %v8304_v6 = vld [vmem:[#allocation195_spill] sm:$0xff]  ;;  %v1095_v61 = vadd.f32 %v4750_v21, %v4702_v43  ;;  %v1096_v10 = vadd.f32 %v4753_v58, %v4705_v11  ;;  %v8305_v51 = vld [vmem:[#allocation217_spill] sm:$0xff]  ;;  %v8306_v60 = vld [vmem:[#allocation210_spill] sm:$0xff] }
 0x13e   :  { %v1090_v17 = vadd.f32 %v4686_v20, %v8304_v6  ;;  %v1097_v20 = vadd.f32 %v4756_v30, %v4708_v13  ;;  %v1099_v31 = vadd.f32 %v8305_v51, %v4714_v39  ;;  %v8307_v6 = vld [vmem:[#allocation218_spill] sm:$0xff]  ;;  %v8308_v7 = vld [vmem:[#allocation211_spill] sm:$0xff]  ;;  %v8310_v21 = vld [vmem:[#allocation212_spill] sm:$0xff] }
 0x13f   :  { %v1100_v5 = vadd.f32 %v8307_v6, %v8306_v60  ;;  %v8309_v44 = vld [vmem:[#allocation219_spill] sm:$0xff]  ;;  %v8311_v33 = vld [vmem:[#allocation220_spill] sm:$0xff]  ;;  %v8312_v11 = vld [vmem:[#allocation213_spill] sm:$0xff] }
 0x140   :  { %v1101_v43 = vadd.f32 %v8309_v44, %v8308_v7  ;;  %v1102_v58 = vadd.f32 %v8311_v33, %v8310_v21  ;;  %v8313_v23 = vld [vmem:[#allocation221_spill] sm:$0xff]  ;;  %v8314_v30 = vld [vmem:[#allocation214_spill] sm:$0xff]  ;;  %v8316_v59 = vld [vmem:[#allocation215_spill] sm:$0xff] }
 0x141   :  { %v1103_v13 = vadd.f32 %v8313_v23, %v8312_v11  ;;  %v8315_v18 = vld [vmem:[#allocation222_spill] sm:$0xff]  ;;  %v8317_v3 = vld [vmem:[#allocation223_spill] sm:$0xff]  ;;  %v8318_v1 = vld [vmem:[#allocation216_spill] sm:$0xff] }
 0x142   :  { %v1104_v52 = vadd.f32 %v8315_v18, %v8314_v30  ;;  %v1105_v39 = vadd.f32 %v8317_v3, %v8316_v59  ;;  %v8319_v19 = vld [vmem:[#allocation224_spill] sm:$0xff]  ;;  %v8320_v57 = vld [vmem:[#allocation225_spill] sm:$0xff]  ;;  %v8321_v60 = vld [vmem:[#allocation226_spill] sm:$0xff] }
 0x143   :  { %v1106_v12 = vadd.f32 %v8319_v19, %v8318_v1  ;;  %v1107_v51 = vadd.f32 %v1059_v0, %v8320_v57  ;;  %v1108_v6 = vadd.f32 %v1060_v8, %v8321_v60  ;;  %v8322_v7 = vld [vmem:[#allocation227_spill] sm:$0xff]  ;;  %v8323_v21 = vld [vmem:[#allocation228_spill] sm:$0xff]  ;;  %v8324_v11 = vld [vmem:[#allocation229_spill] sm:$0xff]  ;;  %v1123_v0 = vadd.f32 %v1091_v2, %v1075_v14 }
 0x144   :  { %v1109_v44 = vadd.f32 %v1061_v56, %v8322_v7  ;;  %v1110_v33 = vadd.f32 %v1062_v27, %v8323_v21  ;;  %v1111_v23 = vadd.f32 %v1063_v36, %v8324_v11  ;;  %v8325_v18 = vld [vmem:[#allocation230_spill] sm:$0xff]  ;;  %v8326_v3 = vld [vmem:[#allocation231_spill] sm:$0xff]  ;;  %v8327_v1 = vld [vmem:[#allocation232_spill] sm:$0xff]  ;;  %v1124_v27 = vadd.f32 %v1092_v40, %v1076_v38 }
 0x145   :  { %v1112_v30 = vadd.f32 %v1064_v48, %v8325_v18  ;;  %v1113_v59 = vadd.f32 %v1065_v25, %v8326_v3  ;;  %v1114_v19 = vadd.f32 %v1066_v63, %v8327_v1  ;;  %v8328_v57 = vld [vmem:[#allocation233_spill] sm:$0xff]  ;;  %v8329_v60 = vld [vmem:[#allocation234_spill] sm:$0xff]  ;;  %v8330_v56 = vld [vmem:[#allocation120_spill] sm:$0xff]  ;;  %v1125_v1 = vadd.f32 %v1093_v47, %v1077_v54 }
 0x146   :  { %v1115_v8 = vadd.f32 %v1067_v35, %v8328_v57  ;;  %v1116_v7 = vadd.f32 %v1068_v53, %v8329_v60  ;;  %v1117_v21 = vadd.f32 %v1069_v24, %v8330_v56  ;;  %v8331_v11 = vld [vmem:[#allocation126_spill] sm:$0xff]  ;;  %v8332_v18 = vld [vmem:[#allocation121_spill] sm:$0xff]  ;;  %v8333_v3 = vld [vmem:[#allocation127_spill] sm:$0xff]  ;;  %v1126_v57 = vadd.f32 %v1094_v4, %v1078_v22 }
 0x147   :  { %v1118_v36 = vadd.f32 %v1070_v46, %v8331_v11  ;;  %v1119_v48 = vadd.f32 %v1071_v9, %v8332_v18  ;;  %v1120_v25 = vadd.f32 %v1072_v26, %v8333_v3  ;;  %v8334_v63 = vld [vmem:[#allocation122_spill] sm:$0xff]  ;;  %v8335_v14 = vld [vmem:[#allocation128_spill] sm:$0xff]  ;;  %v1127_v53 = vadd.f32 %v1095_v61, %v1079_v37 }
 0x148   :  { %v1121_v2 = vadd.f32 %v1073_v29, %v8334_v63  ;;  %v1122_v35 = vadd.f32 %v1074_v49, %v8335_v14  ;;  %v1128_v24 = vadd.f32 %v1096_v10, %v1080_v42  ;;  %v1129_v38 = vadd.f32 %v1097_v20, %v1081_v62 }
 0x149   :  { %v1130_v40 = vadd.f32 %v1098_v41, %v1082_v15  ;;  %v1139_v46 = vadd.f32 %v1123_v0, %v1107_v51  ;;  %v1131_v60 = vadd.f32 %v1099_v31, %v1083_v55  ;;  %v1132_v9 = vadd.f32 %v1100_v5, %v1084_v28 }
 0x14a   :  { %v1140_v56 = vadd.f32 %v1124_v27, %v1108_v6  ;;  %v1155_v11 = vstv %s4931_s1  ;;  %v1133_v26 = vadd.f32 %v1101_v43, %v1085_v34  ;;  %v1134_v54 = vadd.f32 %v1102_v58, %v1086_v45  ;;  %s6813_s1 = sld [smem:[#allocation2 + $0x2a]] }
 0x14b   :  { %v1135_v47 = vadd.f32 %v1103_v13, %v1087_v16  ;;  %v1141_v18 = vadd.f32 %v1125_v1, %v1109_v44  ;;  %v1136_v3 = vadd.f32 %v1104_v52, %v1088_v32  ;;  %v1137_v29 = vadd.f32 %v1105_v39, %v1089_v50 }
 0x14c   :  { %v1138_v63 = vadd.f32 %v1106_v12, %v1090_v17  ;;  %v1142_v49 = vadd.f32 %v1126_v57, %v1110_v33  ;;  %v1143_v22 = vadd.f32 %v1127_v53, %v1111_v23  ;;  %v1144_v37 = vadd.f32 %v1128_v24, %v1112_v30  ;;  %v8336_v53 = vld [vmem:[#allocation8_spill] sm:$0xff] }
 0x14d   :  { %v1145_v4 = vadd.f32 %v1129_v38, %v1113_v59  ;;  %v1156_v61 = vadd.f32 %v1155_v11, %v1139_v46  ;;  %v1146_v42 = vadd.f32 %v1130_v40, %v1114_v19  ;;  %v1147_v62 = vadd.f32 %v1131_v60, %v1115_v8  ;;  %v8337_v38 = vld [vmem:[#allocation9_spill] sm:$0xff]  ;;  %v8338_v46 = vld [vmem:[#allocation10_spill] sm:$0xff] }
 0x14e   :  { %v1148_v15 = vadd.f32 %v1132_v9, %v1116_v7  ;;  %v1157_v55 = vadd.f32 %v1155_v11, %v1140_v56  ;;  %v1149_v28 = vadd.f32 %v1133_v26, %v1117_v21  ;;  %v1150_v34 = vadd.f32 %v1134_v54, %v1118_v36  ;;  %v8339_v9 = vld [vmem:[#allocation11_spill] sm:$0xff]  ;;  %v8341_v54 = vld [vmem:[#allocation13_spill] sm:$0xff] }
 0x14f   :  { %v1151_v45 = vadd.f32 %v1135_v47, %v1119_v48  ;;  %v1158_v16 = vadd.f32 %v1155_v11, %v1141_v18  ;;  %v1152_v32 = vadd.f32 %v1136_v3, %v1120_v25  ;;  %v1153_v50 = vadd.f32 %v1137_v29, %v1121_v2  ;;  %v8342_v18 = vld [vmem:[#allocation14_spill] sm:$0xff]  ;;  %v8343_v29 = vld [vmem:[#allocation15_spill] sm:$0xff] }
 0x150   :  { %v1154_v17 = vadd.f32 %v1138_v63, %v1122_v35  ;;  %v1159_v10 = vadd.f32 %v1155_v11, %v1142_v49  ;;  %v1160_v20 = vadd.f32 %v1155_v11, %v1143_v22  ;;  %v1172_v41 = vmul.f32 0.5, %v1156_v61  ;;  %v8344_v49 = vld [vmem:[#allocation16_spill] sm:$0xff] }
 0x151   :  { %v1236_v31 = vstv %s4961_s25  ;;  %v4972_v5 = vstv %s4965_s26  ;;  %v1161_v43 = vadd.f32 %v1155_v11, %v1144_v37  ;;  %v1162_v58 = vadd.f32 %v1155_v11, %v1145_v4  ;;  %v8345_v37 = vld [vmem:[#allocation17_spill] sm:$0xff]  ;;  %v8346_v61 = vld [vmem:[#allocation72_spill] sm:$0xff]  ;;  %s6886_s25 = sld [smem:[#allocation2 + $0x2b]] }
 0x152   :  { %v1163_v13 = vadd.f32 %v1155_v11, %v1146_v42  ;;  %v1173_v52 = vmul.f32 0.5, %v1157_v55  ;;  %v1164_v39 = vadd.f32 %v1155_v11, %v1147_v62  ;;  %v1165_v12 = vadd.f32 %v1155_v11, %v1148_v15  ;;  %v8347_v62 = vld [vmem:[#allocation73_spill] sm:$0xff]  ;;  %v8348_v55 = vld [vmem:[#allocation74_spill] sm:$0xff]  ;;  %s7044_s26 = sld [smem:[#allocation4 + $0xc]] }
 0x153   :  { %v1166_v51 = vadd.f32 %v1155_v11, %v1149_v28  ;;  %v1174_v6 = vmul.f32 0.5, %v1158_v16  ;;  %v1167_v44 = vadd.f32 %v1155_v11, %v1150_v34  ;;  %v1168_v33 = vadd.f32 %v1155_v11, %v1151_v45  ;;  %v8349_v34 = vld [vmem:[#allocation75_spill] sm:$0xff]  ;;  %v8350_v16 = vld [vmem:[#allocation76_spill] sm:$0xff] }
 0x154   :  { %v1169_v23 = vadd.f32 %v1155_v11, %v1152_v32  ;;  %v1175_v30 = vmul.f32 0.5, %v1159_v10  ;;  %v1170_v59 = vadd.f32 %v1155_v11, %v1153_v50  ;;  %v1171_v19 = vadd.f32 %v1155_v11, %v1154_v17  ;;  %v8340_v11 = vld [vmem:[#allocation12_spill] sm:$0xff]  ;;  %v8351_v50 = vld [vmem:[#allocation77_spill] sm:$0xff]  ;;  %v8352_v10 = vld [vmem:[#allocation78_spill] sm:$0xff] }
 0x155   :  { %v1176_v0 = vmul.f32 0.5, %v1160_v20  ;;  %3029 = vtanh.f32 %v1172_v41  ;;  %v1177_v8 = vmul.f32 0.5, %v1161_v43  ;;  %v1178_v7 = vmul.f32 0.5, %v1162_v58  ;;  %v8353_v41 = vld [vmem:[#allocation79_spill] sm:$0xff]  ;;  %v8354_v58 = vld [vmem:[#allocation80_spill] sm:$0xff] }
 0x156   :  { %3031 = vtanh.f32 %v1173_v52  ;;  %v4975_v21 = vstv %s4968_s27  ;;  %v1179_v27 = vmul.f32 0.5, %v1163_v13  ;;  %v1180_v36 = vmul.f32 0.5, %v1164_v39  ;;  %v8355_v52 = vld [vmem:[#allocation81_spill] sm:$0xff]  ;;  %s7091_s27 = sld [smem:[#allocation2 + $0x2c]] }
 0x157   :  { %v1181_v48 = vmul.f32 0.5, %v1165_v12  ;;  %3033 = vtanh.f32 %v1174_v6  ;;  %v1182_v25 = vmul.f32 0.5, %v1166_v51  ;;  %v1183_v1 = vmul.f32 0.5, %v1167_v44  ;;  %v8357_v51 = vld [vmem:[#allocation18_spill] sm:$0xff]  ;;  %v8358_v44 = vld [vmem:[#allocation19_spill] sm:$0xff] }
 0x158   :  { %v1184_v2 = vmul.f32 0.5, %v1168_v33  ;;  %3035 = vtanh.f32 %v1175_v30  ;;  %v1185_v14 = vmul.f32 0.5, %v1169_v23  ;;  %v1186_v35 = vmul.f32 0.5, %v1170_v59  ;;  %v8359_v23 = vld [vmem:[#allocation20_spill] sm:$0xff] }
 0x159   :  { %v1187_v57 = vmul.f32 0.5, %v1171_v19  ;;  %3037 = vtanh.f32 %v1176_v0  ;;  %v4978_v24 = vmul.f32 %v1236_v31, %v8336_v53  ;;  %v4981_v40 = vmul.f32 %v1236_v31, %v8337_v38  ;;  %v8360_v19 = vld [vmem:[#allocation21_spill] sm:$0xff] }
 0x15a   :  { %3039 = vtanh.f32 %v1177_v8  ;;  %v4984_v60 = vmul.f32 %v1236_v31, %v8338_v46  ;;  %v4987_v56 = vmul.f32 %v1236_v31, %v8339_v9  ;;  %v4990_v26 = vmul.f32 %v1236_v31, %v8340_v11  ;;  %v8361_v8 = vld [vmem:[#allocation22_spill] sm:$0xff]  ;;  %v8389_v9 = vld [vmem:[#allocation87_spill] sm:$0xff]  ;;  %v8391_v46 = vld [vmem:[#allocation37_spill] sm:$0xff] }
 0x15b   :  { %3041 = vtanh.f32 %v1178_v7  ;;  %v4993_v47 = vmul.f32 %v1236_v31, %v8341_v54  ;;  %v4996_v3 = vmul.f32 %v1236_v31, %v8342_v18  ;;  %v4999_v63 = vmul.f32 %v1236_v31, %v8343_v29  ;;  %v8384_v29 = vld [vmem:[#allocation35_spill] sm:$0xff]  ;;  %v8386_v18 = vld [vmem:[#allocation36_spill] sm:$0xff] }
 0x15c   :  { %3043 = vtanh.f32 %v1179_v27  ;;  %v5002_v22 = vmul.f32 %v1236_v31, %v8344_v49  ;;  %v5005_v4 = vmul.f32 %v1236_v31, %v8345_v37  ;;  %v5008_v42 = vmul.f32 %v1236_v31, %v8346_v61  ;;  %v8362_v27 = vld [vmem:[#allocation23_spill] sm:$0xff]  ;;  %v8380_v61 = vld [vmem:[#allocation86_spill] sm:$0xff] }
 0x15d   :  { %3045 = vtanh.f32 %v1180_v36  ;;  %v5011_v15 = vmul.f32 %v1236_v31, %v8347_v62  ;;  %v5014_v28 = vmul.f32 %v1236_v31, %v8348_v55  ;;  %v5017_v45 = vmul.f32 %v1236_v31, %v8349_v34  ;;  %v8378_v62 = vld [vmem:[#allocation85_spill] sm:$0xff] }
 0x15e   :  { %3047 = vtanh.f32 %v1181_v48  ;;  %v5020_v32 = vmul.f32 %v1236_v31, %v8350_v16  ;;  %v5023_v17 = vmul.f32 %v1236_v31, %v8351_v50  ;;  %v5027_v20 = vmul.f32 %v4972_v5, %v8352_v10  ;;  %v8356_v31 = vld [vmem:[#allocation82_spill] sm:$0xff]  ;;  %v8372_v50 = vld [vmem:[#allocation33_spill] sm:$0xff] }
 0x15f   :  { %3049 = vtanh.f32 %v1182_v25  ;;  %v5031_v43 = vmul.f32 %v4972_v5, %v8353_v41  ;;  %v5037_v13 = vmul.f32 %v4972_v5, %v8354_v58  ;;  %v5041_v39 = vmul.f32 %v4972_v5, %v8355_v52  ;;  %v8363_v25 = vld [vmem:[#allocation24_spill] sm:$0xff]  ;;  %v8369_v58 = vld [vmem:[#allocation30_spill] sm:$0xff]  ;;  %v8370_v41 = vld [vmem:[#allocation31_spill] sm:$0xff] }
 0x160   :  { %3051 = vtanh.f32 %v1183_v1  ;;  %v5045_v12 = vmul.f32 %v4972_v5, %v8356_v31  ;;  %v5049_v6 = vmul.f32 %v4972_v5, %v8357_v51  ;;  %v5053_v33 = vmul.f32 %v4972_v5, %v8358_v44  ;;  %v8367_v51 = vld [vmem:[#allocation28_spill] sm:$0xff] }
 0x161   :  { %3053 = vtanh.f32 %v1184_v2  ;;  %v5057_v30 = vmul.f32 %v4972_v5, %v8359_v23  ;;  %v5061_v0 = vmul.f32 %v4972_v5, %v8360_v19  ;;  %v5065_v7 = vmul.f32 %v4972_v5, %v8361_v8  ;;  %v8364_v2 = vld [vmem:[#allocation25_spill] sm:$0xff]  ;;  %v8365_v19 = vld [vmem:[#allocation26_spill] sm:$0xff] }
 0x162   :  { %v3030_v59 = vpop.eup %3029  ;;  %3055 = vtanh.f32 %v1185_v14  ;;  %v5069_v36 = vmul.f32 %v4972_v5, %v8362_v27  ;;  %v5075_v1 = vmul.f32 %v4972_v5, %v8363_v25  ;;  %v5079_v14 = vmul.f32 %v4972_v5, %v8364_v2  ;;  %v8366_v27 = vld [vmem:[#allocation27_spill] sm:$0xff]  ;;  %v8368_v25 = vld [vmem:[#allocation29_spill] sm:$0xff] }
 0x163   :  { %v3032_v48 = vpop.eup %3031  ;;  %3057 = vtanh.f32 %v1186_v35  ;;  %v5083_v8 = vmul.f32 %v4972_v5, %v8365_v19  ;;  %v5087_v44 = vmul.f32 %v4972_v5, %v8366_v27  ;;  %v5091_v35 = vmul.f32 %v4972_v5, %v8367_v51  ;;  %v8371_v27 = vld [vmem:[#allocation32_spill] sm:$0xff] }
 0x164   :  { %v3034_v23 = vpop.eup %3033  ;;  %3059 = vtanh.f32 %v1187_v57  ;;  %v5095_v31 = vmul.f32 %v4975_v21, %v8368_v25  ;;  %v1204_v52 = vmul.f32 0.5, %v3030_v59  ;;  %v5099_v19 = vmul.f32 %v4975_v21, %v8369_v58  ;;  %v8374_v59 = vld [vmem:[#allocation83_spill] sm:$0xff]  ;;  %v8376_v58 = vld [vmem:[#allocation84_spill] sm:$0xff] }
 0x165   :  { %v3036_v2 = vpop.eup %3035  ;;  %v5103_v57 = vmul.f32 %v4975_v21, %v8370_v41  ;;  %v5107_v10 = vmul.f32 %v4975_v21, %v8371_v27  ;;  %v1205_v51 = vmul.f32 0.5, %v3032_v48  ;;  %v5111_v25 = vmul.f32 %v4975_v21, %v8372_v50  ;;  %v8382_v50 = vld [vmem:[#allocation34_spill] sm:$0xff] }
 0x166   :  { %v3038_v5 = vpop.eup %3037  ;;  %v5115_v16 = vmul.f32 %v4975_v21, %v8374_v59  ;;  %v5119_v34 = vmul.f32 %v4975_v21, %v8376_v58  ;;  %v1206_v55 = vmul.f32 0.5, %v3034_v23  ;;  %v5123_v27 = vmul.f32 %v4975_v21, %v8378_v62 }
 0x167   :  { %8373 = vst [vmem:[#allocation123_spill] sm:$0xff] %v5111_v25  ;;  %v3040_v41 = vpop.eup %3039  ;;  %v5127_v48 = vmul.f32 %v4975_v21, %v8380_v61  ;;  %v5131_v37 = vmul.f32 %v4975_v21, %v8382_v50  ;;  %v1207_v49 = vmul.f32 0.5, %v3036_v2  ;;  %v5135_v58 = vmul.f32 %v4975_v21, %v8384_v29 }
 0x168   :  { %8375 = vst [vmem:[#allocation129_spill] sm:$0xff] %v5115_v16  ;;  %8377 = vst [vmem:[#allocation124_spill] sm:$0xff] %v5119_v34  ;;  %v3042_v59 = vpop.eup %3041  ;;  %v5139_v23 = vmul.f32 %v4975_v21, %v8386_v18  ;;  %v1287_v62 = vstv %s5033_s28  ;;  %v1208_v11 = vmul.f32 0.5, %v3038_v5  ;;  %v5142_v61 = vadd.f32 0.5, %v1204_v52  ;;  %v8394_v18 = vld [vmem:[#allocation38_spill] sm:$0xff]  ;;  %s7099_s28 = sld [smem:[#allocation2 + $0x2d]] }
 0x169   :  { %8379 = vst [vmem:[#allocation130_spill] sm:$0xff] %v5123_v27  ;;  %8381 = vst [vmem:[#allocation125_spill] sm:$0xff] %v5127_v48  ;;  %v3044_v54 = vpop.eup %3043  ;;  %v5146_v50 = vmul.f32 %v4975_v21, %v8389_v9  ;;  %v5150_v2 = vmul.f32 %v4975_v21, %v8391_v46  ;;  %v1209_v38 = vmul.f32 0.5, %v3040_v41  ;;  %v5152_v53 = vadd.f32 0.5, %v1205_v51 }
 0x16a   :  { %8383 = vst [vmem:[#allocation131_spill] sm:$0xff] %v5131_v37  ;;  %8385 = vst [vmem:[#allocation132_spill] sm:$0xff] %v5135_v58  ;;  %v3046_v29 = vpop.eup %3045  ;;  %v8396_v58 = vld [vmem:[#allocation39_spill] sm:$0xff]  ;;  %v5162_v9 = vadd.f32 0.5, %v1206_v55  ;;  %v5168_v46 = vstv %s5071_s29  ;;  %v1211_v51 = vmul.f32 0.5, %v3044_v54  ;;  %s7113_s29 = sld [smem:[#allocation2 + $0x2e]] }
 0x16b   :  { %8387 = vst [vmem:[#allocation152_spill] sm:$0xff] %v5139_v23  ;;  %8388 = vst [vmem:[#allocation133_spill] sm:$0xff] %v5142_v61  ;;  %v5156_v23 = vmul.f32 %v4975_v21, %v8394_v18  ;;  %v5160_v52 = vmul.f32 %v4975_v21, %v8396_v58  ;;  %v3048_v5 = vpop.eup %3047  ;;  %v1210_v61 = vmul.f32 0.5, %v3042_v59  ;;  %v1212_v58 = vmul.f32 0.5, %v3046_v29  ;;  %v8404_v55 = vld [vmem:[#allocation43_spill] sm:$0xff] }
 0x16c   :  { %8390 = vst [vmem:[#allocation154_spill] sm:$0xff] %v5146_v50  ;;  %8392 = vst [vmem:[#allocation134_spill] sm:$0xff] %v5150_v2  ;;  %v8399_v50 = vld [vmem:[#allocation40_spill] sm:$0xff]  ;;  %v3050_v41 = vpop.eup %3049  ;;  %v8401_v2 = vld [vmem:[#allocation41_spill] sm:$0xff]  ;;  %v5178_v59 = vadd.f32 0.5, %v1208_v11  ;;  %v1213_v54 = vmul.f32 0.5, %v3048_v5 }
 0x16d   :  { %8393 = vst [vmem:[#allocation155_spill] sm:$0xff] %v5152_v53  ;;  %8395 = vst [vmem:[#allocation135_spill] sm:$0xff] %v5156_v23  ;;  %v5165_v37 = vmul.f32 %v1287_v62, %v8399_v50  ;;  %v5170_v53 = vadd.f32 0.5, %v1207_v49  ;;  %v5173_v18 = vmul.f32 %v1287_v62, %v8401_v2  ;;  %v8402_v23 = vld [vmem:[#allocation42_spill] sm:$0xff]  ;;  %v3052_v21 = vpop.eup %3051  ;;  %v8405_v50 = vld [vmem:[#allocation44_spill] sm:$0xff]  ;;  %v5188_v49 = vadd.f32 0.5, %v1209_v38 }
 0x16e   :  { %8397 = vst [vmem:[#allocation157_spill] sm:$0xff] %v5160_v52  ;;  %8398 = vst [vmem:[#allocation136_spill] sm:$0xff] %v5162_v9  ;;  %v5176_v48 = vmul.f32 %v1287_v62, %v8402_v23  ;;  %v5181_v9 = vmul.f32 %v1287_v62, %v8404_v55  ;;  %v5184_v52 = vmul.f32 %v1287_v62, %v8405_v50  ;;  %v3054_v27 = vpop.eup %3053  ;;  %v8410_v23 = vld [vmem:[#allocation46_spill] sm:$0xff]  ;;  %v1214_v29 = vmul.f32 0.5, %v3050_v41  ;;  %v8413_v55 = vld [vmem:[#allocation47_spill] sm:$0xff] }
 0x16f   :  { %8400 = vst [vmem:[#allocation158_spill] sm:$0xff] %v5170_v53  ;;  %8403 = vst [vmem:[#allocation137_spill] sm:$0xff] %v5178_v59  ;;  %v8408_v53 = vld [vmem:[#allocation45_spill] sm:$0xff]  ;;  %v5194_v34 = vmul.f32 %v1287_v62, %v8410_v23  ;;  %v3056_v11 = vpop.eup %3055  ;;  %v5196_v59 = vadd.f32 0.5, %v1210_v61  ;;  %v5199_v16 = vmul.f32 %v1287_v62, %v8413_v55  ;;  %v8414_v50 = vld [vmem:[#allocation48_spill] sm:$0xff]  ;;  %v1215_v5 = vmul.f32 0.5, %v3052_v21 }
 0x170   :  { %8406 = vst [vmem:[#allocation159_spill] sm:$0xff] %v5184_v52  ;;  %8407 = vst [vmem:[#allocation138_spill] sm:$0xff] %v5188_v49  ;;  %v5191_v2 = vmul.f32 %v1287_v62, %v8408_v53  ;;  %v5202_v52 = vmul.f32 %v1287_v62, %v8414_v50  ;;  %v3058_v25 = vpop.eup %3057  ;;  %v5204_v38 = vadd.f32 0.5, %v1211_v51  ;;  %v8417_v49 = vld [vmem:[#allocation49_spill] sm:$0xff]  ;;  %v1216_v61 = vmul.f32 0.5, %v3054_v27  ;;  %v8423_v50 = vld [vmem:[#allocation52_spill] sm:$0xff] }
 0x171   :  { %8411 = vst [vmem:[#allocation139_spill] sm:$0xff] %v5194_v34  ;;  %8412 = vst [vmem:[#allocation162_spill] sm:$0xff] %v5196_v59  ;;  %v5207_v53 = vmul.f32 %v1287_v62, %v8417_v49  ;;  %v3060_v34 = vpop.eup %3059  ;;  %v5214_v41 = vadd.f32 0.5, %v1212_v58  ;;  %v8422_v59 = vld [vmem:[#allocation51_spill] sm:$0xff]  ;;  %v1217_v51 = vmul.f32 0.5, %v3056_v11  ;;  %v5222_v21 = vadd.f32 0.5, %v1213_v54 }
 0x172   :  { %8409 = vst [vmem:[#allocation161_spill] sm:$0xff] %v5191_v2  ;;  %8415 = vst [vmem:[#allocation140_spill] sm:$0xff] %v5202_v52  ;;  %v8419_v2 = vld [vmem:[#allocation50_spill] sm:$0xff]  ;;  %v5217_v55 = vmul.f32 %v1287_v62, %v8422_v59  ;;  %v5220_v52 = vmul.f32 %v1287_v62, %v8423_v50  ;;  %v5230_v27 = vadd.f32 0.5, %v1214_v29  ;;  %v8429_v58 = vld [vmem:[#allocation55_spill] sm:$0xff]  ;;  %v1219_v11 = vmul.f32 0.5, %v3060_v34 }
 0x173   :  { %8416 = vst [vmem:[#allocation164_spill] sm:$0xff] %v5204_v38  ;;  %8418 = vst [vmem:[#allocation142_spill] sm:$0xff] %v5207_v53  ;;  %v5210_v23 = vmul.f32 %v1287_v62, %v8419_v2  ;;  %v8425_v38 = vld [vmem:[#allocation53_spill] sm:$0xff]  ;;  %v8426_v2 = vld [vmem:[#allocation54_spill] sm:$0xff]  ;;  %v1218_v53 = vmul.f32 0.5, %v3058_v25  ;;  %v5239_v54 = vadd.f32 0.5, %v1215_v5 }
 0x174   :  { %8421 = vst [vmem:[#allocation143_spill] sm:$0xff] %v5214_v41  ;;  %8424 = vst [vmem:[#allocation167_spill] sm:$0xff] %v5222_v21  ;;  %v5225_v49 = vmul.f32 %v1287_v62, %v8425_v38  ;;  %v5233_v41 = vmul.f32 %v1287_v62, %v8429_v58  ;;  %v8431_v59 = vld [vmem:[#allocation56_spill] sm:$0xff]  ;;  %v8434_v21 = vld [vmem:[#allocation57_spill] sm:$0xff]  ;;  %v5249_v25 = vadd.f32 0.5, %v1216_v61 }
 0x175   :  { %8420 = vst [vmem:[#allocation166_spill] sm:$0xff] %v5210_v23  ;;  %v5228_v23 = vmul.f32 %v1287_v62, %v8426_v2  ;;  %8428 = vst [vmem:[#allocation168_spill] sm:$0xff] %v5230_v27  ;;  %v5237_v50 = vmul.f32 %v5168_v46, %v8431_v59  ;;  %v5243_v38 = vmul.f32 %v5168_v46, %v8434_v21  ;;  %v8436_v2 = vld [vmem:[#allocation58_spill] sm:$0xff]  ;;  %v8439_v29 = vld [vmem:[#allocation59_spill] sm:$0xff] }
 0x176   :  { %8430 = vst [vmem:[#allocation146_spill] sm:$0xff] %v5233_v41  ;;  %8433 = vst [vmem:[#allocation148_spill] sm:$0xff] %v5239_v54  ;;  %v5253_v62 = vmul.f32 %v5168_v46, %v8439_v29  ;;  %v8441_v27 = vld [vmem:[#allocation60_spill] sm:$0xff]  ;;  %v8443_v34 = vld [vmem:[#allocation61_spill] sm:$0xff]  ;;  %v5263_v54 = vadd.f32 0.5, %v1217_v51  ;;  %v1321_v29 = vstv %s5186_s30  ;;  %s7182_s30 = sld [smem:[#allocation2 + $0x2f]] }
 0x177   :  { %8427 = vst [vmem:[#allocation145_spill] sm:$0xff] %v5228_v23  ;;  %8432 = vst [vmem:[#allocation170_spill] sm:$0xff] %v5237_v50  ;;  %v5247_v23 = vmul.f32 %v5168_v46, %v8436_v2  ;;  %v5257_v59 = vmul.f32 %v5168_v46, %v8441_v27  ;;  %v5261_v5 = vmul.f32 %v5168_v46, %v8443_v34  ;;  %v8446_v21 = vld [vmem:[#allocation62_spill] sm:$0xff]  ;;  %v8448_v61 = vld [vmem:[#allocation63_spill] sm:$0xff]  ;;  %v5276_v27 = vadd.f32 0.5, %v1218_v53 }
 0x178   :  { %8435 = vst [vmem:[#allocation171_spill] sm:$0xff] %v5243_v38  ;;  %8438 = vst [vmem:[#allocation174_spill] sm:$0xff] %v5249_v25  ;;  %v5267_v2 = vmul.f32 %v5168_v46, %v8446_v21  ;;  %v5271_v25 = vmul.f32 %v5168_v46, %v8448_v61  ;;  %v8451_v58 = vld [vmem:[#allocation64_spill] sm:$0xff]  ;;  %v8458_v61 = vld [vmem:[#allocation90_spill] sm:$0xff] }
 0x179   :  { %8437 = vst [vmem:[#allocation149_spill] sm:$0xff] %v5247_v23  ;;  %8440 = vst [vmem:[#allocation151_spill] sm:$0xff] %v5253_v62  ;;  %v5280_v34 = vmul.f32 %v5168_v46, %v8451_v58  ;;  %v8453_v51 = vld [vmem:[#allocation88_spill] sm:$0xff]  ;;  %v8460_v53 = vld [vmem:[#allocation91_spill] sm:$0xff] }
 0x17a   :  { %8442 = vst [vmem:[#allocation175_spill] sm:$0xff] %v5257_v59  ;;  %8444 = vst [vmem:[#allocation177_spill] sm:$0xff] %v5261_v5  ;;  %v8455_v5 = vld [vmem:[#allocation89_spill] sm:$0xff]  ;;  %v8462_v58 = vld [vmem:[#allocation92_spill] sm:$0xff] }
 0x17b   :  { %8445 = vst [vmem:[#allocation196_spill] sm:$0xff] %v5263_v54  ;;  %8447 = vst [vmem:[#allocation178_spill] sm:$0xff] %v5267_v2  ;;  %v5284_v54 = vmul.f32 %v5168_v46, %v8453_v51  ;;  %v5288_v21 = vmul.f32 %v5168_v46, %v8455_v5  ;;  %v5290_v2 = vadd.f32 0.5, %v1219_v11  ;;  %v8464_v51 = vld [vmem:[#allocation93_spill] sm:$0xff]  ;;  %v8476_v62 = vld [vmem:[#allocation70_spill] sm:$0xff] }
 0x17c   :  { %8449 = vst [vmem:[#allocation197_spill] sm:$0xff] %v5271_v25  ;;  %8450 = vst [vmem:[#allocation181_spill] sm:$0xff] %v5276_v27  ;;  %v5294_v25 = vmul.f32 %v5168_v46, %v8458_v61  ;;  %v5298_v27 = vmul.f32 %v5168_v46, %v8460_v53  ;;  %v8466_v5 = vld [vmem:[#allocation65_spill] sm:$0xff]  ;;  %v1338_v61 = vstv %s5212_s4  ;;  %v8472_v53 = vld [vmem:[#allocation68_spill] sm:$0xff]  ;;  %s7327_s4 = sld [smem:[#allocation4 + $0xd]] }
 0x17d   :  { %8452 = vst [vmem:[#allocation198_spill] sm:$0xff] %v5280_v34  ;;  %8454 = vst [vmem:[#allocation182_spill] sm:$0xff] %v5284_v54  ;;  %v5302_v34 = vmul.f32 %v5168_v46, %v8462_v58  ;;  %v5306_v54 = vmul.f32 %v5168_v46, %v8464_v51  ;;  %v5310_v11 = vmul.f32 %v5168_v46, %v8466_v5  ;;  %v8474_v58 = vld [vmem:[#allocation69_spill] sm:$0xff]  ;;  %v8480_v46 = vld [vmem:[#allocation94_spill] sm:$0xff] }
 0x17e   :  { %8456 = vst [vmem:[#allocation199_spill] sm:$0xff] %v5288_v21  ;;  %8457 = vst [vmem:[#allocation184_spill] sm:$0xff] %v5290_v2  ;;  %v8468_v2 = vld [vmem:[#allocation66_spill] sm:$0xff]  ;;  %v5326_v51 = vmul.f32 %v1321_v29, %v8476_v62  ;;  %v5332_v5 = vmul.f32 %v1321_v29, %v8480_v46  ;;  %v8490_v62 = vld [vmem:[#allocation99_spill] sm:$0xff] }
 0x17f   :  { %8459 = vst [vmem:[#allocation200_spill] sm:$0xff] %v5294_v25  ;;  %8461 = vst [vmem:[#allocation185_spill] sm:$0xff] %v5298_v27  ;;  %v5313_v21 = vmul.f32 %v1321_v29, %v8468_v2  ;;  %v8470_v25 = vld [vmem:[#allocation67_spill] sm:$0xff]  ;;  %v5320_v27 = vmul.f32 %v1321_v29, %v8472_v53  ;;  %v8486_v53 = vld [vmem:[#allocation97_spill] sm:$0xff] }
 0x180   :  { %8463 = vst [vmem:[#allocation201_spill] sm:$0xff] %v5302_v34  ;;  %8465 = vst [vmem:[#allocation186_spill] sm:$0xff] %v5306_v54  ;;  %v5317_v59 = vmul.f32 %v1321_v29, %v8470_v25  ;;  %v5323_v34 = vmul.f32 %v1321_v29, %v8474_v58  ;;  %v8478_v54 = vld [vmem:[#allocation71_spill] sm:$0xff]  ;;  %v8484_v25 = vld [vmem:[#allocation96_spill] sm:$0xff] }
 0x181   :  { %8467 = vst [vmem:[#allocation202_spill] sm:$0xff] %v5310_v11  ;;  %8469 = vst [vmem:[#allocation187_spill] sm:$0xff] %v5313_v21  ;;  %v5329_v23 = vmul.f32 %v1321_v29, %v8478_v54  ;;  %v8482_v2 = vld [vmem:[#allocation95_spill] sm:$0xff]  ;;  %v8488_v58 = vld [vmem:[#allocation98_spill] sm:$0xff] }
 0x182   :  { %8471 = vst [vmem:[#allocation203_spill] sm:$0xff] %v5317_v59  ;;  %8473 = vst [vmem:[#allocation188_spill] sm:$0xff] %v5320_v27  ;;  %v5335_v11 = vmul.f32 %v1321_v29, %v8482_v2  ;;  %v5338_v59 = vmul.f32 %v1321_v29, %v8484_v25  ;;  %v5341_v27 = vmul.f32 %v1321_v29, %v8486_v53  ;;  %v8492_v54 = vld [vmem:[#allocation100_spill] sm:$0xff]  ;;  %v8494_v46 = vld [vmem:[#allocation101_spill] sm:$0xff] }
 0x183   :  { %8475 = vst [vmem:[#allocation204_spill] sm:$0xff] %v5323_v34  ;;  %8477 = vst [vmem:[#allocation189_spill] sm:$0xff] %v5326_v51  ;;  %v5344_v34 = vmul.f32 %v1321_v29, %v8488_v58  ;;  %v5347_v51 = vmul.f32 %v1321_v29, %v8490_v62  ;;  %v8496_v2 = vld [vmem:[#allocation102_spill] sm:$0xff]  ;;  %v8498_v25 = vld [vmem:[#allocation103_spill] sm:$0xff] }
 0x184   :  { %8479 = vst [vmem:[#allocation205_spill] sm:$0xff] %v5329_v23  ;;  %8481 = vst [vmem:[#allocation190_spill] sm:$0xff] %v5332_v5  ;;  %v5350_v23 = vmul.f32 %v1321_v29, %v8492_v54  ;;  %v5353_v5 = vmul.f32 %v1321_v29, %v8494_v46  ;;  %v8500_v53 = vld [vmem:[#allocation104_spill] sm:$0xff]  ;;  %v8502_v58 = vld [vmem:[#allocation105_spill] sm:$0xff] }
 0x185   :  { %8483 = vst [vmem:[#allocation206_spill] sm:$0xff] %v5335_v11  ;;  %8485 = vst [vmem:[#allocation191_spill] sm:$0xff] %v5338_v59  ;;  %v5356_v11 = vmul.f32 %v1321_v29, %v8496_v2  ;;  %v5359_v59 = vmul.f32 %v1321_v29, %v8498_v25  ;;  %v8504_v62 = vld [vmem:[#allocation106_spill] sm:$0xff]  ;;  %v8506_v54 = vld [vmem:[#allocation107_spill] sm:$0xff] }
 0x186   :  { %8487 = vst [vmem:[#allocation207_spill] sm:$0xff] %v5341_v27  ;;  %8489 = vst [vmem:[#allocation192_spill] sm:$0xff] %v5344_v34  ;;  %v5362_v27 = vmul.f32 %v1338_v61, %v8500_v53  ;;  %v5365_v34 = vmul.f32 %v1338_v61, %v8502_v58  ;;  %v8508_v46 = vld [vmem:[#allocation108_spill] sm:$0xff]  ;;  %v8510_v2 = vld [vmem:[#allocation109_spill] sm:$0xff]  ;;  %v1355_v58 = vstv %s5274_s21  ;;  %s7410_s21 = sld [smem:[#allocation2 + $0x30]] }
 0x187   :  { %8491 = vst [vmem:[#allocation193_spill] sm:$0xff] %v5347_v51  ;;  %8493 = vst [vmem:[#allocation208_spill] sm:$0xff] %v5350_v23  ;;  %v5368_v51 = vmul.f32 %v1338_v61, %v8504_v62  ;;  %v5371_v23 = vmul.f32 %v1338_v61, %v8506_v54  ;;  %v8512_v29 = vld [vmem:[#allocation110_spill] sm:$0xff]  ;;  %v8514_v53 = vld [vmem:[#allocation111_spill] sm:$0xff] }
 0x188   :  { %8495 = vst [vmem:[#allocation194_spill] sm:$0xff] %v5353_v5  ;;  %8497 = vst [vmem:[#allocation209_spill] sm:$0xff] %v5356_v11  ;;  %v5374_v5 = vmul.f32 %v1338_v61, %v8508_v46  ;;  %v5377_v11 = vmul.f32 %v1338_v61, %v8510_v2  ;;  %v5380_v25 = vmul.f32 %v1338_v61, %v8512_v29  ;;  %v8518_v62 = vld [vmem:[#allocation113_spill] sm:$0xff]  ;;  %v8520_v54 = vld [vmem:[#allocation114_spill] sm:$0xff] }
 0x189   :  { %8499 = vst [vmem:[#allocation195_spill] sm:$0xff] %v5359_v59  ;;  %8501 = vst [vmem:[#allocation217_spill] sm:$0xff] %v5362_v27  ;;  %v5383_v27 = vmul.f32 %v1338_v61, %v8514_v53  ;;  %v8522_v46 = vld [vmem:[#allocation115_spill] sm:$0xff]  ;;  %v8524_v2 = vld [vmem:[#allocation116_spill] sm:$0xff] }
 0x18a   :  { %8503 = vst [vmem:[#allocation210_spill] sm:$0xff] %v5365_v34  ;;  %8505 = vst [vmem:[#allocation218_spill] sm:$0xff] %v5368_v51  ;;  %v8516_v34 = vld [vmem:[#allocation112_spill] sm:$0xff]  ;;  %v5390_v51 = vmul.f32 %v1338_v61, %v8518_v62  ;;  %v8526_v29 = vld [vmem:[#allocation117_spill] sm:$0xff] }
 0x18b   :  { %8507 = vst [vmem:[#allocation211_spill] sm:$0xff] %v5371_v23  ;;  %8509 = vst [vmem:[#allocation219_spill] sm:$0xff] %v5374_v5  ;;  %v5387_v59 = vmul.f32 %v1338_v61, %v8516_v34  ;;  %v5393_v23 = vmul.f32 %v1338_v61, %v8520_v54  ;;  %v5396_v5 = vmul.f32 %v1338_v61, %v8522_v46  ;;  %v8528_v53 = vld [vmem:[#allocation118_spill] sm:$0xff]  ;;  %v8530_v34 = vld [vmem:[#allocation119_spill] sm:$0xff] }
 0x18c   :  { %8511 = vst [vmem:[#allocation212_spill] sm:$0xff] %v5377_v11  ;;  %8513 = vst [vmem:[#allocation220_spill] sm:$0xff] %v5380_v25  ;;  %v5399_v11 = vmul.f32 %v1338_v61, %v8524_v2  ;;  %v5402_v25 = vmul.f32 %v1338_v61, %v8526_v29  ;;  %v8532_v62 = vld [vmem:[#allocation141_spill] sm:$0xff]  ;;  %v5415_v54 = vadd.f32 %v5027_v20, %v4978_v24  ;;  %v8542_v24 = vld [vmem:[#allocation160_spill] sm:$0xff] }
 0x18d   :  { %8515 = vst [vmem:[#allocation213_spill] sm:$0xff] %v5383_v27  ;;  %8517 = vst [vmem:[#allocation221_spill] sm:$0xff] %v5387_v59  ;;  %v5405_v27 = vmul.f32 %v1338_v61, %v8528_v53  ;;  %v5408_v59 = vmul.f32 %v1338_v61, %v8530_v34  ;;  %v5419_v2 = vadd.f32 %v5031_v43, %v4981_v40  ;;  %v8537_v53 = vld [vmem:[#allocation144_spill] sm:$0xff]  ;;  %v8539_v34 = vld [vmem:[#allocation150_spill] sm:$0xff] }
 0x18e   :  { %8519 = vst [vmem:[#allocation214_spill] sm:$0xff] %v5390_v51  ;;  %8521 = vst [vmem:[#allocation222_spill] sm:$0xff] %v5393_v23  ;;  %v5411_v51 = vmul.f32 %v1355_v58, %v8532_v62  ;;  %v5423_v29 = vadd.f32 %v5037_v13, %v4984_v60  ;;  %v1357_v46 = vmul.f32 %v1355_v58, %v8537_v53  ;;  %v8540_v62 = vld [vmem:[#allocation153_spill] sm:$0xff]  ;;  %v8546_v60 = vld [vmem:[#allocation172_spill] sm:$0xff] }
 0x18f   :  { %8523 = vst [vmem:[#allocation215_spill] sm:$0xff] %v5396_v5  ;;  %8525 = vst [vmem:[#allocation223_spill] sm:$0xff] %v5399_v11  ;;  %v8541_v11 = vld [vmem:[#allocation156_spill] sm:$0xff]  ;;  %v1362_v20 = vmul.f32 %v1355_v58, %v8542_v24  ;;  %v8544_v40 = vld [vmem:[#allocation165_spill] sm:$0xff]  ;;  %v1366_v13 = vmul.f32 %v1355_v58, %v8546_v60  ;;  %v5442_v24 = vadd.f32 %v5041_v39, %v4987_v56 }
 0x190   :  { %8527 = vst [vmem:[#allocation216_spill] sm:$0xff] %v5402_v25  ;;  %8529 = vst [vmem:[#allocation224_spill] sm:$0xff] %v5405_v27  ;;  %v8538_v27 = vld [vmem:[#allocation147_spill] sm:$0xff]  ;;  %v1360_v25 = vmul.f32 %v1355_v58, %v8540_v62  ;;  %v1361_v5 = vmul.f32 %v1355_v58, %v8541_v11  ;;  %v1364_v43 = vmul.f32 %v1355_v58, %v8544_v40  ;;  %v8548_v38 = vld [vmem:[#allocation176_spill] sm:$0xff] }
 0x191   :  { %8531 = vst [vmem:[#allocation225_spill] sm:$0xff] %v5408_v59  ;;  %8533 = vst [vmem:[#allocation226_spill] sm:$0xff] %v5411_v51  ;;  %v1358_v61 = vmul.f32 %v1355_v58, %v8538_v27  ;;  %v1359_v59 = vmul.f32 %v1355_v58, %v8539_v34  ;;  %v1368_v27 = vmul.f32 %v1355_v58, %v8548_v38  ;;  %v8549_v21 = vld [vmem:[#allocation179_spill] sm:$0xff]  ;;  %v8550_v50 = vld [vmem:[#allocation180_spill] sm:$0xff] }
 0x192   :  { %8534 = vst [vmem:[#allocation227_spill] sm:$0xff] %v5415_v54  ;;  %8535 = vst [vmem:[#allocation228_spill] sm:$0xff] %v5419_v2  ;;  %v8543_v54 = vld [vmem:[#allocation163_spill] sm:$0xff]  ;;  %v8545_v2 = vld [vmem:[#allocation169_spill] sm:$0xff]  ;;  %v1369_v34 = vmul.f32 %v1355_v58, %v8549_v21  ;;  %v1370_v62 = vmul.f32 %v1355_v58, %v8550_v50  ;;  %v5446_v40 = vadd.f32 %v5045_v12, %v4990_v26 }
 0x193   :  { %8536 = vst [vmem:[#allocation229_spill] sm:$0xff] %v5423_v29  ;;  %v1363_v23 = vmul.f32 %v1355_v58, %v8543_v54  ;;  %v1365_v51 = vmul.f32 %v1355_v58, %v8545_v2  ;;  %v8547_v29 = vld [vmem:[#allocation173_spill] sm:$0xff]  ;;  %v8551_v41 = vld [vmem:[#allocation183_spill] sm:$0xff]  ;;  %8552 = vst [vmem:[#allocation230_spill] sm:$0xff] %v5442_v24  ;;  %v5450_v60 = vadd.f32 %v5049_v6, %v4993_v47 }
 0x194   :  { %v1367_v53 = vmul.f32 %v1355_v58, %v8547_v29  ;;  %v1371_v11 = vmul.f32 %v1355_v58, %v8551_v41  ;;  %8553 = vst [vmem:[#allocation231_spill] sm:$0xff] %v5446_v40  ;;  %v5454_v38 = vadd.f32 %v5053_v33, %v4996_v3  ;;  %v5458_v50 = vadd.f32 %v5057_v30, %v4999_v63  ;;  %v8565_v12 = vld [vmem:[#allocation123_spill] sm:$0xff]  ;;  %v8568_v33 = vld [vmem:[#allocation161_spill] sm:$0xff]  ;;  %v8579_v58 = vld [vmem:[#allocation154_spill] sm:$0xff] }
 0x195   :  { %8554 = vst [vmem:[#allocation232_spill] sm:$0xff] %v5450_v60  ;;  %v5462_v56 = vadd.f32 %v5061_v0, %v5002_v22  ;;  %v5466_v26 = vadd.f32 %v5065_v7, %v5005_v4  ;;  %v5470_v47 = vadd.f32 %v5069_v36, %v5008_v42  ;;  %v5474_v3 = vadd.f32 %v5075_v1, %v5011_v15  ;;  %v8566_v6 = vld [vmem:[#allocation159_spill] sm:$0xff]  ;;  %v8571_v7 = vld [vmem:[#allocation130_spill] sm:$0xff]  ;;  %v8589_v21 = vld [vmem:[#allocation149_spill] sm:$0xff] }
 0x196   :  { %8555 = vst [vmem:[#allocation233_spill] sm:$0xff] %v5454_v38  ;;  %8556 = vst [vmem:[#allocation234_spill] sm:$0xff] %v5458_v50  ;;  %v5478_v63 = vadd.f32 %v5079_v14, %v5014_v28  ;;  %v5482_v22 = vadd.f32 %v5083_v8, %v5017_v45  ;;  %v5486_v4 = vadd.f32 %v5087_v44, %v5020_v32  ;;  %v8567_v44 = vld [vmem:[#allocation129_spill] sm:$0xff]  ;;  %v8570_v0 = vld [vmem:[#allocation139_spill] sm:$0xff] }
 0x197   :  { %8557 = vst [vmem:[#allocation120_spill] sm:$0xff] %v5462_v56  ;;  %8558 = vst [vmem:[#allocation126_spill] sm:$0xff] %v5466_v26  ;;  %v5490_v42 = vadd.f32 %v5091_v35, %v5023_v17  ;;  %v1388_v15 = vadd.f32 %v5165_v37, %v5095_v31  ;;  %v1389_v39 = vadd.f32 %v5173_v18, %v5099_v19  ;;  %v8569_v17 = vld [vmem:[#allocation124_spill] sm:$0xff]  ;;  %v8572_v31 = vld [vmem:[#allocation125_spill] sm:$0xff] }
 0x198   :  { %8559 = vst [vmem:[#allocation121_spill] sm:$0xff] %v5470_v47  ;;  %8560 = vst [vmem:[#allocation127_spill] sm:$0xff] %v5474_v3  ;;  %v1390_v28 = vadd.f32 %v5176_v48, %v5103_v57  ;;  %v1391_v45 = vadd.f32 %v5181_v9, %v5107_v10  ;;  %v1392_v32 = vadd.f32 %v8566_v6, %v8565_v12  ;;  %v8573_v18 = vld [vmem:[#allocation140_spill] sm:$0xff]  ;;  %v8574_v36 = vld [vmem:[#allocation131_spill] sm:$0xff] }
 0x199   :  { %8561 = vst [vmem:[#allocation122_spill] sm:$0xff] %v5478_v63  ;;  %8562 = vst [vmem:[#allocation128_spill] sm:$0xff] %v5482_v22  ;;  %v1393_v30 = vadd.f32 %v8568_v33, %v8567_v44  ;;  %v1394_v8 = vadd.f32 %v8570_v0, %v8569_v17  ;;  %v1395_v37 = vadd.f32 %v5199_v16, %v8571_v7  ;;  %v8575_v1 = vld [vmem:[#allocation142_spill] sm:$0xff]  ;;  %v8576_v35 = vld [vmem:[#allocation132_spill] sm:$0xff] }
 0x19a   :  { %8563 = vst [vmem:[#allocation235_spill] sm:$0xff] %v5486_v4  ;;  %8564 = vst [vmem:[#allocation236_spill] sm:$0xff] %v5490_v42  ;;  %v1396_v19 = vadd.f32 %v8573_v18, %v8572_v31  ;;  %v1397_v14 = vadd.f32 %v8575_v1, %v8574_v36  ;;  %v8577_v9 = vld [vmem:[#allocation166_spill] sm:$0xff]  ;;  %v8578_v57 = vld [vmem:[#allocation152_spill] sm:$0xff]  ;;  %v1400_v12 = vadd.f32 %v5220_v52, %v8579_v58 }
 0x19b   :  { %v1398_v10 = vadd.f32 %v8577_v9, %v8576_v35  ;;  %v1399_v48 = vadd.f32 %v5217_v55, %v8578_v57  ;;  %v8580_v6 = vld [vmem:[#allocation134_spill] sm:$0xff]  ;;  %v8581_v33 = vld [vmem:[#allocation135_spill] sm:$0xff]  ;;  %v8582_v16 = vld [vmem:[#allocation145_spill] sm:$0xff] }
 0x19c   :  { %v1401_v44 = vadd.f32 %v5225_v49, %v8580_v6  ;;  %v1402_v17 = vadd.f32 %v8582_v16, %v8581_v33  ;;  %v8583_v0 = vld [vmem:[#allocation157_spill] sm:$0xff]  ;;  %v8584_v7 = vld [vmem:[#allocation146_spill] sm:$0xff]  ;;  %v8586_v36 = vld [vmem:[#allocation187_spill] sm:$0xff] }
 0x19d   :  { %v1403_v31 = vadd.f32 %v8584_v7, %v8583_v0  ;;  %v8585_v18 = vld [vmem:[#allocation170_spill] sm:$0xff]  ;;  %v8587_v41 = vld [vmem:[#allocation171_spill] sm:$0xff]  ;;  %v8590_v55 = vld [vmem:[#allocation188_spill] sm:$0xff] }
 0x19e   :  { %v1404_v1 = vadd.f32 %v8586_v36, %v8585_v18  ;;  %v8588_v35 = vld [vmem:[#allocation203_spill] sm:$0xff]  ;;  %v1406_v57 = vadd.f32 %v8590_v55, %v8589_v21  ;;  %v8592_v52 = vld [vmem:[#allocation204_spill] sm:$0xff]  ;;  %v8594_v49 = vld [vmem:[#allocation189_spill] sm:$0xff] }
 0x19f   :  { %v1405_v9 = vadd.f32 %v8588_v35, %v8587_v41  ;;  %v8591_v29 = vld [vmem:[#allocation151_spill] sm:$0xff]  ;;  %v8595_v54 = vld [vmem:[#allocation177_spill] sm:$0xff]  ;;  %v8597_v42 = vld [vmem:[#allocation178_spill] sm:$0xff] }
 0x1a0   :  { %v1407_v58 = vadd.f32 %v8592_v52, %v8591_v29  ;;  %v8593_v2 = vld [vmem:[#allocation175_spill] sm:$0xff]  ;;  %v8596_v33 = vld [vmem:[#allocation205_spill] sm:$0xff]  ;;  %v8598_v0 = vld [vmem:[#allocation190_spill] sm:$0xff] }
 0x1a1   :  { %v1408_v6 = vadd.f32 %v8594_v49, %v8593_v2  ;;  %v1409_v16 = vadd.f32 %v8596_v33, %v8595_v54  ;;  %v1410_v7 = vadd.f32 %v8598_v0, %v8597_v42  ;;  %v8599_v4 = vld [vmem:[#allocation197_spill] sm:$0xff]  ;;  %v8600_v18 = vld [vmem:[#allocation206_spill] sm:$0xff]  ;;  %v8602_v41 = vld [vmem:[#allocation191_spill] sm:$0xff] }
 0x1a2   :  { %v1411_v36 = vadd.f32 %v8600_v18, %v8599_v4  ;;  %v8601_v22 = vld [vmem:[#allocation198_spill] sm:$0xff]  ;;  %v8604_v21 = vld [vmem:[#allocation207_spill] sm:$0xff]  ;;  %v8606_v29 = vld [vmem:[#allocation192_spill] sm:$0xff] }
 0x1a3   :  { %v1412_v35 = vadd.f32 %v8602_v41, %v8601_v22  ;;  %v8603_v63 = vld [vmem:[#allocation182_spill] sm:$0xff]  ;;  %v8605_v3 = vld [vmem:[#allocation199_spill] sm:$0xff]  ;;  %v8607_v47 = vld [vmem:[#allocation200_spill] sm:$0xff] }
 0x1a4   :  { %v1413_v55 = vadd.f32 %v8604_v21, %v8603_v63  ;;  %v1414_v52 = vadd.f32 %v8606_v29, %v8605_v3  ;;  %v8608_v2 = vld [vmem:[#allocation193_spill] sm:$0xff]  ;;  %v8610_v54 = vld [vmem:[#allocation208_spill] sm:$0xff]  ;;  %v8612_v42 = vld [vmem:[#allocation194_spill] sm:$0xff] }
 0x1a5   :  { %v1415_v49 = vadd.f32 %v8608_v2, %v8607_v47  ;;  %v8609_v26 = vld [vmem:[#allocation185_spill] sm:$0xff]  ;;  %v8613_v50 = vld [vmem:[#allocation186_spill] sm:$0xff]  ;;  %v8616_v22 = vld [vmem:[#allocation195_spill] sm:$0xff] }
 0x1a6   :  { %v1416_v33 = vadd.f32 %v8610_v54, %v8609_v26  ;;  %v8611_v56 = vld [vmem:[#allocation201_spill] sm:$0xff]  ;;  %v8615_v38 = vld [vmem:[#allocation202_spill] sm:$0xff]  ;;  %v8621_v47 = vld [vmem:[#allocation211_spill] sm:$0xff] }
 0x1a7   :  { %v1417_v0 = vadd.f32 %v8612_v42, %v8611_v56  ;;  %v8614_v4 = vld [vmem:[#allocation209_spill] sm:$0xff]  ;;  %v1419_v41 = vadd.f32 %v8616_v22, %v8615_v38  ;;  %v8618_v63 = vld [vmem:[#allocation226_spill] sm:$0xff]  ;;  %v1423_v2 = vadd.f32 %v1359_v59, %v8621_v47  ;;  %v8622_v26 = vld [vmem:[#allocation219_spill] sm:$0xff] }
 0x1a8   :  { %v1418_v18 = vadd.f32 %v8614_v4, %v8613_v50  ;;  %v8617_v60 = vld [vmem:[#allocation217_spill] sm:$0xff]  ;;  %v8619_v40 = vld [vmem:[#allocation210_spill] sm:$0xff]  ;;  %v1424_v54 = vadd.f32 %v1360_v25, %v8622_v26  ;;  %v8623_v56 = vld [vmem:[#allocation212_spill] sm:$0xff] }
 0x1a9   :  { %v1420_v21 = vadd.f32 %v8618_v63, %v8617_v60  ;;  %v1421_v3 = vadd.f32 %v1357_v46, %v8619_v40  ;;  %v8620_v29 = vld [vmem:[#allocation218_spill] sm:$0xff]  ;;  %v1425_v42 = vadd.f32 %v1361_v5, %v8623_v56  ;;  %v8624_v4 = vld [vmem:[#allocation220_spill] sm:$0xff]  ;;  %v8625_v22 = vld [vmem:[#allocation213_spill] sm:$0xff] }
 0x1aa   :  { %v1422_v24 = vadd.f32 %v1358_v61, %v8620_v29  ;;  %v1426_v50 = vadd.f32 %v1362_v20, %v8624_v4  ;;  %v1427_v38 = vadd.f32 %v1363_v23, %v8625_v22  ;;  %v8626_v60 = vld [vmem:[#allocation221_spill] sm:$0xff]  ;;  %v8627_v40 = vld [vmem:[#allocation214_spill] sm:$0xff]  ;;  %v8629_v47 = vld [vmem:[#allocation215_spill] sm:$0xff] }
 0x1ab   :  { %v1428_v63 = vadd.f32 %v1364_v43, %v8626_v60  ;;  %v1429_v46 = vadd.f32 %v1365_v51, %v8627_v40  ;;  %v8628_v29 = vld [vmem:[#allocation222_spill] sm:$0xff]  ;;  %v1431_v59 = vadd.f32 %v1367_v53, %v8629_v47  ;;  %v8630_v25 = vld [vmem:[#allocation223_spill] sm:$0xff]  ;;  %v8631_v5 = vld [vmem:[#allocation216_spill] sm:$0xff]  ;;  %v1452_v47 = vadd.f32 %v1420_v21, %v1404_v1 }
 0x1ac   :  { %v1430_v61 = vadd.f32 %v1366_v13, %v8628_v29  ;;  %v1432_v26 = vadd.f32 %v1368_v27, %v8630_v25  ;;  %v1433_v56 = vadd.f32 %v1369_v34, %v8631_v5  ;;  %v8632_v4 = vld [vmem:[#allocation224_spill] sm:$0xff]  ;;  %v8633_v22 = vld [vmem:[#allocation225_spill] sm:$0xff]  ;;  %v8634_v43 = vld [vmem:[#allocation227_spill] sm:$0xff] }
 0x1ad   :  { %v1434_v20 = vadd.f32 %v1370_v62, %v8632_v4  ;;  %v1435_v23 = vadd.f32 %v1371_v11, %v8633_v22  ;;  %v1436_v60 = vadd.f32 %v1388_v15, %v8634_v43  ;;  %v8635_v40 = vld [vmem:[#allocation228_spill] sm:$0xff]  ;;  %v8636_v13 = vld [vmem:[#allocation229_spill] sm:$0xff]  ;;  %v8637_v53 = vld [vmem:[#allocation230_spill] sm:$0xff]  ;;  %v1453_v62 = vadd.f32 %v1421_v3, %v1405_v9 }
 0x1ae   :  { %v1437_v51 = vadd.f32 %v1389_v39, %v8635_v40  ;;  %v1438_v29 = vadd.f32 %v1390_v28, %v8636_v13  ;;  %v1439_v25 = vadd.f32 %v1391_v45, %v8637_v53  ;;  %v8638_v27 = vld [vmem:[#allocation231_spill] sm:$0xff]  ;;  %v8639_v34 = vld [vmem:[#allocation232_spill] sm:$0xff]  ;;  %v8640_v11 = vld [vmem:[#allocation233_spill] sm:$0xff]  ;;  %v1454_v13 = vadd.f32 %v1422_v24, %v1406_v57 }
 0x1af   :  { %v1440_v5 = vadd.f32 %v1392_v32, %v8638_v27  ;;  %v1441_v4 = vadd.f32 %v1393_v30, %v8639_v34  ;;  %v1442_v22 = vadd.f32 %v1394_v8, %v8640_v11  ;;  %v8641_v15 = vld [vmem:[#allocation234_spill] sm:$0xff]  ;;  %v8642_v39 = vld [vmem:[#allocation120_spill] sm:$0xff]  ;;  %v8644_v21 = vld [vmem:[#allocation121_spill] sm:$0xff]  ;;  %v1455_v32 = vadd.f32 %v1423_v2, %v1407_v58 }
 0x1b0   :  { %v1443_v43 = vadd.f32 %v1395_v37, %v8641_v15  ;;  %v1444_v40 = vadd.f32 %v1396_v19, %v8642_v39  ;;  %v8643_v28 = vld [vmem:[#allocation126_spill] sm:$0xff]  ;;  %v1446_v45 = vadd.f32 %v1398_v10, %v8644_v21  ;;  %v8645_v53 = vld [vmem:[#allocation127_spill] sm:$0xff]  ;;  %v8647_v3 = vld [vmem:[#allocation128_spill] sm:$0xff]  ;;  %v1456_v8 = vadd.f32 %v1424_v54, %v1408_v6 }
 0x1b1   :  { %v1445_v1 = vadd.f32 %v1397_v14, %v8643_v28  ;;  %v1447_v27 = vadd.f32 %v1399_v48, %v8645_v53  ;;  %v8646_v30 = vld [vmem:[#allocation122_spill] sm:$0xff]  ;;  %v1449_v9 = vadd.f32 %v1401_v44, %v8647_v3  ;;  %v1468_v11 = vadd.f32 %v1452_v47, %v1436_v60  ;;  %v8648_v15 = vld [vmem:[#allocation235_spill] sm:$0xff]  ;;  %v8649_v57 = vld [vmem:[#allocation236_spill] sm:$0xff] }
 0x1b2   :  { %v1448_v34 = vadd.f32 %v1400_v12, %v8646_v30  ;;  %v1450_v37 = vadd.f32 %v1402_v17, %v8648_v15  ;;  %v1457_v19 = vadd.f32 %v1425_v42, %v1409_v16  ;;  %v1469_v39 = vadd.f32 %v1453_v62, %v1437_v51 }
 0x1b3   :  { %v1484_v24 = vstv %s5561_s22  ;;  %v1451_v14 = vadd.f32 %v1403_v31, %v8649_v57  ;;  %v1458_v28 = vadd.f32 %v1426_v50, %v1410_v7  ;;  %v1459_v10 = vadd.f32 %v1427_v38, %v1411_v36  ;;  %v8652_v57 = vld [vmem:[#allocation10_spill] sm:$0xff]  ;;  %s7415_s22 = sld [smem:[#allocation2 + $0x31]] }
 0x1b4   :  { %v1470_v21 = vadd.f32 %v1454_v13, %v1438_v29  ;;  %v1460_v48 = vadd.f32 %v1428_v63, %v1412_v35  ;;  %v1461_v53 = vadd.f32 %v1429_v46, %v1413_v55  ;;  %v1462_v2 = vadd.f32 %v1430_v61, %v1414_v52 }
 0x1b5   :  { %v1471_v58 = vadd.f32 %v1455_v32, %v1439_v25  ;;  %v1463_v12 = vadd.f32 %v1431_v59, %v1415_v49  ;;  %v1464_v30 = vadd.f32 %v1432_v26, %v1416_v33  ;;  %v1472_v3 = vadd.f32 %v1456_v8, %v1440_v5 }
 0x1b6   :  { %v1485_v44 = vadd.f32 %v1484_v24, %v1468_v11  ;;  %v1465_v6 = vadd.f32 %v1433_v56, %v1417_v0  ;;  %v1466_v54 = vadd.f32 %v1434_v20, %v1418_v18  ;;  %v1473_v60 = vadd.f32 %v1457_v19, %v1441_v4 }
 0x1b7   :  { %v1486_v17 = vadd.f32 %v1484_v24, %v1469_v39  ;;  %v1467_v16 = vadd.f32 %v1435_v23, %v1419_v41  ;;  %v1474_v42 = vadd.f32 %v1458_v28, %v1442_v22  ;;  %v1475_v31 = vadd.f32 %v1459_v10, %v1443_v43  ;;  %v8651_v39 = vld [vmem:[#allocation9_spill] sm:$0xff]  ;;  %v8653_v28 = vld [vmem:[#allocation11_spill] sm:$0xff] }
 0x1b8   :  { %v1487_v7 = vadd.f32 %v1484_v24, %v1470_v21  ;;  %v1476_v36 = vadd.f32 %v1460_v48, %v1444_v40  ;;  %v1477_v35 = vadd.f32 %v1461_v53, %v1445_v1  ;;  %v1478_v55 = vadd.f32 %v1462_v2, %v1446_v45  ;;  %v8654_v21 = vld [vmem:[#allocation12_spill] sm:$0xff]  ;;  %v8655_v53 = vld [vmem:[#allocation13_spill] sm:$0xff] }
 0x1b9   :  { %v1488_v52 = vadd.f32 %v1484_v24, %v1471_v58  ;;  %v1479_v49 = vadd.f32 %v1463_v12, %v1447_v27  ;;  %v1480_v33 = vadd.f32 %v1464_v30, %v1448_v34  ;;  %v1489_v50 = vadd.f32 %v1484_v24, %v1472_v3  ;;  %v8656_v58 = vld [vmem:[#allocation14_spill] sm:$0xff]  ;;  %v8657_v30 = vld [vmem:[#allocation15_spill] sm:$0xff] }
 0x1ba   :  { %v1501_v38 = vmul.f32 0.5, %v1485_v44  ;;  %v1481_v0 = vadd.f32 %v1465_v6, %v1449_v9  ;;  %v1482_v18 = vadd.f32 %v1466_v54, %v1450_v37  ;;  %v1490_v63 = vadd.f32 %v1484_v24, %v1473_v60  ;;  %v8650_v37 = vld [vmem:[#allocation8_spill] sm:$0xff]  ;;  %v8659_v54 = vld [vmem:[#allocation17_spill] sm:$0xff] }
 0x1bb   :  { %v1502_v46 = vmul.f32 0.5, %v1486_v17  ;;  %v1483_v61 = vadd.f32 %v1467_v16, %v1451_v14  ;;  %v1491_v59 = vadd.f32 %v1484_v24, %v1474_v42  ;;  %v1492_v41 = vadd.f32 %v1484_v24, %v1475_v31  ;;  %v8658_v44 = vld [vmem:[#allocation16_spill] sm:$0xff]  ;;  %v8661_v42 = vld [vmem:[#allocation73_spill] sm:$0xff] }
 0x1bc   :  { %v1503_v26 = vmul.f32 0.5, %v1487_v7  ;;  %v1493_v56 = vadd.f32 %v1484_v24, %v1476_v36  ;;  %v1494_v20 = vadd.f32 %v1484_v24, %v1477_v35  ;;  %v1495_v23 = vadd.f32 %v1484_v24, %v1478_v55  ;;  %v8660_v17 = vld [vmem:[#allocation72_spill] sm:$0xff]  ;;  %v8662_v7 = vld [vmem:[#allocation74_spill] sm:$0xff]  ;;  %v8663_v35 = vld [vmem:[#allocation75_spill] sm:$0xff] }
 0x1bd   :  { %v1504_v51 = vmul.f32 0.5, %v1488_v52  ;;  %v1496_v29 = vadd.f32 %v1484_v24, %v1479_v49  ;;  %v1497_v47 = vadd.f32 %v1484_v24, %v1480_v33  ;;  %v1505_v25 = vmul.f32 0.5, %v1489_v50  ;;  %v8664_v52 = vld [vmem:[#allocation76_spill] sm:$0xff]  ;;  %v8665_v33 = vld [vmem:[#allocation77_spill] sm:$0xff] }
 0x1be   :  { %3061 = vtanh.f32 %v1501_v38  ;;  %v1498_v5 = vadd.f32 %v1484_v24, %v1481_v0  ;;  %v1499_v4 = vadd.f32 %v1484_v24, %v1482_v18  ;;  %v1506_v62 = vmul.f32 0.5, %v1490_v63  ;;  %v8666_v38 = vld [vmem:[#allocation78_spill] sm:$0xff]  ;;  %v8667_v18 = vld [vmem:[#allocation79_spill] sm:$0xff] }
 0x1bf   :  { %3063 = vtanh.f32 %v1502_v46  ;;  %v1500_v22 = vadd.f32 %v1484_v24, %v1483_v61  ;;  %v1507_v43 = vmul.f32 0.5, %v1491_v59  ;;  %v1565_v40 = vstv %s5592_s23  ;;  %v8668_v46 = vld [vmem:[#allocation80_spill] sm:$0xff]  ;;  %v8669_v59 = vld [vmem:[#allocation81_spill] sm:$0xff]  ;;  %s7429_s23 = sld [smem:[#allocation4 + $0xe]] }
 0x1c0   :  { %3065 = vtanh.f32 %v1503_v26  ;;  %v1508_v13 = vmul.f32 0.5, %v1492_v41  ;;  %v1509_v1 = vmul.f32 0.5, %v1493_v56  ;;  %v1582_v45 = vstv %s5594_s24  ;;  %v8670_v56 = vld [vmem:[#allocation82_spill] sm:$0xff] }
 0x1c1   :  { %3067 = vtanh.f32 %v1504_v51  ;;  %v1510_v27 = vmul.f32 0.5, %v1494_v20  ;;  %v1511_v32 = vmul.f32 0.5, %v1495_v23  ;;  %v1512_v34 = vmul.f32 0.5, %v1496_v29  ;;  %v8671_v23 = vld [vmem:[#allocation18_spill] sm:$0xff]  ;;  %v8672_v29 = vld [vmem:[#allocation19_spill] sm:$0xff] }
 0x1c2   :  { %3069 = vtanh.f32 %v1505_v25  ;;  %v1513_v9 = vmul.f32 0.5, %v1497_v47  ;;  %v1514_v8 = vmul.f32 0.5, %v1498_v5  ;;  %v1515_v11 = vmul.f32 0.5, %v1499_v4  ;;  %v8673_v5 = vld [vmem:[#allocation20_spill] sm:$0xff] }
 0x1c3   :  { %3071 = vtanh.f32 %v1506_v62  ;;  %v1516_v15 = vmul.f32 0.5, %v1500_v22  ;;  %v5601_v19 = vmul.f32 %v1565_v40, %v8650_v37  ;;  %v5604_v24 = vmul.f32 %v1565_v40, %v8651_v39  ;;  %v8674_v62 = vld [vmem:[#allocation21_spill] sm:$0xff] }
 0x1c4   :  { %3073 = vtanh.f32 %v1507_v43  ;;  %v5607_v14 = vmul.f32 %v1565_v40, %v8652_v57  ;;  %v5610_v10 = vmul.f32 %v1565_v40, %v8653_v28  ;;  %v5613_v48 = vmul.f32 %v1565_v40, %v8654_v21 }
 0x1c5   :  { %3075 = vtanh.f32 %v1508_v13  ;;  %v5616_v2 = vmul.f32 %v1565_v40, %v8655_v53  ;;  %v5619_v12 = vmul.f32 %v1565_v40, %v8656_v58  ;;  %v5622_v3 = vmul.f32 %v1565_v40, %v8657_v30  ;;  %v8675_v13 = vld [vmem:[#allocation22_spill] sm:$0xff] }
 0x1c6   :  { %3077 = vtanh.f32 %v1509_v1  ;;  %v5625_v6 = vmul.f32 %v1565_v40, %v8658_v44  ;;  %v5628_v60 = vmul.f32 %v1565_v40, %v8659_v54  ;;  %v5631_v16 = vmul.f32 %v1565_v40, %v8660_v17  ;;  %v8690_v17 = vld [vmem:[#allocation84_spill] sm:$0xff]  ;;  %v8692_v54 = vld [vmem:[#allocation85_spill] sm:$0xff]  ;;  %v8696_v58 = vld [vmem:[#allocation34_spill] sm:$0xff] }
 0x1c7   :  { %3079 = vtanh.f32 %v1510_v27  ;;  %v5634_v31 = vmul.f32 %v1565_v40, %v8661_v42  ;;  %v5637_v36 = vmul.f32 %v1565_v40, %v8662_v7  ;;  %v5640_v55 = vmul.f32 %v1565_v40, %v8663_v35  ;;  %v8676_v27 = vld [vmem:[#allocation23_spill] sm:$0xff]  ;;  %v8685_v35 = vld [vmem:[#allocation32_spill] sm:$0xff]  ;;  %v8686_v7 = vld [vmem:[#allocation33_spill] sm:$0xff] }
 0x1c8   :  { %3081 = vtanh.f32 %v1511_v32  ;;  %v5643_v49 = vmul.f32 %v1565_v40, %v8664_v52  ;;  %v5646_v50 = vmul.f32 %v1565_v40, %v8665_v33  ;;  %v5649_v0 = vmul.f32 %v1582_v45, %v8666_v38  ;;  %v8684_v33 = vld [vmem:[#allocation31_spill] sm:$0xff] }
 0x1c9   :  { %3083 = vtanh.f32 %v1512_v34  ;;  %v5654_v63 = vmul.f32 %v1582_v45, %v8667_v18  ;;  %v5657_v61 = vmul.f32 %v1582_v45, %v8668_v46  ;;  %v5660_v41 = vmul.f32 %v1582_v45, %v8669_v59  ;;  %v8677_v34 = vld [vmem:[#allocation24_spill] sm:$0xff] }
 0x1ca   :  { %3085 = vtanh.f32 %v1513_v9  ;;  %v5663_v20 = vmul.f32 %v1582_v45, %v8670_v56  ;;  %v5666_v51 = vmul.f32 %v1582_v45, %v8671_v23  ;;  %v5669_v47 = vmul.f32 %v1582_v45, %v8672_v29 }
 0x1cb   :  { %v3062_v26 = vpop.eup %3061  ;;  %3087 = vtanh.f32 %v1514_v8  ;;  %v5672_v4 = vmul.f32 %v1582_v45, %v8673_v5  ;;  %v5675_v22 = vmul.f32 %v1582_v45, %v8674_v62  ;;  %v1599_v43 = vstv %s5598_s5  ;;  %v8679_v5 = vld [vmem:[#allocation26_spill] sm:$0xff]  ;;  %v8680_v62 = vld [vmem:[#allocation27_spill] sm:$0xff] }
 0x1cc   :  { %v3064_v25 = vpop.eup %3063  ;;  %3089 = vtanh.f32 %v1515_v11  ;;  %v5679_v1 = vmul.f32 %v1582_v45, %v8675_v13  ;;  %v5682_v32 = vmul.f32 %v1582_v45, %v8676_v27  ;;  %v5685_v9 = vmul.f32 %v1582_v45, %v8677_v34  ;;  %v8678_v11 = vld [vmem:[#allocation25_spill] sm:$0xff]  ;;  %v8683_v34 = vld [vmem:[#allocation30_spill] sm:$0xff] }
 0x1cd   :  { %v3066_v40 = vpop.eup %3065  ;;  %3091 = vtanh.f32 %v1516_v15  ;;  %v5688_v29 = vmul.f32 %v1582_v45, %v8678_v11  ;;  %v5691_v23 = vmul.f32 %v1582_v45, %v8679_v5  ;;  %v5694_v56 = vmul.f32 %v1582_v45, %v8680_v62  ;;  %v8681_v15 = vld [vmem:[#allocation28_spill] sm:$0xff]  ;;  %v8682_v27 = vld [vmem:[#allocation29_spill] sm:$0xff] }
 0x1ce   :  { %v3068_v8 = vpop.eup %3067  ;;  %v5697_v59 = vmul.f32 %v1582_v45, %v8681_v15  ;;  %v1533_v46 = vmul.f32 0.5, %v3062_v26  ;;  %v5700_v18 = vmul.f32 %v1599_v43, %v8682_v27  ;;  %v5703_v38 = vmul.f32 %v1599_v43, %v8683_v34  ;;  %v8688_v15 = vld [vmem:[#allocation83_spill] sm:$0xff] }
 0x1cf   :  { %v3070_v13 = vpop.eup %3069  ;;  %v5706_v11 = vmul.f32 %v1599_v43, %v8684_v33  ;;  %v1534_v52 = vmul.f32 0.5, %v3064_v25  ;;  %v5709_v62 = vmul.f32 %v1599_v43, %v8685_v35  ;;  %v5712_v45 = vmul.f32 %v1599_v43, %v8686_v7  ;;  %v8694_v33 = vld [vmem:[#allocation86_spill] sm:$0xff]  ;;  %v8698_v7 = vld [vmem:[#allocation35_spill] sm:$0xff] }
 0x1d0   :  { %v3072_v5 = vpop.eup %3071  ;;  %v5715_v26 = vmul.f32 %v1599_v43, %v8688_v15  ;;  %v1535_v42 = vmul.f32 0.5, %v3066_v40  ;;  %v5718_v34 = vmul.f32 %v1599_v43, %v8690_v17  ;;  %v5721_v44 = vmul.f32 %v1599_v43, %v8692_v54  ;;  %v8701_v54 = vld [vmem:[#allocation36_spill] sm:$0xff] }
 0x1d1   :  { %8687 = vst [vmem:[#allocation123_spill] sm:$0xff] %v5712_v45  ;;  %v3074_v27 = vpop.eup %3073  ;;  %v5724_v30 = vmul.f32 %v1599_v43, %v8694_v33  ;;  %v1536_v35 = vmul.f32 0.5, %v3068_v8  ;;  %v5727_v53 = vmul.f32 %v1599_v43, %v8696_v58  ;;  %v5730_v21 = vmul.f32 %v1599_v43, %v8698_v7  ;;  %v8703_v33 = vld [vmem:[#allocation87_spill] sm:$0xff] }
 0x1d2   :  { %8689 = vst [vmem:[#allocation159_spill] sm:$0xff] %v5715_v26  ;;  %8691 = vst [vmem:[#allocation129_spill] sm:$0xff] %v5718_v34  ;;  %v3076_v25 = vpop.eup %3075  ;;  %v1616_v15 = vstv %s5651_s6  ;;  %v1537_v40 = vmul.f32 0.5, %v3070_v13  ;;  %v5735_v17 = vadd.f32 0.5, %v1533_v46  ;;  %v5738_v57 = vmul.f32 %v1599_v43, %v8701_v54  ;;  %v8726_v34 = vld [vmem:[#allocation47_spill] sm:$0xff]  ;;  %v8729_v26 = vld [vmem:[#allocation48_spill] sm:$0xff] }
 0x1d3   :  { %8693 = vst [vmem:[#allocation161_spill] sm:$0xff] %v5721_v44  ;;  %8695 = vst [vmem:[#allocation124_spill] sm:$0xff] %v5724_v30  ;;  %v3078_v28 = vpop.eup %3077  ;;  %v5741_v39 = vmul.f32 %v1599_v43, %v8703_v33  ;;  %v1538_v37 = vmul.f32 0.5, %v3072_v5  ;;  %v5743_v58 = vadd.f32 0.5, %v1534_v52  ;;  %v1539_v13 = vmul.f32 0.5, %v3074_v27 }
 0x1d4   :  { %8697 = vst [vmem:[#allocation139_spill] sm:$0xff] %v5727_v53  ;;  %8699 = vst [vmem:[#allocation130_spill] sm:$0xff] %v5730_v21  ;;  %v3080_v8 = vpop.eup %3079  ;;  %v8706_v53 = vld [vmem:[#allocation37_spill] sm:$0xff]  ;;  %v8708_v21 = vld [vmem:[#allocation38_spill] sm:$0xff]  ;;  %v5751_v46 = vadd.f32 0.5, %v1535_v42  ;;  %v1540_v52 = vmul.f32 0.5, %v3076_v25 }
 0x1d5   :  { %8700 = vst [vmem:[#allocation125_spill] sm:$0xff] %v5735_v17  ;;  %8702 = vst [vmem:[#allocation140_spill] sm:$0xff] %v5738_v57  ;;  %v5746_v7 = vmul.f32 %v1599_v43, %v8706_v53  ;;  %v5749_v30 = vmul.f32 %v1599_v43, %v8708_v21  ;;  %v3082_v44 = vpop.eup %3081  ;;  %v8711_v17 = vld [vmem:[#allocation39_spill] sm:$0xff]  ;;  %v8713_v57 = vld [vmem:[#allocation40_spill] sm:$0xff]  ;;  %v5761_v5 = vadd.f32 0.5, %v1536_v35  ;;  %v1541_v27 = vmul.f32 0.5, %v3078_v28 }
 0x1d6   :  { %8704 = vst [vmem:[#allocation131_spill] sm:$0xff] %v5741_v39  ;;  %8705 = vst [vmem:[#allocation142_spill] sm:$0xff] %v5743_v58  ;;  %v5754_v54 = vmul.f32 %v1599_v43, %v8711_v17  ;;  %v5757_v33 = vmul.f32 %v1616_v15, %v8713_v57  ;;  %v3084_v39 = vpop.eup %3083  ;;  %v8715_v58 = vld [vmem:[#allocation41_spill] sm:$0xff]  ;;  %v8716_v21 = vld [vmem:[#allocation42_spill] sm:$0xff]  ;;  %v5777_v25 = vadd.f32 0.5, %v1538_v37  ;;  %v5786_v28 = vmul.f32 %v1616_v15, %v8726_v34 }
 0x1d7   :  { %8707 = vst [vmem:[#allocation132_spill] sm:$0xff] %v5746_v7  ;;  %8709 = vst [vmem:[#allocation166_spill] sm:$0xff] %v5749_v30  ;;  %v5764_v53 = vmul.f32 %v1616_v15, %v8715_v58  ;;  %v5767_v30 = vmul.f32 %v1616_v15, %v8716_v21  ;;  %v3086_v42 = vpop.eup %3085  ;;  %v8718_v43 = vld [vmem:[#allocation43_spill] sm:$0xff]  ;;  %v8719_v57 = vld [vmem:[#allocation44_spill] sm:$0xff]  ;;  %v5796_v45 = vadd.f32 0.5, %v1540_v52 }
 0x1d8   :  { %8710 = vst [vmem:[#allocation152_spill] sm:$0xff] %v5751_v46  ;;  %8712 = vst [vmem:[#allocation154_spill] sm:$0xff] %v5754_v54  ;;  %v5769_v46 = vadd.f32 0.5, %v1537_v40  ;;  %v5772_v17 = vmul.f32 %v1616_v15, %v8718_v43  ;;  %v5775_v54 = vmul.f32 %v1616_v15, %v8719_v57  ;;  %v3088_v7 = vpop.eup %3087  ;;  %v8722_v35 = vld [vmem:[#allocation45_spill] sm:$0xff]  ;;  %v8724_v58 = vld [vmem:[#allocation46_spill] sm:$0xff]  ;;  %v5788_v43 = vadd.f32 0.5, %v1539_v13 }
 0x1d9   :  { %8714 = vst [vmem:[#allocation134_spill] sm:$0xff] %v5761_v5  ;;  %8721 = vst [vmem:[#allocation157_spill] sm:$0xff] %v5777_v25  ;;  %v5780_v5 = vmul.f32 %v1616_v15, %v8722_v35  ;;  %v5783_v21 = vmul.f32 %v1616_v15, %v8724_v58  ;;  %v3090_v40 = vpop.eup %3089  ;;  %v5791_v57 = vmul.f32 %v1616_v15, %v8729_v26  ;;  %v1543_v35 = vmul.f32 0.5, %v3082_v44  ;;  %v8734_v58 = vld [vmem:[#allocation50_spill] sm:$0xff]  ;;  %v8739_v44 = vld [vmem:[#allocation53_spill] sm:$0xff] }
 0x1da   :  { %8717 = vst [vmem:[#allocation135_spill] sm:$0xff] %v5769_v46  ;;  %8720 = vst [vmem:[#allocation145_spill] sm:$0xff] %v5775_v54  ;;  %v1542_v46 = vmul.f32 0.5, %v3080_v8  ;;  %v8731_v54 = vld [vmem:[#allocation49_spill] sm:$0xff]  ;;  %v3092_v25 = vpop.eup %3091  ;;  %v1545_v34 = vmul.f32 0.5, %v3086_v42  ;;  %v8736_v8 = vld [vmem:[#allocation51_spill] sm:$0xff] }
 0x1db   :  { %8723 = vst [vmem:[#allocation146_spill] sm:$0xff] %v5780_v5  ;;  %8725 = vst [vmem:[#allocation170_spill] sm:$0xff] %v5783_v21  ;;  %v5794_v37 = vmul.f32 %v1616_v15, %v8731_v54  ;;  %v1544_v5 = vmul.f32 0.5, %v3084_v39  ;;  %v5799_v21 = vmul.f32 %v1616_v15, %v8734_v58  ;;  %v5804_v13 = vmul.f32 %v1616_v15, %v8736_v8  ;;  %v8737_v54 = vld [vmem:[#allocation52_spill] sm:$0xff]  ;;  %v8742_v42 = vld [vmem:[#allocation54_spill] sm:$0xff] }
 0x1dc   :  { %8727 = vst [vmem:[#allocation187_spill] sm:$0xff] %v5786_v28  ;;  %8728 = vst [vmem:[#allocation171_spill] sm:$0xff] %v5788_v43  ;;  %v5801_v28 = vadd.f32 0.5, %v1541_v27  ;;  %v1633_v43 = vstv %s5733_s7  ;;  %v1546_v26 = vmul.f32 0.5, %v3088_v7  ;;  %v5811_v39 = vmul.f32 %v1616_v15, %v8739_v44 }
 0x1dd   :  { %8730 = vst [vmem:[#allocation203_spill] sm:$0xff] %v5791_v57  ;;  %8732 = vst [vmem:[#allocation149_spill] sm:$0xff] %v5794_v37  ;;  %v1547_v57 = vmul.f32 0.5, %v3090_v40  ;;  %v5808_v37 = vmul.f32 %v1616_v15, %v8737_v54  ;;  %v1548_v52 = vmul.f32 0.5, %v3092_v25  ;;  %v5818_v27 = vmul.f32 %v1616_v15, %v8742_v42  ;;  %v8747_v40 = vld [vmem:[#allocation56_spill] sm:$0xff]  ;;  %v8752_v42 = vld [vmem:[#allocation59_spill] sm:$0xff] }
 0x1de   :  { %8733 = vst [vmem:[#allocation188_spill] sm:$0xff] %v5796_v45  ;;  %8735 = vst [vmem:[#allocation151_spill] sm:$0xff] %v5801_v28  ;;  %v5815_v45 = vadd.f32 0.5, %v1542_v46  ;;  %v8744_v28 = vld [vmem:[#allocation55_spill] sm:$0xff]  ;;  %v5823_v58 = vadd.f32 0.5, %v1543_v35  ;;  %v5825_v7 = vadd.f32 0.5, %v1544_v5  ;;  %v5828_v54 = vmul.f32 %v1633_v43, %v8747_v40 }
 0x1df   :  { %8738 = vst [vmem:[#allocation204_spill] sm:$0xff] %v5808_v37  ;;  %8740 = vst [vmem:[#allocation175_spill] sm:$0xff] %v5811_v39  ;;  %v5821_v8 = vmul.f32 %v1616_v15, %v8744_v28  ;;  %v1650_v44 = vstv %s5759_s8  ;;  %v5831_v39 = vadd.f32 0.5, %v1545_v34  ;;  %v8749_v37 = vld [vmem:[#allocation57_spill] sm:$0xff]  ;;  %v8750_v46 = vld [vmem:[#allocation58_spill] sm:$0xff]  ;;  %v5844_v15 = vadd.f32 0.5, %v1546_v26 }
 0x1e0   :  { %8741 = vst [vmem:[#allocation189_spill] sm:$0xff] %v5815_v45  ;;  %8743 = vst [vmem:[#allocation177_spill] sm:$0xff] %v5818_v27  ;;  %v5834_v25 = vmul.f32 %v1633_v43, %v8749_v37  ;;  %v5837_v45 = vmul.f32 %v1633_v43, %v8750_v46  ;;  %v5840_v27 = vmul.f32 %v1633_v43, %v8752_v42  ;;  %v5846_v5 = vadd.f32 0.5, %v1547_v57  ;;  %v8756_v35 = vld [vmem:[#allocation60_spill] sm:$0xff]  ;;  %v8758_v34 = vld [vmem:[#allocation61_spill] sm:$0xff] }
 0x1e1   :  { %8745 = vst [vmem:[#allocation205_spill] sm:$0xff] %v5823_v58  ;;  %8746 = vst [vmem:[#allocation178_spill] sm:$0xff] %v5825_v7  ;;  %v5849_v7 = vmul.f32 %v1633_v43, %v8756_v35  ;;  %v5854_v58 = vadd.f32 0.5, %v1548_v52  ;;  %v8761_v37 = vld [vmem:[#allocation62_spill] sm:$0xff]  ;;  %v8763_v40 = vld [vmem:[#allocation63_spill] sm:$0xff] }
 0x1e2   :  { %8748 = vst [vmem:[#allocation190_spill] sm:$0xff] %v5831_v39  ;;  %8751 = vst [vmem:[#allocation197_spill] sm:$0xff] %v5837_v45  ;;  %v5852_v39 = vmul.f32 %v1633_v43, %v8758_v34  ;;  %v5857_v46 = vmul.f32 %v1633_v43, %v8761_v37  ;;  %v5860_v42 = vmul.f32 %v1633_v43, %v8763_v40  ;;  %v8765_v28 = vld [vmem:[#allocation64_spill] sm:$0xff]  ;;  %v8771_v34 = vld [vmem:[#allocation90_spill] sm:$0xff] }
 0x1e3   :  { %8753 = vst [vmem:[#allocation206_spill] sm:$0xff] %v5840_v27  ;;  %8754 = vst [vmem:[#allocation198_spill] sm:$0xff] %v5844_v15  ;;  %v5863_v27 = vmul.f32 %v1633_v43, %v8765_v28  ;;  %v8767_v26 = vld [vmem:[#allocation88_spill] sm:$0xff]  ;;  %v5872_v35 = vmul.f32 %v1633_v43, %v8771_v34  ;;  %v8773_v52 = vld [vmem:[#allocation91_spill] sm:$0xff] }
 0x1e4   :  { %8755 = vst [vmem:[#allocation191_spill] sm:$0xff] %v5846_v5  ;;  %8757 = vst [vmem:[#allocation182_spill] sm:$0xff] %v5849_v7  ;;  %v5866_v57 = vmul.f32 %v1633_v43, %v8767_v26  ;;  %v8769_v5 = vld [vmem:[#allocation89_spill] sm:$0xff]  ;;  %v8775_v37 = vld [vmem:[#allocation92_spill] sm:$0xff] }
 0x1e5   :  { %8759 = vst [vmem:[#allocation207_spill] sm:$0xff] %v5852_v39  ;;  %8760 = vst [vmem:[#allocation199_spill] sm:$0xff] %v5854_v58  ;;  %v5869_v15 = vmul.f32 %v1633_v43, %v8769_v5  ;;  %v5875_v58 = vmul.f32 %v1633_v43, %v8773_v52  ;;  %v8777_v40 = vld [vmem:[#allocation93_spill] sm:$0xff]  ;;  %v8781_v26 = vld [vmem:[#allocation66_spill] sm:$0xff] }
 0x1e6   :  { %8762 = vst [vmem:[#allocation192_spill] sm:$0xff] %v5857_v46  ;;  %8764 = vst [vmem:[#allocation200_spill] sm:$0xff] %v5860_v42  ;;  %v5878_v46 = vmul.f32 %v1633_v43, %v8775_v37  ;;  %v5881_v42 = vmul.f32 %v1633_v43, %v8777_v40  ;;  %v8779_v28 = vld [vmem:[#allocation65_spill] sm:$0xff]  ;;  %v8782_v5 = vld [vmem:[#allocation67_spill] sm:$0xff] }
 0x1e7   :  { %8766 = vst [vmem:[#allocation193_spill] sm:$0xff] %v5863_v27  ;;  %8768 = vst [vmem:[#allocation185_spill] sm:$0xff] %v5866_v57  ;;  %v5884_v27 = vmul.f32 %v1633_v43, %v8779_v28  ;;  %v5887_v57 = vmul.f32 %v1650_v44, %v8781_v26  ;;  %v8784_v34 = vld [vmem:[#allocation68_spill] sm:$0xff]  ;;  %v8786_v52 = vld [vmem:[#allocation69_spill] sm:$0xff] }
 0x1e8   :  { %8770 = vst [vmem:[#allocation208_spill] sm:$0xff] %v5869_v15  ;;  %8772 = vst [vmem:[#allocation201_spill] sm:$0xff] %v5872_v35  ;;  %v5890_v15 = vmul.f32 %v1650_v44, %v8782_v5  ;;  %v5893_v35 = vmul.f32 %v1650_v44, %v8784_v34  ;;  %v8788_v37 = vld [vmem:[#allocation70_spill] sm:$0xff]  ;;  %v8790_v40 = vld [vmem:[#allocation71_spill] sm:$0xff]  ;;  %v1667_v5 = vstv %s5813_s9 }
 0x1e9   :  { %8774 = vst [vmem:[#allocation194_spill] sm:$0xff] %v5875_v58  ;;  %8776 = vst [vmem:[#allocation186_spill] sm:$0xff] %v5878_v46  ;;  %v5896_v58 = vmul.f32 %v1650_v44, %v8786_v52  ;;  %v5899_v46 = vmul.f32 %v1650_v44, %v8788_v37  ;;  %v8792_v43 = vld [vmem:[#allocation94_spill] sm:$0xff]  ;;  %v8794_v26 = vld [vmem:[#allocation95_spill] sm:$0xff] }
 0x1ea   :  { %8778 = vst [vmem:[#allocation209_spill] sm:$0xff] %v5881_v42  ;;  %8780 = vst [vmem:[#allocation202_spill] sm:$0xff] %v5884_v27  ;;  %v5902_v42 = vmul.f32 %v1650_v44, %v8790_v40  ;;  %v5905_v28 = vmul.f32 %v1650_v44, %v8792_v43  ;;  %v5908_v27 = vmul.f32 %v1650_v44, %v8794_v26  ;;  %v8796_v39 = vld [vmem:[#allocation96_spill] sm:$0xff]  ;;  %v8798_v7 = vld [vmem:[#allocation97_spill] sm:$0xff] }
 0x1eb   :  { %8783 = vst [vmem:[#allocation195_spill] sm:$0xff] %v5890_v15  ;;  %8785 = vst [vmem:[#allocation217_spill] sm:$0xff] %v5893_v35  ;;  %v5912_v34 = vmul.f32 %v1650_v44, %v8796_v39  ;;  %v5915_v35 = vmul.f32 %v1650_v44, %v8798_v7  ;;  %v8800_v52 = vld [vmem:[#allocation98_spill] sm:$0xff]  ;;  %v8802_v37 = vld [vmem:[#allocation99_spill] sm:$0xff] }
 0x1ec   :  { %8787 = vst [vmem:[#allocation226_spill] sm:$0xff] %v5896_v58  ;;  %8789 = vst [vmem:[#allocation210_spill] sm:$0xff] %v5899_v46  ;;  %v5918_v58 = vmul.f32 %v1650_v44, %v8800_v52  ;;  %v5921_v46 = vmul.f32 %v1650_v44, %v8802_v37  ;;  %v8804_v40 = vld [vmem:[#allocation100_spill] sm:$0xff]  ;;  %v8806_v43 = vld [vmem:[#allocation101_spill] sm:$0xff]  ;;  %v1684_v52 = vstv %s5842_s10  ;;  %v5941_v37 = vadd.f32 %v5649_v0, %v5601_v19 }
 0x1ed   :  { %8791 = vst [vmem:[#allocation218_spill] sm:$0xff] %v5902_v42  ;;  %8793 = vst [vmem:[#allocation211_spill] sm:$0xff] %v5905_v28  ;;  %v5924_v42 = vmul.f32 %v1650_v44, %v8804_v40  ;;  %v5927_v28 = vmul.f32 %v1650_v44, %v8806_v43  ;;  %v8808_v26 = vld [vmem:[#allocation102_spill] sm:$0xff]  ;;  %v8810_v39 = vld [vmem:[#allocation103_spill] sm:$0xff]  ;;  %v5945_v40 = vadd.f32 %v5654_v63, %v5604_v24 }
 0x1ee   :  { %8795 = vst [vmem:[#allocation219_spill] sm:$0xff] %v5908_v27  ;;  %8797 = vst [vmem:[#allocation212_spill] sm:$0xff] %v5912_v34  ;;  %v5930_v27 = vmul.f32 %v1650_v44, %v8808_v26  ;;  %v5933_v34 = vmul.f32 %v1650_v44, %v8810_v39  ;;  %v8812_v7 = vld [vmem:[#allocation104_spill] sm:$0xff]  ;;  %v8816_v43 = vld [vmem:[#allocation105_spill] sm:$0xff] }
 0x1ef   :  { %8799 = vst [vmem:[#allocation220_spill] sm:$0xff] %v5915_v35  ;;  %8801 = vst [vmem:[#allocation213_spill] sm:$0xff] %v5918_v58  ;;  %v5936_v35 = vmul.f32 %v1667_v5, %v8812_v7  ;;  %v8818_v26 = vld [vmem:[#allocation106_spill] sm:$0xff]  ;;  %v8820_v44 = vld [vmem:[#allocation107_spill] sm:$0xff] }
 0x1f0   :  { %8803 = vst [vmem:[#allocation221_spill] sm:$0xff] %v5921_v46  ;;  %8805 = vst [vmem:[#allocation214_spill] sm:$0xff] %v5924_v42  ;;  %v5954_v39 = vmul.f32 %v1667_v5, %v8820_v44  ;;  %v8822_v7 = vld [vmem:[#allocation108_spill] sm:$0xff]  ;;  %v8826_v19 = vld [vmem:[#allocation110_spill] sm:$0xff] }
 0x1f1   :  { %8807 = vst [vmem:[#allocation222_spill] sm:$0xff] %v5927_v28  ;;  %8809 = vst [vmem:[#allocation215_spill] sm:$0xff] %v5930_v27  ;;  %v5948_v28 = vmul.f32 %v1667_v5, %v8816_v43  ;;  %v5951_v27 = vmul.f32 %v1667_v5, %v8818_v26  ;;  %v5963_v0 = vmul.f32 %v1667_v5, %v8826_v19  ;;  %v8828_v24 = vld [vmem:[#allocation111_spill] sm:$0xff]  ;;  %v8830_v43 = vld [vmem:[#allocation112_spill] sm:$0xff] }
 0x1f2   :  { %8811 = vst [vmem:[#allocation223_spill] sm:$0xff] %v5933_v34  ;;  %8813 = vst [vmem:[#allocation216_spill] sm:$0xff] %v5936_v35  ;;  %v5957_v35 = vmul.f32 %v1667_v5, %v8822_v7  ;;  %v8824_v34 = vld [vmem:[#allocation109_spill] sm:$0xff]  ;;  %v5966_v63 = vmul.f32 %v1667_v5, %v8828_v24  ;;  %v8834_v44 = vld [vmem:[#allocation114_spill] sm:$0xff] }
 0x1f3   :  { %8814 = vst [vmem:[#allocation224_spill] sm:$0xff] %v5941_v37  ;;  %8815 = vst [vmem:[#allocation225_spill] sm:$0xff] %v5945_v40  ;;  %v5960_v42 = vmul.f32 %v1667_v5, %v8824_v34  ;;  %v5969_v40 = vmul.f32 %v1667_v5, %v8830_v43  ;;  %v8832_v26 = vld [vmem:[#allocation113_spill] sm:$0xff]  ;;  %v8836_v7 = vld [vmem:[#allocation115_spill] sm:$0xff] }
 0x1f4   :  { %8817 = vst [vmem:[#allocation227_spill] sm:$0xff] %v5948_v28  ;;  %8819 = vst [vmem:[#allocation228_spill] sm:$0xff] %v5951_v27  ;;  %v5972_v37 = vmul.f32 %v1667_v5, %v8832_v26  ;;  %v8838_v34 = vld [vmem:[#allocation116_spill] sm:$0xff]  ;;  %v8840_v19 = vld [vmem:[#allocation117_spill] sm:$0xff] }
 0x1f5   :  { %8821 = vst [vmem:[#allocation229_spill] sm:$0xff] %v5954_v39  ;;  %8823 = vst [vmem:[#allocation230_spill] sm:$0xff] %v5957_v35  ;;  %v5975_v39 = vmul.f32 %v1667_v5, %v8834_v44  ;;  %v5978_v35 = vmul.f32 %v1667_v5, %v8836_v7  ;;  %v8842_v24 = vld [vmem:[#allocation118_spill] sm:$0xff]  ;;  %v8844_v43 = vld [vmem:[#allocation119_spill] sm:$0xff] }
 0x1f6   :  { %8825 = vst [vmem:[#allocation231_spill] sm:$0xff] %v5960_v42  ;;  %8827 = vst [vmem:[#allocation232_spill] sm:$0xff] %v5963_v0  ;;  %v5981_v42 = vmul.f32 %v1667_v5, %v8838_v34  ;;  %v5984_v0 = vmul.f32 %v1667_v5, %v8840_v19  ;;  %v8846_v26 = vld [vmem:[#allocation141_spill] sm:$0xff]  ;;  %v8847_v27 = vld [vmem:[#allocation144_spill] sm:$0xff] }
 0x1f7   :  { %8829 = vst [vmem:[#allocation233_spill] sm:$0xff] %v5966_v63  ;;  %8831 = vst [vmem:[#allocation234_spill] sm:$0xff] %v5969_v40  ;;  %v5987_v63 = vmul.f32 %v1667_v5, %v8842_v24  ;;  %v5990_v40 = vmul.f32 %v1667_v5, %v8844_v43  ;;  %v1686_v44 = vmul.f32 %v1684_v52, %v8847_v27  ;;  %v8849_v7 = vld [vmem:[#allocation150_spill] sm:$0xff]  ;;  %v8850_v46 = vld [vmem:[#allocation153_spill] sm:$0xff] }
 0x1f8   :  { %8833 = vst [vmem:[#allocation120_spill] sm:$0xff] %v5972_v37  ;;  %8835 = vst [vmem:[#allocation126_spill] sm:$0xff] %v5975_v39  ;;  %v1685_v37 = vmul.f32 %v1684_v52, %v8846_v26  ;;  %v8848_v39 = vld [vmem:[#allocation147_spill] sm:$0xff]  ;;  %v1689_v34 = vmul.f32 %v1684_v52, %v8850_v46  ;;  %v8852_v19 = vld [vmem:[#allocation160_spill] sm:$0xff] }
 0x1f9   :  { %8837 = vst [vmem:[#allocation121_spill] sm:$0xff] %v5978_v35  ;;  %8839 = vst [vmem:[#allocation127_spill] sm:$0xff] %v5981_v42  ;;  %v1687_v28 = vmul.f32 %v1684_v52, %v8848_v39  ;;  %v1688_v35 = vmul.f32 %v1684_v52, %v8849_v7  ;;  %v8851_v42 = vld [vmem:[#allocation156_spill] sm:$0xff]  ;;  %v8853_v45 = vld [vmem:[#allocation163_spill] sm:$0xff] }
 0x1fa   :  { %8841 = vst [vmem:[#allocation122_spill] sm:$0xff] %v5984_v0  ;;  %8843 = vst [vmem:[#allocation128_spill] sm:$0xff] %v5987_v63  ;;  %v1690_v58 = vmul.f32 %v1684_v52, %v8851_v42  ;;  %v1691_v0 = vmul.f32 %v1684_v52, %v8852_v19  ;;  %v6000_v24 = vmul.f32 %v1684_v52, %v8853_v45  ;;  %v8855_v63 = vld [vmem:[#allocation165_spill] sm:$0xff]  ;;  %v8858_v27 = vld [vmem:[#allocation172_spill] sm:$0xff] }
 0x1fb   :  { %8845 = vst [vmem:[#allocation235_spill] sm:$0xff] %v5990_v40  ;;  %v6003_v5 = vmul.f32 %v1684_v52, %v8855_v63  ;;  %v8857_v43 = vld [vmem:[#allocation169_spill] sm:$0xff]  ;;  %v6009_v40 = vmul.f32 %v1684_v52, %v8858_v27  ;;  %v8860_v46 = vld [vmem:[#allocation176_spill] sm:$0xff]  ;;  %v8861_v42 = vld [vmem:[#allocation179_spill] sm:$0xff] }
 0x1fc   :  { %8854 = vst [vmem:[#allocation236_spill] sm:$0xff] %v6000_v24  ;;  %v6006_v26 = vmul.f32 %v1684_v52, %v8857_v43  ;;  %v8859_v39 = vld [vmem:[#allocation173_spill] sm:$0xff]  ;;  %v6015_v15 = vmul.f32 %v1684_v52, %v8860_v46  ;;  %v6018_v19 = vmul.f32 %v1684_v52, %v8861_v42  ;;  %v8862_v45 = vld [vmem:[#allocation180_spill] sm:$0xff]  ;;  %v8863_v63 = vld [vmem:[#allocation183_spill] sm:$0xff]  ;;  %v6028_v43 = vadd.f32 %v5657_v61, %v5607_v14 }
 0x1fd   :  { %8856 = vst [vmem:[#allocation237_spill] sm:$0xff] %v6003_v5  ;;  %v6012_v7 = vmul.f32 %v1684_v52, %v8859_v39  ;;  %v6021_v24 = vmul.f32 %v1684_v52, %v8862_v45  ;;  %v6024_v5 = vmul.f32 %v1684_v52, %v8863_v63  ;;  %v6032_v39 = vadd.f32 %v5660_v41, %v5610_v10  ;;  %v8879_v41 = vld [vmem:[#allocation123_spill] sm:$0xff]  ;;  %v8899_v63 = vld [vmem:[#allocation154_spill] sm:$0xff] }
 0x1fe   :  { %8865 = vst [vmem:[#allocation239_spill] sm:$0xff] %v6028_v43  ;;  %v6036_v46 = vadd.f32 %v5663_v20, %v5613_v48  ;;  %v6040_v42 = vadd.f32 %v5666_v51, %v5616_v2  ;;  %v6044_v52 = vadd.f32 %v5669_v47, %v5619_v12  ;;  %v6048_v14 = vadd.f32 %v5672_v4, %v5622_v3  ;;  %v8880_v20 = vld [vmem:[#allocation145_spill] sm:$0xff]  ;;  %v8887_v4 = vld [vmem:[#allocation124_spill] sm:$0xff]  ;;  %v8905_v45 = vld [vmem:[#allocation182_spill] sm:$0xff] }
 0x1ff   :  { %8864 = vst [vmem:[#allocation238_spill] sm:$0xff] %v6024_v5  ;;  %8866 = vst [vmem:[#allocation240_spill] sm:$0xff] %v6032_v39  ;;  %v6052_v10 = vadd.f32 %v5675_v22, %v5625_v6  ;;  %v6056_v48 = vadd.f32 %v5679_v1, %v5628_v60  ;;  %v6060_v2 = vadd.f32 %v5682_v32, %v5631_v16  ;;  %v8885_v47 = vld [vmem:[#allocation161_spill] sm:$0xff]  ;;  %v8889_v22 = vld [vmem:[#allocation139_spill] sm:$0xff] }
 0x200   :  { %8867 = vst [vmem:[#allocation241_spill] sm:$0xff] %v6036_v46  ;;  %8868 = vst [vmem:[#allocation242_spill] sm:$0xff] %v6040_v42  ;;  %v6064_v12 = vadd.f32 %v5685_v9, %v5634_v31  ;;  %v6068_v3 = vadd.f32 %v5688_v29, %v5637_v36  ;;  %v6072_v6 = vadd.f32 %v5691_v23, %v5640_v55  ;;  %v8882_v23 = vld [vmem:[#allocation146_spill] sm:$0xff]  ;;  %v8907_v27 = vld [vmem:[#allocation207_spill] sm:$0xff] }
 0x201   :  { %8869 = vst [vmem:[#allocation243_spill] sm:$0xff] %v6044_v52  ;;  %8870 = vst [vmem:[#allocation244_spill] sm:$0xff] %v6048_v14  ;;  %v6076_v60 = vadd.f32 %v5694_v56, %v5643_v49  ;;  %v6080_v16 = vadd.f32 %v5697_v59, %v5646_v50  ;;  %v1717_v31 = vadd.f32 %v5757_v33, %v5700_v18  ;;  %v8881_v56 = vld [vmem:[#allocation159_spill] sm:$0xff]  ;;  %v8883_v50 = vld [vmem:[#allocation129_spill] sm:$0xff] }
 0x202   :  { %8871 = vst [vmem:[#allocation245_spill] sm:$0xff] %v6052_v10  ;;  %8872 = vst [vmem:[#allocation246_spill] sm:$0xff] %v6056_v48  ;;  %v1718_v61 = vadd.f32 %v5764_v53, %v5703_v38  ;;  %v1719_v36 = vadd.f32 %v5767_v30, %v5706_v11  ;;  %v1720_v55 = vadd.f32 %v5772_v17, %v5709_v62  ;;  %v8884_v59 = vld [vmem:[#allocation170_spill] sm:$0xff]  ;;  %v8886_v33 = vld [vmem:[#allocation187_spill] sm:$0xff] }
 0x203   :  { %8873 = vst [vmem:[#allocation247_spill] sm:$0xff] %v6060_v2  ;;  %8874 = vst [vmem:[#allocation248_spill] sm:$0xff] %v6064_v12  ;;  %v1721_v49 = vadd.f32 %v8880_v20, %v8879_v41  ;;  %v1722_v51 = vadd.f32 %v8882_v23, %v8881_v56  ;;  %v1723_v29 = vadd.f32 %v8884_v59, %v8883_v50  ;;  %v8888_v53 = vld [vmem:[#allocation203_spill] sm:$0xff]  ;;  %v8890_v30 = vld [vmem:[#allocation149_spill] sm:$0xff] }
 0x204   :  { %8875 = vst [vmem:[#allocation249_spill] sm:$0xff] %v6068_v3  ;;  %8876 = vst [vmem:[#allocation250_spill] sm:$0xff] %v6072_v6  ;;  %v1724_v18 = vadd.f32 %v8886_v33, %v8885_v47  ;;  %v1725_v38 = vadd.f32 %v8888_v53, %v8887_v4  ;;  %v1726_v1 = vadd.f32 %v8890_v30, %v8889_v22  ;;  %v8891_v32 = vld [vmem:[#allocation130_spill] sm:$0xff]  ;;  %v8892_v62 = vld [vmem:[#allocation140_spill] sm:$0xff] }
 0x205   :  { %8877 = vst [vmem:[#allocation251_spill] sm:$0xff] %v6076_v60  ;;  %8878 = vst [vmem:[#allocation252_spill] sm:$0xff] %v6080_v16  ;;  %v1727_v17 = vadd.f32 %v5799_v21, %v8891_v32  ;;  %v1728_v9 = vadd.f32 %v5804_v13, %v8892_v62  ;;  %v8893_v11 = vld [vmem:[#allocation131_spill] sm:$0xff]  ;;  %v8894_v41 = vld [vmem:[#allocation204_spill] sm:$0xff]  ;;  %v1732_v4 = vadd.f32 %v5821_v8, %v8899_v63 }
 0x206   :  { %v1729_v20 = vadd.f32 %v8894_v41, %v8893_v11  ;;  %v8895_v56 = vld [vmem:[#allocation132_spill] sm:$0xff]  ;;  %v8896_v23 = vld [vmem:[#allocation175_spill] sm:$0xff]  ;;  %v8897_v59 = vld [vmem:[#allocation166_spill] sm:$0xff]  ;;  %v1733_v53 = vadd.f32 %v5887_v57, %v5828_v54 }
 0x207   :  { %v1730_v50 = vadd.f32 %v8896_v23, %v8895_v56  ;;  %v8898_v47 = vld [vmem:[#allocation177_spill] sm:$0xff]  ;;  %v8900_v21 = vld [vmem:[#allocation195_spill] sm:$0xff]  ;;  %v8903_v62 = vld [vmem:[#allocation206_spill] sm:$0xff] }
 0x208   :  { %v1731_v33 = vadd.f32 %v8898_v47, %v8897_v59  ;;  %v1734_v22 = vadd.f32 %v8900_v21, %v5834_v25  ;;  %v8901_v30 = vld [vmem:[#allocation197_spill] sm:$0xff]  ;;  %v8904_v11 = vld [vmem:[#allocation226_spill] sm:$0xff]  ;;  %v8909_v16 = vld [vmem:[#allocation192_spill] sm:$0xff] }
 0x209   :  { %v8902_v13 = vld [vmem:[#allocation217_spill] sm:$0xff]  ;;  %v1736_v41 = vadd.f32 %v8904_v11, %v8903_v62  ;;  %v8906_v56 = vld [vmem:[#allocation210_spill] sm:$0xff]  ;;  %v8910_v8 = vld [vmem:[#allocation211_spill] sm:$0xff] }
 0x20a   :  { %v1735_v32 = vadd.f32 %v8902_v13, %v8901_v30  ;;  %v1737_v23 = vadd.f32 %v8906_v56, %v8905_v45  ;;  %v8908_v59 = vld [vmem:[#allocation218_spill] sm:$0xff]  ;;  %v1739_v63 = vadd.f32 %v8910_v8, %v8909_v16  ;;  %v8911_v60 = vld [vmem:[#allocation200_spill] sm:$0xff]  ;;  %v8912_v54 = vld [vmem:[#allocation219_spill] sm:$0xff] }
 0x20b   :  { %v1738_v47 = vadd.f32 %v8908_v59, %v8907_v27  ;;  %v1740_v57 = vadd.f32 %v8912_v54, %v8911_v60  ;;  %v8913_v6 = vld [vmem:[#allocation193_spill] sm:$0xff]  ;;  %v8914_v25 = vld [vmem:[#allocation212_spill] sm:$0xff]  ;;  %v8921_v48 = vld [vmem:[#allocation194_spill] sm:$0xff] }
 0x20c   :  { %v1741_v21 = vadd.f32 %v8914_v25, %v8913_v6  ;;  %v8915_v3 = vld [vmem:[#allocation185_spill] sm:$0xff]  ;;  %v8916_v30 = vld [vmem:[#allocation220_spill] sm:$0xff]  ;;  %v8922_v27 = vld [vmem:[#allocation214_spill] sm:$0xff] }
 0x20d   :  { %v1742_v13 = vadd.f32 %v8916_v30, %v8915_v3  ;;  %v8917_v12 = vld [vmem:[#allocation208_spill] sm:$0xff]  ;;  %v8918_v62 = vld [vmem:[#allocation213_spill] sm:$0xff]  ;;  %v1745_v59 = vadd.f32 %v8922_v27, %v8921_v48  ;;  %v8923_v10 = vld [vmem:[#allocation186_spill] sm:$0xff] }
 0x20e   :  { %v1743_v11 = vadd.f32 %v8918_v62, %v8917_v12  ;;  %v8919_v2 = vld [vmem:[#allocation201_spill] sm:$0xff]  ;;  %v8924_v16 = vld [vmem:[#allocation222_spill] sm:$0xff]  ;;  %v8926_v60 = vld [vmem:[#allocation215_spill] sm:$0xff] }
 0x20f   :  { %v8920_v45 = vld [vmem:[#allocation221_spill] sm:$0xff]  ;;  %v1746_v8 = vadd.f32 %v8924_v16, %v8923_v10  ;;  %v8927_v52 = vld [vmem:[#allocation202_spill] sm:$0xff]  ;;  %v8928_v6 = vld [vmem:[#allocation223_spill] sm:$0xff] }
 0x210   :  { %v1744_v56 = vadd.f32 %v8920_v45, %v8919_v2  ;;  %v8925_v14 = vld [vmem:[#allocation209_spill] sm:$0xff]  ;;  %v1748_v25 = vadd.f32 %v8928_v6, %v8927_v52  ;;  %v8929_v42 = vld [vmem:[#allocation216_spill] sm:$0xff]  ;;  %v8930_v30 = vld [vmem:[#allocation227_spill] sm:$0xff] }
 0x211   :  { %v1747_v54 = vadd.f32 %v8926_v60, %v8925_v14  ;;  %v1749_v3 = vadd.f32 %v1685_v37, %v8929_v42  ;;  %v1750_v46 = vadd.f32 %v1686_v44, %v8930_v30  ;;  %v8931_v12 = vld [vmem:[#allocation228_spill] sm:$0xff]  ;;  %v8932_v39 = vld [vmem:[#allocation229_spill] sm:$0xff]  ;;  %v8933_v45 = vld [vmem:[#allocation230_spill] sm:$0xff] }
 0x212   :  { %v1751_v62 = vadd.f32 %v1687_v28, %v8931_v12  ;;  %v1752_v2 = vadd.f32 %v1688_v35, %v8932_v39  ;;  %v1753_v43 = vadd.f32 %v1689_v34, %v8933_v45  ;;  %v8934_v48 = vld [vmem:[#allocation231_spill] sm:$0xff]  ;;  %v8935_v5 = vld [vmem:[#allocation232_spill] sm:$0xff]  ;;  %v8936_v14 = vld [vmem:[#allocation233_spill] sm:$0xff] }
 0x213   :  { %v1754_v27 = vadd.f32 %v1690_v58, %v8934_v48  ;;  %v1755_v10 = vadd.f32 %v1691_v0, %v8935_v5  ;;  %v8937_v16 = vld [vmem:[#allocation236_spill] sm:$0xff]  ;;  %v8938_v52 = vld [vmem:[#allocation234_spill] sm:$0xff]  ;;  %v8939_v6 = vld [vmem:[#allocation237_spill] sm:$0xff] }
 0x214   :  { %v1756_v60 = vadd.f32 %v8937_v16, %v8936_v14  ;;  %v1757_v37 = vadd.f32 %v8939_v6, %v8938_v52  ;;  %v8940_v42 = vld [vmem:[#allocation120_spill] sm:$0xff]  ;;  %v8941_v28 = vld [vmem:[#allocation126_spill] sm:$0xff]  ;;  %v8942_v35 = vld [vmem:[#allocation121_spill] sm:$0xff] }
 0x215   :  { %v1758_v44 = vadd.f32 %v6006_v26, %v8940_v42  ;;  %v1759_v39 = vadd.f32 %v6009_v40, %v8941_v28  ;;  %v1760_v34 = vadd.f32 %v6012_v7, %v8942_v35  ;;  %v8943_v58 = vld [vmem:[#allocation127_spill] sm:$0xff]  ;;  %v8944_v5 = vld [vmem:[#allocation122_spill] sm:$0xff]  ;;  %v8945_v12 = vld [vmem:[#allocation128_spill] sm:$0xff] }
 0x216   :  { %v1761_v0 = vadd.f32 %v6015_v15, %v8943_v58  ;;  %v1762_v30 = vadd.f32 %v6018_v19, %v8944_v5  ;;  %v1763_v45 = vadd.f32 %v6021_v24, %v8945_v12  ;;  %v8946_v48 = vld [vmem:[#allocation235_spill] sm:$0xff]  ;;  %v8947_v14 = vld [vmem:[#allocation238_spill] sm:$0xff]  ;;  %v8948_v52 = vld [vmem:[#allocation224_spill] sm:$0xff]  ;;  %v1781_v12 = vadd.f32 %v1749_v3, %v1733_v53 }
 0x217   :  { %v1764_v16 = vadd.f32 %v8947_v14, %v8946_v48  ;;  %v1765_v26 = vadd.f32 %v1717_v31, %v8948_v52  ;;  %v8949_v6 = vld [vmem:[#allocation225_spill] sm:$0xff]  ;;  %v8950_v40 = vld [vmem:[#allocation239_spill] sm:$0xff]  ;;  %v8951_v7 = vld [vmem:[#allocation240_spill] sm:$0xff] }
 0x218   :  { %v1766_v42 = vadd.f32 %v1718_v61, %v8949_v6  ;;  %v1767_v28 = vadd.f32 %v1719_v36, %v8950_v40  ;;  %v1768_v35 = vadd.f32 %v1720_v55, %v8951_v7  ;;  %v8952_v15 = vld [vmem:[#allocation241_spill] sm:$0xff]  ;;  %v8953_v5 = vld [vmem:[#allocation242_spill] sm:$0xff]  ;;  %v8954_v24 = vld [vmem:[#allocation243_spill] sm:$0xff]  ;;  %v1782_v61 = vadd.f32 %v1750_v46, %v1734_v22 }
 0x219   :  { %v1769_v58 = vadd.f32 %v1721_v49, %v8952_v15  ;;  %v1770_v19 = vadd.f32 %v1722_v51, %v8953_v5  ;;  %v1771_v14 = vadd.f32 %v1723_v29, %v8954_v24  ;;  %v8955_v48 = vld [vmem:[#allocation244_spill] sm:$0xff]  ;;  %v8956_v52 = vld [vmem:[#allocation245_spill] sm:$0xff]  ;;  %v8957_v36 = vld [vmem:[#allocation246_spill] sm:$0xff]  ;;  %v1783_v5 = vadd.f32 %v1751_v62, %v1735_v32 }
 0x21a   :  { %v1772_v31 = vadd.f32 %v1724_v18, %v8955_v48  ;;  %v1773_v6 = vadd.f32 %v1725_v38, %v8956_v52  ;;  %v1774_v40 = vadd.f32 %v1726_v1, %v8957_v36  ;;  %v8958_v7 = vld [vmem:[#allocation247_spill] sm:$0xff]  ;;  %v8959_v15 = vld [vmem:[#allocation248_spill] sm:$0xff]  ;;  %v8960_v51 = vld [vmem:[#allocation249_spill] sm:$0xff]  ;;  %v1784_v48 = vadd.f32 %v1752_v2, %v1736_v41 }
 0x21b   :  { %v1775_v55 = vadd.f32 %v1727_v17, %v8958_v7  ;;  %v1776_v49 = vadd.f32 %v1728_v9, %v8959_v15  ;;  %v1777_v3 = vadd.f32 %v1729_v20, %v8960_v51  ;;  %v8961_v53 = vld [vmem:[#allocation250_spill] sm:$0xff]  ;;  %v8962_v29 = vld [vmem:[#allocation251_spill] sm:$0xff]  ;;  %v8963_v38 = vld [vmem:[#allocation252_spill] sm:$0xff]  ;;  %v1785_v22 = vadd.f32 %v1753_v43, %v1737_v23 }
 0x21c   :  { %v1778_v24 = vadd.f32 %v1730_v50, %v8961_v53  ;;  %v1779_v18 = vadd.f32 %v1731_v33, %v8962_v29  ;;  %v1780_v52 = vadd.f32 %v1732_v4, %v8963_v38  ;;  %v1786_v46 = vadd.f32 %v1754_v27, %v1738_v47  ;;  %v8964_v38 = vld [vmem:[#allocation8_spill] sm:$0xff] }
 0x21d   :  { %v1797_v1 = vadd.f32 %v1781_v12, %v1765_v26  ;;  %v1787_v36 = vadd.f32 %v1755_v10, %v1739_v63  ;;  %v1788_v7 = vadd.f32 %v1756_v60, %v1740_v57  ;;  %v1798_v17 = vadd.f32 %v1782_v61, %v1766_v42 }
 0x21e   :  { %v1813_v9 = vstv %s6153_s11  ;;  %v1789_v15 = vadd.f32 %v1757_v37, %v1741_v21  ;;  %v1790_v32 = vadd.f32 %v1758_v44, %v1742_v13  ;;  %v1791_v62 = vadd.f32 %v1759_v39, %v1743_v11 }
 0x21f   :  { %v1799_v20 = vadd.f32 %v1783_v5, %v1767_v28  ;;  %v1792_v51 = vadd.f32 %v1760_v34, %v1744_v56  ;;  %v1793_v50 = vadd.f32 %v1761_v0, %v1745_v59  ;;  %v1794_v53 = vadd.f32 %v1762_v30, %v1746_v8 }
 0x220   :  { %v1800_v29 = vadd.f32 %v1784_v48, %v1768_v35  ;;  %v1795_v33 = vadd.f32 %v1763_v45, %v1747_v54  ;;  %v1796_v2 = vadd.f32 %v1764_v16, %v1748_v25  ;;  %v1801_v41 = vadd.f32 %v1785_v22, %v1769_v58  ;;  %v8965_v22 = vld [vmem:[#allocation9_spill] sm:$0xff] }
 0x221   :  { %v1814_v4 = vadd.f32 %v1813_v9, %v1797_v1  ;;  %v1802_v43 = vadd.f32 %v1786_v46, %v1770_v19  ;;  %v1803_v23 = vadd.f32 %v1787_v36, %v1771_v14  ;;  %v1804_v47 = vadd.f32 %v1788_v7, %v1772_v31  ;;  %v8966_v1 = vld [vmem:[#allocation10_spill] sm:$0xff]  ;;  %v8967_v7 = vld [vmem:[#allocation11_spill] sm:$0xff] }
 0x222   :  { %v1815_v63 = vadd.f32 %v1813_v9, %v1798_v17  ;;  %v1805_v57 = vadd.f32 %v1789_v15, %v1773_v6  ;;  %v1806_v27 = vadd.f32 %v1790_v32, %v1774_v40  ;;  %v1807_v21 = vadd.f32 %v1791_v62, %v1775_v55  ;;  %v8969_v32 = vld [vmem:[#allocation13_spill] sm:$0xff] }
 0x223   :  { %v1816_v13 = vadd.f32 %v1813_v9, %v1799_v20  ;;  %v1808_v11 = vadd.f32 %v1792_v51, %v1776_v49  ;;  %v1809_v10 = vadd.f32 %v1793_v50, %v1777_v3  ;;  %v1810_v56 = vadd.f32 %v1794_v53, %v1778_v24  ;;  %v8970_v20 = vld [vmem:[#allocation14_spill] sm:$0xff]  ;;  %v8971_v50 = vld [vmem:[#allocation15_spill] sm:$0xff] }
 0x224   :  { %v1817_v59 = vadd.f32 %v1813_v9, %v1800_v29  ;;  %v1811_v8 = vadd.f32 %v1795_v33, %v1779_v18  ;;  %v1812_v60 = vadd.f32 %v1796_v2, %v1780_v52  ;;  %v1818_v54 = vadd.f32 %v1813_v9, %v1801_v41  ;;  %v8972_v29 = vld [vmem:[#allocation16_spill] sm:$0xff]  ;;  %v8973_v2 = vld [vmem:[#allocation17_spill] sm:$0xff] }
 0x225   :  { %v1830_v25 = vmul.f32 0.5, %v1814_v4  ;;  %v1819_v37 = vadd.f32 %v1813_v9, %v1802_v43  ;;  %v1820_v44 = vadd.f32 %v1813_v9, %v1803_v23  ;;  %v1821_v39 = vadd.f32 %v1813_v9, %v1804_v47  ;;  %v8974_v4 = vld [vmem:[#allocation72_spill] sm:$0xff]  ;;  %v8975_v47 = vld [vmem:[#allocation73_spill] sm:$0xff] }
 0x226   :  { %v1831_v34 = vmul.f32 0.5, %v1815_v63  ;;  %v1822_v0 = vadd.f32 %v1813_v9, %v1805_v57  ;;  %v1823_v30 = vadd.f32 %v1813_v9, %v1806_v27  ;;  %v1824_v45 = vadd.f32 %v1813_v9, %v1807_v21  ;;  %v8976_v57 = vld [vmem:[#allocation74_spill] sm:$0xff]  ;;  %v8977_v21 = vld [vmem:[#allocation75_spill] sm:$0xff] }
 0x227   :  { %v1832_v16 = vmul.f32 0.5, %v1816_v13  ;;  %v1825_v26 = vadd.f32 %v1813_v9, %v1808_v11  ;;  %v1826_v42 = vadd.f32 %v1813_v9, %v1809_v10  ;;  %v1827_v28 = vadd.f32 %v1813_v9, %v1810_v56  ;;  %v8978_v11 = vld [vmem:[#allocation76_spill] sm:$0xff]  ;;  %v8979_v56 = vld [vmem:[#allocation77_spill] sm:$0xff] }
 0x228   :  { %v1833_v35 = vmul.f32 0.5, %v1817_v59  ;;  %v1828_v58 = vadd.f32 %v1813_v9, %v1811_v8  ;;  %v1829_v19 = vadd.f32 %v1813_v9, %v1812_v60  ;;  %v1834_v12 = vmul.f32 0.5, %v1818_v54  ;;  %v8968_v9 = vld [vmem:[#allocation12_spill] sm:$0xff]  ;;  %v8980_v60 = vld [vmem:[#allocation78_spill] sm:$0xff] }
 0x229   :  { %3093 = vtanh.f32 %v1830_v25  ;;  %v1835_v14 = vmul.f32 0.5, %v1819_v37  ;;  %v1836_v31 = vmul.f32 0.5, %v1820_v44  ;;  %v1894_v6 = vstv %s6190_s12  ;;  %v8981_v25 = vld [vmem:[#allocation79_spill] sm:$0xff]  ;;  %v8982_v44 = vld [vmem:[#allocation80_spill] sm:$0xff] }
 0x22a   :  { %3095 = vtanh.f32 %v1831_v34  ;;  %v1837_v61 = vmul.f32 0.5, %v1821_v39  ;;  %v1838_v40 = vmul.f32 0.5, %v1822_v0  ;;  %v1839_v55 = vmul.f32 0.5, %v1823_v30  ;;  %v8983_v34 = vld [vmem:[#allocation81_spill] sm:$0xff]  ;;  %v8984_v30 = vld [vmem:[#allocation82_spill] sm:$0xff] }
 0x22b   :  { %3097 = vtanh.f32 %v1832_v16  ;;  %v1840_v49 = vmul.f32 0.5, %v1824_v45  ;;  %v1841_v5 = vmul.f32 0.5, %v1825_v26  ;;  %v1842_v3 = vmul.f32 0.5, %v1826_v42  ;;  %v8985_v16 = vld [vmem:[#allocation18_spill] sm:$0xff] }
 0x22c   :  { %3099 = vtanh.f32 %v1833_v35  ;;  %v1843_v24 = vmul.f32 0.5, %v1827_v28  ;;  %v1844_v18 = vmul.f32 0.5, %v1828_v58  ;;  %v1845_v48 = vmul.f32 0.5, %v1829_v19  ;;  %v8986_v28 = vld [vmem:[#allocation19_spill] sm:$0xff]  ;;  %v8987_v58 = vld [vmem:[#allocation20_spill] sm:$0xff] }
 0x22d   :  { %3101 = vtanh.f32 %v1834_v12  ;;  %v6198_v52 = vmul.f32 %v1894_v6, %v8964_v38  ;;  %v6201_v46 = vmul.f32 %v1894_v6, %v8965_v22  ;;  %v6204_v36 = vmul.f32 %v1894_v6, %v8966_v1  ;;  %v8988_v12 = vld [vmem:[#allocation21_spill] sm:$0xff]  ;;  %v8993_v1 = vld [vmem:[#allocation26_spill] sm:$0xff] }
 0x22e   :  { %3103 = vtanh.f32 %v1835_v14  ;;  %v6207_v17 = vmul.f32 %v1894_v6, %v8967_v7  ;;  %v6210_v15 = vmul.f32 %v1894_v6, %v8968_v9  ;;  %v6213_v62 = vmul.f32 %v1894_v6, %v8969_v32  ;;  %v8994_v9 = vld [vmem:[#allocation27_spill] sm:$0xff] }
 0x22f   :  { %3105 = vtanh.f32 %v1836_v31  ;;  %v6216_v51 = vmul.f32 %v1894_v6, %v8970_v20  ;;  %v6219_v53 = vmul.f32 %v1894_v6, %v8971_v50  ;;  %v6222_v33 = vmul.f32 %v1894_v6, %v8972_v29  ;;  %v8989_v31 = vld [vmem:[#allocation22_spill] sm:$0xff] }
 0x230   :  { %3107 = vtanh.f32 %v1837_v61  ;;  %v6225_v41 = vmul.f32 %v1894_v6, %v8973_v2  ;;  %v6228_v43 = vmul.f32 %v1894_v6, %v8974_v4  ;;  %v1911_v23 = vstv %s6192_s14  ;;  %v8996_v2 = vld [vmem:[#allocation29_spill] sm:$0xff] }
 0x231   :  { %3109 = vtanh.f32 %v1838_v40  ;;  %v6232_v63 = vmul.f32 %v1894_v6, %v8975_v47  ;;  %v6235_v27 = vmul.f32 %v1894_v6, %v8976_v57  ;;  %v6238_v13 = vmul.f32 %v1894_v6, %v8977_v21  ;;  %v8990_v40 = vld [vmem:[#allocation23_spill] sm:$0xff]  ;;  %v8997_v47 = vld [vmem:[#allocation30_spill] sm:$0xff] }
 0x232   :  { %3111 = vtanh.f32 %v1839_v55  ;;  %v6241_v10 = vmul.f32 %v1894_v6, %v8978_v11  ;;  %v6244_v59 = vmul.f32 %v1894_v6, %v8979_v56  ;;  %v1928_v8 = vstv %s6195_s15  ;;  %v8998_v11 = vld [vmem:[#allocation31_spill] sm:$0xff] }
 0x233   :  { %3113 = vtanh.f32 %v1840_v49  ;;  %v6248_v54 = vmul.f32 %v1911_v23, %v8980_v60  ;;  %v6251_v37 = vmul.f32 %v1911_v23, %v8981_v25  ;;  %v6254_v39 = vmul.f32 %v1911_v23, %v8982_v44  ;;  %v8991_v49 = vld [vmem:[#allocation24_spill] sm:$0xff]  ;;  %v9000_v44 = vld [vmem:[#allocation33_spill] sm:$0xff] }
 0x234   :  { %3115 = vtanh.f32 %v1841_v5  ;;  %v6259_v0 = vmul.f32 %v1911_v23, %v8983_v34  ;;  %v6262_v45 = vmul.f32 %v1911_v23, %v8984_v30  ;;  %v6265_v26 = vmul.f32 %v1911_v23, %v8985_v16  ;;  %v8999_v60 = vld [vmem:[#allocation32_spill] sm:$0xff]  ;;  %v9001_v30 = vld [vmem:[#allocation83_spill] sm:$0xff] }
 0x235   :  { %3117 = vtanh.f32 %v1842_v3  ;;  %v6268_v35 = vmul.f32 %v1911_v23, %v8986_v28  ;;  %v6271_v19 = vmul.f32 %v1911_v23, %v8987_v58  ;;  %v6274_v14 = vmul.f32 %v1911_v23, %v8988_v12  ;;  %v8992_v3 = vld [vmem:[#allocation25_spill] sm:$0xff] }
 0x236   :  { %v3094_v42 = vpop.eup %3093  ;;  %v6277_v6 = vmul.f32 %v1911_v23, %v8989_v31  ;;  %3119 = vtanh.f32 %v1843_v24  ;;  %v6280_v55 = vmul.f32 %v1911_v23, %v8990_v40  ;;  %v6283_v5 = vmul.f32 %v1911_v23, %v8991_v49  ;;  %v8995_v24 = vld [vmem:[#allocation28_spill] sm:$0xff]  ;;  %v9005_v58 = vld [vmem:[#allocation85_spill] sm:$0xff]  ;;  %v9007_v40 = vld [vmem:[#allocation86_spill] sm:$0xff] }
 0x237   :  { %v3096_v61 = vpop.eup %3095  ;;  %v6286_v38 = vmul.f32 %v1911_v23, %v8992_v3  ;;  %3121 = vtanh.f32 %v1844_v18  ;;  %v6291_v7 = vmul.f32 %v1911_v23, %v8993_v1  ;;  %v6294_v32 = vmul.f32 %v1911_v23, %v8994_v9  ;;  %v9009_v3 = vld [vmem:[#allocation34_spill] sm:$0xff]  ;;  %v9011_v9 = vld [vmem:[#allocation35_spill] sm:$0xff] }
 0x238   :  { %v3098_v22 = vpop.eup %3097  ;;  %v6297_v20 = vmul.f32 %v1911_v23, %v8995_v24  ;;  %3123 = vtanh.f32 %v1845_v48  ;;  %v1862_v29 = vmul.f32 0.5, %v3094_v42  ;;  %v6300_v4 = vmul.f32 %v1928_v8, %v8996_v2  ;;  %v9003_v42 = vld [vmem:[#allocation84_spill] sm:$0xff] }
 0x239   :  { %v3100_v50 = vpop.eup %3099  ;;  %v6303_v57 = vmul.f32 %v1928_v8, %v8997_v47  ;;  %v1863_v18 = vmul.f32 0.5, %v3096_v61  ;;  %v6306_v56 = vmul.f32 %v1928_v8, %v8998_v11  ;;  %v6309_v25 = vmul.f32 %v1928_v8, %v8999_v60  ;;  %v9014_v11 = vld [vmem:[#allocation36_spill] sm:$0xff] }
 0x23a   :  { %v3102_v21 = vpop.eup %3101  ;;  %v6312_v23 = vmul.f32 %v1928_v8, %v9000_v44  ;;  %v1864_v34 = vmul.f32 0.5, %v3098_v22  ;;  %v6315_v16 = vmul.f32 %v1928_v8, %v9001_v30  ;;  %v6318_v28 = vmul.f32 %v1928_v8, %v9003_v42 }
 0x23b   :  { %v3104_v48 = vpop.eup %3103  ;;  %v6321_v12 = vmul.f32 %v1928_v8, %v9005_v58  ;;  %v1865_v61 = vmul.f32 0.5, %v3100_v50  ;;  %v6324_v49 = vmul.f32 %v1928_v8, %v9007_v40  ;;  %v6327_v1 = vmul.f32 %v1928_v8, %v9009_v3  ;;  %v9017_v58 = vld [vmem:[#allocation87_spill] sm:$0xff]  ;;  %v9019_v3 = vld [vmem:[#allocation37_spill] sm:$0xff] }
 0x23c   :  { %9002 = vst [vmem:[#allocation123_spill] sm:$0xff] %v6315_v16  ;;  %9004 = vst [vmem:[#allocation145_spill] sm:$0xff] %v6318_v28  ;;  %v3106_v31 = vpop.eup %3105  ;;  %v6330_v24 = vmul.f32 %v1928_v8, %v9011_v9  ;;  %v1866_v2 = vmul.f32 0.5, %v3102_v21  ;;  %v6332_v47 = vadd.f32 0.5, %v1862_v29  ;;  %v6335_v60 = vmul.f32 %v1928_v8, %v9014_v11  ;;  %v9022_v29 = vld [vmem:[#allocation38_spill] sm:$0xff]  ;;  %v9024_v11 = vld [vmem:[#allocation39_spill] sm:$0xff] }
 0x23d   :  { %9006 = vst [vmem:[#allocation159_spill] sm:$0xff] %v6321_v12  ;;  %9008 = vst [vmem:[#allocation146_spill] sm:$0xff] %v6324_v49  ;;  %v3108_v22 = vpop.eup %3107  ;;  %v1945_v44 = vstv %s6256_s13  ;;  %v1867_v50 = vmul.f32 0.5, %v3104_v48  ;;  %v6338_v42 = vadd.f32 0.5, %v1863_v18  ;;  %v6341_v40 = vmul.f32 %v1928_v8, %v9017_v58  ;;  %v9043_v28 = vld [vmem:[#allocation48_spill] sm:$0xff] }
 0x23e   :  { %9010 = vst [vmem:[#allocation129_spill] sm:$0xff] %v6327_v1  ;;  %9012 = vst [vmem:[#allocation170_spill] sm:$0xff] %v6330_v24  ;;  %v3110_v30 = vpop.eup %3109  ;;  %v6344_v1 = vmul.f32 %v1928_v8, %v9019_v3  ;;  %v1868_v24 = vmul.f32 0.5, %v3106_v31  ;;  %v6346_v21 = vadd.f32 0.5, %v1864_v34  ;;  %v1869_v48 = vmul.f32 0.5, %v3108_v22  ;;  %v9029_v34 = vld [vmem:[#allocation41_spill] sm:$0xff] }
 0x23f   :  { %9013 = vst [vmem:[#allocation161_spill] sm:$0xff] %v6332_v47  ;;  %9015 = vst [vmem:[#allocation187_spill] sm:$0xff] %v6335_v60  ;;  %v3112_v9 = vpop.eup %3111  ;;  %v6349_v47 = vmul.f32 %v1928_v8, %v9022_v29  ;;  %v6352_v60 = vmul.f32 %v1928_v8, %v9024_v11  ;;  %v6354_v18 = vadd.f32 0.5, %v1865_v61  ;;  %v6360_v12 = vadd.f32 0.5, %v1866_v2  ;;  %v9030_v29 = vld [vmem:[#allocation42_spill] sm:$0xff]  ;;  %v9032_v61 = vld [vmem:[#allocation43_spill] sm:$0xff] }
 0x240   :  { %9016 = vst [vmem:[#allocation124_spill] sm:$0xff] %v6338_v42  ;;  %9018 = vst [vmem:[#allocation203_spill] sm:$0xff] %v6341_v40  ;;  %v3114_v49 = vpop.eup %3113  ;;  %v9027_v42 = vld [vmem:[#allocation40_spill] sm:$0xff]  ;;  %v1962_v40 = vstv %s6288_s17  ;;  %v6363_v31 = vmul.f32 %v1945_v44, %v9029_v34  ;;  %v1871_v11 = vmul.f32 0.5, %v3112_v9  ;;  %v6371_v22 = vmul.f32 %v1945_v44, %v9032_v61  ;;  %v9036_v34 = vld [vmem:[#allocation45_spill] sm:$0xff] }
 0x241   :  { %9020 = vst [vmem:[#allocation139_spill] sm:$0xff] %v6344_v1  ;;  %9021 = vst [vmem:[#allocation149_spill] sm:$0xff] %v6346_v21  ;;  %v6357_v58 = vmul.f32 %v1945_v44, %v9027_v42  ;;  %v3116_v3 = vpop.eup %3115  ;;  %v1870_v1 = vmul.f32 0.5, %v3110_v30  ;;  %v6366_v21 = vmul.f32 %v1945_v44, %v9030_v29  ;;  %v9033_v42 = vld [vmem:[#allocation44_spill] sm:$0xff]  ;;  %v1872_v2 = vmul.f32 0.5, %v3114_v49  ;;  %v9038_v29 = vld [vmem:[#allocation46_spill] sm:$0xff] }
 0x242   :  { %9023 = vst [vmem:[#allocation130_spill] sm:$0xff] %v6349_v47  ;;  %9025 = vst [vmem:[#allocation140_spill] sm:$0xff] %v6352_v60  ;;  %v3118_v8 = vpop.eup %3117  ;;  %v6368_v60 = vadd.f32 0.5, %v1867_v50  ;;  %v6378_v30 = vadd.f32 0.5, %v1868_v24  ;;  %v6384_v47 = vmul.f32 %v1945_v44, %v9038_v29  ;;  %v1873_v50 = vmul.f32 0.5, %v3116_v3  ;;  %v9046_v29 = vld [vmem:[#allocation49_spill] sm:$0xff] }
 0x243   :  { %9026 = vst [vmem:[#allocation131_spill] sm:$0xff] %v6354_v18  ;;  %9028 = vst [vmem:[#allocation204_spill] sm:$0xff] %v6360_v12  ;;  %v6374_v18 = vmul.f32 %v1945_v44, %v9033_v42  ;;  %v6381_v12 = vmul.f32 %v1945_v44, %v9036_v34  ;;  %v3120_v9 = vpop.eup %3119  ;;  %v6388_v61 = vadd.f32 0.5, %v1869_v48  ;;  %v6394_v16 = vmul.f32 %v1945_v44, %v9043_v28  ;;  %v9051_v28 = vld [vmem:[#allocation52_spill] sm:$0xff] }
 0x244   :  { %9031 = vst [vmem:[#allocation132_spill] sm:$0xff] %v6368_v60  ;;  %9035 = vst [vmem:[#allocation166_spill] sm:$0xff] %v6378_v30  ;;  %v9041_v60 = vld [vmem:[#allocation47_spill] sm:$0xff]  ;;  %v3122_v49 = vpop.eup %3121  ;;  %v1874_v24 = vmul.f32 0.5, %v3118_v8  ;;  %v6398_v34 = vadd.f32 0.5, %v1870_v1  ;;  %v6401_v30 = vmul.f32 %v1945_v44, %v9046_v29  ;;  %v6406_v3 = vadd.f32 0.5, %v1871_v11 }
 0x245   :  { %9034 = vst [vmem:[#allocation175_spill] sm:$0xff] %v6374_v18  ;;  %9037 = vst [vmem:[#allocation177_spill] sm:$0xff] %v6381_v12  ;;  %v6391_v42 = vmul.f32 %v1945_v44, %v9041_v60  ;;  %v3124_v48 = vpop.eup %3123  ;;  %v9050_v60 = vld [vmem:[#allocation51_spill] sm:$0xff]  ;;  %v6417_v1 = vmul.f32 0.5, %v3120_v9  ;;  %v6419_v8 = vadd.f32 0.5, %v1872_v2  ;;  %v9056_v29 = vld [vmem:[#allocation54_spill] sm:$0xff] }
 0x246   :  { %9039 = vst [vmem:[#allocation154_spill] sm:$0xff] %v6384_v47  ;;  %9040 = vst [vmem:[#allocation195_spill] sm:$0xff] %v6388_v61  ;;  %v9047_v47 = vld [vmem:[#allocation50_spill] sm:$0xff]  ;;  %v6409_v61 = vmul.f32 %v1945_v44, %v9050_v60  ;;  %v6427_v11 = vmul.f32 0.5, %v3122_v49  ;;  %v6429_v60 = vadd.f32 0.5, %v1873_v50  ;;  %v6437_v9 = vmul.f32 0.5, %v3124_v48 }
 0x247   :  { %9042 = vst [vmem:[#allocation197_spill] sm:$0xff] %v6391_v42  ;;  %9044 = vst [vmem:[#allocation217_spill] sm:$0xff] %v6394_v16  ;;  %v6404_v12 = vmul.f32 %v1945_v44, %v9047_v47  ;;  %v6412_v16 = vmul.f32 %v1945_v44, %v9051_v28  ;;  %v9052_v42 = vld [vmem:[#allocation53_spill] sm:$0xff]  ;;  %v9057_v47 = vld [vmem:[#allocation55_spill] sm:$0xff]  ;;  %v6439_v2 = vadd.f32 0.5, %v1874_v24 }
 0x248   :  { %9045 = vst [vmem:[#allocation206_spill] sm:$0xff] %v6398_v34  ;;  %9049 = vst [vmem:[#allocation182_spill] sm:$0xff] %v6406_v3  ;;  %v6415_v18 = vmul.f32 %v1945_v44, %v9052_v42  ;;  %v6422_v34 = vmul.f32 %v1945_v44, %v9056_v29  ;;  %v9060_v28 = vld [vmem:[#allocation56_spill] sm:$0xff]  ;;  %v9061_v42 = vld [vmem:[#allocation57_spill] sm:$0xff] }
 0x249   :  { %9048 = vst [vmem:[#allocation226_spill] sm:$0xff] %v6404_v12  ;;  %9054 = vst [vmem:[#allocation207_spill] sm:$0xff] %v6417_v1  ;;  %v6425_v12 = vmul.f32 %v1945_v44, %v9057_v47  ;;  %v6432_v3 = vmul.f32 %v1962_v40, %v9060_v28  ;;  %v9064_v29 = vld [vmem:[#allocation58_spill] sm:$0xff]  ;;  %v9066_v44 = vld [vmem:[#allocation59_spill] sm:$0xff] }
 0x24a   :  { %9053 = vst [vmem:[#allocation210_spill] sm:$0xff] %v6415_v18  ;;  %9055 = vst [vmem:[#allocation218_spill] sm:$0xff] %v6419_v8  ;;  %v6435_v18 = vmul.f32 %v1962_v40, %v9061_v42  ;;  %v6442_v8 = vmul.f32 %v1962_v40, %v9064_v29  ;;  %v6445_v49 = vmul.f32 %v1962_v40, %v9066_v44  ;;  %v9068_v50 = vld [vmem:[#allocation60_spill] sm:$0xff]  ;;  %v9070_v28 = vld [vmem:[#allocation61_spill] sm:$0xff] }
 0x24b   :  { %9058 = vst [vmem:[#allocation192_spill] sm:$0xff] %v6427_v11  ;;  %9059 = vst [vmem:[#allocation211_spill] sm:$0xff] %v6429_v60  ;;  %v6448_v47 = vmul.f32 %v1962_v40, %v9068_v50  ;;  %v6451_v60 = vmul.f32 %v1962_v40, %v9070_v28  ;;  %v9072_v42 = vld [vmem:[#allocation62_spill] sm:$0xff]  ;;  %v9074_v48 = vld [vmem:[#allocation63_spill] sm:$0xff]  ;;  %v1979_v50 = vstv %s6376_s2 }
 0x24c   :  { %9062 = vst [vmem:[#allocation200_spill] sm:$0xff] %v6437_v9  ;;  %9063 = vst [vmem:[#allocation219_spill] sm:$0xff] %v6439_v2  ;;  %v6454_v11 = vmul.f32 %v1962_v40, %v9072_v42  ;;  %v6457_v24 = vmul.f32 %v1962_v40, %v9074_v48  ;;  %v9076_v2 = vld [vmem:[#allocation64_spill] sm:$0xff]  ;;  %v9080_v44 = vld [vmem:[#allocation89_spill] sm:$0xff] }
 0x24d   :  { %9065 = vst [vmem:[#allocation193_spill] sm:$0xff] %v6442_v8  ;;  %9067 = vst [vmem:[#allocation212_spill] sm:$0xff] %v6445_v49  ;;  %v6460_v9 = vmul.f32 %v1962_v40, %v9076_v2  ;;  %v9078_v29 = vld [vmem:[#allocation88_spill] sm:$0xff]  ;;  %v6466_v49 = vmul.f32 %v1962_v40, %v9080_v44  ;;  %v9084_v28 = vld [vmem:[#allocation91_spill] sm:$0xff]  ;;  %v6488_v44 = vadd.f32 %v6248_v54, %v6198_v52 }
 0x24e   :  { %9069 = vst [vmem:[#allocation185_spill] sm:$0xff] %v6448_v47  ;;  %9071 = vst [vmem:[#allocation220_spill] sm:$0xff] %v6451_v60  ;;  %v6463_v1 = vmul.f32 %v1962_v40, %v9078_v29  ;;  %v9082_v47 = vld [vmem:[#allocation90_spill] sm:$0xff]  ;;  %v6473_v60 = vmul.f32 %v1962_v40, %v9084_v28  ;;  %v9086_v42 = vld [vmem:[#allocation92_spill] sm:$0xff]  ;;  %v1996_v29 = vstv %s6386_s16 }
 0x24f   :  { %9073 = vst [vmem:[#allocation208_spill] sm:$0xff] %v6454_v11  ;;  %9075 = vst [vmem:[#allocation213_spill] sm:$0xff] %v6457_v24  ;;  %v6470_v8 = vmul.f32 %v1962_v40, %v9082_v47  ;;  %v6476_v11 = vmul.f32 %v1962_v40, %v9086_v42  ;;  %v9088_v48 = vld [vmem:[#allocation93_spill] sm:$0xff]  ;;  %v9093_v47 = vld [vmem:[#allocation66_spill] sm:$0xff] }
 0x250   :  { %9077 = vst [vmem:[#allocation201_spill] sm:$0xff] %v6460_v9  ;;  %9079 = vst [vmem:[#allocation221_spill] sm:$0xff] %v6463_v1  ;;  %v6479_v24 = vmul.f32 %v1962_v40, %v9088_v48  ;;  %v9090_v2 = vld [vmem:[#allocation65_spill] sm:$0xff]  ;;  %v2013_v1 = vstv %s6396_s18  ;;  %v9094_v28 = vld [vmem:[#allocation67_spill] sm:$0xff] }
 0x251   :  { %9081 = vst [vmem:[#allocation194_spill] sm:$0xff] %v6466_v49  ;;  %9083 = vst [vmem:[#allocation214_spill] sm:$0xff] %v6470_v8  ;;  %v6482_v9 = vmul.f32 %v1962_v40, %v9090_v2  ;;  %v6491_v8 = vmul.f32 %v1979_v50, %v9093_v47  ;;  %v9096_v42 = vld [vmem:[#allocation68_spill] sm:$0xff]  ;;  %v9098_v48 = vld [vmem:[#allocation69_spill] sm:$0xff] }
 0x252   :  { %9085 = vst [vmem:[#allocation186_spill] sm:$0xff] %v6473_v60  ;;  %9087 = vst [vmem:[#allocation222_spill] sm:$0xff] %v6476_v11  ;;  %v6494_v60 = vmul.f32 %v1979_v50, %v9094_v28  ;;  %v6497_v11 = vmul.f32 %v1979_v50, %v9096_v42  ;;  %v9100_v40 = vld [vmem:[#allocation70_spill] sm:$0xff]  ;;  %v9106_v47 = vld [vmem:[#allocation95_spill] sm:$0xff] }
 0x253   :  { %9089 = vst [vmem:[#allocation209_spill] sm:$0xff] %v6479_v24  ;;  %9091 = vst [vmem:[#allocation215_spill] sm:$0xff] %v6482_v9  ;;  %v6500_v24 = vmul.f32 %v1979_v50, %v9098_v48  ;;  %v6503_v2 = vmul.f32 %v1979_v50, %v9100_v40  ;;  %v9102_v9 = vld [vmem:[#allocation71_spill] sm:$0xff]  ;;  %v9104_v52 = vld [vmem:[#allocation94_spill] sm:$0xff] }
 0x254   :  { %9092 = vst [vmem:[#allocation202_spill] sm:$0xff] %v6488_v44  ;;  %9095 = vst [vmem:[#allocation223_spill] sm:$0xff] %v6494_v60  ;;  %v6506_v49 = vmul.f32 %v1979_v50, %v9102_v9  ;;  %v6509_v54 = vmul.f32 %v1979_v50, %v9104_v52  ;;  %v6512_v44 = vmul.f32 %v1979_v50, %v9106_v47  ;;  %v9108_v28 = vld [vmem:[#allocation96_spill] sm:$0xff]  ;;  %v9110_v42 = vld [vmem:[#allocation97_spill] sm:$0xff] }
 0x255   :  { %9097 = vst [vmem:[#allocation216_spill] sm:$0xff] %v6497_v11  ;;  %9099 = vst [vmem:[#allocation227_spill] sm:$0xff] %v6500_v24  ;;  %v6515_v60 = vmul.f32 %v1979_v50, %v9108_v28  ;;  %v6518_v11 = vmul.f32 %v1979_v50, %v9110_v42  ;;  %v9112_v48 = vld [vmem:[#allocation98_spill] sm:$0xff]  ;;  %v9114_v40 = vld [vmem:[#allocation99_spill] sm:$0xff] }
 0x256   :  { %9101 = vst [vmem:[#allocation228_spill] sm:$0xff] %v6503_v2  ;;  %9103 = vst [vmem:[#allocation229_spill] sm:$0xff] %v6506_v49  ;;  %v6521_v24 = vmul.f32 %v1979_v50, %v9112_v48  ;;  %v6524_v2 = vmul.f32 %v1979_v50, %v9114_v40  ;;  %v9116_v9 = vld [vmem:[#allocation100_spill] sm:$0xff]  ;;  %v9118_v52 = vld [vmem:[#allocation101_spill] sm:$0xff] }
 0x257   :  { %9105 = vst [vmem:[#allocation230_spill] sm:$0xff] %v6509_v54  ;;  %9107 = vst [vmem:[#allocation231_spill] sm:$0xff] %v6512_v44  ;;  %v6527_v49 = vmul.f32 %v1979_v50, %v9116_v9  ;;  %v6530_v54 = vmul.f32 %v1979_v50, %v9118_v52  ;;  %v9120_v47 = vld [vmem:[#allocation102_spill] sm:$0xff]  ;;  %v9122_v28 = vld [vmem:[#allocation103_spill] sm:$0xff] }
 0x258   :  { %9109 = vst [vmem:[#allocation232_spill] sm:$0xff] %v6515_v60  ;;  %9111 = vst [vmem:[#allocation233_spill] sm:$0xff] %v6518_v11  ;;  %v6533_v44 = vmul.f32 %v1979_v50, %v9120_v47  ;;  %v6536_v60 = vmul.f32 %v1979_v50, %v9122_v28  ;;  %v9123_v42 = vld [vmem:[#allocation104_spill] sm:$0xff]  ;;  %v9125_v48 = vld [vmem:[#allocation105_spill] sm:$0xff] }
 0x259   :  { %9113 = vst [vmem:[#allocation236_spill] sm:$0xff] %v6521_v24  ;;  %9115 = vst [vmem:[#allocation234_spill] sm:$0xff] %v6524_v2  ;;  %v6539_v11 = vmul.f32 %v1996_v29, %v9123_v42  ;;  %v6542_v24 = vmul.f32 %v1996_v29, %v9125_v48  ;;  %v9127_v40 = vld [vmem:[#allocation106_spill] sm:$0xff]  ;;  %v9129_v9 = vld [vmem:[#allocation107_spill] sm:$0xff] }
 0x25a   :  { %9117 = vst [vmem:[#allocation237_spill] sm:$0xff] %v6527_v49  ;;  %9119 = vst [vmem:[#allocation120_spill] sm:$0xff] %v6530_v54  ;;  %v6545_v2 = vmul.f32 %v1996_v29, %v9127_v40  ;;  %v6548_v49 = vmul.f32 %v1996_v29, %v9129_v9  ;;  %v9131_v52 = vld [vmem:[#allocation108_spill] sm:$0xff]  ;;  %v9133_v47 = vld [vmem:[#allocation109_spill] sm:$0xff] }
 0x25b   :  { %9121 = vst [vmem:[#allocation126_spill] sm:$0xff] %v6533_v44  ;;  %9124 = vst [vmem:[#allocation121_spill] sm:$0xff] %v6539_v11  ;;  %v6551_v54 = vmul.f32 %v1996_v29, %v9131_v52  ;;  %v6554_v44 = vmul.f32 %v1996_v29, %v9133_v47  ;;  %v9135_v50 = vld [vmem:[#allocation110_spill] sm:$0xff]  ;;  %v9137_v42 = vld [vmem:[#allocation111_spill] sm:$0xff] }
 0x25c   :  { %9126 = vst [vmem:[#allocation127_spill] sm:$0xff] %v6542_v24  ;;  %9128 = vst [vmem:[#allocation122_spill] sm:$0xff] %v6545_v2  ;;  %v6557_v28 = vmul.f32 %v1996_v29, %v9135_v50  ;;  %v6560_v11 = vmul.f32 %v1996_v29, %v9137_v42  ;;  %v9139_v48 = vld [vmem:[#allocation112_spill] sm:$0xff]  ;;  %v9141_v40 = vld [vmem:[#allocation113_spill] sm:$0xff] }
 0x25d   :  { %9130 = vst [vmem:[#allocation128_spill] sm:$0xff] %v6548_v49  ;;  %9132 = vst [vmem:[#allocation235_spill] sm:$0xff] %v6551_v54  ;;  %v6563_v24 = vmul.f32 %v1996_v29, %v9139_v48  ;;  %v6566_v2 = vmul.f32 %v1996_v29, %v9141_v40  ;;  %v9143_v9 = vld [vmem:[#allocation114_spill] sm:$0xff]  ;;  %v9145_v52 = vld [vmem:[#allocation115_spill] sm:$0xff] }
 0x25e   :  { %9134 = vst [vmem:[#allocation238_spill] sm:$0xff] %v6554_v44  ;;  %9136 = vst [vmem:[#allocation224_spill] sm:$0xff] %v6557_v28  ;;  %v6569_v49 = vmul.f32 %v1996_v29, %v9143_v9  ;;  %v6572_v54 = vmul.f32 %v1996_v29, %v9145_v52  ;;  %v9147_v47 = vld [vmem:[#allocation116_spill] sm:$0xff]  ;;  %v9149_v50 = vld [vmem:[#allocation117_spill] sm:$0xff] }
 0x25f   :  { %9138 = vst [vmem:[#allocation225_spill] sm:$0xff] %v6560_v11  ;;  %9140 = vst [vmem:[#allocation239_spill] sm:$0xff] %v6563_v24  ;;  %v6575_v44 = vmul.f32 %v1996_v29, %v9147_v47  ;;  %v6578_v28 = vmul.f32 %v1996_v29, %v9149_v50  ;;  %v9151_v42 = vld [vmem:[#allocation118_spill] sm:$0xff]  ;;  %v9153_v48 = vld [vmem:[#allocation119_spill] sm:$0xff] }
 0x260   :  { %9142 = vst [vmem:[#allocation240_spill] sm:$0xff] %v6566_v2  ;;  %9144 = vst [vmem:[#allocation241_spill] sm:$0xff] %v6569_v49  ;;  %v6581_v11 = vmul.f32 %v1996_v29, %v9151_v42  ;;  %v6584_v24 = vmul.f32 %v1996_v29, %v9153_v48  ;;  %v9155_v40 = vld [vmem:[#allocation141_spill] sm:$0xff]  ;;  %v9156_v9 = vld [vmem:[#allocation144_spill] sm:$0xff] }
 0x261   :  { %9146 = vst [vmem:[#allocation242_spill] sm:$0xff] %v6572_v54  ;;  %9148 = vst [vmem:[#allocation243_spill] sm:$0xff] %v6575_v44  ;;  %v6587_v2 = vmul.f32 %v2013_v1, %v9155_v40  ;;  %v6590_v49 = vmul.f32 %v2013_v1, %v9156_v9  ;;  %v9158_v52 = vld [vmem:[#allocation147_spill] sm:$0xff]  ;;  %v9160_v47 = vld [vmem:[#allocation150_spill] sm:$0xff] }
 0x262   :  { %9150 = vst [vmem:[#allocation244_spill] sm:$0xff] %v6578_v28  ;;  %9152 = vst [vmem:[#allocation245_spill] sm:$0xff] %v6581_v11  ;;  %v6593_v54 = vmul.f32 %v2013_v1, %v9158_v52  ;;  %v6596_v44 = vmul.f32 %v2013_v1, %v9160_v47  ;;  %v9162_v50 = vld [vmem:[#allocation153_spill] sm:$0xff]  ;;  %v9164_v42 = vld [vmem:[#allocation156_spill] sm:$0xff] }
 0x263   :  { %9154 = vst [vmem:[#allocation246_spill] sm:$0xff] %v6584_v24  ;;  %9157 = vst [vmem:[#allocation247_spill] sm:$0xff] %v6590_v49  ;;  %v6599_v28 = vmul.f32 %v2013_v1, %v9162_v50  ;;  %v6602_v11 = vmul.f32 %v2013_v1, %v9164_v42  ;;  %v9166_v29 = vld [vmem:[#allocation160_spill] sm:$0xff]  ;;  %v9168_v40 = vld [vmem:[#allocation163_spill] sm:$0xff] }
 0x264   :  { %9159 = vst [vmem:[#allocation248_spill] sm:$0xff] %v6593_v54  ;;  %9161 = vst [vmem:[#allocation249_spill] sm:$0xff] %v6596_v44  ;;  %v6605_v48 = vmul.f32 %v2013_v1, %v9166_v29  ;;  %v6608_v24 = vmul.f32 %v2013_v1, %v9168_v40  ;;  %v9170_v9 = vld [vmem:[#allocation165_spill] sm:$0xff]  ;;  %v9173_v47 = vld [vmem:[#allocation172_spill] sm:$0xff] }
 0x265   :  { %9163 = vst [vmem:[#allocation250_spill] sm:$0xff] %v6599_v28  ;;  %9165 = vst [vmem:[#allocation251_spill] sm:$0xff] %v6602_v11  ;;  %v6611_v49 = vmul.f32 %v2013_v1, %v9170_v9  ;;  %v9172_v52 = vld [vmem:[#allocation169_spill] sm:$0xff]  ;;  %v6617_v44 = vmul.f32 %v2013_v1, %v9173_v47  ;;  %v9175_v42 = vld [vmem:[#allocation176_spill] sm:$0xff]  ;;  %v6640_v47 = vadd.f32 %v6254_v39, %v6204_v36 }
 0x266   :  { %9167 = vst [vmem:[#allocation252_spill] sm:$0xff] %v6605_v48  ;;  %9169 = vst [vmem:[#allocation8_spill] sm:$0xff] %v6608_v24  ;;  %v6614_v54 = vmul.f32 %v2013_v1, %v9172_v52  ;;  %v9174_v50 = vld [vmem:[#allocation173_spill] sm:$0xff]  ;;  %v6623_v11 = vmul.f32 %v2013_v1, %v9175_v42  ;;  %v9176_v29 = vld [vmem:[#allocation179_spill] sm:$0xff]  ;;  %v6636_v52 = vadd.f32 %v6251_v37, %v6201_v46 }
 0x267   :  { %9171 = vst [vmem:[#allocation9_spill] sm:$0xff] %v6611_v49  ;;  %v6620_v28 = vmul.f32 %v2013_v1, %v9174_v50  ;;  %v6626_v48 = vmul.f32 %v2013_v1, %v9176_v29  ;;  %v9177_v40 = vld [vmem:[#allocation180_spill] sm:$0xff]  ;;  %v9178_v9 = vld [vmem:[#allocation183_spill] sm:$0xff]  ;;  %9180 = vst [vmem:[#allocation11_spill] sm:$0xff] %v6640_v47  ;;  %v6644_v50 = vadd.f32 %v6259_v0, %v6207_v17 }
 0x268   :  { %v6629_v24 = vmul.f32 %v2013_v1, %v9177_v40  ;;  %v6632_v49 = vmul.f32 %v2013_v1, %v9178_v9  ;;  %9179 = vst [vmem:[#allocation10_spill] sm:$0xff] %v6636_v52  ;;  %v6648_v42 = vadd.f32 %v6262_v45, %v6210_v15  ;;  %v6652_v1 = vadd.f32 %v6265_v26, %v6213_v62  ;;  %v9194_v39 = vld [vmem:[#allocation175_spill] sm:$0xff]  ;;  %v9196_v45 = vld [vmem:[#allocation177_spill] sm:$0xff]  ;;  %v9210_v40 = vld [vmem:[#allocation130_spill] sm:$0xff] }
 0x269   :  { %9181 = vst [vmem:[#allocation12_spill] sm:$0xff] %v6644_v50  ;;  %v6656_v46 = vadd.f32 %v6268_v35, %v6216_v51  ;;  %v6660_v36 = vadd.f32 %v6271_v19, %v6219_v53  ;;  %v6664_v17 = vadd.f32 %v6274_v14, %v6222_v33  ;;  %v6668_v15 = vadd.f32 %v6277_v6, %v6225_v41  ;;  %v9195_v0 = vld [vmem:[#allocation123_spill] sm:$0xff]  ;;  %v9198_v35 = vld [vmem:[#allocation154_spill] sm:$0xff]  ;;  %v9200_v6 = vld [vmem:[#allocation197_spill] sm:$0xff] }
 0x26a   :  { %9182 = vst [vmem:[#allocation13_spill] sm:$0xff] %v6648_v42  ;;  %9183 = vst [vmem:[#allocation14_spill] sm:$0xff] %v6652_v1  ;;  %v6672_v62 = vadd.f32 %v6280_v55, %v6228_v43  ;;  %v6676_v51 = vadd.f32 %v6283_v5, %v6232_v63  ;;  %v6680_v53 = vadd.f32 %v6286_v38, %v6235_v27  ;;  %v9199_v14 = vld [vmem:[#allocation159_spill] sm:$0xff]  ;;  %v9201_v5 = vld [vmem:[#allocation146_spill] sm:$0xff] }
 0x26b   :  { %9184 = vst [vmem:[#allocation15_spill] sm:$0xff] %v6656_v46  ;;  %9185 = vst [vmem:[#allocation16_spill] sm:$0xff] %v6660_v36  ;;  %v6684_v33 = vadd.f32 %v6291_v7, %v6238_v13  ;;  %v6688_v41 = vadd.f32 %v6294_v32, %v6241_v10  ;;  %v6692_v43 = vadd.f32 %v6297_v20, %v6244_v59  ;;  %v9197_v59 = vld [vmem:[#allocation145_spill] sm:$0xff]  ;;  %v9255_v50 = vld [vmem:[#allocation239_spill] sm:$0xff] }
 0x26c   :  { %9186 = vst [vmem:[#allocation17_spill] sm:$0xff] %v6664_v17  ;;  %9187 = vst [vmem:[#allocation72_spill] sm:$0xff] %v6668_v15  ;;  %v2046_v63 = vadd.f32 %v6357_v58, %v6300_v4  ;;  %v2047_v37 = vadd.f32 %v6363_v31, %v6303_v57  ;;  %v2048_v27 = vadd.f32 %v6366_v21, %v6306_v56  ;;  %v9202_v38 = vld [vmem:[#allocation217_spill] sm:$0xff]  ;;  %v9204_v4 = vld [vmem:[#allocation170_spill] sm:$0xff] }
 0x26d   :  { %9188 = vst [vmem:[#allocation73_spill] sm:$0xff] %v6672_v62  ;;  %9189 = vst [vmem:[#allocation74_spill] sm:$0xff] %v6676_v51  ;;  %v2049_v13 = vadd.f32 %v6371_v22, %v6309_v25  ;;  %v2050_v10 = vadd.f32 %v9194_v39, %v6312_v23  ;;  %v2051_v26 = vadd.f32 %v9196_v45, %v9195_v0  ;;  %v9203_v32 = vld [vmem:[#allocation129_spill] sm:$0xff]  ;;  %v9205_v57 = vld [vmem:[#allocation226_spill] sm:$0xff] }
 0x26e   :  { %9190 = vst [vmem:[#allocation75_spill] sm:$0xff] %v6680_v53  ;;  %9191 = vst [vmem:[#allocation76_spill] sm:$0xff] %v6684_v33  ;;  %v2052_v19 = vadd.f32 %v9198_v35, %v9197_v59  ;;  %v2053_v55 = vadd.f32 %v9200_v6, %v9199_v14  ;;  %v2054_v7 = vadd.f32 %v9202_v38, %v9201_v5  ;;  %v9206_v25 = vld [vmem:[#allocation187_spill] sm:$0xff]  ;;  %v9209_v22 = vld [vmem:[#allocation210_spill] sm:$0xff] }
 0x26f   :  { %9192 = vst [vmem:[#allocation77_spill] sm:$0xff] %v6688_v41  ;;  %9193 = vst [vmem:[#allocation78_spill] sm:$0xff] %v6692_v43  ;;  %v2055_v20 = vadd.f32 %v6401_v30, %v9203_v32  ;;  %v2056_v56 = vadd.f32 %v9205_v57, %v9204_v4  ;;  %v2057_v23 = vadd.f32 %v6409_v61, %v9206_v25  ;;  %v9207_v21 = vld [vmem:[#allocation203_spill] sm:$0xff]  ;;  %v9211_v39 = vld [vmem:[#allocation140_spill] sm:$0xff] }
 0x270   :  { %v2058_v58 = vadd.f32 %v6412_v16, %v9207_v21  ;;  %v9208_v31 = vld [vmem:[#allocation139_spill] sm:$0xff]  ;;  %v2060_v9 = vadd.f32 %v6422_v34, %v9210_v40  ;;  %v2061_v0 = vadd.f32 %v6425_v12, %v9211_v39  ;;  %v2062_v30 = vadd.f32 %v6491_v8, %v6432_v3  ;;  %v9213_v35 = vld [vmem:[#allocation193_spill] sm:$0xff]  ;;  %v9214_v61 = vld [vmem:[#allocation216_spill] sm:$0xff] }
 0x271   :  { %v2059_v29 = vadd.f32 %v9209_v22, %v9208_v31  ;;  %v9212_v45 = vld [vmem:[#allocation223_spill] sm:$0xff]  ;;  %v2064_v14 = vadd.f32 %v9214_v61, %v9213_v35  ;;  %v9215_v6 = vld [vmem:[#allocation212_spill] sm:$0xff]  ;;  %v9217_v38 = vld [vmem:[#allocation185_spill] sm:$0xff] }
 0x272   :  { %v2063_v59 = vadd.f32 %v9212_v45, %v6435_v18  ;;  %v9216_v16 = vld [vmem:[#allocation227_spill] sm:$0xff]  ;;  %v9218_v32 = vld [vmem:[#allocation228_spill] sm:$0xff]  ;;  %v9220_v34 = vld [vmem:[#allocation229_spill] sm:$0xff] }
 0x273   :  { %v2065_v5 = vadd.f32 %v9216_v16, %v9215_v6  ;;  %v2066_v4 = vadd.f32 %v9218_v32, %v9217_v38  ;;  %v9219_v57 = vld [vmem:[#allocation220_spill] sm:$0xff]  ;;  %v9222_v12 = vld [vmem:[#allocation230_spill] sm:$0xff]  ;;  %v9223_v22 = vld [vmem:[#allocation213_spill] sm:$0xff] }
 0x274   :  { %v2067_v25 = vadd.f32 %v9220_v34, %v9219_v57  ;;  %v9221_v21 = vld [vmem:[#allocation208_spill] sm:$0xff]  ;;  %v9224_v3 = vld [vmem:[#allocation231_spill] sm:$0xff]  ;;  %v9225_v40 = vld [vmem:[#allocation201_spill] sm:$0xff] }
 0x275   :  { %v2068_v31 = vadd.f32 %v9222_v12, %v9221_v21  ;;  %v2069_v8 = vadd.f32 %v9224_v3, %v9223_v22  ;;  %v9226_v18 = vld [vmem:[#allocation232_spill] sm:$0xff]  ;;  %v9227_v45 = vld [vmem:[#allocation221_spill] sm:$0xff]  ;;  %v9229_v43 = vld [vmem:[#allocation194_spill] sm:$0xff] }
 0x276   :  { %v2070_v39 = vadd.f32 %v9226_v18, %v9225_v40  ;;  %v9228_v35 = vld [vmem:[#allocation233_spill] sm:$0xff]  ;;  %v9230_v6 = vld [vmem:[#allocation236_spill] sm:$0xff]  ;;  %v9231_v41 = vld [vmem:[#allocation214_spill] sm:$0xff] }
 0x277   :  { %v2071_v61 = vadd.f32 %v9228_v35, %v9227_v45  ;;  %v2072_v16 = vadd.f32 %v9230_v6, %v9229_v43  ;;  %v9232_v38 = vld [vmem:[#allocation234_spill] sm:$0xff]  ;;  %v9234_v57 = vld [vmem:[#allocation237_spill] sm:$0xff]  ;;  %v9236_v21 = vld [vmem:[#allocation120_spill] sm:$0xff] }
 0x278   :  { %v2073_v32 = vadd.f32 %v9232_v38, %v9231_v41  ;;  %v9233_v33 = vld [vmem:[#allocation186_spill] sm:$0xff]  ;;  %v9237_v51 = vld [vmem:[#allocation209_spill] sm:$0xff]  ;;  %v9239_v62 = vld [vmem:[#allocation215_spill] sm:$0xff] }
 0x279   :  { %v2074_v34 = vadd.f32 %v9234_v57, %v9233_v33  ;;  %v9235_v53 = vld [vmem:[#allocation222_spill] sm:$0xff]  ;;  %v2077_v40 = vadd.f32 %v6536_v60, %v9239_v62  ;;  %v9240_v18 = vld [vmem:[#allocation121_spill] sm:$0xff]  ;;  %v9241_v43 = vld [vmem:[#allocation127_spill] sm:$0xff] }
 0x27a   :  { %v2075_v12 = vadd.f32 %v9236_v21, %v9235_v53  ;;  %v9238_v22 = vld [vmem:[#allocation126_spill] sm:$0xff]  ;;  %v2078_v45 = vadd.f32 %v6587_v2, %v9240_v18  ;;  %v9242_v35 = vld [vmem:[#allocation247_spill] sm:$0xff]  ;;  %v9244_v38 = vld [vmem:[#allocation248_spill] sm:$0xff] }
 0x27b   :  { %v2076_v3 = vadd.f32 %v9238_v22, %v9237_v51  ;;  %v2079_v41 = vadd.f32 %v9242_v35, %v9241_v43  ;;  %v9243_v6 = vld [vmem:[#allocation122_spill] sm:$0xff]  ;;  %v9245_v57 = vld [vmem:[#allocation128_spill] sm:$0xff]  ;;  %v9246_v15 = vld [vmem:[#allocation249_spill] sm:$0xff] }
 0x27c   :  { %v2080_v33 = vadd.f32 %v9244_v38, %v9243_v6  ;;  %v2081_v53 = vadd.f32 %v9246_v15, %v9245_v57  ;;  %v9247_v21 = vld [vmem:[#allocation235_spill] sm:$0xff]  ;;  %v9248_v17 = vld [vmem:[#allocation250_spill] sm:$0xff]  ;;  %v9251_v62 = vld [vmem:[#allocation224_spill] sm:$0xff] }
 0x27d   :  { %v2082_v51 = vadd.f32 %v9248_v17, %v9247_v21  ;;  %v9249_v22 = vld [vmem:[#allocation238_spill] sm:$0xff]  ;;  %v9250_v36 = vld [vmem:[#allocation251_spill] sm:$0xff]  ;;  %v9252_v46 = vld [vmem:[#allocation252_spill] sm:$0xff] }
 0x27e   :  { %v2083_v60 = vadd.f32 %v9250_v36, %v9249_v22  ;;  %v2084_v2 = vadd.f32 %v9252_v46, %v9251_v62  ;;  %v9253_v18 = vld [vmem:[#allocation225_spill] sm:$0xff]  ;;  %v9254_v1 = vld [vmem:[#allocation8_spill] sm:$0xff]  ;;  %v9259_v57 = vld [vmem:[#allocation242_spill] sm:$0xff] }
 0x27f   :  { %v2085_v42 = vadd.f32 %v9254_v1, %v9253_v18  ;;  %v9256_v43 = vld [vmem:[#allocation9_spill] sm:$0xff]  ;;  %v9257_v47 = vld [vmem:[#allocation240_spill] sm:$0xff]  ;;  %v2089_v17 = vadd.f32 %v6620_v28, %v9259_v57  ;;  %v9260_v21 = vld [vmem:[#allocation243_spill] sm:$0xff]  ;;  %v2111_v57 = vadd.f32 %v2079_v41, %v2063_v59 }
 0x280   :  { %v2086_v35 = vadd.f32 %v9256_v43, %v9255_v50  ;;  %v2087_v6 = vadd.f32 %v6614_v54, %v9257_v47  ;;  %v9258_v38 = vld [vmem:[#allocation241_spill] sm:$0xff]  ;;  %v2090_v36 = vadd.f32 %v6623_v11, %v9260_v21  ;;  %v9261_v22 = vld [vmem:[#allocation244_spill] sm:$0xff]  ;;  %v9263_v18 = vld [vmem:[#allocation202_spill] sm:$0xff]  ;;  %v2110_v43 = vadd.f32 %v2078_v45, %v2062_v30 }
 0x281   :  { %v2088_v15 = vadd.f32 %v6617_v44, %v9258_v38  ;;  %v2091_v46 = vadd.f32 %v6626_v48, %v9261_v22  ;;  %v9262_v62 = vld [vmem:[#allocation245_spill] sm:$0xff]  ;;  %v2094_v50 = vadd.f32 %v2046_v63, %v9263_v18  ;;  %v9264_v52 = vld [vmem:[#allocation246_spill] sm:$0xff]  ;;  %v9266_v38 = vld [vmem:[#allocation11_spill] sm:$0xff]  ;;  %v2112_v18 = vadd.f32 %v2080_v33, %v2064_v14 }
 0x282   :  { %v2092_v1 = vadd.f32 %v6629_v24, %v9262_v62  ;;  %v2093_v54 = vadd.f32 %v6632_v49, %v9264_v52  ;;  %v9265_v47 = vld [vmem:[#allocation10_spill] sm:$0xff]  ;;  %v2096_v28 = vadd.f32 %v2048_v27, %v9266_v38  ;;  %v9267_v11 = vld [vmem:[#allocation12_spill] sm:$0xff]  ;;  %v9268_v22 = vld [vmem:[#allocation13_spill] sm:$0xff]  ;;  %v2142_v14 = vstv %s6760_s19 }
 0x283   :  { %v2095_v44 = vadd.f32 %v2047_v37, %v9265_v47  ;;  %v2097_v21 = vadd.f32 %v2049_v13, %v9267_v11  ;;  %v2098_v48 = vadd.f32 %v2050_v10, %v9268_v22  ;;  %v9269_v24 = vld [vmem:[#allocation14_spill] sm:$0xff]  ;;  %v9270_v63 = vld [vmem:[#allocation15_spill] sm:$0xff]  ;;  %v9271_v45 = vld [vmem:[#allocation16_spill] sm:$0xff]  ;;  %v2113_v47 = vadd.f32 %v2081_v53, %v2065_v5 }
 0x284   :  { %v2099_v62 = vadd.f32 %v2051_v26, %v9269_v24  ;;  %v2100_v30 = vadd.f32 %v2052_v19, %v9270_v63  ;;  %v2101_v49 = vadd.f32 %v2053_v55, %v9271_v45  ;;  %v9272_v52 = vld [vmem:[#allocation17_spill] sm:$0xff]  ;;  %v9273_v27 = vld [vmem:[#allocation72_spill] sm:$0xff]  ;;  %v2114_v11 = vadd.f32 %v2082_v51, %v2066_v4  ;;  %v9275_v10 = vld [vmem:[#allocation74_spill] sm:$0xff] }
 0x285   :  { %v2102_v37 = vadd.f32 %v2054_v7, %v9272_v52  ;;  %v2103_v38 = vadd.f32 %v2055_v20, %v9273_v27  ;;  %v9274_v41 = vld [vmem:[#allocation73_spill] sm:$0xff]  ;;  %v2126_v13 = vadd.f32 %v2110_v43, %v2094_v50  ;;  %v2105_v22 = vadd.f32 %v2057_v23, %v9275_v10  ;;  %v9276_v33 = vld [vmem:[#allocation75_spill] sm:$0xff]  ;;  %v9277_v63 = vld [vmem:[#allocation76_spill] sm:$0xff] }
 0x286   :  { %v2104_v59 = vadd.f32 %v2056_v56, %v9274_v41  ;;  %v2115_v24 = vadd.f32 %v2083_v60, %v2067_v25  ;;  %v2127_v26 = vadd.f32 %v2111_v57, %v2095_v44  ;;  %v2106_v19 = vadd.f32 %v2058_v58, %v9276_v33  ;;  %v9278_v52 = vld [vmem:[#allocation77_spill] sm:$0xff]  ;;  %v9279_v53 = vld [vmem:[#allocation78_spill] sm:$0xff] }
 0x287   :  { %v2107_v45 = vadd.f32 %v2059_v29, %v9277_v63  ;;  %v2116_v55 = vadd.f32 %v2084_v2, %v2068_v31  ;;  %v2128_v7 = vadd.f32 %v2112_v18, %v2096_v28  ;;  %v2108_v5 = vadd.f32 %v2060_v9, %v9278_v52 }
 0x288   :  { %v2109_v20 = vadd.f32 %v2061_v0, %v9279_v53  ;;  %v2117_v27 = vadd.f32 %v2085_v42, %v2069_v8  ;;  %v2129_v41 = vadd.f32 %v2113_v47, %v2097_v21  ;;  %v2118_v56 = vadd.f32 %v2086_v35, %v2070_v39 }
 0x289   :  { %v2119_v4 = vadd.f32 %v2087_v6, %v2071_v61  ;;  %v2130_v51 = vadd.f32 %v2114_v11, %v2098_v48  ;;  %v2143_v50 = vadd.f32 %v2142_v14, %v2126_v13  ;;  %v2120_v23 = vadd.f32 %v2088_v15, %v2072_v16  ;;  %v9282_v13 = vld [vmem:[#allocation192_spill] sm:$0xff] }
 0x28a   :  { %v2121_v25 = vadd.f32 %v2089_v17, %v2073_v32  ;;  %v2131_v60 = vadd.f32 %v2115_v24, %v2099_v62  ;;  %v2144_v43 = vadd.f32 %v2142_v14, %v2127_v26  ;;  %v2122_v44 = vadd.f32 %v2090_v36, %v2074_v34  ;;  %v9284_v24 = vld [vmem:[#allocation200_spill] sm:$0xff] }
 0x28b   :  { %v2123_v58 = vadd.f32 %v2091_v46, %v2075_v12  ;;  %v2132_v57 = vadd.f32 %v2116_v55, %v2100_v30  ;;  %v2145_v29 = vadd.f32 %v2142_v14, %v2128_v7  ;;  %v2124_v31 = vadd.f32 %v2092_v1, %v2076_v3 }
 0x28c   :  { %v2125_v2 = vadd.f32 %v2093_v54, %v2077_v40  ;;  %v2133_v28 = vadd.f32 %v2117_v27, %v2101_v49  ;;  %v2146_v9 = vadd.f32 %v2142_v14, %v2129_v41  ;;  %v2134_v18 = vadd.f32 %v2118_v56, %v2102_v37  ;;  %v9287_v41 = vld [vmem:[#allocation155_spill] sm:$0xff] }
 0x28d   :  { %v2135_v0 = vadd.f32 %v2119_v4, %v2103_v38  ;;  %v2147_v42 = vadd.f32 %v2142_v14, %v2130_v51  ;;  %v2159_v8 = vmul.f32 0.5, %v2143_v50  ;;  %v2136_v39 = vadd.f32 %v2120_v23, %v2104_v59  ;;  %v9280_v59 = vld [vmem:[#allocation207_spill] sm:$0xff]  ;;  %v9288_v4 = vld [vmem:[#allocation136_spill] sm:$0xff]  ;;  %v9289_v50 = vld [vmem:[#allocation158_spill] sm:$0xff] }
 0x28e   :  { %v2137_v61 = vadd.f32 %v2121_v25, %v2105_v22  ;;  %v2148_v16 = vadd.f32 %v2142_v14, %v2131_v60  ;;  %v2160_v32 = vmul.f32 0.5, %v2144_v43  ;;  %v2138_v35 = vadd.f32 %v2122_v44, %v2106_v19  ;;  %v9290_v25 = vld [vmem:[#allocation137_spill] sm:$0xff]  ;;  %v9291_v43 = vld [vmem:[#allocation138_spill] sm:$0xff] }
 0x28f   :  { %v2139_v6 = vadd.f32 %v2123_v58, %v2107_v45  ;;  %v2149_v34 = vadd.f32 %v2142_v14, %v2132_v57  ;;  %v2161_v12 = vmul.f32 0.5, %v2145_v29  ;;  %v2140_v3 = vadd.f32 %v2124_v31, %v2108_v5  ;;  %v9286_v5 = vld [vmem:[#allocation133_spill] sm:$0xff]  ;;  %v9292_v58 = vld [vmem:[#allocation162_spill] sm:$0xff]  ;;  %v9293_v29 = vld [vmem:[#allocation164_spill] sm:$0xff] }
 0x290   :  { %v2141_v40 = vadd.f32 %v2125_v2, %v2109_v20  ;;  %v2150_v15 = vadd.f32 %v2142_v14, %v2133_v28  ;;  %v2162_v17 = vmul.f32 0.5, %v2146_v9  ;;  %v2151_v36 = vadd.f32 %v2142_v14, %v2134_v18  ;;  %v9294_v2 = vld [vmem:[#allocation143_spill] sm:$0xff] }
 0x291   :  { %v2152_v46 = vadd.f32 %v2142_v14, %v2135_v0  ;;  %v2163_v1 = vmul.f32 0.5, %v2147_v42  ;;  %3125 = vtanh.f32 %v2159_v8  ;;  %v2153_v54 = vadd.f32 %v2142_v14, %v2136_v39  ;;  %v9295_v9 = vld [vmem:[#allocation167_spill] sm:$0xff]  ;;  %v9296_v0 = vld [vmem:[#allocation168_spill] sm:$0xff] }
 0x292   :  { %v2154_v21 = vadd.f32 %v2142_v14, %v2137_v61  ;;  %v2164_v48 = vmul.f32 0.5, %v2148_v16  ;;  %3127 = vtanh.f32 %v2160_v32  ;;  %v2155_v62 = vadd.f32 %v2142_v14, %v2138_v35  ;;  %v9297_v8 = vld [vmem:[#allocation148_spill] sm:$0xff]  ;;  %v9298_v61 = vld [vmem:[#allocation174_spill] sm:$0xff] }
 0x293   :  { %v2156_v30 = vadd.f32 %v2142_v14, %v2139_v6  ;;  %v2165_v49 = vmul.f32 0.5, %v2149_v34  ;;  %3129 = vtanh.f32 %v2161_v12  ;;  %v2157_v37 = vadd.f32 %v2142_v14, %v2140_v3  ;;  %v9299_v35 = vld [vmem:[#allocation196_spill] sm:$0xff]  ;;  %v9300_v34 = vld [vmem:[#allocation181_spill] sm:$0xff] }
 0x294   :  { %v2158_v47 = vadd.f32 %v2142_v14, %v2141_v40  ;;  %v2166_v38 = vmul.f32 0.5, %v2150_v15  ;;  %3131 = vtanh.f32 %v2162_v17  ;;  %v6816_v11 = vadd.f32 0.5, %v9280_v59  ;;  %v9301_v3 = vld [vmem:[#allocation184_spill] sm:$0xff]  ;;  %v9302_v17 = vld [vmem:[#allocation125_spill] sm:$0xff] }
 0x295   :  { %v6819_v10 = vadd.f32 0.5, %v9282_v13  ;;  %v2167_v22 = vmul.f32 0.5, %v2151_v36  ;;  %3133 = vtanh.f32 %v2163_v1  ;;  %v6822_v26 = vadd.f32 0.5, %v9284_v24  ;;  %v9308_v13 = vld [vmem:[#allocation171_spill] sm:$0xff]  ;;  %v9309_v24 = vld [vmem:[#allocation188_spill] sm:$0xff] }
 0x296   :  { %9281 = vst [vmem:[#allocation79_spill] sm:$0xff] %v6816_v11  ;;  %v2168_v33 = vmul.f32 0.5, %v2152_v46  ;;  %3135 = vtanh.f32 %v2164_v48  ;;  %v2223_v19 = vstv %s6809_s20  ;;  %v2169_v63 = vmul.f32 0.5, %v2153_v54  ;;  %v9303_v46 = vld [vmem:[#allocation142_spill] sm:$0xff]  ;;  %v9304_v54 = vld [vmem:[#allocation152_spill] sm:$0xff] }
 0x297   :  { %9283 = vst [vmem:[#allocation80_spill] sm:$0xff] %v6819_v10  ;;  %9285 = vst [vmem:[#allocation81_spill] sm:$0xff] %v6822_v26  ;;  %v2170_v14 = vmul.f32 0.5, %v2154_v21  ;;  %v2171_v45 = vmul.f32 0.5, %v2155_v62  ;;  %3137 = vtanh.f32 %v2165_v49  ;;  %v2172_v55 = vmul.f32 0.5, %v2156_v30  ;;  %v9305_v62 = vld [vmem:[#allocation134_spill] sm:$0xff] }
 0x298   :  { %v2173_v7 = vmul.f32 0.5, %v2157_v37  ;;  %v2174_v52 = vmul.f32 0.5, %v2158_v47  ;;  %3139 = vtanh.f32 %v2166_v38  ;;  %v6826_v53 = vmul.f32 %v2223_v19, %v9286_v5  ;;  %v9306_v49 = vld [vmem:[#allocation135_spill] sm:$0xff]  ;;  %v9307_v47 = vld [vmem:[#allocation157_spill] sm:$0xff] }
 0x299   :  { %3141 = vtanh.f32 %v2167_v22  ;;  %v2240_v20 = vstv %s6811_s0  ;;  %v6830_v27 = vstv %s6813_s1  ;;  %v6833_v56 = vmul.f32 %v2223_v19, %v9287_v41 }
 0x29a   :  { %3143 = vtanh.f32 %v2168_v33  ;;  %v6836_v51 = vmul.f32 %v2223_v19, %v9288_v4  ;;  %v6839_v23 = vmul.f32 %v2223_v19, %v9289_v50  ;;  %v6842_v60 = vmul.f32 %v2223_v19, %v9290_v25 }
 0x29b   :  { %3145 = vtanh.f32 %v2169_v63  ;;  %v6845_v44 = vmul.f32 %v2223_v19, %v9291_v43  ;;  %v6848_v57 = vmul.f32 %v2223_v19, %v9292_v58  ;;  %v6851_v31 = vmul.f32 %v2223_v19, %v9293_v29  ;;  %v9326_v29 = vld [vmem:[#allocation166_spill] sm:$0xff]  ;;  %v9328_v58 = vld [vmem:[#allocation195_spill] sm:$0xff] }
 0x29c   :  { %3147 = vtanh.f32 %v2170_v14  ;;  %v6854_v28 = vmul.f32 %v2223_v19, %v9294_v2  ;;  %v6857_v18 = vmul.f32 %v2223_v19, %v9295_v9  ;;  %v6860_v42 = vmul.f32 %v2223_v19, %v9296_v0  ;;  %v9311_v14 = vld [vmem:[#allocation189_spill] sm:$0xff]  ;;  %v9321_v9 = vld [vmem:[#allocation131_spill] sm:$0xff] }
 0x29d   :  { %3149 = vtanh.f32 %v2171_v45  ;;  %v6863_v39 = vmul.f32 %v2223_v19, %v9297_v8  ;;  %v6866_v16 = vmul.f32 %v2223_v19, %v9298_v61  ;;  %v6869_v6 = vmul.f32 %v2223_v19, %v9299_v35  ;;  %v9318_v8 = vld [vmem:[#allocation161_spill] sm:$0xff] }
 0x29e   :  { %v3126_v32 = vpop.eup %3125  ;;  %3151 = vtanh.f32 %v2172_v55  ;;  %v6872_v12 = vmul.f32 %v2223_v19, %v9300_v34  ;;  %v6875_v40 = vmul.f32 %v2223_v19, %v9301_v3  ;;  %v6878_v36 = vmul.f32 %v2240_v20, %v9302_v17  ;;  %v9310_v19 = vld [vmem:[#allocation151_spill] sm:$0xff] }
 0x29f   :  { %v3128_v15 = vpop.eup %3127  ;;  %3153 = vtanh.f32 %v2173_v7  ;;  %v6881_v1 = vmul.f32 %v2240_v20, %v9303_v46  ;;  %v6884_v21 = vmul.f32 %v2240_v20, %v9304_v54  ;;  %v6889_v30 = vmul.f32 %v2240_v20, %v9305_v62  ;;  %v9312_v7 = vld [vmem:[#allocation205_spill] sm:$0xff]  ;;  %v9314_v62 = vld [vmem:[#allocation190_spill] sm:$0xff]  ;;  %v9316_v3 = vld [vmem:[#allocation191_spill] sm:$0xff] }
 0x2a0   :  { %v3130_v48 = vpop.eup %3129  ;;  %3155 = vtanh.f32 %v2174_v52  ;;  %v6892_v37 = vmul.f32 %v2240_v20, %v9306_v49  ;;  %v6895_v38 = vmul.f32 %v2240_v20, %v9307_v47  ;;  %v6898_v22 = vmul.f32 %v2240_v20, %v9308_v13  ;;  %v9313_v49 = vld [vmem:[#allocation178_spill] sm:$0xff] }
 0x2a1   :  { %v3132_v59 = vpop.eup %3131  ;;  %v6901_v33 = vmul.f32 %v2240_v20, %v9309_v24  ;;  %v6904_v63 = vmul.f32 %v2240_v20, %v9310_v19  ;;  %v6907_v45 = vmul.f32 %v2240_v20, %v9311_v14  ;;  %v6910_v52 = vmul.f32 %v2240_v20, %v9312_v7  ;;  %v9315_v13 = vld [vmem:[#allocation198_spill] sm:$0xff]  ;;  %v9317_v14 = vld [vmem:[#allocation199_spill] sm:$0xff] }
 0x2a2   :  { %v3134_v55 = vpop.eup %3133  ;;  %v6913_v47 = vmul.f32 %v2240_v20, %v9313_v49  ;;  %v6916_v54 = vmul.f32 %v2240_v20, %v9314_v62  ;;  %v6919_v46 = vmul.f32 %v2240_v20, %v9315_v13  ;;  %v2191_v17 = vmul.f32 0.5, %v3126_v32  ;;  %v9319_v62 = vld [vmem:[#allocation124_spill] sm:$0xff]  ;;  %v9320_v13 = vld [vmem:[#allocation149_spill] sm:$0xff] }
 0x2a3   :  { %v3136_v24 = vpop.eup %3135  ;;  %v2192_v19 = vmul.f32 0.5, %v3128_v15  ;;  %v6922_v34 = vmul.f32 %v2240_v20, %v9316_v3  ;;  %v6925_v35 = vmul.f32 %v2240_v20, %v9317_v14  ;;  %v2193_v61 = vmul.f32 0.5, %v3130_v48  ;;  %v9322_v14 = vld [vmem:[#allocation204_spill] sm:$0xff] }
 0x2a4   :  { %v3138_v7 = vpop.eup %3137  ;;  %v6929_v49 = vmul.f32 %v6830_v27, %v9318_v8  ;;  %v6933_v0 = vmul.f32 %v6830_v27, %v9319_v62  ;;  %v6937_v32 = vmul.f32 %v6830_v27, %v9320_v13  ;;  %v2194_v3 = vmul.f32 0.5, %v3132_v59  ;;  %v9324_v8 = vld [vmem:[#allocation132_spill] sm:$0xff] }
 0x2a5   :  { %v3140_v15 = vpop.eup %3139  ;;  %v6941_v20 = vmul.f32 %v6830_v27, %v9321_v9  ;;  %v6945_v48 = vmul.f32 %v6830_v27, %v9322_v14  ;;  %v6949_v2 = vmul.f32 %v6830_v27, %v9324_v8  ;;  %v6953_v13 = vmul.f32 %v6830_v27, %v9326_v29  ;;  %v9330_v9 = vld [vmem:[#allocation206_spill] sm:$0xff] }
 0x2a6   :  { %v3142_v62 = vpop.eup %3141  ;;  %v6957_v59 = vmul.f32 %v6830_v27, %v9328_v58  ;;  %v6961_v43 = vmul.f32 %v6830_v27, %v9330_v9  ;;  %v9332_v14 = vld [vmem:[#allocation182_spill] sm:$0xff]  ;;  %v2195_v8 = vmul.f32 0.5, %v3134_v55  ;;  %v6967_v4 = vadd.f32 0.5, %v2191_v17  ;;  %v9339_v9 = vld [vmem:[#allocation211_spill] sm:$0xff] }
 0x2a7   :  { %9323 = vst [vmem:[#allocation82_spill] sm:$0xff] %v6945_v48  ;;  %9325 = vst [vmem:[#allocation18_spill] sm:$0xff] %v6949_v2  ;;  %v6965_v25 = vmul.f32 %v6830_v27, %v9332_v14  ;;  %v3144_v50 = vpop.eup %3143  ;;  %v6969_v41 = vadd.f32 0.5, %v2192_v19  ;;  %v9336_v29 = vld [vmem:[#allocation218_spill] sm:$0xff]  ;;  %v6982_v14 = vstv %s6886_s25  ;;  %v2197_v55 = vmul.f32 0.5, %v3138_v7  ;;  %v9342_v19 = vld [vmem:[#allocation219_spill] sm:$0xff] }
 0x2a8   :  { %9327 = vst [vmem:[#allocation19_spill] sm:$0xff] %v6953_v13  ;;  %9329 = vst [vmem:[#allocation20_spill] sm:$0xff] %v6957_v59  ;;  %v6973_v5 = vmul.f32 %v6830_v27, %v9336_v29  ;;  %v3146_v58 = vpop.eup %3145  ;;  %v2196_v59 = vmul.f32 0.5, %v3136_v24  ;;  %v6975_v13 = vadd.f32 0.5, %v2193_v61  ;;  %v6984_v17 = vadd.f32 0.5, %v2194_v3 }
 0x2a9   :  { %9331 = vst [vmem:[#allocation21_spill] sm:$0xff] %v6961_v43  ;;  %9333 = vst [vmem:[#allocation22_spill] sm:$0xff] %v6965_v25  ;;  %v6979_v43 = vmul.f32 %v6830_v27, %v9339_v9  ;;  %v3148_v25 = vpop.eup %3147  ;;  %v6988_v2 = vmul.f32 %v6830_v27, %v9342_v19  ;;  %v6992_v29 = vmul.f32 %v6830_v27, %v6816_v11  ;;  %v2198_v24 = vmul.f32 0.5, %v3140_v15 }
 0x2aa   :  { %9334 = vst [vmem:[#allocation23_spill] sm:$0xff] %v6967_v4  ;;  %9335 = vst [vmem:[#allocation24_spill] sm:$0xff] %v6969_v41  ;;  %v3150_v61 = vpop.eup %3149  ;;  %v6996_v9 = vmul.f32 %v6830_v27, %v6819_v10  ;;  %v7000_v7 = vmul.f32 %v6830_v27, %v6822_v26  ;;  %v7002_v48 = vadd.f32 0.5, %v2195_v8  ;;  %v2275_v19 = vmul.f32 %v6982_v14, %v6967_v4 }
 0x2ab   :  { %9337 = vst [vmem:[#allocation25_spill] sm:$0xff] %v6973_v5  ;;  %9338 = vst [vmem:[#allocation26_spill] sm:$0xff] %v6975_v13  ;;  %v2199_v5 = vmul.f32 0.5, %v3142_v62  ;;  %v3152_v3 = vpop.eup %3151  ;;  %v2276_v11 = vmul.f32 %v6982_v14, %v6969_v41  ;;  %v2201_v62 = vmul.f32 0.5, %v3146_v58  ;;  %v2277_v10 = vmul.f32 %v6982_v14, %v6975_v13 }
 0x2ac   :  { %9340 = vst [vmem:[#allocation27_spill] sm:$0xff] %v6979_v43  ;;  %9341 = vst [vmem:[#allocation28_spill] sm:$0xff] %v6984_v17  ;;  %v2200_v43 = vmul.f32 0.5, %v3144_v50  ;;  %v3154_v15 = vpop.eup %3153  ;;  %v2203_v26 = vmul.f32 0.5, %v3150_v61  ;;  %v2278_v50 = vmul.f32 %v6982_v14, %v6984_v17  ;;  %v2291_v8 = vadd.f32 %v6878_v36, %v6826_v53 }
 0x2ad   :  { %9343 = vst [vmem:[#allocation29_spill] sm:$0xff] %v6988_v2  ;;  %9344 = vst [vmem:[#allocation30_spill] sm:$0xff] %v6992_v29  ;;  %v2202_v29 = vmul.f32 0.5, %v3148_v25  ;;  %v7008_v2 = vadd.f32 0.5, %v2196_v59  ;;  %v3156_v27 = vpop.eup %3155  ;;  %v2204_v4 = vmul.f32 0.5, %v3152_v3  ;;  %v7018_v41 = vadd.f32 0.5, %v2198_v24 }
 0x2ae   :  { %9345 = vst [vmem:[#allocation31_spill] sm:$0xff] %v6996_v9  ;;  %9346 = vst [vmem:[#allocation32_spill] sm:$0xff] %v7000_v7  ;;  %v7012_v7 = vadd.f32 0.5, %v2197_v55  ;;  %v7020_v58 = vadd.f32 0.5, %v2199_v5  ;;  %v2292_v25 = vadd.f32 %v6881_v1, %v6833_v56  ;;  %v2205_v59 = vmul.f32 0.5, %v3154_v15 }
 0x2af   :  { %v7024_v13 = vadd.f32 0.5, %v2200_v43  ;;  %v2279_v55 = vmul.f32 %v6982_v14, %v7002_v48  ;;  %v2293_v61 = vadd.f32 %v6884_v21, %v6836_v51  ;;  %v2206_v17 = vmul.f32 0.5, %v3156_v27 }
 0x2b0   :  { %v7030_v9 = vadd.f32 0.5, %v2201_v62  ;;  %v7032_v53 = vadd.f32 0.5, %v2202_v29  ;;  %v2280_v5 = vmul.f32 %v6982_v14, %v7008_v2  ;;  %v7036_v36 = vadd.f32 0.5, %v2203_v26 }
 0x2b1   :  { %v2281_v56 = vmul.f32 %v6982_v14, %v7012_v7  ;;  %v2294_v43 = vadd.f32 %v6889_v30, %v6839_v23  ;;  %v2295_v1 = vadd.f32 %v6892_v37, %v6842_v60  ;;  %v7046_v51 = vadd.f32 0.5, %v2204_v4 }
 0x2b2   :  { %v2282_v29 = vmul.f32 %v6982_v14, %v7018_v41  ;;  %v2283_v26 = vmul.f32 %v6982_v14, %v7020_v58  ;;  %v2296_v21 = vadd.f32 %v6895_v38, %v6845_v44  ;;  %v7054_v24 = vadd.f32 0.5, %v2205_v59 }
 0x2b3   :  { %v2284_v23 = vmul.f32 %v6982_v14, %v7024_v13  ;;  %v2297_v60 = vadd.f32 %v6898_v22, %v6848_v57  ;;  %v2298_v4 = vadd.f32 %v6901_v33, %v6851_v31  ;;  %v7062_v30 = vadd.f32 0.5, %v2206_v17 }
 0x2b4   :  { %v2285_v37 = vmul.f32 %v6982_v14, %v7030_v9  ;;  %v2286_v3 = vmul.f32 %v6982_v14, %v7032_v53  ;;  %v2299_v44 = vadd.f32 %v6904_v63, %v6854_v28  ;;  %v2287_v38 = vmul.f32 %v6982_v14, %v7036_v36  ;;  %v9356_v59 = vld [vmem:[#allocation29_spill] sm:$0xff] }
 0x2b5   :  { %9347 = vst [vmem:[#allocation33_spill] sm:$0xff] %v7062_v30  ;;  %v2300_v57 = vadd.f32 %v6907_v45, %v6857_v18  ;;  %v2301_v31 = vadd.f32 %v6910_v52, %v6860_v42  ;;  %v2307_v22 = vadd.f32 %v2275_v19, %v6929_v49  ;;  %v2288_v33 = vmul.f32 %v6982_v14, %v7046_v51  ;;  %v9352_v52 = vld [vmem:[#allocation21_spill] sm:$0xff]  ;;  %v9353_v19 = vld [vmem:[#allocation22_spill] sm:$0xff] }
 0x2b6   :  { %v2302_v17 = vadd.f32 %v6913_v47, %v6863_v39  ;;  %v2303_v28 = vadd.f32 %v6916_v54, %v6866_v16  ;;  %v2308_v63 = vadd.f32 %v2276_v11, %v6933_v0  ;;  %v2289_v15 = vmul.f32 %v6982_v14, %v7054_v24  ;;  %v9348_v16 = vld [vmem:[#allocation82_spill] sm:$0xff]  ;;  %v9350_v47 = vld [vmem:[#allocation19_spill] sm:$0xff] }
 0x2b7   :  { %v2304_v18 = vadd.f32 %v6919_v46, %v6869_v6  ;;  %v2305_v42 = vadd.f32 %v6922_v34, %v6872_v12  ;;  %v2309_v49 = vadd.f32 %v2277_v10, %v6937_v32  ;;  %v2290_v39 = vmul.f32 %v6982_v14, %v7062_v30  ;;  %v9349_v6 = vld [vmem:[#allocation18_spill] sm:$0xff]  ;;  %v9351_v12 = vld [vmem:[#allocation20_spill] sm:$0xff] }
 0x2b8   :  { %v2306_v11 = vadd.f32 %v6925_v35, %v6875_v40  ;;  %v2310_v0 = vadd.f32 %v2278_v50, %v6941_v20  ;;  %v2311_v54 = vadd.f32 %v2279_v55, %v9348_v16  ;;  %v2312_v46 = vadd.f32 %v2280_v5, %v9349_v6  ;;  %v9354_v35 = vld [vmem:[#allocation25_spill] sm:$0xff]  ;;  %v9355_v20 = vld [vmem:[#allocation27_spill] sm:$0xff]  ;;  %v9357_v30 = vld [vmem:[#allocation30_spill] sm:$0xff] }
 0x2b9   :  { %v2313_v34 = vadd.f32 %v2281_v56, %v9350_v47  ;;  %v2314_v10 = vadd.f32 %v2282_v29, %v9351_v12  ;;  %v2323_v45 = vadd.f32 %v2307_v22, %v2291_v8  ;;  %v2315_v32 = vadd.f32 %v2283_v26, %v9352_v52  ;;  %v9358_v6 = vld [vmem:[#allocation31_spill] sm:$0xff]  ;;  %v9359_v47 = vld [vmem:[#allocation32_spill] sm:$0xff] }
 0x2ba   :  { %v2316_v14 = vadd.f32 %v2284_v23, %v9353_v19  ;;  %v2324_v62 = vadd.f32 %v2308_v63, %v2292_v25  ;;  %v2339_v27 = vstv %s7044_s26  ;;  %v2317_v40 = vadd.f32 %v2285_v37, %v9354_v35 }
 0x2bb   :  { %v2318_v50 = vadd.f32 %v2286_v3, %v9355_v20  ;;  %v2319_v55 = vadd.f32 %v2287_v38, %v9356_v59  ;;  %v2325_v16 = vadd.f32 %v2309_v49, %v2293_v61  ;;  %v2320_v5 = vadd.f32 %v2288_v33, %v9357_v30 }
 0x2bc   :  { %v2321_v56 = vadd.f32 %v2289_v15, %v9358_v6  ;;  %v2322_v29 = vadd.f32 %v2290_v39, %v9359_v47  ;;  %v2326_v8 = vadd.f32 %v2310_v0, %v2294_v43  ;;  %v2327_v22 = vadd.f32 %v2311_v54, %v2295_v1 }
 0x2bd   :  { %v2328_v26 = vadd.f32 %v2312_v46, %v2296_v21  ;;  %v2329_v12 = vadd.f32 %v2313_v34, %v2297_v60  ;;  %v2340_v23 = vadd.f32 %v2339_v27, %v2323_v45  ;;  %v2330_v25 = vadd.f32 %v2314_v10, %v2298_v4 }
 0x2be   :  { %v2331_v37 = vadd.f32 %v2315_v32, %v2299_v44  ;;  %v2332_v3 = vadd.f32 %v2316_v14, %v2300_v57  ;;  %v2341_v38 = vadd.f32 %v2339_v27, %v2324_v62  ;;  %v2333_v61 = vadd.f32 %v2317_v40, %v2301_v31 }
 0x2bf   :  { %v2334_v63 = vadd.f32 %v2318_v50, %v2302_v17  ;;  %v2335_v30 = vadd.f32 %v2319_v55, %v2303_v28  ;;  %v2342_v33 = vadd.f32 %v2339_v27, %v2325_v16  ;;  %v2336_v15 = vadd.f32 %v2320_v5, %v2304_v18 }
 0x2c0   :  { %v2337_v49 = vadd.f32 %v2321_v56, %v2305_v42  ;;  %v2338_v39 = vadd.f32 %v2322_v29, %v2306_v11  ;;  %v2343_v43 = vadd.f32 %v2339_v27, %v2326_v8  ;;  %v2344_v1 = vadd.f32 %v2339_v27, %v2327_v22  ;;  %v9361_v56 = vld [vmem:[#allocation155_spill] sm:$0xff]  ;;  %v9362_v29 = vld [vmem:[#allocation136_spill] sm:$0xff]  ;;  %v9363_v22 = vld [vmem:[#allocation158_spill] sm:$0xff] }
 0x2c1   :  { %v2356_v21 = vmul.f32 0.5, %v2340_v23  ;;  %v2420_v60 = vstv %s7091_s27  ;;  %v7117_v0 = vstv %s7099_s28  ;;  %v2345_v54 = vadd.f32 %v2339_v27, %v2328_v26 }
 0x2c2   :  { %v2346_v46 = vadd.f32 %v2339_v27, %v2329_v12  ;;  %v2347_v34 = vadd.f32 %v2339_v27, %v2330_v25  ;;  %v2357_v4 = vmul.f32 0.5, %v2341_v38  ;;  %v2348_v44 = vadd.f32 %v2339_v27, %v2331_v37  ;;  %v9364_v12 = vld [vmem:[#allocation137_spill] sm:$0xff]  ;;  %v9365_v25 = vld [vmem:[#allocation138_spill] sm:$0xff] }
 0x2c3   :  { %v2349_v57 = vadd.f32 %v2339_v27, %v2332_v3  ;;  %v2350_v31 = vadd.f32 %v2339_v27, %v2333_v61  ;;  %v2358_v17 = vmul.f32 0.5, %v2342_v33  ;;  %v2351_v28 = vadd.f32 %v2339_v27, %v2334_v63  ;;  %v9366_v3 = vld [vmem:[#allocation162_spill] sm:$0xff]  ;;  %v9367_v61 = vld [vmem:[#allocation164_spill] sm:$0xff] }
 0x2c4   :  { %v2352_v10 = vadd.f32 %v2339_v27, %v2335_v30  ;;  %v2353_v18 = vadd.f32 %v2339_v27, %v2336_v15  ;;  %v2359_v42 = vmul.f32 0.5, %v2343_v43  ;;  %v2354_v11 = vadd.f32 %v2339_v27, %v2337_v49  ;;  %v9368_v30 = vld [vmem:[#allocation143_spill] sm:$0xff] }
 0x2c5   :  { %v2355_v45 = vadd.f32 %v2339_v27, %v2338_v39  ;;  %v2360_v52 = vmul.f32 0.5, %v2344_v1  ;;  %3157 = vtanh.f32 %v2356_v21  ;;  %v2361_v32 = vmul.f32 0.5, %v2345_v54  ;;  %v9360_v27 = vld [vmem:[#allocation133_spill] sm:$0xff]  ;;  %v9369_v15 = vld [vmem:[#allocation167_spill] sm:$0xff]  ;;  %v9370_v39 = vld [vmem:[#allocation168_spill] sm:$0xff] }
 0x2c6   :  { %v2362_v19 = vmul.f32 0.5, %v2346_v46  ;;  %3159 = vtanh.f32 %v2357_v4  ;;  %v7120_v14 = vstv %s7113_s29  ;;  %v2363_v62 = vmul.f32 0.5, %v2347_v34  ;;  %v9371_v1 = vld [vmem:[#allocation148_spill] sm:$0xff]  ;;  %v9373_v54 = vld [vmem:[#allocation174_spill] sm:$0xff] }
 0x2c7   :  { %v2364_v35 = vmul.f32 0.5, %v2348_v44  ;;  %v2365_v40 = vmul.f32 0.5, %v2349_v57  ;;  %3161 = vtanh.f32 %v2358_v17  ;;  %v2366_v20 = vmul.f32 0.5, %v2350_v31  ;;  %v9375_v34 = vld [vmem:[#allocation196_spill] sm:$0xff]  ;;  %v9377_v44 = vld [vmem:[#allocation181_spill] sm:$0xff] }
 0x2c8   :  { %v2367_v50 = vmul.f32 0.5, %v2351_v28  ;;  %v2368_v59 = vmul.f32 0.5, %v2352_v10  ;;  %3163 = vtanh.f32 %v2359_v42  ;;  %v2369_v55 = vmul.f32 0.5, %v2353_v18  ;;  %v9379_v31 = vld [vmem:[#allocation184_spill] sm:$0xff]  ;;  %v9381_v28 = vld [vmem:[#allocation125_spill] sm:$0xff]  ;;  %v9382_v18 = vld [vmem:[#allocation142_spill] sm:$0xff] }
 0x2c9   :  { %v2370_v16 = vmul.f32 0.5, %v2354_v11  ;;  %v7122_v5 = vmul.f32 0.5, %v2355_v45  ;;  %3165 = vtanh.f32 %v2360_v52  ;;  %v7125_v6 = vmul.f32 %v2420_v60, %v9360_v27  ;;  %v9383_v11 = vld [vmem:[#allocation152_spill] sm:$0xff]  ;;  %v9384_v52 = vld [vmem:[#allocation134_spill] sm:$0xff] }
 0x2ca   :  { %3167 = vtanh.f32 %v2361_v32  ;;  %v7128_v47 = vmul.f32 %v2420_v60, %v9361_v56  ;;  %v7131_v8 = vmul.f32 %v2420_v60, %v9362_v29  ;;  %v7134_v26 = vmul.f32 %v2420_v60, %v9363_v22  ;;  %v9388_v56 = vld [vmem:[#allocation188_spill] sm:$0xff] }
 0x2cb   :  { %3169 = vtanh.f32 %v2362_v19  ;;  %v7137_v23 = vmul.f32 %v2420_v60, %v9364_v12  ;;  %v7140_v37 = vmul.f32 %v2420_v60, %v9365_v25  ;;  %v7143_v38 = vmul.f32 %v2420_v60, %v9366_v3  ;;  %v9390_v12 = vld [vmem:[#allocation189_spill] sm:$0xff] }
 0x2cc   :  { %3171 = vtanh.f32 %v2363_v62  ;;  %v7146_v63 = vmul.f32 %v2420_v60, %v9367_v61  ;;  %v7149_v33 = vmul.f32 %v2420_v60, %v9368_v30  ;;  %v7152_v49 = vmul.f32 %v2420_v60, %v9369_v15  ;;  %v9386_v62 = vld [vmem:[#allocation157_spill] sm:$0xff]  ;;  %v9393_v15 = vld [vmem:[#allocation178_spill] sm:$0xff] }
 0x2cd   :  { %3173 = vtanh.f32 %v2364_v35  ;;  %v7155_v43 = vmul.f32 %v2420_v60, %v9370_v39  ;;  %v7158_v21 = vmul.f32 %v2420_v60, %v9371_v1  ;;  %v7161_v46 = vmul.f32 %v2420_v60, %v9373_v54  ;;  %v9391_v61 = vld [vmem:[#allocation205_spill] sm:$0xff]  ;;  %v9395_v1 = vld [vmem:[#allocation190_spill] sm:$0xff] }
 0x2ce   :  { %3175 = vtanh.f32 %v2365_v40  ;;  %v7164_v4 = vmul.f32 %v2420_v60, %v9375_v34  ;;  %v7167_v57 = vmul.f32 %v2420_v60, %v9377_v44  ;;  %v7170_v17 = vmul.f32 %v2420_v60, %v9379_v31  ;;  %v9385_v60 = vld [vmem:[#allocation135_spill] sm:$0xff]  ;;  %v9397_v44 = vld [vmem:[#allocation198_spill] sm:$0xff] }
 0x2cf   :  { %9372 = vst [vmem:[#allocation83_spill] sm:$0xff] %v7158_v21  ;;  %9374 = vst [vmem:[#allocation84_spill] sm:$0xff] %v7161_v46  ;;  %v2438_v10 = vmul.f32 %v7117_v0, %v9381_v28  ;;  %v7176_v42 = vmul.f32 %v7117_v0, %v9382_v18  ;;  %v7180_v45 = vmul.f32 %v7117_v0, %v9383_v11  ;;  %3177 = vtanh.f32 %v2366_v20  ;;  %v9387_v40 = vld [vmem:[#allocation171_spill] sm:$0xff]  ;;  %v9433_v21 = vld [vmem:[#allocation26_spill] sm:$0xff] }
 0x2d0   :  { %9376 = vst [vmem:[#allocation85_spill] sm:$0xff] %v7164_v4  ;;  %9378 = vst [vmem:[#allocation86_spill] sm:$0xff] %v7167_v57  ;;  %v7186_v32 = vmul.f32 %v7117_v0, %v9384_v52  ;;  %v7190_v19 = vmul.f32 %v7117_v0, %v9385_v60  ;;  %v7194_v35 = vmul.f32 %v7117_v0, %v9386_v62  ;;  %v9389_v20 = vld [vmem:[#allocation151_spill] sm:$0xff]  ;;  %3179 = vtanh.f32 %v2367_v50  ;;  %v9403_v52 = vld [vmem:[#allocation161_spill] sm:$0xff] }
 0x2d1   :  { %9380 = vst [vmem:[#allocation34_spill] sm:$0xff] %v7170_v17  ;;  %v7198_v27 = vmul.f32 %v7117_v0, %v9387_v40  ;;  %v7202_v29 = vmul.f32 %v7117_v0, %v9388_v56  ;;  %v7206_v22 = vmul.f32 %v7117_v0, %v9389_v20  ;;  %v7210_v25 = vmul.f32 %v7117_v0, %v9390_v12  ;;  %v9399_v28 = vld [vmem:[#allocation191_spill] sm:$0xff]  ;;  %v9404_v40 = vld [vmem:[#allocation124_spill] sm:$0xff]  ;;  %v9405_v20 = vld [vmem:[#allocation149_spill] sm:$0xff] }
 0x2d2   :  { %v3158_v3 = vpop.eup %3157  ;;  %v7214_v30 = vmul.f32 %v7117_v0, %v9391_v61  ;;  %v7218_v39 = vmul.f32 %v7117_v0, %v9393_v15  ;;  %v7222_v54 = vmul.f32 %v7117_v0, %v9395_v1  ;;  %v7226_v31 = vmul.f32 %v7117_v0, %v9397_v44  ;;  %v9401_v18 = vld [vmem:[#allocation199_spill] sm:$0xff]  ;;  %v9407_v44 = vld [vmem:[#allocation204_spill] sm:$0xff]  ;;  %v9415_v57 = vld [vmem:[#allocation182_spill] sm:$0xff] }
 0x2d3   :  { %v3160_v34 = vpop.eup %3159  ;;  %v7230_v50 = vmul.f32 %v7117_v0, %v9399_v28  ;;  %v7234_v11 = vmul.f32 %v7117_v0, %v9401_v18  ;;  %v7238_v60 = vmul.f32 %v7120_v14, %v9403_v52  ;;  %3181 = vtanh.f32 %v2368_v59  ;;  %v9406_v61 = vld [vmem:[#allocation131_spill] sm:$0xff]  ;;  %v9408_v18 = vld [vmem:[#allocation132_spill] sm:$0xff]  ;;  %v9409_v52 = vld [vmem:[#allocation166_spill] sm:$0xff] }
 0x2d4   :  { %9392 = vst [vmem:[#allocation35_spill] sm:$0xff] %v7214_v30  ;;  %9394 = vst [vmem:[#allocation36_spill] sm:$0xff] %v7218_v39  ;;  %v3162_v62 = vpop.eup %3161  ;;  %v7242_v56 = vmul.f32 %v7120_v14, %v9404_v40  ;;  %v7246_v12 = vmul.f32 %v7120_v14, %v9405_v20  ;;  %v7250_v15 = vmul.f32 %v7120_v14, %v9406_v61  ;;  %v2388_v1 = vmul.f32 0.5, %v3158_v3  ;;  %v9411_v61 = vld [vmem:[#allocation195_spill] sm:$0xff]  ;;  %v9413_v3 = vld [vmem:[#allocation206_spill] sm:$0xff] }
 0x2d5   :  { %9396 = vst [vmem:[#allocation87_spill] sm:$0xff] %v7222_v54  ;;  %9398 = vst [vmem:[#allocation37_spill] sm:$0xff] %v7226_v31  ;;  %v3164_v0 = vpop.eup %3163  ;;  %v7254_v28 = vmul.f32 %v7120_v14, %v9407_v44  ;;  %v7258_v59 = vmul.f32 %v7120_v14, %v9408_v18  ;;  %v7262_v40 = vmul.f32 %v7120_v14, %v9409_v52  ;;  %3183 = vtanh.f32 %v2369_v55  ;;  %v9417_v52 = vld [vmem:[#allocation218_spill] sm:$0xff]  ;;  %v9422_v46 = vld [vmem:[#allocation219_spill] sm:$0xff] }
 0x2d6   :  { %9400 = vst [vmem:[#allocation38_spill] sm:$0xff] %v7230_v50  ;;  %9402 = vst [vmem:[#allocation39_spill] sm:$0xff] %v7234_v11  ;;  %v3166_v20 = vpop.eup %3165  ;;  %v2389_v11 = vmul.f32 0.5, %v3160_v34  ;;  %v7266_v17 = vmul.f32 %v7120_v14, %v9411_v61  ;;  %v7270_v44 = vmul.f32 %v7120_v14, %v9413_v3  ;;  %3185 = vtanh.f32 %v2370_v16  ;;  %v9419_v61 = vld [vmem:[#allocation211_spill] sm:$0xff] }
 0x2d7   :  { %9410 = vst [vmem:[#allocation40_spill] sm:$0xff] %v7262_v40  ;;  %v3168_v50 = vpop.eup %3167  ;;  %v2390_v18 = vmul.f32 0.5, %v3162_v62  ;;  %v7274_v31 = vmul.f32 %v7120_v14, %v9415_v57  ;;  %v7278_v4 = vmul.f32 %v7120_v14, %v9417_v52  ;;  %3187 = vtanh.f32 %v7122_v5 }
 0x2d8   :  { %9412 = vst [vmem:[#allocation41_spill] sm:$0xff] %v7266_v17  ;;  %9414 = vst [vmem:[#allocation42_spill] sm:$0xff] %v7270_v44  ;;  %v3170_v55 = vpop.eup %3169  ;;  %v2391_v34 = vmul.f32 0.5, %v3164_v0  ;;  %v7283_v54 = vmul.f32 %v7120_v14, %v9419_v61  ;;  %v2471_v3 = vstv %s7182_s30  ;;  %v2392_v16 = vmul.f32 0.5, %v3166_v20  ;;  %v9427_v17 = vld [vmem:[#allocation80_spill] sm:$0xff] }
 0x2d9   :  { %9416 = vst [vmem:[#allocation43_spill] sm:$0xff] %v7274_v31  ;;  %9418 = vst [vmem:[#allocation44_spill] sm:$0xff] %v7278_v4  ;;  %v3172_v44 = vpop.eup %3171  ;;  %v7286_v62 = vadd.f32 0.5, %v2388_v1  ;;  %v7290_v57 = vmul.f32 %v7120_v14, %v9422_v46  ;;  %v9424_v31 = vld [vmem:[#allocation79_spill] sm:$0xff]  ;;  %v2393_v5 = vmul.f32 0.5, %v3168_v50  ;;  %v7296_v0 = vadd.f32 0.5, %v2389_v11 }
 0x2da   :  { %9420 = vst [vmem:[#allocation45_spill] sm:$0xff] %v7283_v54  ;;  %v7294_v52 = vmul.f32 %v7120_v14, %v9424_v31  ;;  %v3174_v4 = vpop.eup %3173  ;;  %v7300_v61 = vmul.f32 %v7120_v14, %v9427_v17  ;;  %v9429_v54 = vld [vmem:[#allocation81_spill] sm:$0xff]  ;;  %v7306_v46 = vadd.f32 0.5, %v2390_v18  ;;  %v2488_v31 = vadd.f32 %v2438_v10, %v7125_v6  ;;  %v9432_v11 = vld [vmem:[#allocation24_spill] sm:$0xff] }
 0x2db   :  { %9421 = vst [vmem:[#allocation46_spill] sm:$0xff] %v7286_v62  ;;  %9423 = vst [vmem:[#allocation47_spill] sm:$0xff] %v7290_v57  ;;  %v7304_v1 = vmul.f32 %v7120_v14, %v9429_v54  ;;  %v3176_v20 = vpop.eup %3175  ;;  %v2394_v62 = vmul.f32 0.5, %v3170_v55  ;;  %v9431_v57 = vld [vmem:[#allocation23_spill] sm:$0xff]  ;;  %v7310_v50 = vadd.f32 0.5, %v2391_v34  ;;  %v2474_v17 = vmul.f32 %v2471_v3, %v9433_v21  ;;  %v9434_v14 = vld [vmem:[#allocation28_spill] sm:$0xff] }
 0x2dc   :  { %9425 = vst [vmem:[#allocation48_spill] sm:$0xff] %v7294_v52  ;;  %9426 = vst [vmem:[#allocation49_spill] sm:$0xff] %v7296_v0  ;;  %v2472_v39 = vmul.f32 %v2471_v3, %v9431_v57  ;;  %v2395_v52 = vmul.f32 0.5, %v3172_v44  ;;  %v2473_v0 = vmul.f32 %v2471_v3, %v9432_v11  ;;  %v2396_v40 = vmul.f32 0.5, %v3174_v4 }
 0x2dd   :  { %9428 = vst [vmem:[#allocation50_spill] sm:$0xff] %v7300_v61  ;;  %9430 = vst [vmem:[#allocation51_spill] sm:$0xff] %v7306_v46  ;;  %v3178_v61 = vpop.eup %3177  ;;  %v7314_v30 = vadd.f32 0.5, %v2392_v16  ;;  %v2475_v54 = vmul.f32 %v2471_v3, %v9434_v14  ;;  %v2476_v18 = vmul.f32 %v2471_v3, %v7002_v48  ;;  %v2397_v55 = vmul.f32 0.5, %v3176_v20 }
 0x2de   :  { %v7318_v46 = vadd.f32 0.5, %v2393_v5  ;;  %v2477_v6 = vmul.f32 %v2471_v3, %v7008_v2  ;;  %v2478_v10 = vmul.f32 %v2471_v3, %v7012_v7  ;;  %v3180_v44 = vpop.eup %3179  ;;  %v7322_v34 = vadd.f32 0.5, %v2394_v62 }
 0x2df   :  { %v2479_v21 = vmul.f32 %v2471_v3, %v7018_v41  ;;  %v2480_v4 = vmul.f32 %v2471_v3, %v7020_v58  ;;  %v2481_v16 = vmul.f32 %v2471_v3, %v7024_v13  ;;  %v7329_v57 = vmul.f32 0.5, %v3178_v61 }
 0x2e0   :  { %v7331_v48 = vadd.f32 0.5, %v2395_v52  ;;  %v2482_v5 = vmul.f32 %v2471_v3, %v7030_v9  ;;  %v2483_v2 = vmul.f32 %v2471_v3, %v7032_v53  ;;  %v3182_v7 = vpop.eup %3181  ;;  %v7335_v20 = vadd.f32 0.5, %v2396_v40  ;;  %v9435_v40 = vld [vmem:[#allocation33_spill] sm:$0xff] }
 0x2e1   :  { %v2484_v62 = vmul.f32 %v2471_v3, %v7036_v36  ;;  %v2485_v41 = vmul.f32 %v2471_v3, %v7046_v51  ;;  %v2504_v58 = vadd.f32 %v2472_v39, %v7238_v60  ;;  %v7340_v13 = vmul.f32 0.5, %v3180_v44  ;;  %v9445_v44 = vld [vmem:[#allocation37_spill] sm:$0xff] }
 0x2e2   :  { %v7342_v11 = vadd.f32 0.5, %v2397_v55  ;;  %v2489_v52 = vadd.f32 %v7176_v42, %v7128_v47  ;;  %v2505_v9 = vadd.f32 %v2473_v0, %v7242_v56  ;;  %v7347_v61 = vpop.eup %3183  ;;  %v2486_v53 = vmul.f32 %v2471_v3, %v7054_v24  ;;  %v9437_v0 = vld [vmem:[#allocation40_spill] sm:$0xff]  ;;  %v9443_v55 = vld [vmem:[#allocation42_spill] sm:$0xff] }
 0x2e3   :  { %v2487_v14 = vmul.f32 %v2471_v3, %v9435_v40  ;;  %v2490_v36 = vadd.f32 %v7180_v45, %v7131_v8  ;;  %v2506_v51 = vadd.f32 %v2474_v17, %v7246_v12  ;;  %v7354_v39 = vpop.eup %3185  ;;  %v7356_v60 = vmul.f32 0.5, %v3182_v7  ;;  %v9446_v7 = vld [vmem:[#allocation43_spill] sm:$0xff]  ;;  %v9448_v40 = vld [vmem:[#allocation38_spill] sm:$0xff] }
 0x2e4   :  { %v2491_v47 = vadd.f32 %v7186_v32, %v7134_v26  ;;  %v2492_v42 = vadd.f32 %v7190_v19, %v7137_v23  ;;  %v2507_v56 = vadd.f32 %v2475_v54, %v7250_v15  ;;  %v7363_v24 = vpop.eup %3187  ;;  %v2493_v8 = vadd.f32 %v7194_v35, %v7140_v37  ;;  %v9436_v37 = vld [vmem:[#allocation35_spill] sm:$0xff]  ;;  %v9440_v54 = vld [vmem:[#allocation41_spill] sm:$0xff] }
 0x2e5   :  { %v2494_v45 = vadd.f32 %v7198_v27, %v7143_v38  ;;  %v2508_v12 = vadd.f32 %v2476_v18, %v7254_v28  ;;  %v2520_v3 = vadd.f32 %v2504_v58, %v2488_v31  ;;  %v2495_v26 = vadd.f32 %v7202_v29, %v7146_v63  ;;  %v9438_v28 = vld [vmem:[#allocation83_spill] sm:$0xff]  ;;  %v9439_v31 = vld [vmem:[#allocation36_spill] sm:$0xff] }
 0x2e6   :  { %v2496_v23 = vadd.f32 %v7206_v22, %v7149_v33  ;;  %v2509_v32 = vadd.f32 %v2477_v6, %v7258_v59  ;;  %v2521_v19 = vadd.f32 %v2505_v9, %v2489_v52  ;;  %v2497_v15 = vadd.f32 %v7210_v25, %v7152_v49  ;;  %v9441_v33 = vld [vmem:[#allocation84_spill] sm:$0xff]  ;;  %v9442_v22 = vld [vmem:[#allocation87_spill] sm:$0xff] }
 0x2e7   :  { %v2498_v35 = vadd.f32 %v9436_v37, %v7155_v43  ;;  %v2510_v38 = vadd.f32 %v2478_v10, %v9437_v0  ;;  %v2522_v27 = vadd.f32 %v2506_v51, %v2490_v36  ;;  %v2499_v17 = vadd.f32 %v9439_v31, %v9438_v28  ;;  %v9444_v43 = vld [vmem:[#allocation85_spill] sm:$0xff]  ;;  %v9449_v51 = vld [vmem:[#allocation44_spill] sm:$0xff] }
 0x2e8   :  { %v2511_v63 = vadd.f32 %v2479_v21, %v9440_v54  ;;  %v2523_v29 = vadd.f32 %v2507_v56, %v2491_v47  ;;  %v7384_v18 = vstv %s7327_s4  ;;  %v2500_v59 = vadd.f32 %v9442_v22, %v9441_v33  ;;  %v9447_v21 = vld [vmem:[#allocation86_spill] sm:$0xff]  ;;  %v9454_v33 = vld [vmem:[#allocation48_spill] sm:$0xff] }
 0x2e9   :  { %v2512_v6 = vadd.f32 %v2480_v4, %v9443_v55  ;;  %v2524_v49 = vadd.f32 %v2508_v12, %v2492_v42  ;;  %v2537_v25 = vadd.f32 %v7384_v18, %v2520_v3  ;;  %v2501_v10 = vadd.f32 %v9445_v44, %v9444_v43  ;;  %v9450_v4 = vld [vmem:[#allocation34_spill] sm:$0xff]  ;;  %v9451_v42 = vld [vmem:[#allocation39_spill] sm:$0xff]  ;;  %v9452_v3 = vld [vmem:[#allocation45_spill] sm:$0xff] }
 0x2ea   :  { %v2513_v58 = vadd.f32 %v2481_v16, %v9446_v7  ;;  %v2525_v52 = vadd.f32 %v2509_v32, %v2493_v8  ;;  %v2538_v9 = vadd.f32 %v7384_v18, %v2521_v19  ;;  %v2502_v36 = vadd.f32 %v9448_v40, %v9447_v21  ;;  %v9453_v16 = vld [vmem:[#allocation47_spill] sm:$0xff] }
 0x2eb   :  { %v2514_v47 = vadd.f32 %v2482_v5, %v9449_v51  ;;  %v2526_v56 = vadd.f32 %v2510_v38, %v2494_v45  ;;  %v2539_v37 = vadd.f32 %v7384_v18, %v2522_v27  ;;  %v2503_v12 = vadd.f32 %v9451_v42, %v9450_v4  ;;  %v9455_v27 = vld [vmem:[#allocation50_spill] sm:$0xff] }
 0x2ec   :  { %v2515_v0 = vadd.f32 %v2483_v2, %v9452_v3  ;;  %v2527_v28 = vadd.f32 %v2511_v63, %v2495_v26  ;;  %v2540_v31 = vadd.f32 %v7384_v18, %v2523_v29  ;;  %v2516_v8 = vadd.f32 %v2484_v62, %v9453_v16  ;;  %v9457_v16 = vld [vmem:[#allocation49_spill] sm:$0xff] }
 0x2ed   :  { %v2528_v32 = vadd.f32 %v2512_v6, %v2496_v23  ;;  %v2541_v19 = vadd.f32 %v7384_v18, %v2524_v49  ;;  %v2553_v54 = vmul.f32 0.5, %v2537_v25  ;;  %v2517_v22 = vadd.f32 %v2485_v41, %v9454_v33 }
 0x2ee   :  { %v2529_v5 = vadd.f32 %v2513_v58, %v2497_v15  ;;  %v2542_v45 = vadd.f32 %v7384_v18, %v2525_v52  ;;  %v2554_v38 = vmul.f32 0.5, %v2538_v9  ;;  %v2518_v55 = vadd.f32 %v2486_v53, %v9455_v27 }
 0x2ef   :  { %v2530_v43 = vadd.f32 %v2514_v47, %v2498_v35  ;;  %v2543_v2 = vadd.f32 %v7384_v18, %v2526_v56  ;;  %v2555_v26 = vmul.f32 0.5, %v2539_v37  ;;  %v2519_v63 = vadd.f32 %v2487_v14, %v7304_v1 }
 0x2f0   :  { %v2531_v29 = vadd.f32 %v2515_v0, %v2499_v17  ;;  %v2544_v62 = vadd.f32 %v7384_v18, %v2527_v28  ;;  %v2556_v23 = vmul.f32 0.5, %v2540_v31  ;;  %v2532_v6 = vadd.f32 %v2516_v8, %v2500_v59 }
 0x2f1   :  { %v2545_v41 = vadd.f32 %v7384_v18, %v2528_v32  ;;  %v2557_v15 = vmul.f32 0.5, %v2541_v19  ;;  %3189 = vtanh.f32 %v2553_v54  ;;  %v2533_v49 = vadd.f32 %v2517_v22, %v2501_v10  ;;  %v9458_v32 = vld [vmem:[#allocation51_spill] sm:$0xff] }
 0x2f2   :  { %v2546_v53 = vadd.f32 %v7384_v18, %v2529_v5  ;;  %v2558_v35 = vmul.f32 0.5, %v2542_v45  ;;  %3191 = vtanh.f32 %v2554_v38  ;;  %v2534_v25 = vadd.f32 %v2518_v55, %v2502_v36 }
 0x2f3   :  { %v2547_v44 = vadd.f32 %v7384_v18, %v2530_v43  ;;  %v2559_v1 = vmul.f32 0.5, %v2543_v2  ;;  %3193 = vtanh.f32 %v2555_v26  ;;  %v2535_v14 = vadd.f32 %v2519_v63, %v2503_v12 }
 0x2f4   :  { %v2548_v17 = vadd.f32 %v7384_v18, %v2531_v29  ;;  %v2560_v59 = vmul.f32 0.5, %v2544_v62  ;;  %3195 = vtanh.f32 %v2556_v23  ;;  %v2401_v7 = vmul.f32 0.5, %v7347_v61 }
 0x2f5   :  { %v2549_v10 = vadd.f32 %v7384_v18, %v2532_v6  ;;  %v2561_v58 = vmul.f32 0.5, %v2545_v41  ;;  %3197 = vtanh.f32 %v2557_v15  ;;  %v2402_v52 = vmul.f32 0.5, %v7354_v39 }
 0x2f6   :  { %v2550_v9 = vadd.f32 %v7384_v18, %v2533_v49  ;;  %v2562_v21 = vmul.f32 0.5, %v2546_v53  ;;  %3199 = vtanh.f32 %v2558_v35  ;;  %v2403_v40 = vmul.f32 0.5, %v7363_v24 }
 0x2f7   :  { %v2551_v36 = vadd.f32 %v7384_v18, %v2534_v25  ;;  %v2563_v51 = vmul.f32 0.5, %v2547_v44  ;;  %3201 = vtanh.f32 %v2559_v1  ;;  %v2414_v47 = vadd.f32 0.5, %v7329_v57 }
 0x2f8   :  { %v2552_v61 = vadd.f32 %v7384_v18, %v2535_v14  ;;  %v2564_v56 = vmul.f32 0.5, %v2548_v17  ;;  %3203 = vtanh.f32 %v2560_v59  ;;  %v2415_v37 = vadd.f32 0.5, %v7340_v13  ;;  %v9456_v18 = vld [vmem:[#allocation46_spill] sm:$0xff] }
 0x2f9   :  { %v2565_v39 = vmul.f32 0.5, %v2549_v10  ;;  %3205 = vtanh.f32 %v2561_v58  ;;  %v2617_v4 = vstv %s7410_s21  ;;  %v2416_v42 = vadd.f32 0.5, %v7356_v60 }
 0x2fa   :  { %v2417_v12 = vadd.f32 0.5, %v2401_v7  ;;  %v2566_v24 = vmul.f32 0.5, %v2550_v9  ;;  %3207 = vtanh.f32 %v2562_v21  ;;  %v2418_v3 = vadd.f32 0.5, %v2402_v52 }
 0x2fb   :  { %v2419_v0 = vadd.f32 0.5, %v2403_v40  ;;  %v2567_v28 = vmul.f32 0.5, %v2551_v36  ;;  %3209 = vtanh.f32 %v2563_v51  ;;  %v2568_v57 = vmul.f32 0.5, %v2552_v61 }
 0x2fc   :  { %3211 = vtanh.f32 %v2564_v56  ;;  %v2618_v31 = vmul.f32 %v2617_v4, %v9456_v18  ;;  %v7433_v13 = vstv %s7415_s22  ;;  %v2619_v8 = vmul.f32 %v2617_v4, %v9457_v16 }
 0x2fd   :  { %3213 = vtanh.f32 %v2565_v39  ;;  %v2620_v60 = vmul.f32 %v2617_v4, %v9458_v32  ;;  %v2621_v19 = vmul.f32 %v2617_v4, %v7310_v50  ;;  %v2622_v33 = vmul.f32 %v2617_v4, %v7314_v30 }
 0x2fe   :  { %v3190_v54 = vpop.eup %3189  ;;  %3215 = vtanh.f32 %v2566_v24  ;;  %v2623_v22 = vmul.f32 %v2617_v4, %v7318_v46  ;;  %v7441_v5 = vmul.f32 %v2617_v4, %v7322_v34  ;;  %v7444_v27 = vmul.f32 %v2617_v4, %v7331_v48 }
 0x2ff   :  { %v3192_v45 = vpop.eup %3191  ;;  %3217 = vtanh.f32 %v2567_v28  ;;  %v2585_v38 = vmul.f32 0.5, %v3190_v54  ;;  %v7447_v55 = vmul.f32 %v2617_v4, %v7335_v20  ;;  %v7450_v2 = vmul.f32 %v2617_v4, %v7342_v11 }
 0x300   :  { %v3194_v43 = vpop.eup %3193  ;;  %3219 = vtanh.f32 %v2568_v57  ;;  %v2586_v50 = vmul.f32 0.5, %v3192_v45  ;;  %v7452_v30 = vmul.f32 %v2617_v4, %v2414_v47  ;;  %v7454_v63 = vmul.f32 %v2617_v4, %v2415_v37 }
 0x301   :  { %v3196_v46 = vpop.eup %3195  ;;  %v2587_v34 = vmul.f32 0.5, %v3194_v43  ;;  %v2601_v26 = vadd.f32 0.5, %v2585_v38  ;;  %v7456_v29 = vmul.f32 %v2617_v4, %v2416_v42  ;;  %v7458_v23 = vmul.f32 %v2617_v4, %v2417_v12 }
 0x302   :  { %v3198_v48 = vpop.eup %3197  ;;  %v2588_v62 = vmul.f32 0.5, %v3196_v46  ;;  %v2602_v20 = vadd.f32 0.5, %v2586_v50  ;;  %v7460_v6 = vmul.f32 %v2617_v4, %v2418_v3  ;;  %v7462_v49 = vmul.f32 %v2617_v4, %v2419_v0 }
 0x303   :  { %v3200_v41 = vpop.eup %3199  ;;  %v2589_v11 = vmul.f32 0.5, %v3198_v48  ;;  %v2603_v15 = vadd.f32 0.5, %v2587_v34  ;;  %v2635_v53 = vmul.f32 %v7433_v13, %v2601_v26  ;;  %v7467_v14 = vstv %s7429_s23 }
 0x304   :  { %v3202_v35 = vpop.eup %3201  ;;  %v2590_v25 = vmul.f32 0.5, %v3200_v41  ;;  %v2604_v44 = vadd.f32 0.5, %v2588_v62  ;;  %v2636_v1 = vmul.f32 %v7433_v13, %v2602_v20 }
 0x305   :  { %v3204_v17 = vpop.eup %3203  ;;  %v2591_v59 = vmul.f32 0.5, %v3202_v35  ;;  %v2605_v7 = vadd.f32 0.5, %v2589_v11  ;;  %v2637_v10 = vmul.f32 %v7433_v13, %v2603_v15  ;;  %v2651_v58 = vadd.f32 %v2635_v53, %v2618_v31 }
 0x306   :  { %v3206_v52 = vpop.eup %3205  ;;  %v2592_v9 = vmul.f32 0.5, %v3204_v17  ;;  %v2606_v21 = vadd.f32 0.5, %v2590_v25  ;;  %v2638_v40 = vmul.f32 %v7433_v13, %v2604_v44  ;;  %v2652_v36 = vadd.f32 %v2636_v1, %v2619_v8 }
 0x307   :  { %v3208_v51 = vpop.eup %3207  ;;  %v2593_v47 = vmul.f32 0.5, %v3206_v52  ;;  %v2607_v61 = vadd.f32 0.5, %v2591_v59  ;;  %v2639_v56 = vmul.f32 %v7433_v13, %v2605_v7  ;;  %v2653_v37 = vadd.f32 %v2637_v10, %v2620_v60 }
 0x308   :  { %v3210_v39 = vpop.eup %3209  ;;  %v2594_v4 = vmul.f32 0.5, %v3208_v51  ;;  %v2608_v42 = vadd.f32 0.5, %v2592_v9  ;;  %v2640_v12 = vmul.f32 %v7433_v13, %v2606_v21  ;;  %v2654_v24 = vadd.f32 %v2638_v40, %v2621_v19 }
 0x309   :  { %v3212_v3 = vpop.eup %3211  ;;  %v2595_v0 = vmul.f32 0.5, %v3210_v39  ;;  %v2609_v28 = vadd.f32 0.5, %v2593_v47  ;;  %v2641_v57 = vmul.f32 %v7433_v13, %v2607_v61  ;;  %v2655_v18 = vadd.f32 %v2639_v56, %v2622_v33 }
 0x30a   :  { %v3214_v31 = vpop.eup %3213  ;;  %v2596_v16 = vmul.f32 0.5, %v3212_v3  ;;  %v2610_v8 = vadd.f32 0.5, %v2594_v4  ;;  %v2642_v32 = vmul.f32 %v7433_v13, %v2608_v42  ;;  %v2656_v54 = vadd.f32 %v2640_v12, %v2623_v22 }
 0x30b   :  { %v3216_v45 = vpop.eup %3215  ;;  %v2597_v60 = vmul.f32 0.5, %v3214_v31  ;;  %v2611_v38 = vadd.f32 0.5, %v2595_v0  ;;  %v2643_v43 = vmul.f32 %v7433_v13, %v2609_v28  ;;  %v2657_v50 = vadd.f32 %v2641_v57, %v7441_v5 }
 0x30c   :  { %v3218_v19 = vpop.eup %3217  ;;  %v2598_v46 = vmul.f32 0.5, %v3216_v45  ;;  %v2612_v34 = vadd.f32 0.5, %v2596_v16  ;;  %v2644_v26 = vmul.f32 %v7433_v13, %v2610_v8  ;;  %v2658_v33 = vadd.f32 %v2642_v32, %v7444_v27 }
 0x30d   :  { %v3220_v48 = vpop.eup %3219  ;;  %v2599_v62 = vmul.f32 0.5, %v3218_v19  ;;  %v2613_v20 = vadd.f32 0.5, %v2597_v60  ;;  %v2645_v41 = vmul.f32 %v7433_v13, %v2611_v38  ;;  %v2659_v22 = vadd.f32 %v2643_v43, %v7447_v55 }
 0x30e   :  { %v2600_v11 = vmul.f32 0.5, %v3220_v48  ;;  %v2614_v15 = vadd.f32 0.5, %v2598_v46  ;;  %v2646_v53 = vmul.f32 %v7433_v13, %v2612_v34  ;;  %v2660_v5 = vadd.f32 %v2644_v26, %v7450_v2 }
 0x30f   :  { %v2615_v35 = vadd.f32 0.5, %v2599_v62  ;;  %v2647_v25 = vmul.f32 %v7433_v13, %v2613_v20  ;;  %v2661_v44 = vadd.f32 %v2645_v41, %v7452_v30  ;;  %v2668_v27 = vadd.f32 %v7467_v14, %v2651_v58 }
 0x310   :  { %v2616_v1 = vadd.f32 0.5, %v2600_v11  ;;  %v2648_v17 = vmul.f32 %v7433_v13, %v2614_v15  ;;  %v2662_v59 = vadd.f32 %v2646_v53, %v7454_v63  ;;  %v2669_v55 = vadd.f32 %v7467_v14, %v2652_v36 }
 0x311   :  { %v2649_v7 = vmul.f32 %v7433_v13, %v2615_v35  ;;  %v2663_v10 = vadd.f32 %v2647_v25, %v7456_v29  ;;  %v2670_v2 = vadd.f32 %v7467_v14, %v2653_v37  ;;  %v2671_v52 = vadd.f32 %v7467_v14, %v2654_v24  ;;  %2686 = vst [vmem:[%s7560_s3] sm:$0xff] %v2668_v27 }
 0x312   :  { %v2650_v30 = vmul.f32 %v7433_v13, %v2616_v1  ;;  %v2664_v58 = vadd.f32 %v2648_v17, %v7458_v23  ;;  %v2672_v63 = vadd.f32 %v7467_v14, %v2655_v18  ;;  %v2673_v9 = vadd.f32 %v7467_v14, %v2656_v54  ;;  %2687 = vst [vmem:[%s7560_s3 + $0x8] sm:$0xff] %v2669_v55 }
 0x313   :  { %v2665_v29 = vadd.f32 %v2649_v7, %v7460_v6  ;;  %v2674_v21 = vadd.f32 %v7467_v14, %v2657_v50  ;;  %v2675_v40 = vadd.f32 %v7467_v14, %v2658_v33  ;;  %v2676_v36 = vadd.f32 %v7467_v14, %v2659_v22  ;;  %2688 = vst [vmem:[%s7560_s3 + $0x10] sm:$0xff] %v2670_v2 }
 0x314   :  { %2689 = vst [vmem:[%s7560_s3 + $0x18] sm:$0xff] %v2671_v52  ;;  %v2666_v13 = vadd.f32 %v2650_v30, %v7462_v49  ;;  %v2677_v23 = vadd.f32 %v7467_v14, %v2660_v5  ;;  %v2678_v6 = vadd.f32 %v7467_v14, %v2661_v44  ;;  %v2679_v51 = vadd.f32 %v7467_v14, %v2662_v59 }
 0x315   :  { %2690 = vst [vmem:[%s7560_s3 + $0x20] sm:$0xff] %v2672_v63  ;;  %2691 = vst [vmem:[%s7560_s3 + $0x28] sm:$0xff] %v2673_v9  ;;  %v2680_v47 = vadd.f32 %v7467_v14, %v2663_v10  ;;  %v2681_v61 = vadd.f32 %v7467_v14, %v2664_v58  ;;  %v2682_v49 = vadd.f32 %v7467_v14, %v2665_v29 }
 0x316   :  { %2692 = vst [vmem:[%s7560_s3 + $0x30] sm:$0xff] %v2674_v21  ;;  %2693 = vst [vmem:[%s7560_s3 + $0x38] sm:$0xff] %v2675_v40  ;;  %v2683_v56 = vadd.f32 %v7467_v14, %v2666_v13 }
 0x317   :  { %2694 = vst [vmem:[%s7560_s3 + $0x40] sm:$0xff] %v2676_v36  ;;  %2695 = vst [vmem:[%s7560_s3 + $0x48] sm:$0xff] %v2677_v23 }
 0x318   :  { %2696 = vst [vmem:[%s7560_s3 + $0x50] sm:$0xff] %v2678_v6  ;;  %2697 = vst [vmem:[%s7560_s3 + $0x58] sm:$0xff] %v2679_v51 }
 0x319   :  { %2698 = vst [vmem:[%s7560_s3 + $0x60] sm:$0xff] %v2680_v47  ;;  %2699 = vst [vmem:[%s7560_s3 + $0x68] sm:$0xff] %v2681_v61 }
 0x31a   :  { %2700 = vst [vmem:[%s7560_s3 + $0x70] sm:$0xff] %v2682_v49  ;;  %2701 = vst [vmem:[%s7560_s3 + $0x78] sm:$0xff] %v2683_v56 }
 0x31b   :  { %2706 = vsyncpa [#allocation3], 1 }
 0x31c   :  { %2707 = vsyncpa [#allocation5], 1 }

</bundles_post_ra>
